<compile_context>
chip_gen: v7x
topology: tpu7x:2x2x1
jax: 0.10.0
libtpu: 0.0.40
codegen_flags: <defaults>
</compile_context>

<pallas_src>
import functools

import jax
import jax.numpy as jnp
import numpy as np
from jax import lax
from jax.experimental import pallas as pl
from jax.experimental.pallas import tpu as pltpu

VOCAB = 256            # nn.Embedding(256, 256)
CH = 256               # channels everywhere
HALF = CH // 2         # 128: output/input half (32 groups)
K = 32                 # conv1 kernel size
STACK = 8              # taps stacked along the matmul contraction axis
NSTK = K // STACK      # 4 stacked-tap matmuls per half
GROUPS = 64
CIN_PER_G = CH // GROUPS   # 4
LPAD = K - 1           # causal left padding (31)
SELU_ALPHA = 1.6732632423543772
SELU_SCALE = 1.0507009873554805


def _convlm_kernel(tok_ref, embd_ref, w1q_ref, b1_ref, w2_ref, b2_ref,
                   out_ref, xpad_ref, xs0_ref, xs1_ref, *, T, R):
    """One grid step = R batch rows, time-major (row index = t*R + r)."""
    M = T * R                  # matmul M dimension
    SLAB = (T + 24) * R        # rows of each 8-tap stacked slab
    HALO = LPAD * R            # causal-halo rows of the padded activation buffer

    # 1) zero only the causal halo; the data rows are fully overwritten below and the
    #    rows past the data extent are never read.
    xpad_ref[0:HALO, :] = jnp.zeros((HALO, CH), jnp.bfloat16)

    # 2) embedding lookup as one-hot @ table on the MXU (bf16 in, f32 accumulate).
    tok = tok_ref[0]                                                     # (M, 1) int32
    oh = (tok == lax.broadcasted_iota(jnp.int32, (M, VOCAB), 1)).astype(jnp.bfloat16)
    x = jnp.dot(oh, embd_ref[...], preferred_element_type=jnp.float32)   # (M, CH) f32

    # 3) place activations behind the causal pad: row (LPAD + t)*R + r.
    xpad_ref[HALO:HALO + M, :] = x.astype(jnp.bfloat16)

    partials = []
    for h, xs_ref in ((0, xs0_ref), (1, xs1_ref)):
        # 4) 8-tap stacked slab for this half:
        #    lane block j (j = 0..7) = xpad (this half's 128 channels) shifted by j steps.
        for j in range(STACK):
            xs_ref[:, j * HALF:(j + 1) * HALF] = \
                xpad_ref[j * R:j * R + SLAB, h * HALF:(h + 1) * HALF]

        # 5) grouped causal conv1 for this half: 4 matmuls of (M, 1024) x (1024, 128).
        #    Slice starts are static multiples of STACK*R (=16 here): bf16-tile aligned.
        #    Accumulator starts from the conv1 bias (saves a separate add).
        acc = jnp.broadcast_to(b1_ref[:, h * HALF:(h + 1) * HALF], (M, HALF))
        for s in range(NSTK):
            xblk = xs_ref[s * STACK * R:s * STACK * R + M, :]   # (M, 1024) bf16
            acc = acc + jnp.dot(xblk, w1q_ref[h * NSTK + s],
                                preferred_element_type=jnp.float32)

        # 6) SELU (exp on the EUP; argument clamped to <= 0 in the dead branch).
        y1 = SELU_SCALE * jnp.where(
            acc > 0, acc, SELU_ALPHA * (jnp.exp(jnp.minimum(acc, 0.0)) - 1.0))

        # 7) this half's share of the pointwise conv2 contraction.
        partials.append(
            jnp.dot(y1.astype(jnp.bfloat16), w2_ref[h * HALF:(h + 1) * HALF, :],
                    preferred_element_type=jnp.float32))

    out_ref[0] = partials[0] + partials[1] + b2_ref[...]


def convlm_forward(tokens, embd, w1, b1, w2, b2):
    """tokens: (B, T) int.  Returns (B, C, T) float32, matching the PyTorch module."""
    B, T = tokens.shape
    assert T % 8 == 0, "T must be a multiple of 8"
    R = B if B <= 8 else 8          # batch rows packed per grid step (M = R*T)
    assert B % R == 0
    G = B // R
    M = T * R
    XP_ROWS = (T + 32) * R          # padded activations (only the first (T+31)*R rows used)
    SLAB = (T + 24) * R             # stacked-slab rows

    # --- conv1 weights -> per-half block-diagonal, 8-tap-stacked form (bf16, 2 MiB) ---
    # w1q[h*NSTK + s] is (1024, 128): row block j (128 rows) = block-diag of tap 8s + j
    # restricted to half h.  Column n is output channel 128h + n.
    w1r = w1.reshape(2, 32, CIN_PER_G, CIN_PER_G, K)          # (h, g, o, i, k)
    wt = jnp.transpose(w1r, (0, 4, 1, 3, 2))                  # (h, k, g, i, o)
    eye = jnp.eye(32, dtype=w1.dtype)
    wbd = jnp.einsum('hkgio,gG->hkgiGo', wt, eye).reshape(2, K, HALF, HALF)
    w1q = wbd.reshape(2 * NSTK, STACK * HALF, HALF).astype(jnp.bfloat16)

    embd_bf = embd.astype(jnp.bfloat16)
    w2m = w2[:, :, 0].T.astype(jnp.bfloat16)                  # (cin, cout) bf16
    b1r = b1.reshape(1, CH).astype(jnp.float32)
    b2r = b2.reshape(1, CH).astype(jnp.float32)

    # tokens -> time-major rows (t*R + r) per group of R batch rows
    tok_tm = (tokens.astype(jnp.int32)
              .reshape(G, R, T).transpose(0, 2, 1).reshape(G, M, 1))

    out_g = pl.pallas_call(
        functools.partial(_convlm_kernel, T=T, R=R),
        out_shape=jax.ShapeDtypeStruct((G, M, CH), jnp.float32),
        grid_spec=pltpu.PrefetchScalarGridSpec(
            num_scalar_prefetch=0,
            grid=(G,),
            in_specs=[
                pl.BlockSpec((1, M, 1), lambda g: (g, 0, 0)),              # tokens
                pl.BlockSpec((VOCAB, CH), lambda g: (0, 0)),               # embedding (bf16)
                pl.BlockSpec((2 * NSTK, STACK * HALF, HALF),               # conv1 stacked taps
                             lambda g: (0, 0, 0)),
                pl.BlockSpec((1, CH), lambda g: (0, 0)),                   # conv1 bias
                pl.BlockSpec((CH, CH), lambda g: (0, 0)),                  # conv2 weight (bf16)
                pl.BlockSpec((1, CH), lambda g: (0, 0)),                   # conv2 bias
            ],
            out_specs=pl.BlockSpec((1, M, CH), lambda g: (g, 0, 0)),
            scratch_shapes=[
                pltpu.VMEM((XP_ROWS, CH), jnp.bfloat16),          # causally padded activations
                pltpu.VMEM((SLAB, STACK * HALF), jnp.bfloat16),   # stacked slab, half 0
                pltpu.VMEM((SLAB, STACK * HALF), jnp.bfloat16),   # stacked slab, half 1
            ],
        ),
        compiler_params=pltpu.CompilerParams(
            dimension_semantics=("parallel",),
            vmem_limit_bytes=32 << 20),   # real footprint ~6 MiB; <= v7x's 64 MiB physical
    )(tok_tm, embd_bf, w1q, b1r, w2m, b2r)

    # (G, t*R + r, c) -> (B, C, T) to match the PyTorch module layout
    return out_g.reshape(G, T, R, CH).transpose(0, 2, 3, 1).reshape(B, CH, T)


def convlm_reference(tokens, embd, w1, b1, w2, b2):
    """Plain-JAX f32 reference mirroring the PyTorch forward (NCL layout)."""
    x = embd[tokens]                         # (B, T, C)
    x = jnp.transpose(x, (0, 2, 1))          # (B, C, T)
    xpad = jnp.pad(x, ((0, 0), (0, 0), (K - 1, 0)))
    y = jax.lax.conv_general_dilated(
        xpad, w1, window_strides=(1,), padding='VALID',
        dimension_numbers=('NCH', 'OIH', 'NCH'),
        feature_group_count=GROUPS)
    y = y + b1[None, :, None]
    y = SELU_SCALE * jnp.where(y > 0, y, SELU_ALPHA * (jnp.exp(y) - 1.0))
    y2 = jax.lax.conv_general_dilated(
        y, w2, window_strides=(1,), padding='VALID',
        dimension_numbers=('NCH', 'OIH', 'NCH'))
    return y2 + b2[None, :, None]            # (B, C, T)


if __name__ == "__main__":
    B, T = 2, 64
    key = jax.random.PRNGKey(0)
    k_tok, k_emb, k_w1, k_b1, k_w2, k_b2 = jax.random.split(key, 6)

    tokens = jax.random.randint(k_tok, (B, T), 0, VOCAB, dtype=jnp.int32)

    # Deterministic synthetic parameters (shapes from the module's __init__).
    embd = jax.random.normal(k_emb, (VOCAB, CH), dtype=jnp.float32)
    w1 = jax.random.normal(k_w1, (CH, CIN_PER_G, K), dtype=jnp.float32) * (1.0 / np.sqrt(CIN_PER_G * K))
    b1 = jax.random.normal(k_b1, (CH,), dtype=jnp.float32) * 0.05
    w2 = jax.random.normal(k_w2, (CH, CH, 1), dtype=jnp.float32) * (1.0 / np.sqrt(CH))
    b2 = jax.random.normal(k_b2, (CH,), dtype=jnp.float32) * 0.05

    out = jax.block_until_ready(convlm_forward(tokens, embd, w1, b1, w2, b2))
    ref = jax.block_until_ready(convlm_reference(tokens, embd, w1, b1, w2, b2))

    assert out.shape == (B, CH, T), out.shape
    # bf16 MXU inputs (weights + activations) -> bf16-level tolerance vs the f32 reference.
    np.testing.assert_allclose(np.asarray(out), np.asarray(ref), atol=1e-1, rtol=1e-1)
    print("KERNEL_OK")
</pallas_src>

<mosaic_0001>
module attributes {stable_mosaic.version = 11 : i64} {
  func.func @_convlm_kernel(%arg0: i32, %arg1: memref<1x128x1xi32, #tpu.memory_space<vmem>>, %arg2: memref<256x256xbf16, #tpu.memory_space<vmem>>, %arg3: memref<8x1024x128xbf16, #tpu.memory_space<vmem>>, %arg4: memref<1x256xf32, #tpu.memory_space<vmem>>, %arg5: memref<256x256xbf16, #tpu.memory_space<vmem>>, %arg6: memref<1x256xf32, #tpu.memory_space<vmem>>, %arg7: memref<1x128x256xf32, #tpu.memory_space<vmem>>, %arg8: memref<192x256xbf16, #tpu.memory_space<vmem>>, %arg9: memref<176x1024xbf16, #tpu.memory_space<vmem>>, %arg10: memref<176x1024xbf16, #tpu.memory_space<vmem>>) attributes {dimension_semantics = [#tpu.dimension_semantics<parallel>], iteration_bounds = array<i64: 1>, scalar_prefetch = 0 : i64, scratch_operands = 3 : i64, tpu.core_type = #tpu.core_type<tc>, window_params = [{transform_indices = @transform_0, window_bounds = array<i64: 1, 128, 1>}, {pipeline_mode = #tpu.pipeline_mode<synchronous>, transform_indices = @transform_1, window_bounds = array<i64: 256, 256>}, {pipeline_mode = #tpu.pipeline_mode<synchronous>, transform_indices = @transform_2, window_bounds = array<i64: 8, 1024, 128>}, {pipeline_mode = #tpu.pipeline_mode<synchronous>, transform_indices = @transform_3, window_bounds = array<i64: 1, 256>}, {pipeline_mode = #tpu.pipeline_mode<synchronous>, transform_indices = @transform_4, window_bounds = array<i64: 256, 256>}, {pipeline_mode = #tpu.pipeline_mode<synchronous>, transform_indices = @transform_5, window_bounds = array<i64: 1, 256>}, {transform_indices = @transform_6, window_bounds = array<i64: 1, 128, 256>}]} {
    %cst = arith.constant 0.000000e+00 : bf16
    %0 = vector.broadcast %cst : bf16 to vector<62x256xbf16>
    %c0 = arith.constant 0 : index
    %c0_0 = arith.constant 0 : index
    %1 = vector.load %arg8[%c0, %c0_0] : memref<192x256xbf16, #tpu.memory_space<vmem>>, vector<62x256xbf16>
    tpu.vector_store %arg8[%c0, %c0_0], %0 {strides = array<i32>} : memref<192x256xbf16, #tpu.memory_space<vmem>>, vector<62x256xbf16>,
    %c0_1 = arith.constant 0 : index
    %c0_2 = arith.constant 0 : index
    %c0_3 = arith.constant 0 : index
    %2 = vector.load %arg1[%c0_1, %c0_2, %c0_3] : memref<1x128x1xi32, #tpu.memory_space<vmem>>, vector<1x128x1xi32>
    %3 = vector.shape_cast %2 : vector<1x128x1xi32> to vector<128x1xi32>
    %4 = tpu.iota {dimensions = array<i32: 1>} : vector<128x256xi32>
    %5 = vector.broadcast %3 : vector<128x1xi32> to vector<128x256xi32>
    %6 = arith.cmpi eq, %5, %4 : vector<128x256xi32>
    %7 = arith.extui %6 : vector<128x256xi1> to vector<128x256xi32>
    %8 = arith.sitofp %7 : vector<128x256xi32> to vector<128x256xf32>
    %9 = arith.truncf %8 : vector<128x256xf32> to vector<128x256xbf16>
    %c0_4 = arith.constant 0 : index
    %c0_5 = arith.constant 0 : index
    %10 = vector.load %arg2[%c0_4, %c0_5] : memref<256x256xbf16, #tpu.memory_space<vmem>>, vector<256x256xbf16>
    %cst_6 = arith.constant dense<0.000000e+00> : vector<128x256xf32>
    %11 = tpu.matmul %9, %10, %cst_6 {dimension_numbers = #tpu.dot_dimension_numbers<[1], [0], [0], [1], [0, 0, 1, 1], [], []>} : vector<128x256xbf16>, vector<256x256xbf16>, vector<128x256xf32> -> vector<128x256xf32>
    %12 = arith.truncf %11 : vector<128x256xf32> to vector<128x256xbf16>
    %c62 = arith.constant 62 : index
    %c0_7 = arith.constant 0 : index
    %13 = vector.load %arg8[%c62, %c0_7] : memref<192x256xbf16, #tpu.memory_space<vmem>>, vector<128x256xbf16>
    tpu.vector_store %arg8[%c62, %c0_7], %12 {strides = array<i32>} : memref<192x256xbf16, #tpu.memory_space<vmem>>, vector<128x256xbf16>,
    %c0_8 = arith.constant 0 : index
    %c0_9 = arith.constant 0 : index
    %14 = vector.load %arg8[%c0_8, %c0_9] : memref<192x256xbf16, #tpu.memory_space<vmem>>, vector<176x128xbf16>
    %c0_10 = arith.constant 0 : index
    %c0_11 = arith.constant 0 : index
    %15 = vector.load %arg9[%c0_10, %c0_11] : memref<176x1024xbf16, #tpu.memory_space<vmem>>, vector<176x128xbf16>
    tpu.vector_store %arg9[%c0_10, %c0_11], %14 {strides = array<i32>} : memref<176x1024xbf16, #tpu.memory_space<vmem>>, vector<176x128xbf16>,
    %c2 = arith.constant 2 : index
    %c0_12 = arith.constant 0 : index
    %16 = vector.load %arg8[%c2, %c0_12] : memref<192x256xbf16, #tpu.memory_space<vmem>>, vector<176x128xbf16>
    %c0_13 = arith.constant 0 : index
    %c128 = arith.constant 128 : index
    %17 = vector.load %arg9[%c0_13, %c128] : memref<176x1024xbf16, #tpu.memory_space<vmem>>, vector<176x128xbf16>
    tpu.vector_store %arg9[%c0_13, %c128], %16 {strides = array<i32>} : memref<176x1024xbf16, #tpu.memory_space<vmem>>, vector<176x128xbf16>,
    %c4 = arith.constant 4 : index
    %c0_14 = arith.constant 0 : index
    %18 = vector.load %arg8[%c4, %c0_14] : memref<192x256xbf16, #tpu.memory_space<vmem>>, vector<176x128xbf16>
    %c0_15 = arith.constant 0 : index
    %c256 = arith.constant 256 : index
    %19 = vector.load %arg9[%c0_15, %c256] : memref<176x1024xbf16, #tpu.memory_space<vmem>>, vector<176x128xbf16>
    tpu.vector_store %arg9[%c0_15, %c256], %18 {strides = array<i32>} : memref<176x1024xbf16, #tpu.memory_space<vmem>>, vector<176x128xbf16>,
    %c6 = arith.constant 6 : index
    %c0_16 = arith.constant 0 : index
    %20 = vector.load %arg8[%c6, %c0_16] : memref<192x256xbf16, #tpu.memory_space<vmem>>, vector<176x128xbf16>
    %c0_17 = arith.constant 0 : index
    %c384 = arith.constant 384 : index
    %21 = vector.load %arg9[%c0_17, %c384] : memref<176x1024xbf16, #tpu.memory_space<vmem>>, vector<176x128xbf16>
    tpu.vector_store %arg9[%c0_17, %c384], %20 {strides = array<i32>} : memref<176x1024xbf16, #tpu.memory_space<vmem>>, vector<176x128xbf16>,
    %c8 = arith.constant 8 : index
    %c0_18 = arith.constant 0 : index
    %22 = vector.load %arg8[%c8, %c0_18] : memref<192x256xbf16, #tpu.memory_space<vmem>>, vector<176x128xbf16>
    %c0_19 = arith.constant 0 : index
    %c512 = arith.constant 512 : index
    %23 = vector.load %arg9[%c0_19, %c512] : memref<176x1024xbf16, #tpu.memory_space<vmem>>, vector<176x128xbf16>
    tpu.vector_store %arg9[%c0_19, %c512], %22 {strides = array<i32>} : memref<176x1024xbf16, #tpu.memory_space<vmem>>, vector<176x128xbf16>,
    %c10 = arith.constant 10 : index
    %c0_20 = arith.constant 0 : index
    %24 = vector.load %arg8[%c10, %c0_20] : memref<192x256xbf16, #tpu.memory_space<vmem>>, vector<176x128xbf16>
    %c0_21 = arith.constant 0 : index
    %c640 = arith.constant 640 : index
    %25 = vector.load %arg9[%c0_21, %c640] : memref<176x1024xbf16, #tpu.memory_space<vmem>>, vector<176x128xbf16>
    tpu.vector_store %arg9[%c0_21, %c640], %24 {strides = array<i32>} : memref<176x1024xbf16, #tpu.memory_space<vmem>>, vector<176x128xbf16>,
    %c12 = arith.constant 12 : index
    %c0_22 = arith.constant 0 : index
    %26 = vector.load %arg8[%c12, %c0_22] : memref<192x256xbf16, #tpu.memory_space<vmem>>, vector<176x128xbf16>
    %c0_23 = arith.constant 0 : index
    %c768 = arith.constant 768 : index
    %27 = vector.load %arg9[%c0_23, %c768] : memref<176x1024xbf16, #tpu.memory_space<vmem>>, vector<176x128xbf16>
    tpu.vector_store %arg9[%c0_23, %c768], %26 {strides = array<i32>} : memref<176x1024xbf16, #tpu.memory_space<vmem>>, vector<176x128xbf16>,
    %c14 = arith.constant 14 : index
    %c0_24 = arith.constant 0 : index
    %28 = vector.load %arg8[%c14, %c0_24] : memref<192x256xbf16, #tpu.memory_space<vmem>>, vector<176x128xbf16>
    %c0_25 = arith.constant 0 : index
    %c896 = arith.constant 896 : index
    %29 = vector.load %arg9[%c0_25, %c896] : memref<176x1024xbf16, #tpu.memory_space<vmem>>, vector<176x128xbf16>
    tpu.vector_store %arg9[%c0_25, %c896], %28 {strides = array<i32>} : memref<176x1024xbf16, #tpu.memory_space<vmem>>, vector<176x128xbf16>,
    %c0_26 = arith.constant 0 : index
    %c0_27 = arith.constant 0 : index
    %30 = vector.load %arg4[%c0_26, %c0_27] : memref<1x256xf32, #tpu.memory_space<vmem>>, vector<1x128xf32>
    %31 = vector.shape_cast %30 : vector<1x128xf32> to vector<1x128xf32>
    %32 = vector.broadcast %31 : vector<1x128xf32> to vector<128x128xf32>
    %c0_28 = arith.constant 0 : index
    %c0_29 = arith.constant 0 : index
    %33 = vector.load %arg9[%c0_28, %c0_29] : memref<176x1024xbf16, #tpu.memory_space<vmem>>, vector<128x1024xbf16>
    %c0_30 = arith.constant 0 : index
    %c0_31 = arith.constant 0 : index
    %c0_32 = arith.constant 0 : index
    %34 = vector.load %arg3[%c0_30, %c0_31, %c0_32] : memref<8x1024x128xbf16, #tpu.memory_space<vmem>>, vector<1x1024x128xbf16>
    %35 = vector.shape_cast %34 : vector<1x1024x128xbf16> to vector<1024x128xbf16>
    %cst_33 = arith.constant dense<0.000000e+00> : vector<128x128xf32>
    %36 = tpu.matmul %33, %35, %cst_33 {dimension_numbers = #tpu.dot_dimension_numbers<[1], [0], [0], [1], [0, 0, 1, 1], [], []>} : vector<128x1024xbf16>, vector<1024x128xbf16>, vector<128x128xf32> -> vector<128x128xf32>
    %37 = arith.addf %32, %36 : vector<128x128xf32>
    %c16 = arith.constant 16 : index
    %c0_34 = arith.constant 0 : index
    %38 = vector.load %arg9[%c16, %c0_34] : memref<176x1024xbf16, #tpu.memory_space<vmem>>, vector<128x1024xbf16>
    %c1 = arith.constant 1 : index
    %c0_35 = arith.constant 0 : index
    %c0_36 = arith.constant 0 : index
    %39 = vector.load %arg3[%c1, %c0_35, %c0_36] : memref<8x1024x128xbf16, #tpu.memory_space<vmem>>, vector<1x1024x128xbf16>
    %40 = vector.shape_cast %39 : vector<1x1024x128xbf16> to vector<1024x128xbf16>
    %cst_37 = arith.constant dense<0.000000e+00> : vector<128x128xf32>
    %41 = tpu.matmul %38, %40, %cst_37 {dimension_numbers = #tpu.dot_dimension_numbers<[1], [0], [0], [1], [0, 0, 1, 1], [], []>} : vector<128x1024xbf16>, vector<1024x128xbf16>, vector<128x128xf32> -> vector<128x128xf32>
    %42 = arith.addf %37, %41 : vector<128x128xf32>
    %c32 = arith.constant 32 : index
    %c0_38 = arith.constant 0 : index
    %43 = vector.load %arg9[%c32, %c0_38] : memref<176x1024xbf16, #tpu.memory_space<vmem>>, vector<128x1024xbf16>
    %c2_39 = arith.constant 2 : index
    %c0_40 = arith.constant 0 : index
    %c0_41 = arith.constant 0 : index
    %44 = vector.load %arg3[%c2_39, %c0_40, %c0_41] : memref<8x1024x128xbf16, #tpu.memory_space<vmem>>, vector<1x1024x128xbf16>
    %45 = vector.shape_cast %44 : vector<1x1024x128xbf16> to vector<1024x128xbf16>
    %cst_42 = arith.constant dense<0.000000e+00> : vector<128x128xf32>
    %46 = tpu.matmul %43, %45, %cst_42 {dimension_numbers = #tpu.dot_dimension_numbers<[1], [0], [0], [1], [0, 0, 1, 1], [], []>} : vector<128x1024xbf16>, vector<1024x128xbf16>, vector<128x128xf32> -> vector<128x128xf32>
    %47 = arith.addf %42, %46 : vector<128x128xf32>
    %c48 = arith.constant 48 : index
    %c0_43 = arith.constant 0 : index
    %48 = vector.load %arg9[%c48, %c0_43] : memref<176x1024xbf16, #tpu.memory_space<vmem>>, vector<128x1024xbf16>
    %c3 = arith.constant 3 : index
    %c0_44 = arith.constant 0 : index
    %c0_45 = arith.constant 0 : index
    %49 = vector.load %arg3[%c3, %c0_44, %c0_45] : memref<8x1024x128xbf16, #tpu.memory_space<vmem>>, vector<1x1024x128xbf16>
    %50 = vector.shape_cast %49 : vector<1x1024x128xbf16> to vector<1024x128xbf16>
    %cst_46 = arith.constant dense<0.000000e+00> : vector<128x128xf32>
    %51 = tpu.matmul %48, %50, %cst_46 {dimension_numbers = #tpu.dot_dimension_numbers<[1], [0], [0], [1], [0, 0, 1, 1], [], []>} : vector<128x1024xbf16>, vector<1024x128xbf16>, vector<128x128xf32> -> vector<128x128xf32>
    %52 = arith.addf %47, %51 : vector<128x128xf32>
    %cst_47 = arith.constant 0.000000e+00 : f32
    %53 = vector.broadcast %cst_47 : f32 to vector<128x128xf32>
    %54 = arith.cmpf ogt, %52, %53 : vector<128x128xf32>
    %cst_48 = arith.constant 0.000000e+00 : f32
    %55 = vector.broadcast %cst_48 : f32 to vector<128x128xf32>
    %56 = arith.minimumf %52, %55 : vector<128x128xf32>
    %57 = math.exp %56 : vector<128x128xf32>
    %cst_49 = arith.constant 1.000000e+00 : f32
    %58 = vector.broadcast %cst_49 : f32 to vector<128x128xf32>
    %59 = arith.subf %57, %58 : vector<128x128xf32>
    %cst_50 = arith.constant 1.67326319 : f32
    %60 = vector.broadcast %cst_50 : f32 to vector<128x128xf32>
    %61 = arith.mulf %60, %59 : vector<128x128xf32>
    %62 = arith.select %54, %52, %61 : vector<128x128xi1>, vector<128x128xf32>
    %cst_51 = arith.constant 1.05070102 : f32
    %63 = vector.broadcast %cst_51 : f32 to vector<128x128xf32>
    %64 = arith.mulf %63, %62 : vector<128x128xf32>
    %65 = arith.truncf %64 : vector<128x128xf32> to vector<128x128xbf16>
    %c0_52 = arith.constant 0 : index
    %c0_53 = arith.constant 0 : index
    %66 = vector.load %arg5[%c0_52, %c0_53] : memref<256x256xbf16, #tpu.memory_space<vmem>>, vector<128x256xbf16>
    %cst_54 = arith.constant dense<0.000000e+00> : vector<128x256xf32>
    %67 = tpu.matmul %65, %66, %cst_54 {dimension_numbers = #tpu.dot_dimension_numbers<[1], [0], [0], [1], [0, 0, 1, 1], [], []>} : vector<128x128xbf16>, vector<128x256xbf16>, vector<128x256xf32> -> vector<128x256xf32>
    %c0_55 = arith.constant 0 : index
    %c128_56 = arith.constant 128 : index
    %68 = vector.load %arg8[%c0_55, %c128_56] : memref<192x256xbf16, #tpu.memory_space<vmem>>, vector<176x128xbf16>
    %c0_57 = arith.constant 0 : index
    %c0_58 = arith.constant 0 : index
    %69 = vector.load %arg10[%c0_57, %c0_58] : memref<176x1024xbf16, #tpu.memory_space<vmem>>, vector<176x128xbf16>
    tpu.vector_store %arg10[%c0_57, %c0_58], %68 {strides = array<i32>} : memref<176x1024xbf16, #tpu.memory_space<vmem>>, vector<176x128xbf16>,
    %c2_59 = arith.constant 2 : index
    %c128_60 = arith.constant 128 : index
    %70 = vector.load %arg8[%c2_59, %c128_60] : memref<192x256xbf16, #tpu.memory_space<vmem>>, vector<176x128xbf16>
    %c0_61 = arith.constant 0 : index
    %c128_62 = arith.constant 128 : index
    %71 = vector.load %arg10[%c0_61, %c128_62] : memref<176x1024xbf16, #tpu.memory_space<vmem>>, vector<176x128xbf16>
    tpu.vector_store %arg10[%c0_61, %c128_62], %70 {strides = array<i32>} : memref<176x1024xbf16, #tpu.memory_space<vmem>>, vector<176x128xbf16>,
    %c4_63 = arith.constant 4 : index
    %c128_64 = arith.constant 128 : index
    %72 = vector.load %arg8[%c4_63, %c128_64] : memref<192x256xbf16, #tpu.memory_space<vmem>>, vector<176x128xbf16>
    %c0_65 = arith.constant 0 : index
    %c256_66 = arith.constant 256 : index
    %73 = vector.load %arg10[%c0_65, %c256_66] : memref<176x1024xbf16, #tpu.memory_space<vmem>>, vector<176x128xbf16>
    tpu.vector_store %arg10[%c0_65, %c256_66], %72 {strides = array<i32>} : memref<176x1024xbf16, #tpu.memory_space<vmem>>, vector<176x128xbf16>,
    %c6_67 = arith.constant 6 : index
    %c128_68 = arith.constant 128 : index
    %74 = vector.load %arg8[%c6_67, %c128_68] : memref<192x256xbf16, #tpu.memory_space<vmem>>, vector<176x128xbf16>
    %c0_69 = arith.constant 0 : index
    %c384_70 = arith.constant 384 : index
    %75 = vector.load %arg10[%c0_69, %c384_70] : memref<176x1024xbf16, #tpu.memory_space<vmem>>, vector<176x128xbf16>
    tpu.vector_store %arg10[%c0_69, %c384_70], %74 {strides = array<i32>} : memref<176x1024xbf16, #tpu.memory_space<vmem>>, vector<176x128xbf16>,
    %c8_71 = arith.constant 8 : index
    %c128_72 = arith.constant 128 : index
    %76 = vector.load %arg8[%c8_71, %c128_72] : memref<192x256xbf16, #tpu.memory_space<vmem>>, vector<176x128xbf16>
    %c0_73 = arith.constant 0 : index
    %c512_74 = arith.constant 512 : index
    %77 = vector.load %arg10[%c0_73, %c512_74] : memref<176x1024xbf16, #tpu.memory_space<vmem>>, vector<176x128xbf16>
    tpu.vector_store %arg10[%c0_73, %c512_74], %76 {strides = array<i32>} : memref<176x1024xbf16, #tpu.memory_space<vmem>>, vector<176x128xbf16>,
    %c10_75 = arith.constant 10 : index
    %c128_76 = arith.constant 128 : index
    %78 = vector.load %arg8[%c10_75, %c128_76] : memref<192x256xbf16, #tpu.memory_space<vmem>>, vector<176x128xbf16>
    %c0_77 = arith.constant 0 : index
    %c640_78 = arith.constant 640 : index
    %79 = vector.load %arg10[%c0_77, %c640_78] : memref<176x1024xbf16, #tpu.memory_space<vmem>>, vector<176x128xbf16>
    tpu.vector_store %arg10[%c0_77, %c640_78], %78 {strides = array<i32>} : memref<176x1024xbf16, #tpu.memory_space<vmem>>, vector<176x128xbf16>,
    %c12_79 = arith.constant 12 : index
    %c128_80 = arith.constant 128 : index
    %80 = vector.load %arg8[%c12_79, %c128_80] : memref<192x256xbf16, #tpu.memory_space<vmem>>, vector<176x128xbf16>
    %c0_81 = arith.constant 0 : index
    %c768_82 = arith.constant 768 : index
    %81 = vector.load %arg10[%c0_81, %c768_82] : memref<176x1024xbf16, #tpu.memory_space<vmem>>, vector<176x128xbf16>
    tpu.vector_store %arg10[%c0_81, %c768_82], %80 {strides = array<i32>} : memref<176x1024xbf16, #tpu.memory_space<vmem>>, vector<176x128xbf16>,
    %c14_83 = arith.constant 14 : index
    %c128_84 = arith.constant 128 : index
    %82 = vector.load %arg8[%c14_83, %c128_84] : memref<192x256xbf16, #tpu.memory_space<vmem>>, vector<176x128xbf16>
    %c0_85 = arith.constant 0 : index
    %c896_86 = arith.constant 896 : index
    %83 = vector.load %arg10[%c0_85, %c896_86] : memref<176x1024xbf16, #tpu.memory_space<vmem>>, vector<176x128xbf16>
    tpu.vector_store %arg10[%c0_85, %c896_86], %82 {strides = array<i32>} : memref<176x1024xbf16, #tpu.memory_space<vmem>>, vector<176x128xbf16>,
    %c0_87 = arith.constant 0 : index
    %c128_88 = arith.constant 128 : index
    %84 = vector.load %arg4[%c0_87, %c128_88] : memref<1x256xf32, #tpu.memory_space<vmem>>, vector<1x128xf32>
    %85 = vector.shape_cast %84 : vector<1x128xf32> to vector<1x128xf32>
    %86 = vector.broadcast %85 : vector<1x128xf32> to vector<128x128xf32>
    %c0_89 = arith.constant 0 : index
    %c0_90 = arith.constant 0 : index
    %87 = vector.load %arg10[%c0_89, %c0_90] : memref<176x1024xbf16, #tpu.memory_space<vmem>>, vector<128x1024xbf16>
    %c4_91 = arith.constant 4 : index
    %c0_92 = arith.constant 0 : index
    %c0_93 = arith.constant 0 : index
    %88 = vector.load %arg3[%c4_91, %c0_92, %c0_93] : memref<8x1024x128xbf16, #tpu.memory_space<vmem>>, vector<1x1024x128xbf16>
    %89 = vector.shape_cast %88 : vector<1x1024x128xbf16> to vector<1024x128xbf16>
    %cst_94 = arith.constant dense<0.000000e+00> : vector<128x128xf32>
    %90 = tpu.matmul %87, %89, %cst_94 {dimension_numbers = #tpu.dot_dimension_numbers<[1], [0], [0], [1], [0, 0, 1, 1], [], []>} : vector<128x1024xbf16>, vector<1024x128xbf16>, vector<128x128xf32> -> vector<128x128xf32>
    %91 = arith.addf %86, %90 : vector<128x128xf32>
    %c16_95 = arith.constant 16 : index
    %c0_96 = arith.constant 0 : index
    %92 = vector.load %arg10[%c16_95, %c0_96] : memref<176x1024xbf16, #tpu.memory_space<vmem>>, vector<128x1024xbf16>
    %c5 = arith.constant 5 : index
    %c0_97 = arith.constant 0 : index
    %c0_98 = arith.constant 0 : index
    %93 = vector.load %arg3[%c5, %c0_97, %c0_98] : memref<8x1024x128xbf16, #tpu.memory_space<vmem>>, vector<1x1024x128xbf16>
    %94 = vector.shape_cast %93 : vector<1x1024x128xbf16> to vector<1024x128xbf16>
    %cst_99 = arith.constant dense<0.000000e+00> : vector<128x128xf32>
    %95 = tpu.matmul %92, %94, %cst_99 {dimension_numbers = #tpu.dot_dimension_numbers<[1], [0], [0], [1], [0, 0, 1, 1], [], []>} : vector<128x1024xbf16>, vector<1024x128xbf16>, vector<128x128xf32> -> vector<128x128xf32>
    %96 = arith.addf %91, %95 : vector<128x128xf32>
    %c32_100 = arith.constant 32 : index
    %c0_101 = arith.constant 0 : index
    %97 = vector.load %arg10[%c32_100, %c0_101] : memref<176x1024xbf16, #tpu.memory_space<vmem>>, vector<128x1024xbf16>
    %c6_102 = arith.constant 6 : index
    %c0_103 = arith.constant 0 : index
    %c0_104 = arith.constant 0 : index
    %98 = vector.load %arg3[%c6_102, %c0_103, %c0_104] : memref<8x1024x128xbf16, #tpu.memory_space<vmem>>, vector<1x1024x128xbf16>
    %99 = vector.shape_cast %98 : vector<1x1024x128xbf16> to vector<1024x128xbf16>
    %cst_105 = arith.constant dense<0.000000e+00> : vector<128x128xf32>
    %100 = tpu.matmul %97, %99, %cst_105 {dimension_numbers = #tpu.dot_dimension_numbers<[1], [0], [0], [1], [0, 0, 1, 1], [], []>} : vector<128x1024xbf16>, vector<1024x128xbf16>, vector<128x128xf32> -> vector<128x128xf32>
    %101 = arith.addf %96, %100 : vector<128x128xf32>
    %c48_106 = arith.constant 48 : index
    %c0_107 = arith.constant 0 : index
    %102 = vector.load %arg10[%c48_106, %c0_107] : memref<176x1024xbf16, #tpu.memory_space<vmem>>, vector<128x1024xbf16>
    %c7 = arith.constant 7 : index
    %c0_108 = arith.constant 0 : index
    %c0_109 = arith.constant 0 : index
    %103 = vector.load %arg3[%c7, %c0_108, %c0_109] : memref<8x1024x128xbf16, #tpu.memory_space<vmem>>, vector<1x1024x128xbf16>
    %104 = vector.shape_cast %103 : vector<1x1024x128xbf16> to vector<1024x128xbf16>
    %cst_110 = arith.constant dense<0.000000e+00> : vector<128x128xf32>
    %105 = tpu.matmul %102, %104, %cst_110 {dimension_numbers = #tpu.dot_dimension_numbers<[1], [0], [0], [1], [0, 0, 1, 1], [], []>} : vector<128x1024xbf16>, vector<1024x128xbf16>, vector<128x128xf32> -> vector<128x128xf32>
    %106 = arith.addf %101, %105 : vector<128x128xf32>
    %cst_111 = arith.constant 0.000000e+00 : f32
    %107 = vector.broadcast %cst_111 : f32 to vector<128x128xf32>
    %108 = arith.cmpf ogt, %106, %107 : vector<128x128xf32>
    %cst_112 = arith.constant 0.000000e+00 : f32
    %109 = vector.broadcast %cst_112 : f32 to vector<128x128xf32>
    %110 = arith.minimumf %106, %109 : vector<128x128xf32>
    %111 = math.exp %110 : vector<128x128xf32>
    %cst_113 = arith.constant 1.000000e+00 : f32
    %112 = vector.broadcast %cst_113 : f32 to vector<128x128xf32>
    %113 = arith.subf %111, %112 : vector<128x128xf32>
    %cst_114 = arith.constant 1.67326319 : f32
    %114 = vector.broadcast %cst_114 : f32 to vector<128x128xf32>
    %115 = arith.mulf %114, %113 : vector<128x128xf32>
    %116 = arith.select %108, %106, %115 : vector<128x128xi1>, vector<128x128xf32>
    %cst_115 = arith.constant 1.05070102 : f32
    %117 = vector.broadcast %cst_115 : f32 to vector<128x128xf32>
    %118 = arith.mulf %117, %116 : vector<128x128xf32>
    %119 = arith.truncf %118 : vector<128x128xf32> to vector<128x128xbf16>
    %c128_116 = arith.constant 128 : index
    %c0_117 = arith.constant 0 : index
    %120 = vector.load %arg5[%c128_116, %c0_117] : memref<256x256xbf16, #tpu.memory_space<vmem>>, vector<128x256xbf16>
    %cst_118 = arith.constant dense<0.000000e+00> : vector<128x256xf32>
    %121 = tpu.matmul %119, %120, %cst_118 {dimension_numbers = #tpu.dot_dimension_numbers<[1], [0], [0], [1], [0, 0, 1, 1], [], []>} : vector<128x128xbf16>, vector<128x256xbf16>, vector<128x256xf32> -> vector<128x256xf32>
    %122 = arith.addf %67, %121 : vector<128x256xf32>
    %c0_119 = arith.constant 0 : index
    %c0_120 = arith.constant 0 : index
    %123 = vector.load %arg6[%c0_119, %c0_120] : memref<1x256xf32, #tpu.memory_space<vmem>>, vector<1x256xf32>
    %124 = vector.broadcast %123 : vector<1x256xf32> to vector<128x256xf32>
    %125 = arith.addf %122, %124 : vector<128x256xf32>
    %c0_121 = arith.constant 0 : index
    %c0_122 = arith.constant 0 : index
    %c0_123 = arith.constant 0 : index
    %126 = vector.load %arg7[%c0_121, %c0_122, %c0_123] : memref<1x128x256xf32, #tpu.memory_space<vmem>>, vector<1x128x256xf32>
    %127 = vector.shape_cast %126 : vector<1x128x256xf32> to vector<128x256xf32>
    %128 = vector.shape_cast %125 : vector<128x256xf32> to vector<1x128x256xf32>
    tpu.vector_store %arg7[%c0_121, %c0_122, %c0_123], %128 {strides = array<i32>} : memref<1x128x256xf32, #tpu.memory_space<vmem>>, vector<1x128x256xf32>,
    return
  }
  func.func @transform_0(%arg0: i32) -> (i32, i32, i32) {
    %c0_i32 = arith.constant 0 : i32
    %c0_i32_0 = arith.constant 0 : i32
    %c0_i32_1 = arith.constant 0 : i32
    return %arg0, %c0_i32, %c0_i32_0 : i32, i32, i32
  }
  func.func @transform_1(%arg0: i32) -> (i32, i32) {
    %c0_i32 = arith.constant 0 : i32
    %c0_i32_0 = arith.constant 0 : i32
    %c0_i32_1 = arith.constant 0 : i32
    return %c0_i32, %c0_i32_0 : i32, i32
  }
  func.func @transform_2(%arg0: i32) -> (i32, i32, i32) {
    %c0_i32 = arith.constant 0 : i32
    %c0_i32_0 = arith.constant 0 : i32
    %c0_i32_1 = arith.constant 0 : i32
    %c0_i32_2 = arith.constant 0 : i32
    return %c0_i32, %c0_i32_0, %c0_i32_1 : i32, i32, i32
  }
  func.func @transform_3(%arg0: i32) -> (i32, i32) {
    %c0_i32 = arith.constant 0 : i32
    %c0_i32_0 = arith.constant 0 : i32
    %c0_i32_1 = arith.constant 0 : i32
    return %c0_i32, %c0_i32_0 : i32, i32
  }
  func.func @transform_4(%arg0: i32) -> (i32, i32) {
    %c0_i32 = arith.constant 0 : i32
    %c0_i32_0 = arith.constant 0 : i32
    %c0_i32_1 = arith.constant 0 : i32
    return %c0_i32, %c0_i32_0 : i32, i32
  }
  func.func @transform_5(%arg0: i32) -> (i32, i32) {
    %c0_i32 = arith.constant 0 : i32
    %c0_i32_0 = arith.constant 0 : i32
    %c0_i32_1 = arith.constant 0 : i32
    return %c0_i32, %c0_i32_0 : i32, i32
  }
  func.func @transform_6(%arg0: i32) -> (i32, i32, i32) {
    %c0_i32 = arith.constant 0 : i32
    %c0_i32_0 = arith.constant 0 : i32
    %c0_i32_1 = arith.constant 0 : i32
    return %arg0, %c0_i32, %c0_i32_0 : i32, i32, i32
  }
}

</mosaic_0001>

<bundles_post_ra>
// kernel: tpu_custom_call.1
= control target key start
LH: loop header
LB: loop body
LE: loop exit
PB: predicated region body
PF: predicated region fallthrough
CT: control target
= control target key end

     0   :  { %11 = vsyncpa [#allocation6], 0  ;;  %s17347_s0 = inlined_call_operand.vmem [shape: s32[1,128,1], index: 0, kind: input, shape index: {}]   ;;  %s17348_s1 = inlined_call_operand.hbm [shape: bf16[256,256], index: 1, kind: input, shape index: {}]   ;;  %s17349_s2 = inlined_call_operand.hbm [shape: bf16[8,1024,128], index: 2, kind: input, shape index: {}]   ;;  %s17350_s3 = inlined_call_operand.hbm [shape: f32[1,256], index: 3, kind: input, shape index: {}]   ;;  %s17351_s4 = inlined_call_operand.hbm [shape: bf16[256,256], index: 4, kind: input, shape index: {}]   ;;  %s17352_s5 = inlined_call_operand.hbm [shape: f32[1,256], index: 5, kind: input, shape index: {}]   ;;  %s17353_s6 = inlined_call_operand.hbm [shape: f32[1,128,256], index: 6, kind: output, shape index: {}]  }
   0x1   :  { %12 = vsyncpa [#allocation9], 0 }
   0x2   :  { %13 = vsyncpa [#allocation12], 0 }
   0x3   :  { %14 = vsyncpa [#allocation7], 0  ;;  %s13991_s21 = smov [#allocation8]   ;;  %s13851_s25 = scalar_lea.hbm %s17349_s2, 65536 }
   0x4   :  { %s34_s22 = sshll.u32 %s13991_s21, 4  ;;  %p13852_p0 = scmp.ne.s32.totalorder %s17349_s2, %s13851_s25  ;;  %s35_s22 = int_to_ptr.vmem [resolvable:$true] %s34_s22 }
   0x5   :  { %p13855_p1 = scmp.lt.u32.totalorder %s13851_s25, %s17349_s2 }
   0x7   :  { %p13857_p2 = pnand %p13855_p1, %p13852_p0 }
   0x9   :  { %13860 = shalt.err (!%p13857_p2)
}
   0xa   :  { %s13861_s30 = scalar_lea.vmem %s35_s22, 65536  ;;  %p13866_p4 = scmp.lt.s32.totalorder %s35_s22, %s35_s22 }
   0xb   :  { %p13862_p3 = scmp.ne.s32.totalorder %s35_s22, %s13861_s30  ;;  %p13867_p5 = scmp.lt.s32.totalorder %s13861_s30, %s13861_s30 }
   0xd   :  { %p13868_p6 = por %p13867_p5, %p13866_p4 }
   0xf   :  { %p13869_p7 = pnand %p13868_p6, %p13862_p3 }
  0x11   :  { %13872 = shalt.err (!%p13869_p7)
}
  0x12   :  { %s13992_s7 = smov 64   ;;  %s13993_s8 = smov 4  }
  0x13   :  { %40 = dma.hbm_to_vmem [thread:$0]  %s17349_s2, 65536, %s35_s22, [#allocation9], %s13992_s7, %s13992_s7, %s13993_s8  }
  0x14   :  { %s13994_s11 = smov [#allocation11]   ;;  %s13995_s13 = smov [#allocation5]  }
  0x15   :  { %s56_s12 = sshll.u32 %s13994_s11, 4  ;;  %s22_s14 = sshll.u32 %s13995_s13, 4  ;;  %s57_s12 = int_to_ptr.vmem [resolvable:$true] %s56_s12  ;;  %s23_s14 = int_to_ptr.vmem [resolvable:$true] %s22_s14 }
  0x16   :  { %s13873_s17 = scalar_lea.hbm %s17351_s4, 4096 }
  0x17   :  { %p13874_p8 = scmp.ne.s32.totalorder %s17351_s4, %s13873_s17  ;;  %p13877_p9 = scmp.lt.u32.totalorder %s13873_s17, %s17351_s4 }
  0x19   :  { %p13879_p10 = pnand %p13877_p9, %p13874_p8 }
  0x1b   :  { %13882 = shalt.err (!%p13879_p10)
}
  0x1c   :  { %s13883_s2 = scalar_lea.vmem %s57_s12, 4096  ;;  %p13888_p12 = scmp.lt.s32.totalorder %s57_s12, %s57_s12 }
  0x1d   :  { %p13884_p11 = scmp.ne.s32.totalorder %s57_s12, %s13883_s2  ;;  %p13889_p13 = scmp.lt.s32.totalorder %s13883_s2, %s13883_s2 }
  0x1f   :  { %p13890_p0 = por %p13889_p13, %p13888_p12 }
  0x21   :  { %p13891_p1 = pnand %p13890_p0, %p13884_p11 }
  0x23   :  { %13894 = shalt.err (!%p13891_p1)
}
  0x24   :  { %s13996_s22 = smov 128   ;;  %s13997_s23 = smov 8  }
  0x25   :  { %62 = dma.hbm_to_vmem [thread:$0]  %s17351_s4, 4096, %s57_s12, [#allocation12], %s13996_s22, %s13996_s22, %s13997_s23  }
  0x26   :  { %s13895_s28 = scalar_lea.hbm %s17348_s1, 4096 }
  0x27   :  { %p13896_p2 = scmp.ne.s32.totalorder %s17348_s1, %s13895_s28  ;;  %p13899_p3 = scmp.lt.u32.totalorder %s13895_s28, %s17348_s1 }
  0x29   :  { %p13901_p4 = pnand %p13899_p3, %p13896_p2 }
  0x2b   :  { %13904 = shalt.err (!%p13901_p4)
}
  0x2c   :  { %s13905_s9 = scalar_lea.vmem %s23_s14, 4096  ;;  %p13910_p6 = scmp.lt.s32.totalorder %s23_s14, %s23_s14 }
  0x2d   :  { %p13906_p5 = scmp.ne.s32.totalorder %s23_s14, %s13905_s9  ;;  %p13911_p7 = scmp.lt.s32.totalorder %s13905_s9, %s13905_s9 }
  0x2f   :  { %p13912_p8 = por %p13911_p7, %p13910_p6 }
  0x31   :  { %p13913_p9 = pnand %p13912_p8, %p13906_p5 }
  0x33   :  { %13916 = shalt.err (!%p13913_p9)
}
  0x34   :  { %28 = dma.hbm_to_vmem [thread:$0]  %s17348_s1, 4096, %s23_s14, [#allocation6], %s13996_s22, %s13996_s22, %s13997_s23  }
  0x35   :  { %s13998_s11 = smov [#allocation10]   ;;  %s13999_s13 = smov [#allocation13]  }
  0x36   :  { %s47_s12 = sshll.u32 %s13998_s11, 4  ;;  %s69_s15 = sshll.u32 %s13999_s13, 4  ;;  %s48_s12 = int_to_ptr.vmem [resolvable:$true] %s47_s12  ;;  %s70_s15 = int_to_ptr.vmem [resolvable:$true] %s69_s15 }
  0x37   :  { %s13917_s18 = scalar_lea.hbm %s17350_s3, 32 }
  0x38   :  { %p13918_p10 = scmp.ne.s32.totalorder %s17350_s3, %s13917_s18  ;;  %p13921_p11 = scmp.lt.u32.totalorder %s13917_s18, %s17350_s3 }
  0x3a   :  { %p13923_p12 = pnand %p13921_p11, %p13918_p10 }
  0x3c   :  { %13926 = shalt.err (!%p13923_p12)
}
  0x3d   :  { %s13927_s1 = scalar_lea.vmem %s48_s12, 32  ;;  %p13932_p0 = scmp.lt.s32.totalorder %s48_s12, %s48_s12 }
  0x3e   :  { %p13928_p13 = scmp.ne.s32.totalorder %s48_s12, %s13927_s1  ;;  %p13933_p1 = scmp.lt.s32.totalorder %s13927_s1, %s13927_s1 }
  0x40   :  { %p13934_p2 = por %p13933_p1, %p13932_p0 }
  0x42   :  { %p13935_p3 = pnand %p13934_p2, %p13928_p13 }
  0x44   :  { %13938 = shalt.err (!%p13935_p3)
}
  0x45   :  { %50 = dma.hbm_to_vmem [thread:$0]  %s17350_s3, 32, %s48_s12, [#allocation9]  }
  0x46   :  { %s13939_s25 = scalar_lea.hbm %s17352_s5, 32 }
  0x47   :  { %p13940_p4 = scmp.ne.s32.totalorder %s17352_s5, %s13939_s25  ;;  %p13943_p5 = scmp.lt.u32.totalorder %s13939_s25, %s17352_s5 }
  0x49   :  { %p13945_p6 = pnand %p13943_p5, %p13940_p4 }
  0x4b   :  { %13948 = shalt.err (!%p13945_p6)
}
  0x4c   :  { %s13949_s30 = scalar_lea.vmem %s70_s15, 32  ;;  %p13954_p8 = scmp.lt.s32.totalorder %s70_s15, %s70_s15 }
  0x4d   :  { %p13950_p7 = scmp.ne.s32.totalorder %s70_s15, %s13949_s30  ;;  %p13955_p9 = scmp.lt.s32.totalorder %s13949_s30, %s13949_s30 }
  0x4f   :  { %p13956_p10 = por %p13955_p9, %p13954_p8 }
  0x51   :  { %p13957_p11 = pnand %p13956_p10, %p13950_p7 }
  0x53   :  { %13960 = shalt.err (!%p13957_p11)
}
  0x54   :  { %72 = dma.hbm_to_vmem [thread:$0]  %s17352_s5, 32, %s70_s15, [#allocation12]  }
  0x55   :  { %13983 = dma.done.wait [#allocation6], 4096  }
  0x56   :  { %13984 = vsyncadd [#allocation6], 4294963200 }
  0x57   :  { %13985 = dma.done.wait [#allocation9], 65568  }
  0x58   :  { %13986 = vsyncadd [#allocation9], 4294901728 }
  0x59   :  { %13987 = dma.done.wait [#allocation12], 4128  }
  0x5a   :  { %13988 = vsyncadd [#allocation12], 4294963168  ;;  %v14000_v0 = vmov 0   ;;  %v99_v1 = vld [vmem:[%s17347_s0 + $0x10] sm:$0xff]  ;;  %v97_v2 = vld [vmem:[%s17347_s0] sm:$0xff]  ;;  %v17354_v53 = vlaneseq }
  0x5b   :  { %13127 = vset.pattern.permute.xlu1 %v14000_v0  ;;  %89 = vst [vmem:[#allocation2] sm:$0xff] %v14000_v0  ;;  %90 = vst [vmem:[#allocation2 + $0x8] sm:$0xff] %v14000_v0  ;;  %13126 = vset.pattern.permute.xlu0 %v14000_v0  ;;  %v100_v3 = vld [vmem:[%s17347_s0 + $0x18] sm:$0xff]  ;;  %v98_v4 = vld [vmem:[%s17347_s0 + $0x8] sm:$0xff] }
  0x5c   :  { %95 = vst [vmem:[#allocation2 + $0x30] sm:$0x7f] %v14000_v0  ;;  %96 = vst [vmem:[#allocation2 + $0x38] sm:$0x7f] %v14000_v0  ;;  %123 = vperm.xlu1 %13127, %v99_v1   ;;  %117 = vperm.xlu0 %13126, %v97_v2   ;;  %v102_v5 = vld [vmem:[%s17347_s0 + $0x28] sm:$0xff]  ;;  %v101_v6 = vld [vmem:[%s17347_s0 + $0x20] sm:$0xff] }
  0x5d   :  { %v13128_v7 = vld [vmem:[#allocation5 + $0x4] ss:$8 sps:$4 sm:$0xff]   ;;  %v13130_v8 = vld [vmem:[#allocation5] ss:$8 sps:$4 sm:$0xff]   ;;  %v13131_v9 = vld [vmem:[#allocation5 + $0x14] ss:$8 sps:$4 sm:$0xff]  }
  0x5e   :  { %468 = vmatprep.subr.bf16.mxu0 %v13128_v7  ;;  %v104_v10 = vld [vmem:[%s17347_s0 + $0x38] sm:$0xff]  ;;  %v103_v11 = vld [vmem:[%s17347_s0 + $0x30] sm:$0xff]  ;;  %v13134_v13 = vld [vmem:[#allocation5 + $0x24] ss:$8 sps:$4 sm:$0xff]   ;;  %v14149_v56 = vand.u32 127, %v17354_v53 }
  0x5f   :  { %469 = vmatpush1.bf16.msra.mxu0 %v13130_v8  ;;  %v13133_v12 = vld [vmem:[#allocation5 + $0x10] ss:$8 sps:$4 sm:$0xff]   ;;  %v106_v14 = vld [vmem:[%s17347_s0 + $0x48] sm:$0xff]  ;;  %v105_v15 = vld [vmem:[%s17347_s0 + $0x40] sm:$0xff] }
  0x60   :  { %126 = vperm.xlu1 %13127, %v100_v3   ;;  %120 = vperm.xlu0 %13126, %v98_v4   ;;  %v13136_v16 = vld [vmem:[#allocation5 + $0x20] ss:$8 sps:$4 sm:$0xff]   ;;  %v13137_v17 = vld [vmem:[#allocation5 + $0x34] ss:$8 sps:$4 sm:$0xff]   ;;  %v13139_v20 = vld [vmem:[#allocation5 + $0x30] ss:$8 sps:$4 sm:$0xff]  }
  0x61   :  { %470 = vmatprep.subr.bf16.mxu0 %v13131_v9  ;;  %v108_v18 = vld [vmem:[%s17347_s0 + $0x58] sm:$0xff]  ;;  %v107_v19 = vld [vmem:[%s17347_s0 + $0x50] sm:$0xff]  ;;  %v13140_v21 = vld [vmem:[#allocation5 + $0x44] ss:$8 sps:$4 sm:$0xff]   ;;  %v14152_v60 = vadd.s32 128, %v14149_v56 }
  0x62   :  { %v110_v22 = vld [vmem:[%s17347_s0 + $0x68] sm:$0xff]  ;;  %v109_v23 = vld [vmem:[%s17347_s0 + $0x60] sm:$0xff]  ;;  %v13143_v25 = vld [vmem:[#allocation5 + $0x54] ss:$8 sps:$4 sm:$0xff]  }
  0x63   :  { %471 = vmatpush1.bf16.msra.mxu0 %v13133_v12  ;;  %v13142_v24 = vld [vmem:[#allocation5 + $0x40] ss:$8 sps:$4 sm:$0xff]   ;;  %v112_v26 = vld [vmem:[%s17347_s0 + $0x78] sm:$0xff]  ;;  %v111_v27 = vld [vmem:[%s17347_s0 + $0x70] sm:$0xff]  ;;  %s14002_s0 = smov [#allocation14]  }
  0x64   :  { %132 = vperm.xlu1 %13127, %v102_v5   ;;  %129 = vperm.xlu0 %13126, %v101_v6   ;;  %v13145_v28 = vld [vmem:[#allocation5 + $0x50] ss:$8 sps:$4 sm:$0xff]   ;;  %v13146_v29 = vld [vmem:[#allocation5 + $0x64] ss:$8 sps:$4 sm:$0xff]   ;;  %v13148_v30 = vld [vmem:[#allocation5 + $0x60] ss:$8 sps:$4 sm:$0xff]  }
  0x65   :  { %472 = vmatprep.subr.bf16.mxu0 %v13134_v13  ;;  %v13149_v31 = vld [vmem:[#allocation5 + $0x74] ss:$8 sps:$4 sm:$0xff]   ;;  %v13151_v32 = vld [vmem:[#allocation5 + $0x70] ss:$8 sps:$4 sm:$0xff]   ;;  %v13152_v33 = vld [vmem:[#allocation5 + $0x84] ss:$8 sps:$4 sm:$0xff]  }
  0x66   :  { %v13154_v34 = vld [vmem:[#allocation5 + $0x80] ss:$8 sps:$4 sm:$0xff]   ;;  %v13155_v35 = vld [vmem:[#allocation5 + $0x94] ss:$8 sps:$4 sm:$0xff]   ;;  %v13157_v36 = vld [vmem:[#allocation5 + $0x90] ss:$8 sps:$4 sm:$0xff]  }
  0x67   :  { %473 = vmatpush1.bf16.msra.mxu0 %v13136_v16  ;;  %v13158_v37 = vld [vmem:[#allocation5 + $0xa4] ss:$8 sps:$4 sm:$0xff]   ;;  %v13160_v38 = vld [vmem:[#allocation5 + $0xa0] ss:$8 sps:$4 sm:$0xff]   ;;  %v13161_v39 = vld [vmem:[#allocation5 + $0xb4] ss:$8 sps:$4 sm:$0xff]  }
  0x68   :  { %138 = vperm.xlu1 %13127, %v104_v10   ;;  %135 = vperm.xlu0 %13126, %v103_v11   ;;  %v13163_v40 = vld [vmem:[#allocation5 + $0xb0] ss:$8 sps:$4 sm:$0xff]   ;;  %v13164_v41 = vld [vmem:[#allocation5 + $0xc4] ss:$8 sps:$4 sm:$0xff]   ;;  %v13166_v42 = vld [vmem:[#allocation5 + $0xc0] ss:$8 sps:$4 sm:$0xff]  }
  0x69   :  { %474 = vmatprep.subr.bf16.mxu0 %v13137_v17  ;;  %v13167_v43 = vld [vmem:[#allocation5 + $0xd4] ss:$8 sps:$4 sm:$0xff]   ;;  %v13169_v44 = vld [vmem:[#allocation5 + $0xd0] ss:$8 sps:$4 sm:$0xff]   ;;  %v13170_v45 = vld [vmem:[#allocation5 + $0xe4] ss:$8 sps:$4 sm:$0xff]  }
  0x6a   :  { %v13172_v46 = vld [vmem:[#allocation5 + $0xe0] ss:$8 sps:$4 sm:$0xff]   ;;  %v13173_v47 = vld [vmem:[#allocation5 + $0xf4] ss:$8 sps:$4 sm:$0xff]   ;;  %v13175_v48 = vld [vmem:[#allocation5 + $0xf0] ss:$8 sps:$4 sm:$0xff]  }
  0x6b   :  { %475 = vmatpush1.bf16.msra.mxu0 %v13139_v20  ;;  %v13176_v49 = vld [vmem:[#allocation8 + $0x40] sm:$0xff]   ;;  %v13180_v52 = vld [vmem:[#allocation8 + $0x48] sm:$0xff]   ;;  %v13184_v55 = vld [vmem:[#allocation8 + $0x50] sm:$0xff]   ;;  %v14001_v11 = vmov 1.0|1.0   ;;  %s10328_s10 = sshll.u32 %s14002_s0, 4  ;;  %s10329_s10 = int_to_ptr.vmem [resolvable:$true] %s10328_s10 }
  0x6c   :  { %144 = vperm.xlu1 %13127, %v106_v14   ;;  %141 = vperm.xlu0 %13126, %v105_v15   ;;  %v13177_v50 = vld [vmem:[#allocation8] sm:$0xff]   ;;  %v13181_v54 = vld [vmem:[#allocation8 + $0x8] sm:$0xff]   ;;  %v13185_v57 = vld [vmem:[#allocation8 + $0x10] sm:$0xff]   ;;  %s13961_s5 = scalar_lea.vmem %s10329_s10, 4096  ;;  %p13966_p13 = scmp.lt.s32.totalorder %s10329_s10, %s10329_s10 }
  0x6d   :  { %476 = vmatprep.subr.bf16.mxu0 %v13140_v21  ;;  %v13178_v51 = vld [vmem:[#allocation8 + $0x140] sm:$0xff]   ;;  %11016 = vmatprep.subr.bf16.mxu1 %v13176_v49  ;;  %v13188_v58 = vld [vmem:[#allocation8 + $0x58] sm:$0xff]   ;;  %v13196_v63 = vld [vmem:[#allocation8 + $0x68] sm:$0xff]   ;;  %p13962_p12 = scmp.ne.s32.totalorder %s10329_s10, %s13961_s5  ;;  %p13967_p0 = scmp.lt.s32.totalorder %s13961_s5, %s13961_s5 }
  0x6e   :  { %11017 = vmatpush3.bf16.msra.mxu1 %v13177_v50  ;;  %v13189_v59 = vld [vmem:[#allocation8 + $0x18] sm:$0xff]   ;;  %v13192_v61 = vld [vmem:[#allocation8 + $0x60] sm:$0xff]   ;;  %v13197_v0 = vld [vmem:[#allocation8 + $0x28] sm:$0xff]  }
  0x6f   :  { %477 = vmatpush1.bf16.msra.mxu0 %v13142_v24  ;;  %11018 = vmatprep.subr.bf16.mxu1 %v13180_v52  ;;  %v13193_v62 = vld [vmem:[#allocation8 + $0x20] sm:$0xff]   ;;  %v13200_v1 = vld [vmem:[#allocation8 + $0x70] sm:$0xff]   ;;  %v13204_v3 = vld [vmem:[#allocation8 + $0x78] sm:$0xff]   ;;  %p13968_p1 = por %p13967_p0, %p13966_p13 }
  0x70   :  { %150 = vperm.xlu1 %13127, %v108_v18   ;;  %147 = vperm.xlu0 %13126, %v107_v19   ;;  %v13201_v2 = vld [vmem:[#allocation8 + $0x30] sm:$0xff]   ;;  %v13205_v4 = vld [vmem:[#allocation8 + $0x38] sm:$0xff]   ;;  %v13179_v9 = vld [vmem:[#allocation8 + $0x100] sm:$0xff]  }
  0x71   :  { %478 = vmatprep.subr.bf16.mxu0 %v13143_v25  ;;  %v13182_v10 = vld [vmem:[#allocation8 + $0x148] sm:$0xff]   ;;  %v13186_v15 = vld [vmem:[#allocation8 + $0x150] sm:$0xff]   ;;  %v13190_v17 = vld [vmem:[#allocation8 + $0x158] sm:$0xff]   ;;  %p13969_p2 = pnand %p13968_p1, %p13962_p12 }
  0x72   :  { %11019 = vmatpush3.bf16.msra.mxu1 %v13181_v54  ;;  %v13183_v12 = vld [vmem:[#allocation8 + $0x108] sm:$0xff]   ;;  %v13187_v16 = vld [vmem:[#allocation8 + $0x110] sm:$0xff]   ;;  %v13191_v20 = vld [vmem:[#allocation8 + $0x118] sm:$0xff]  }
  0x73   :  { %479 = vmatpush1.bf16.msra.mxu0 %v13145_v28  ;;  %11020 = vmatprep.subr.bf16.mxu1 %v13184_v55  ;;  %v13194_v21 = vld [vmem:[#allocation8 + $0x160] sm:$0xff]   ;;  %v13198_v25 = vld [vmem:[#allocation8 + $0x168] sm:$0xff]   ;;  %v13212_v55 = vld [vmem:[#allocation8 + $0xd0] sm:$0xff]  }
  0x74   :  { %156 = vperm.xlu1 %13127, %v110_v22   ;;  %153 = vperm.xlu0 %13126, %v109_v23   ;;  %v13195_v22 = vld [vmem:[#allocation8 + $0x120] sm:$0xff]   ;;  %v13210_v52 = vld [vmem:[#allocation8 + $0xc8] sm:$0xff]   ;;  %v13256_v53 = vld [vmem:[#allocation8 + $0x350] sm:$0xff]  }
  0x75   :  { %480 = vmatprep.subr.bf16.mxu0 %v13146_v29  ;;  %v13208_v50 = vld [vmem:[#allocation8 + $0xc0] sm:$0xff]   ;;  %v13211_v54 = vld [vmem:[#allocation8 + $0x88] sm:$0xff]  }
  0x76   :  { %11021 = vmatpush3.bf16.msra.mxu1 %v13185_v57  ;;  %v13214_v57 = vld [vmem:[#allocation8 + $0xd8] sm:$0xff]  }
  0x77   :  { %481 = vmatpush1.bf16.msra.mxu0 %v13148_v30  ;;  %11022 = vmatprep.subr.bf16.mxu1 %v13188_v58  ;;  %v13203_v30 = vld [vmem:[#allocation8 + $0x130] sm:$0xff]   ;;  %v13215_v58 = vld [vmem:[#allocation8 + $0x98] sm:$0xff]  }
  0x78   :  { %162 = vperm.xlu1 %13127, %v112_v26   ;;  %159 = vperm.xlu0 %13126, %v111_v27   ;;  %v13199_v26 = vld [vmem:[#allocation8 + $0x128] sm:$0xff]   ;;  %v13202_v27 = vld [vmem:[#allocation8 + $0x170] sm:$0xff]  }
  0x79   :  { %482 = vmatprep.subr.bf16.mxu0 %v13149_v31  ;;  %v13206_v31 = vld [vmem:[#allocation8 + $0x178] sm:$0xff]  }
  0x7a   :  { %11023 = vmatpush3.bf16.msra.mxu1 %v13189_v59  ;;  %v13218_v59 = vld [vmem:[#allocation8 + $0x240] sm:$0xff]  }
  0x7b   :  { %483 = vmatpush1.bf16.msra.mxu0 %v13151_v32  ;;  %11024 = vmatprep.subr.bf16.mxu1 %v13192_v61  ;;  %v13220_v61 = vld [vmem:[#allocation8 + $0x248] sm:$0xff]  }
  0x7c   :  { %484 = vmatprep.subr.bf16.mxu0 %v13152_v33 }
  0x7e   :  { %11025 = vmatpush3.bf16.msra.mxu1 %v13193_v62  ;;  %v13221_v62 = vld [vmem:[#allocation8 + $0x208] sm:$0xff]  }
  0x7f   :  { %485 = vmatpush1.bf16.msra.mxu0 %v13154_v34  ;;  %11026 = vmatprep.subr.bf16.mxu1 %v13196_v63  ;;  %v13216_v63 = vld [vmem:[#allocation8 + $0xe0] sm:$0xff]  }
  0x80   :  { %486 = vmatprep.subr.bf16.mxu0 %v13155_v35 }
  0x82   :  { %11027 = vmatpush3.bf16.msra.mxu1 %v13197_v0  ;;  %v13217_v0 = vld [vmem:[#allocation8 + $0xa0] sm:$0xff]  }
  0x83   :  { %487 = vmatpush1.bf16.msra.mxu0 %v13157_v36  ;;  %11028 = vmatprep.subr.bf16.mxu1 %v13200_v1  ;;  %v702_v36 = vld [vmem:[#allocation2] sm:$0xfe]  ;;  %v13224_v1 = vld [vmem:[#allocation8 + $0x250] sm:$0xff]  }
  0x84   :  { %488 = vmatprep.subr.bf16.mxu0 %v13158_v37  ;;  %v726_v37 = vrot.slane %v702_v36, 1 }
  0x86   :  { %11029 = vmatpush3.bf16.msra.mxu1 %v13201_v2  ;;  %v13225_v2 = vld [vmem:[#allocation8 + $0x210] sm:$0xff]  }
  0x87   :  { %489 = vmatpush1.bf16.msra.mxu0 %v13160_v38  ;;  %11030 = vmatprep.subr.bf16.mxu1 %v13204_v3  ;;  %v14202_v38 = vld [vmem:[#allocation2] sm:$0xff]  ;;  %v13226_v3 = vld [vmem:[#allocation8 + $0x258] sm:$0xff]  }
  0x88   :  { %490 = vmatprep.subr.bf16.mxu0 %v13161_v39  ;;  %v14205_v39 = vrot.slane %v14202_v38, 1 }
  0x8a   :  { %11031 = vmatpush3.bf16.msra.mxu1 %v13205_v4  ;;  %v13227_v4 = vld [vmem:[#allocation8 + $0x218] sm:$0xff]  }
  0x8b   :  { %491 = vmatpush1.bf16.msra.mxu0 %v13163_v40  ;;  %11080 = vmatprep.subr.bf16.mxu1 %v13208_v50 }
  0x8c   :  { %492 = vmatprep.subr.bf16.mxu0 %v13164_v41  ;;  %v13207_v41 = vld [vmem:[#allocation8 + $0x138] sm:$0xff]  }
  0x8f   :  { %493 = vmatpush1.bf16.msra.mxu0 %v13166_v42  ;;  %v981_v42 = vld [vmem:[#allocation2] sm:$0xe0] }
  0x90   :  { %494 = vmatprep.subr.bf16.mxu0 %v13167_v43  ;;  %v1006_v43 = vrot.slane %v981_v42, 5 }
  0x93   :  { %495 = vmatpush1.bf16.msra.mxu0 %v13169_v44  ;;  %v14210_v44 = vrot.slane %v14202_v38, 5 }
  0x94   :  { %496 = vmatprep.subr.bf16.mxu0 %v13170_v45  ;;  %v911_v45 = vld [vmem:[#allocation2] sm:$0xf0] }
  0x97   :  { %497 = vmatpush1.bf16.msra.mxu0 %v13172_v46  ;;  %v936_v46 = vrot.slane %v911_v45, 4 }
  0x98   :  { %498 = vmatprep.subr.bf16.mxu0 %v13173_v47  ;;  %v14214_v47 = vrot.slane %v14202_v38, 4 }
  0x9b   :  { %499 = vmatpush1.bf16.msra.mxu0 %v13175_v48 }
  0x9c   :  { %11144 = vmatprep.subr.bf16.mxu0 %v13178_v51  ;;  %v13209_v51 = vld [vmem:[#allocation8 + $0x80] sm:$0xff]  }
  0xdb   :  { %v124_v5 = vpop.permute.xlu1 %123  ;;  %v118_v6 = vpop.permute.xlu0 %117 }
  0xdc   :  { %vm169_vm0 = vcmp.eq.s32.totalorder %v124_v5, %v14152_v60  ;;  %vm164_vm4 = vcmp.eq.s32.totalorder %v118_v6, %v14149_v56  ;;  %vm165_vm7 = vcmp.eq.s32.totalorder %v118_v6, %v14152_v60  ;;  %vm168_vm9 = vcmp.eq.s32.totalorder %v124_v5, %v14149_v56  ;;  %v13222_v5 = vld [vmem:[#allocation8 + $0xe8] sm:$0xff]  }
  0xdd   :  { %v13223_v6 = vld [vmem:[#allocation8 + $0xa8] sm:$0xff]  }
  0xdf   :  { %v127_v7 = vpop.permute.xlu1 %126  ;;  %v121_v8 = vpop.permute.xlu0 %120 }
  0xe0   :  { %vm171_vm1 = vcmp.eq.s32.totalorder %v127_v7, %v14152_v60  ;;  %vm166_vm2 = vcmp.eq.s32.totalorder %v121_v8, %v14149_v56  ;;  %vm167_vm3 = vcmp.eq.s32.totalorder %v121_v8, %v14152_v60  ;;  %vm170_vm10 = vcmp.eq.s32.totalorder %v127_v7, %v14149_v56  ;;  %v13230_v7 = vld [vmem:[#allocation8 + $0x260] sm:$0xff]  }
  0xe1   :  { %vm10410_vm5 = vmpackc.low %vm171_vm1, %vm169_vm0  ;;  %v13231_v8 = vld [vmem:[#allocation8 + $0x220] sm:$0xff]  }
  0xe2   :  { %vm10408_vm6 = vmpackc.low %vm166_vm2, %vm164_vm4 }
  0xe3   :  { %vm10406_vm8 = vmpackc.low %vm167_vm3, %vm165_vm7  ;;  %v133_v13 = vpop.permute.xlu1 %132  ;;  %v130_v14 = vpop.permute.xlu0 %129 }
  0xe4   :  { %10407 = vmatprep.mubr.msk.bf16.mxu0 %vm10406_vm8, %v14001_v11  ;;  %vm10412_vm11 = vmpackc.low %vm170_vm10, %vm168_vm9  ;;  %vm175_vm12 = vcmp.eq.s32.totalorder %v133_v13, %v14152_v60  ;;  %vm173_vm13 = vcmp.eq.s32.totalorder %v130_v14, %v14152_v60  ;;  %vm174_vm15 = vcmp.eq.s32.totalorder %v133_v13, %v14149_v56  ;;  %vm172_vm0 = vcmp.eq.s32.totalorder %v130_v14, %v14149_v56  ;;  %v13236_v13 = vld [vmem:[#allocation8 + $0x270] sm:$0xff]  }
  0xe5   :  { %10409 = vmatmul.mubr.msk.bf16.vlgmr.msra.gmra.mrb[0].mxu0 %vm10408_vm6, %v14001_v11  ;;  %vm10414_vm14 = vmpackc.low %vm175_vm12, %vm173_vm13  ;;  %v13237_v14 = vld [vmem:[#allocation8 + $0x230] sm:$0xff]  }
  0xe6   :  { %10411 = vmatprep.mubr.msk.bf16.mxu0 %vm10410_vm5, %v14001_v11  ;;  %11145 = vmatpush3.bf16.msra.mxu0 %v13179_v9  ;;  %vm10416_vm3 = vmpackc.low %vm174_vm15, %vm172_vm0  ;;  %v13232_v9 = vld [vmem:[#allocation8 + $0x268] sm:$0xff]  }
  0xe7   :  { %11146 = vmatprep.subr.bf16.mxu0 %v13182_v10  ;;  %v139_v18 = vpop.permute.xlu1 %138  ;;  %v136_v19 = vpop.permute.xlu0 %135  ;;  %v13233_v10 = vld [vmem:[#allocation8 + $0x228] sm:$0xff]  }
  0xe8   :  { %vm179_vm1 = vcmp.eq.s32.totalorder %v139_v18, %v14152_v60  ;;  %vm177_vm2 = vcmp.eq.s32.totalorder %v136_v19, %v14152_v60  ;;  %vm178_vm4 = vcmp.eq.s32.totalorder %v139_v18, %v14149_v56  ;;  %vm176_vm5 = vcmp.eq.s32.totalorder %v136_v19, %v14149_v56  ;;  %v13239_v18 = vld [vmem:[#allocation8 + $0x238] sm:$0xff]   ;;  %v13240_v19 = vld [vmem:[#allocation8 + $0x1c0] sm:$0xff]  }
  0xe9   :  { %vm10418_vm6 = vmpackc.low %vm179_vm1, %vm177_vm2 }
  0xea   :  { %11147 = vmatpush3.bf16.msra.mxu0 %v13183_v12  ;;  %vm10420_vm9 = vmpackc.low %vm178_vm4, %vm176_vm5  ;;  %v13229_v12 = vld [vmem:[#allocation8 + $0xb0] sm:$0xff]  }
  0xeb   :  { %11148 = vmatprep.subr.bf16.mxu0 %v13186_v15  ;;  %v145_v23 = vpop.permute.xlu1 %144  ;;  %v142_v24 = vpop.permute.xlu0 %141  ;;  %v13234_v15 = vld [vmem:[#allocation8 + $0xf8] sm:$0xff]  }
  0xec   :  { %vm183_vm7 = vcmp.eq.s32.totalorder %v145_v23, %v14152_v60  ;;  %vm181_vm8 = vcmp.eq.s32.totalorder %v142_v24, %v14152_v60  ;;  %vm182_vm10 = vcmp.eq.s32.totalorder %v145_v23, %v14149_v56 }
  0xed   :  { %10413 = vmatmul.mubr.msk.bf16.gmra.mrb[4].mxu0 %vm10412_vm11, %v14001_v11  ;;  %vm180_vm11 = vcmp.eq.s32.totalorder %v142_v24, %v14149_v56  ;;  %vm10422_vm12 = vmpackc.low %vm183_vm7, %vm181_vm8 }
  0xee   :  { %10415 = vmatprep.mubr.msk.bf16.mxu0 %vm10414_vm14, %v14001_v11  ;;  %11149 = vmatpush3.bf16.msra.mxu0 %v13187_v16  ;;  %vm10424_vm15 = vmpackc.low %vm182_vm10, %vm180_vm11  ;;  %v13238_v16 = vld [vmem:[#allocation8 + $0x278] sm:$0xff]  }
  0xef   :  { %11150 = vmatprep.subr.bf16.mxu0 %v13190_v17  ;;  %v151_v28 = vpop.permute.xlu1 %150  ;;  %v148_v29 = vpop.permute.xlu0 %147  ;;  %v13235_v17 = vld [vmem:[#allocation8 + $0xb8] sm:$0xff]  }
  0xf0   :  { %vm187_vm13 = vcmp.eq.s32.totalorder %v151_v28, %v14152_v60  ;;  %vm185_vm14 = vcmp.eq.s32.totalorder %v148_v29, %v14152_v60  ;;  %vm186_vm1 = vcmp.eq.s32.totalorder %v151_v28, %v14149_v56  ;;  %vm184_vm2 = vcmp.eq.s32.totalorder %v148_v29, %v14149_v56 }
  0xf1   :  { %vm10426_vm0 = vmpackc.low %vm187_vm13, %vm185_vm14 }
  0xf2   :  { %11151 = vmatpush3.bf16.msra.mxu0 %v13191_v20  ;;  %vm10428_vm5 = vmpackc.low %vm186_vm1, %vm184_vm2  ;;  %vm1005_vm1 = vcmask 1042432   ;;  %vm935_vm2 = vcmask 1043456   ;;  %v13250_v20 = vld [vmem:[#allocation8 + $0x340] sm:$0xff]  }
  0xf3   :  { %11152 = vmatprep.subr.bf16.mxu0 %v13194_v21  ;;  %v157_v32 = vpop.permute.xlu1 %156  ;;  %v154_v33 = vpop.permute.xlu0 %153  ;;  %v1008_v48 = vsel %vm1005_vm1, %v1006_v43, %v14210_v44  ;;  %v938_v49 = vsel %vm935_vm2, %v936_v46, %v14214_v47 }
  0xf4   :  { %vm189_vm4 = vcmp.eq.s32.totalorder %v154_v33, %v14152_v60  ;;  %vm190_vm7 = vcmp.eq.s32.totalorder %v157_v32, %v14149_v56  ;;  %vm188_vm8 = vcmp.eq.s32.totalorder %v154_v33, %v14149_v56 }
  0xf5   :  { %10417 = vmatmul.mubr.msk.bf16.gmra.mrb[8].mxu0 %vm10416_vm3, %v14001_v11  ;;  %vm191_vm3 = vcmp.eq.s32.totalorder %v157_v32, %v14152_v60  ;;  %vm10432_vm11 = vmpackc.low %vm190_vm7, %vm188_vm8 }
  0xf6   :  { %10419 = vmatprep.mubr.msk.bf16.mxu0 %vm10418_vm6, %v14001_v11  ;;  %11153 = vmatpush3.bf16.msra.mxu0 %v13195_v22  ;;  %vm10430_vm6 = vmpackc.low %vm191_vm3, %vm189_vm4  ;;  %vm865_vm3 = vcmask 1044480   ;;  %vm795_vm4 = vcmask 1045504  }
  0xf7   :  { %11154 = vmatprep.subr.bf16.mxu0 %v13198_v25  ;;  %v163_v34 = vpop.permute.xlu1 %162  ;;  %v160_v35 = vpop.permute.xlu0 %159 }
  0xf8   :  { %vm193_vm10 = vcmp.eq.s32.totalorder %v160_v35, %v14152_v60  ;;  %vm194_vm13 = vcmp.eq.s32.totalorder %v163_v34, %v14149_v56  ;;  %vm192_vm14 = vcmp.eq.s32.totalorder %v160_v35, %v14149_v56  ;;  %v13213_v56 = vld [vmem:[#allocation8 + $0x90] sm:$0xff]  }
  0xfa   :  { %11155 = vmatpush3.bf16.msra.mxu0 %v13199_v26 }
  0xfb   :  { %11156 = vmatprep.subr.bf16.mxu0 %v13202_v27 }
  0xfd   :  { %10421 = vmatmul.mubr.msk.bf16.gmra.mrb[12].mxu0 %vm10420_vm9, %v14001_v11  ;;  %vm195_vm9 = vcmp.eq.s32.totalorder %v163_v34, %v14152_v60  ;;  %v13219_v60 = vld [vmem:[#allocation8 + $0x200] sm:$0xff]  }
  0xfe   :  { %10423 = vmatprep.mubr.msk.bf16.mxu0 %vm10422_vm12, %v14001_v11  ;;  %11157 = vmatpush3.bf16.msra.mxu0 %v13203_v30  ;;  %vm10434_vm12 = vmpackc.low %vm195_vm9, %vm193_vm10 }
  0xff   :  { %11158 = vmatprep.subr.bf16.mxu0 %v13206_v31 }
 0x102   :  { %11159 = vmatpush3.bf16.msra.mxu0 %v13207_v41 }
 0x103   :  { %11272 = vmatprep.subr.bf16.mxu0 %v13218_v59 }
 0x105   :  { %10425 = vmatmul.mubr.msk.bf16.gmra.mrb[16].mxu0 %vm10424_vm15, %v14001_v11  ;;  %vm10436_vm15 = vmpackc.low %vm194_vm13, %vm192_vm14 }
 0x106   :  { %10427 = vmatprep.mubr.msk.bf16.mxu0 %vm10426_vm0, %v14001_v11  ;;  %vm613_vm0 = vcmask 1046528  }
 0x107   :  { %v728_v40 = vsel %vm613_vm0, %v726_v37, %v14205_v39 }
 0x108   :  { %1806 = vmatprep.mubr.bf16.mxu1 %v728_v40 }
 0x109   :  { %1807 = vmatmul.mubr.bf16.vlgmr.msra.gmra.mrb[0].mxu1 %v14202_v38 }
 0x10a   :  { %1814 = vmatprep.mubr.bf16.mxu1 %v14205_v39  ;;  %11081 = vmatpush3.bf16.msra.mxu1 %v13209_v51 }
 0x10b   :  { %11082 = vmatprep.subr.bf16.mxu1 %v13210_v52 }
 0x10d   :  { %10429 = vmatmul.mubr.msk.bf16.gmra.mrb[20].mxu0 %vm10428_vm5, %v14001_v11  ;;  %vm1145_vm5 = vcmask 1040384  }
 0x10e   :  { %10431 = vmatprep.mubr.msk.bf16.mxu0 %vm10430_vm6, %v14001_v11  ;;  %11083 = vmatpush3.bf16.msra.mxu1 %v13211_v54  ;;  %vm1075_vm6 = vcmask 1041408  }
 0x10f   :  { %11084 = vmatprep.subr.bf16.mxu1 %v13212_v55 }
 0x111   :  { %1815 = vmatmul.mubr.bf16.gmra.mrb[4].mxu1 %v14202_v38 }
 0x112   :  { %11085 = vmatpush3.bf16.msra.mxu1 %v13213_v56 }
 0x113   :  { %11086 = vmatprep.subr.bf16.mxu1 %v13214_v57 }
 0x115   :  { %10433 = vmatmul.mubr.msk.bf16.gmra.mrb[24].mxu0 %vm10432_vm11, %v14001_v11 }
 0x116   :  { %10435 = vmatprep.mubr.msk.bf16.mxu0 %vm10434_vm12, %v14001_v11  ;;  %11087 = vmatpush3.bf16.msra.mxu1 %v13215_v58 }
 0x117   :  { %11088 = vmatprep.subr.bf16.mxu1 %v13216_v63 }
 0x11a   :  { %11089 = vmatpush3.bf16.msra.mxu1 %v13217_v0 }
 0x11b   :  { %11090 = vmatprep.subr.bf16.mxu1 %v13222_v5 }
 0x11d   :  { %10437 = vmatmul.mubr.msk.bf16.gmra.mrb[28].mxu0 %vm10436_vm15, %v14001_v11  ;;  %v13228_v11 = vld [vmem:[#allocation8 + $0xf0] sm:$0xff]  }
 0x11e   :  { %2000 = vmatprep.mubr.bf16.mxu0 %v1008_v48  ;;  %11091 = vmatpush3.bf16.msra.mxu1 %v13223_v6 }
 0x11f   :  { %11092 = vmatprep.subr.bf16.mxu1 %v13228_v11 }
 0x122   :  { %11093 = vmatpush3.bf16.msra.mxu1 %v13229_v12 }
 0x123   :  { %11094 = vmatprep.subr.bf16.mxu1 %v13234_v15 }
 0x125   :  { %2001 = vmatmul.mubr.bf16.vlgmr.msra.gmra.mrb[32].mxu0 %v938_v49 }
 0x126   :  { %2008 = vmatprep.mubr.bf16.mxu0 %v14210_v44  ;;  %11273 = vmatpush3.bf16.msra.mxu0 %v13219_v60 }
 0x127   :  { %11274 = vmatprep.subr.bf16.mxu0 %v13220_v61  ;;  %11095 = vmatpush3.bf16.msra.mxu1 %v13235_v17 }
 0x128   :  { %11208 = vmatprep.subr.bf16.mxu1 %v13240_v19 }
 0x12a   :  { %11275 = vmatpush3.bf16.msra.mxu0 %v13221_v62 }
 0x12b   :  { %11276 = vmatprep.subr.bf16.mxu0 %v13224_v1 }
 0x12d   :  { %2009 = vmatmul.mubr.bf16.gmra.mrb[36].mxu0 %v14214_v47 }
 0x12e   :  { %11277 = vmatpush3.bf16.msra.mxu0 %v13225_v2 }
 0x12f   :  { %11278 = vmatprep.subr.bf16.mxu0 %v13226_v3 }
 0x132   :  { %11279 = vmatpush3.bf16.msra.mxu0 %v13227_v4 }
 0x133   :  { %11280 = vmatprep.subr.bf16.mxu0 %v13230_v7 }
 0x136   :  { %11281 = vmatpush3.bf16.msra.mxu0 %v13231_v8 }
 0x137   :  { %11282 = vmatprep.subr.bf16.mxu0 %v13232_v9 }
 0x13a   :  { %11283 = vmatpush3.bf16.msra.mxu0 %v13233_v10 }
 0x13b   :  { %11284 = vmatprep.subr.bf16.mxu0 %v13236_v13 }
 0x13e   :  { %11285 = vmatpush3.bf16.msra.mxu0 %v13237_v14 }
 0x13f   :  { %11286 = vmatprep.subr.bf16.mxu0 %v13238_v16 }
 0x142   :  { %11287 = vmatpush3.bf16.msra.mxu0 %v13239_v18 }
 0x143   :  { %11400 = vmatprep.subr.bf16.mxu0 %v13250_v20 }
 0x1b8   :  { %v502_v21 = vpop.f32.mrb[0].mxu0 }
 0x1b9   :  { %v504_v22 = vpop.f32.mrb[1].mxu0 }
 0x1ba   :  { %v506_v23 = vpop.f32.mrb[2].mxu0 }
 0x1bb   :  { %v581_v24 = vpack.c.bf16 %v506_v23, %v502_v21  ;;  %v508_v25 = vpop.f32.mrb[3].mxu0 }
 0x1bc   :  { %v582_v26 = vpack.c.bf16 %v508_v25, %v504_v22 }
 0x1bd   :  { %v614_v27 = vrot.slane %v581_v24, 1 }
 0x1be   :  { %v615_v28 = vrot.slane %v582_v26, 1 }
 0x1bf   :  { %662 = vst [vmem:[#allocation2 + $0x30] sm:$0x80] %v614_v27 }
 0x1c0   :  { %663 = vst [vmem:[#allocation2 + $0x38] sm:$0x80] %v615_v28  ;;  %v512_v29 = vpop.f32.mrb[4].mxu0 }
 0x1c1   :  { %v514_v30 = vpop.f32.mrb[5].mxu0 }
 0x1c2   :  { %v516_v31 = vpop.f32.mrb[6].mxu0 }
 0x1c3   :  { %v583_v32 = vpack.c.bf16 %v516_v31, %v512_v29  ;;  %v518_v33 = vpop.f32.mrb[7].mxu0 }
 0x1c4   :  { %v584_v34 = vpack.c.bf16 %v518_v33, %v514_v30 }
 0x1c5   :  { %v616_v35 = vrot.slane %v583_v32, 1 }
 0x1c6   :  { %v618_v36 = vrot.slane %v584_v34, 1  ;;  %v14224_v37 = vld [vmem:[#allocation2 + $0x30] sm:$0xff] }
 0x1c7   :  { %v14227_v40 = vsel %vm613_vm0, %v614_v27, %v616_v35  ;;  %v731_v41 = vrot.slane %v14224_v37, 1  ;;  %v1011_v42 = vrot.slane %v14224_v37, 5  ;;  %v941_v43 = vrot.slane %v14224_v37, 4 }
 0x1c8   :  { %664 = vst [vmem:[#allocation2 + $0x40] sm:$0xff] %v14227_v40  ;;  %v619_v45 = vsel %vm613_vm0, %v615_v28, %v618_v36  ;;  %v522_v46 = vpop.f32.mrb[8].mxu0  ;;  %v733_v48 = vrot.slane %v14227_v40, 1  ;;  %v1013_v49 = vrot.slane %v14227_v40, 5  ;;  %v943_v63 = vrot.slane %v14227_v40, 4 }
 0x1c9   :  { %665 = vst [vmem:[#allocation2 + $0x48] sm:$0xff] %v619_v45  ;;  %v524_v50 = vpop.f32.mrb[9].mxu0  ;;  %v14238_v51 = vsel %vm613_vm0, %v14205_v39, %v731_v41  ;;  %v14242_v52 = vsel %vm1005_vm1, %v14210_v44, %v1011_v42  ;;  %v14246_v54 = vsel %vm935_vm2, %v14214_v47, %v941_v43 }
 0x1ca   :  { %v526_v55 = vpop.f32.mrb[10].mxu0  ;;  %1822 = vmatprep.mubr.bf16.mxu1 %v14238_v51  ;;  %2016 = vmatprep.mubr.bf16.mxu0 %v14242_v52  ;;  %v14251_v56 = vsel %vm613_vm0, %v731_v41, %v733_v48  ;;  %v14254_v57 = vsel %vm1005_vm1, %v1011_v42, %v1013_v49  ;;  %v14269_v6 = vsel %vm935_vm2, %v941_v43, %v943_v63 }
 0x1cb   :  { %17557 = vst [vmem:[#allocation19_spill] sm:$0xff] %v14254_v57  ;;  %v585_v58 = vpack.c.bf16 %v526_v55, %v522_v46  ;;  %v528_v59 = vpop.f32.mrb[11].mxu0  ;;  %1823 = vmatmul.mubr.bf16.gmra.mrb[8].mxu1 %v14202_v38  ;;  %2017 = vmatmul.mubr.bf16.gmra.mrb[40].mxu0 %v14246_v54  ;;  %17558 = vst [vmem:[#allocation20_spill] sm:$0xff] %v14269_v6 }
 0x1cc   :  { %v586_v60 = vpack.c.bf16 %v528_v59, %v524_v50  ;;  %1830 = vmatprep.mubr.bf16.mxu1 %v14251_v56  ;;  %2024 = vmatprep.mubr.bf16.mxu0 %v14254_v57 }
 0x1cd   :  { %v620_v61 = vrot.slane %v585_v58, 1 }
 0x1ce   :  { %v622_v62 = vrot.slane %v586_v60, 1 }
 0x1cf   :  { %v14262_v0 = vsel %vm613_vm0, %v616_v35, %v620_v61 }
 0x1d0   :  { %666 = vst [vmem:[#allocation2 + $0x50] sm:$0xff] %v14262_v0  ;;  %v623_v1 = vsel %vm613_vm0, %v618_v36, %v622_v62  ;;  %v532_v2 = vpop.f32.mrb[12].mxu0  ;;  %v735_v38 = vrot.slane %v14262_v0, 1  ;;  %v1015_v3 = vrot.slane %v14262_v0, 5  ;;  %v945_v12 = vrot.slane %v14262_v0, 4 }
 0x1d1   :  { %667 = vst [vmem:[#allocation2 + $0x58] sm:$0xff] %v623_v1  ;;  %v534_v4 = vpop.f32.mrb[13].mxu0 }
 0x1d2   :  { %v536_v5 = vpop.f32.mrb[14].mxu0  ;;  %v14272_v7 = vsel %vm613_vm0, %v733_v48, %v735_v38  ;;  %v14275_v8 = vsel %vm1005_vm1, %v1013_v49, %v1015_v3  ;;  %v14290_v22 = vsel %vm935_vm2, %v943_v63, %v945_v12 }
 0x1d3   :  { %17559 = vst [vmem:[#allocation21_spill] sm:$0xff] %v14275_v8  ;;  %v587_v9 = vpack.c.bf16 %v536_v5, %v532_v2  ;;  %v538_v10 = vpop.f32.mrb[15].mxu0  ;;  %1831 = vmatmul.mubr.bf16.gmra.mrb[12].mxu1 %v14224_v37  ;;  %2025 = vmatmul.mubr.bf16.gmra.mrb[44].mxu0 %v14269_v6  ;;  %17560 = vst [vmem:[#allocation22_spill] sm:$0xff] %v14290_v22  ;;  %v841_v2 = vld [vmem:[#allocation2] sm:$0xf8] }
 0x1d4   :  { %v588_v11 = vpack.c.bf16 %v538_v10, %v534_v4  ;;  %1838 = vmatprep.mubr.bf16.mxu1 %v14272_v7  ;;  %2032 = vmatprep.mubr.bf16.mxu0 %v14275_v8 }
 0x1d5   :  { %v624_v13 = vrot.slane %v587_v9, 1 }
 0x1d6   :  { %v626_v14 = vrot.slane %v588_v11, 1 }
 0x1d7   :  { %v14283_v15 = vsel %vm613_vm0, %v620_v61, %v624_v13 }
 0x1d8   :  { %668 = vst [vmem:[#allocation2 + $0x60] sm:$0xff] %v14283_v15  ;;  %v627_v16 = vsel %vm613_vm0, %v622_v62, %v626_v14  ;;  %v542_v17 = vpop.f32.mrb[16].mxu0  ;;  %v737_v18 = vrot.slane %v14283_v15, 1  ;;  %v1017_v19 = vrot.slane %v14283_v15, 5  ;;  %v947_v29 = vrot.slane %v14283_v15, 4 }
 0x1d9   :  { %669 = vst [vmem:[#allocation2 + $0x68] sm:$0xff] %v627_v16  ;;  %v544_v20 = vpop.f32.mrb[17].mxu0 }
 0x1da   :  { %v546_v21 = vpop.f32.mrb[18].mxu0  ;;  %v14293_v23 = vsel %vm613_vm0, %v735_v38, %v737_v18  ;;  %v14296_v24 = vsel %vm1005_vm1, %v1015_v3, %v1017_v19  ;;  %v14311_v42 = vsel %vm935_vm2, %v945_v12, %v947_v29  ;;  %v866_v12 = vrot.slane %v841_v2, 3 }
 0x1db   :  { %17561 = vst [vmem:[#allocation23_spill] sm:$0xff] %v14293_v23  ;;  %17562 = vst [vmem:[#allocation24_spill] sm:$0xff] %v14296_v24  ;;  %v589_v25 = vpack.c.bf16 %v546_v21, %v542_v17  ;;  %v548_v26 = vpop.f32.mrb[19].mxu0  ;;  %1839 = vmatmul.mubr.bf16.gmra.mrb[16].mxu1 %v14227_v40  ;;  %2033 = vmatmul.mubr.bf16.gmra.mrb[48].mxu0 %v14290_v22 }
 0x1dc   :  { %v590_v27 = vpack.c.bf16 %v548_v26, %v544_v20  ;;  %1846 = vmatprep.mubr.bf16.mxu1 %v14293_v23  ;;  %2040 = vmatprep.mubr.bf16.mxu0 %v14296_v24  ;;  %v771_v26 = vld [vmem:[#allocation2] sm:$0xfc] }
 0x1dd   :  { %v628_v28 = vrot.slane %v589_v25, 1 }
 0x1de   :  { %v630_v30 = vrot.slane %v590_v27, 1 }
 0x1df   :  { %v14304_v31 = vsel %vm613_vm0, %v624_v13, %v628_v28 }
 0x1e0   :  { %670 = vst [vmem:[#allocation2 + $0x70] sm:$0xff] %v14304_v31  ;;  %v631_v32 = vsel %vm613_vm0, %v626_v14, %v630_v30  ;;  %v552_v33 = vpop.f32.mrb[20].mxu0  ;;  %v739_v34 = vrot.slane %v14304_v31, 1  ;;  %v1019_v35 = vrot.slane %v14304_v31, 5  ;;  %v949_v58 = vrot.slane %v14304_v31, 4  ;;  %v14344_v14 = vld [vmem:[#allocation2 + $0x48] sm:$0xff] }
 0x1e1   :  { %671 = vst [vmem:[#allocation2 + $0x78] sm:$0xff] %v631_v32  ;;  %v554_v36 = vpop.f32.mrb[21].mxu0  ;;  %v5671_v2 = vrot.slane %v14344_v14, 6 }
 0x1e2   :  { %v556_v41 = vpop.f32.mrb[22].mxu0  ;;  %v14314_v43 = vsel %vm613_vm0, %v737_v18, %v739_v34  ;;  %v14317_v45 = vsel %vm1005_vm1, %v1017_v19, %v1019_v35  ;;  %v14332_v3 = vsel %vm935_vm2, %v947_v29, %v949_v58  ;;  %v14350_v19 = vld [vmem:[#allocation2] sm:$0xff]  ;;  %v14359_v29 = vld [vmem:[#allocation2 + $0x38] sm:$0xff] }
 0x1e3   :  { %17563 = vst [vmem:[#allocation25_spill] sm:$0xff] %v14314_v43  ;;  %v591_v46 = vpack.c.bf16 %v556_v41, %v552_v33  ;;  %v558_v48 = vpop.f32.mrb[23].mxu0  ;;  %1847 = vmatmul.mubr.bf16.gmra.mrb[20].mxu1 %v14262_v0  ;;  %2041 = vmatmul.mubr.bf16.gmra.mrb[52].mxu0 %v14311_v42  ;;  %v14353_v20 = vrot.slane %v14350_v19, 3  ;;  %17565 = vst [vmem:[#allocation27_spill] sm:$0xff] %v14359_v29  ;;  %v5740_v33 = vrot.slane %v14344_v14, 7 }
 0x1e4   :  { %v592_v49 = vpack.c.bf16 %v558_v48, %v554_v36  ;;  %1854 = vmatprep.mubr.bf16.mxu1 %v14314_v43  ;;  %2048 = vmatprep.mubr.bf16.mxu0 %v14317_v45 }
 0x1e5   :  { %v632_v50 = vrot.slane %v591_v46, 1  ;;  %v868_v32 = vsel %vm865_vm3, %v866_v12, %v14353_v20  ;;  %v13241_v12 = vld [vmem:[#allocation8 + $0x180] sm:$0xff]  }
 0x1e6   :  { %v634_v55 = vrot.slane %v592_v49, 1  ;;  %v796_v49 = vrot.slane %v771_v26, 2 }
 0x1e7   :  { %v14325_v59 = vsel %vm613_vm0, %v628_v28, %v632_v50 }
 0x1e8   :  { %672 = vst [vmem:[#allocation2 + $0x80] sm:$0xff] %v14325_v59  ;;  %v635_v60 = vsel %vm613_vm0, %v630_v30, %v634_v55  ;;  %v562_v61 = vpop.f32.mrb[24].mxu0  ;;  %v741_v62 = vrot.slane %v14325_v59, 1  ;;  %v1021_v63 = vrot.slane %v14325_v59, 5  ;;  %v17362_v17 = vrot.slane %v14325_v59, 4 }
 0x1e9   :  { %673 = vst [vmem:[#allocation2 + $0x88] sm:$0xff] %v635_v60  ;;  %v564_v1 = vpop.f32.mrb[25].mxu0  ;;  %v14384_v60 = vrot.slane %v14350_v19, 2 }
 0x1ea   :  { %v566_v38 = vpop.f32.mrb[26].mxu0  ;;  %v14335_v4 = vsel %vm613_vm0, %v739_v34, %v741_v62  ;;  %v14338_v5 = vsel %vm1005_vm1, %v1019_v35, %v1021_v63  ;;  %v14367_v35 = vsel %vm935_vm2, %v949_v58, %v17362_v17 }
 0x1eb   :  { %17564 = vst [vmem:[#allocation26_spill] sm:$0xff] %v14335_v4  ;;  %v593_v9 = vpack.c.bf16 %v566_v38, %v562_v61  ;;  %v568_v10 = vpop.f32.mrb[27].mxu0  ;;  %1855 = vmatmul.mubr.bf16.gmra.mrb[24].mxu1 %v14283_v15  ;;  %2049 = vmatmul.mubr.bf16.gmra.mrb[56].mxu0 %v14332_v3  ;;  %v5439_v61 = vld [vmem:[#allocation2 + $0x68] sm:$0xff] }
 0x1ec   :  { %v594_v11 = vpack.c.bf16 %v568_v10, %v564_v1  ;;  %1862 = vmatprep.mubr.bf16.mxu1 %v14335_v4  ;;  %2056 = vmatprep.mubr.bf16.mxu0 %v14338_v5  ;;  %v17357_v10 = vrot.slane %v14359_v29, 6  ;;  %v5744_v26 = vrot.slane %v5439_v61, 7  ;;  %v5675_v14 = vrot.slane %v5439_v61, 6  ;;  %v13244_v61 = vld [vmem:[#allocation8 + $0x1d0] sm:$0xff]  }
 0x1ed   :  { %v636_v13 = vrot.slane %v593_v9, 1 }
 0x1ee   :  { %v638_v16 = vrot.slane %v594_v11, 1 }
 0x1ef   :  { %v14348_v18 = vsel %vm613_vm0, %v632_v50, %v636_v13  ;;  %v5438_v50 = vld [vmem:[#allocation2 + $0x58] sm:$0xff] }
 0x1f0   :  { %674 = vst [vmem:[#allocation2 + $0x90] sm:$0xff] %v14348_v18  ;;  %v639_v21 = vsel %vm613_vm0, %v634_v55, %v638_v16  ;;  %v572_v25 = vpop.f32.mrb[28].mxu0  ;;  %v17361_v27 = vrot.slane %v14348_v18, 1  ;;  %v1023_v28 = vrot.slane %v14348_v18, 5  ;;  %v17358_v55 = vrot.slane %v14359_v29, 7 }
 0x1f1   :  { %675 = vst [vmem:[#allocation2 + $0x98] sm:$0xff] %v639_v21  ;;  %v574_v30 = vpop.f32.mrb[29].mxu0  ;;  %v5742_v38 = vrot.slane %v5438_v50, 7  ;;  %v14397_v21 = vld [vmem:[#allocation2 + $0x78] sm:$0xff] }
 0x1f2   :  { %v576_v34 = vpop.f32.mrb[30].mxu0  ;;  %v14372_v36 = vsel %vm613_vm0, %v741_v62, %v17361_v27  ;;  %v14377_v41 = vsel %vm1005_vm1, %v1021_v63, %v1023_v28  ;;  %v14389_v63 = vsel %vm1145_vm5, %v17358_v55, %v5740_v33  ;;  %17568 = vst [vmem:[#allocation30_spill] sm:$0xff] %v14397_v21  ;;  %v13248_v55 = vld [vmem:[#allocation8 + $0x1e0] sm:$0xff]  }
 0x1f3   :  { %17566 = vst [vmem:[#allocation28_spill] sm:$0xff] %v14372_v36  ;;  %v595_v46 = vpack.c.bf16 %v576_v34, %v572_v25  ;;  %v578_v48 = vpop.f32.mrb[31].mxu0  ;;  %1863 = vmatmul.mubr.bf16.gmra.mrb[28].mxu1 %v14304_v31  ;;  %2057 = vmatmul.mubr.bf16.gmra.mrb[60].mxu0 %v14367_v35  ;;  %17567 = vst [vmem:[#allocation29_spill] sm:$0xff] %v14389_v63  ;;  %v5673_v25 = vrot.slane %v5438_v50, 6  ;;  %v14405_v34 = vsel %vm1145_vm5, %v5740_v33, %v5742_v38 }
 0x1f4   :  { %v596_v58 = vpack.c.bf16 %v578_v48, %v574_v30  ;;  %1903 = vmatprep.mubr.bf16.mxu1 %v868_v32  ;;  %2787 = vmatprep.mubr.bf16.mxu0 %v14205_v39  ;;  %v798_v39 = vsel %vm795_vm4, %v796_v49, %v14384_v60  ;;  %v13242_v30 = vld [vmem:[#allocation8 + $0x1c8] sm:$0xff]   ;;  %v14402_v32 = vsel %vm1075_vm6, %v17357_v10, %v5671_v2  ;;  %v17356_v33 = vrot.slane %v14397_v21, 6  ;;  %v13258_v10 = vld [vmem:[#allocation8 + $0x358] sm:$0xff]  }
 0x1f5   :  { %v640_v62 = vrot.slane %v595_v46, 1  ;;  %17569 = vst [vmem:[#allocation31_spill] sm:$0xff] %v14402_v32  ;;  %17570 = vst [vmem:[#allocation32_spill] sm:$0xff] %v14405_v34  ;;  %v17355_v46 = vrot.slane %v14397_v21, 7  ;;  %v13243_v48 = vld [vmem:[#allocation8 + $0x188] sm:$0xff]   ;;  %v14411_v49 = vsel %vm1075_vm6, %v5671_v2, %v5673_v25  ;;  %v14414_v50 = vsel %vm1145_vm5, %v5742_v38, %v5744_v26  ;;  %v13269_v34 = vld [vmem:[#allocation8 + $0x330] sm:$0xff]  }
 0x1f6   :  { %v642_v1 = vrot.slane %v596_v58, 1  ;;  %17571 = vst [vmem:[#allocation33_spill] sm:$0xff] %v14411_v49  ;;  %17572 = vst [vmem:[#allocation34_spill] sm:$0xff] %v14414_v50  ;;  %v14417_v58 = vsel %vm1075_vm6, %v5673_v25, %v5675_v14  ;;  %v13253_v2 = vld [vmem:[#allocation8 + $0x308] sm:$0xff]   ;;  %v875_v50 = vrot.slane %v14262_v0, 3  ;;  %v13266_v49 = vld [vmem:[#allocation8 + $0x1f8] sm:$0xff]  }
 0x1f7   :  { %v641_v9 = vsel %vm613_vm0, %v636_v13, %v640_v62  ;;  %678 = vst [vmem:[#allocation2 + $0xb0] sm:$0x7f] %v640_v62  ;;  %v13251_v13 = vld [vmem:[#allocation8 + $0x300] sm:$0xff]   ;;  %17573 = vst [vmem:[#allocation35_spill] sm:$0xff] %v14417_v58  ;;  %v14421_v62 = vld [vmem:[#allocation2 + $0x90] sm:$0xff]  ;;  %v877_v63 = vrot.slane %v14283_v15, 3 }
 0x1f8   :  { %676 = vst [vmem:[#allocation2 + $0xa0] sm:$0xff] %v641_v9  ;;  %v643_v11 = vsel %vm613_vm0, %v638_v16, %v642_v1  ;;  %679 = vst [vmem:[#allocation2 + $0xb8] sm:$0x7f] %v642_v1  ;;  %v13252_v16 = vld [vmem:[#allocation8 + $0x348] sm:$0xff]   ;;  %v14426_v1 = vsel %vm1145_vm5, %v5744_v26, %v17355_v46  ;;  %v5304_v38 = vld [vmem:[#allocation2 + $0x98] sm:$0xff]  ;;  %v14431_v9 = vsel %vm1075_vm6, %v5675_v14, %v17356_v33 }
 0x1f9   :  { %677 = vst [vmem:[#allocation2 + $0xa8] sm:$0xff] %v643_v11  ;;  %17574 = vst [vmem:[#allocation36_spill] sm:$0xff] %v14421_v62  ;;  %v5612_v46 = vrot.slane %v5304_v38, 5  ;;  %v13246_v14 = vld [vmem:[#allocation8 + $0x1d8] sm:$0xff]   ;;  %v13257_v33 = vld [vmem:[#allocation8 + $0x310] sm:$0xff]   ;;  %v5543_v21 = vrot.slane %v5304_v38, 4 }
 0x1fa   :  { %17575 = vst [vmem:[#allocation37_spill] sm:$0xff] %v14426_v1  ;;  %17576 = vst [vmem:[#allocation38_spill] sm:$0xff] %v14431_v9  ;;  %v873_v9 = vrot.slane %v14227_v40, 3  ;;  %v13249_v1 = vld [vmem:[#allocation8 + $0x1a0] sm:$0xff]   ;;  %v13254_v58 = vld [vmem:[#allocation8 + $0x1e8] sm:$0xff]  }
 0x1fb   :  { %1904 = vmatmul.mubr.bf16.vlgmr.msra.gmra.mrb[32].mxu1 %v798_v39  ;;  %2788 = vmatmul.mubr.bf16.vlgmr.msra.gmra.mrb[64].mxu0 %v14350_v19  ;;  %v871_v39 = vrot.slane %v14224_v37, 3  ;;  %v13263_v38 = vld [vmem:[#allocation8 + $0x320] sm:$0xff]  }
 0x1fc   :  { %11209 = vmatpush3.bf16.msra.mxu1 %v13241_v12  ;;  %2795 = vmatprep.mubr.bf16.mxu0 %v14238_v51  ;;  %v17363_v12 = vrot.slane %v14421_v62, 4 }
 0x1fd   :  { %1911 = vmatprep.mubr.bf16.mxu1 %v14353_v20  ;;  %11210 = vmatprep.subr.bf16.mxu1 %v13242_v30  ;;  %v14439_v30 = vld [vmem:[#allocation2 + $0x88] sm:$0xff] }
 0x1fe   :  { %11401 = vmatpush3.bf16.msra.mxu0 %v13251_v13  ;;  %17578 = vst [vmem:[#allocation40_spill] sm:$0xff] %v14439_v30  ;;  %v13245_v13 = vld [vmem:[#allocation8 + $0x190] sm:$0xff]  }
 0x1ff   :  { %11402 = vmatprep.subr.bf16.mxu0 %v13252_v16  ;;  %v14434_v11 = vld [vmem:[#allocation2 + $0xa0] sm:$0xff] }
 0x200   :  { %17577 = vst [vmem:[#allocation39_spill] sm:$0xff] %v14434_v11  ;;  %11211 = vmatpush3.bf16.msra.mxu1 %v13243_v48  ;;  %v17359_v25 = vrot.slane %v14434_v11, 5  ;;  %v17360_v26 = vrot.slane %v14434_v11, 4  ;;  %v14470_v17 = vld [vmem:[#allocation2 + $0xa8] sm:$0xff] }
 0x201   :  { %11212 = vmatprep.subr.bf16.mxu1 %v13244_v61  ;;  %v14459_v61 = vsel %vm865_vm3, %v14353_v20, %v871_v39  ;;  %17582 = vst [vmem:[#allocation44_spill] sm:$0xff] %v14470_v17 }
 0x202   :  { %11403 = vmatpush3.bf16.msra.mxu0 %v13253_v2  ;;  %v14446_v16 = vsel %vm1005_vm1, %v1023_v28, %v17359_v25  ;;  %v14453_v48 = vsel %vm935_vm2, %v17363_v12, %v17360_v26  ;;  %v13247_v2 = vld [vmem:[#allocation8 + $0x198] sm:$0xff]   ;;  %v17369_v28 = vrot.slane %v14439_v30, 5  ;;  %v801_v26 = vrot.slane %v14224_v37, 2 }
 0x203   :  { %17579 = vst [vmem:[#allocation41_spill] sm:$0xff] %v14446_v16  ;;  %17580 = vst [vmem:[#allocation42_spill] sm:$0xff] %v14453_v48  ;;  %1912 = vmatmul.mubr.bf16.gmra.mrb[36].mxu1 %v14384_v60  ;;  %2796 = vmatmul.mubr.bf16.gmra.mrb[68].mxu0 %v14350_v19  ;;  %v13259_v25 = vld [vmem:[#allocation8 + $0x318] sm:$0xff]   ;;  %v17370_v12 = vrot.slane %v14439_v30, 4  ;;  %v13281_v16 = vld [vmem:[#allocation8 + $0x2a0] sm:$0xff]  }
 0x204   :  { %1919 = vmatprep.mubr.bf16.mxu1 %v14459_v61  ;;  %2803 = vmatprep.mubr.bf16.mxu0 %v14251_v56  ;;  %v14468_v27 = vsel %vm1005_vm1, %v17369_v28, %v5612_v46  ;;  %v13262_v28 = vld [vmem:[#allocation8 + $0x360] sm:$0xff]  }
 0x205   :  { %11213 = vmatpush3.bf16.msra.mxu1 %v13245_v13  ;;  %11404 = vmatprep.subr.bf16.mxu0 %v13256_v53  ;;  %17581 = vst [vmem:[#allocation43_spill] sm:$0xff] %v14468_v27  ;;  %v14477_v53 = vsel %vm935_vm2, %v17370_v12, %v5543_v21  ;;  %v17373_v13 = vrot.slane %v14470_v17, 5  ;;  %v13255_v12 = vld [vmem:[#allocation8 + $0x1a8] sm:$0xff]   ;;  %v17586_v27 = vrot.slane %v14470_v17, 4  ;;  %v13268_v17 = vld [vmem:[#allocation8 + $0x370] sm:$0xff]  }
 0x206   :  { %11214 = vmatprep.subr.bf16.mxu1 %v13246_v14  ;;  %11405 = vmatpush3.bf16.msra.mxu0 %v13257_v33  ;;  %17583 = vst [vmem:[#allocation45_spill] sm:$0xff] %v14477_v53  ;;  %v14483_v33 = vsel %vm795_vm4, %v14384_v60, %v801_v26  ;;  %v13264_v14 = vld [vmem:[#allocation8 + $0x368] sm:$0xff]   ;;  %v11032_v53 = vpop.f32.mrb[0].mxu1 }
 0x207   :  { %11406 = vmatprep.subr.bf16.mxu0 %v13258_v10  ;;  %v14488_v10 = vsel %vm1005_vm1, %v5612_v46, %v17373_v13  ;;  %v13260_v46 = vld [vmem:[#allocation8 + $0x1f0] sm:$0xff]   ;;  %v11033_v13 = vpop.f32.mrb[1].mxu1 }
 0x208   :  { %17584 = vst [vmem:[#allocation46_spill] sm:$0xff] %v14488_v10  ;;  %v11035_v10 = vpop.f32.mrb[2].mxu1 }
 0x209   :  { %11215 = vmatpush3.bf16.msra.mxu1 %v13247_v2  ;;  %v14493_v2 = vsel %vm865_vm3, %v871_v39, %v873_v9  ;;  %v14503_v39 = vadd.f32 %v11033_v13, %v11032_v53  ;;  %v13272_v13 = vld [vmem:[#allocation8 + $0x2c0] sm:$0xff]  }
 0x20a   :  { %11216 = vmatprep.subr.bf16.mxu1 %v13248_v55  ;;  %11407 = vmatpush3.bf16.msra.mxu0 %v13259_v25  ;;  %17585 = vst [vmem:[#allocation47_spill] sm:$0xff] %v14493_v2  ;;  %v14498_v55 = vsel %vm935_vm2, %v5543_v21, %v17586_v27  ;;  %v13265_v25 = vld [vmem:[#allocation8 + $0x328] sm:$0xff]   ;;  %v11036_v27 = vpop.f32.mrb[3].mxu1  ;;  %v13261_v21 = vld [vmem:[#allocation8 + $0x1b0] sm:$0xff]  }
 0x20b   :  { %1920 = vmatmul.mubr.bf16.gmra.mrb[40].mxu1 %v14483_v33  ;;  %2804 = vmatmul.mubr.bf16.gmra.mrb[72].mxu0 %v14224_v37  ;;  %17587 = vst [vmem:[#allocation48_spill] sm:$0xff] %v14498_v55  ;;  %v803_v37 = vrot.slane %v14227_v40, 2  ;;  %v14506_v55 = vadd.f32 %v11036_v27, %v11035_v10  ;;  %v11038_v53 = vpop.f32.mrb[4].mxu1 }
 0x20c   :  { %1927 = vmatprep.mubr.bf16.mxu1 %v14493_v2  ;;  %2811 = vmatprep.mubr.bf16.mxu0 %v14272_v7 }
 0x20d   :  { %11217 = vmatpush3.bf16.msra.mxu1 %v13249_v1  ;;  %11408 = vmatprep.subr.bf16.mxu0 %v13262_v28  ;;  %v14509_v32 = vsel %vm795_vm4, %v801_v26, %v803_v37  ;;  %v13267_v1 = vld [vmem:[#allocation8 + $0x1b8] sm:$0xff]  }
 0x20e   :  { %11218 = vmatprep.subr.bf16.mxu1 %v13254_v58  ;;  %11409 = vmatpush3.bf16.msra.mxu0 %v13263_v38  ;;  %17588 = vst [vmem:[#allocation49_spill] sm:$0xff] %v14509_v32  ;;  %v14514_v58 = vsel %vm865_vm3, %v873_v9, %v875_v50  ;;  %v13270_v28 = vld [vmem:[#allocation8 + $0x378] sm:$0xff]   ;;  %v11160_v38 = vpop.f32.mrb[32].mxu0 }
 0x20f   :  { %11410 = vmatprep.subr.bf16.mxu0 %v13264_v14  ;;  %17589 = vst [vmem:[#allocation50_spill] sm:$0xff] %v14514_v58  ;;  %v13271_v26 = vld [vmem:[#allocation8 + $0x338] sm:$0xff]   ;;  %v11039_v14 = vpop.f32.mrb[5].mxu1  ;;  %v11161_v9 = vpop.f32.mrb[33].mxu0 }
 0x210   :  { %v14519_v10 = vadd.f32 %v11039_v14, %v11038_v53  ;;  %v11163_v27 = vpop.f32.mrb[34].mxu0 }
 0x211   :  { %11219 = vmatpush3.bf16.msra.mxu1 %v13255_v12  ;;  %v805_v12 = vrot.slane %v14262_v0, 2  ;;  %v11164_v30 = vpop.f32.mrb[35].mxu0 }
 0x212   :  { %11220 = vmatprep.subr.bf16.mxu1 %v13260_v46  ;;  %11411 = vmatpush3.bf16.msra.mxu0 %v13265_v25  ;;  %17590 = vst [vmem:[#allocation51_spill] sm:$0xff] %v14519_v10  ;;  %v14521_v25 = vadd.f32 %v11161_v9, %v11160_v38  ;;  %v14526_v48 = vadd.f32 %v11164_v30, %v11163_v27  ;;  %v17389_v38 = vrot.slane %v14325_v59, 3  ;;  %v13300_v10 = vld [vmem:[#allocation8 + $0x470] sm:$0xff]  }
 0x213   :  { %1928 = vmatmul.mubr.bf16.gmra.mrb[44].mxu1 %v14509_v32  ;;  %2812 = vmatmul.mubr.bf16.gmra.mrb[76].mxu0 %v14227_v40  ;;  %v11041_v40 = vpop.f32.mrb[6].mxu1  ;;  %v14529_v14 = vsel %vm795_vm4, %v803_v37, %v805_v12  ;;  %v807_v37 = vrot.slane %v14283_v15, 2 }
 0x214   :  { %1935 = vmatprep.mubr.bf16.mxu1 %v14514_v58  ;;  %2819 = vmatprep.mubr.bf16.mxu0 %v14293_v23  ;;  %v11042_v46 = vpop.f32.mrb[7].mxu1  ;;  %17591 = vst [vmem:[#allocation52_spill] sm:$0xff] %v14521_v25  ;;  %17593 = vst [vmem:[#allocation54_spill] sm:$0xff] %v14526_v48  ;;  %v13298_v25 = vld [vmem:[#allocation8 + $0x2f8] sm:$0xff]  }
 0x215   :  { %11221 = vmatpush3.bf16.msra.mxu1 %v13261_v21  ;;  %11412 = vmatprep.subr.bf16.mxu0 %v13268_v17  ;;  %v14524_v29 = vadd.f32 %v11042_v46, %v11041_v40  ;;  %v11166_v21 = vpop.f32.mrb[36].mxu0  ;;  %v13282_v17 = vld [vmem:[#allocation8 + $0x440] sm:$0xff]   ;;  %17594 = vst [vmem:[#allocation55_spill] sm:$0xff] %v14529_v14 }
 0x216   :  { %11222 = vmatprep.subr.bf16.mxu1 %v13266_v49  ;;  %11413 = vmatpush3.bf16.msra.mxu0 %v13269_v34  ;;  %v11167_v53 = vpop.f32.mrb[37].mxu0  ;;  %v1121_v40 = vld [vmem:[#allocation2] sm:$0x80] }
 0x217   :  { %11414 = vmatprep.subr.bf16.mxu0 %v13270_v28  ;;  %17592 = vst [vmem:[#allocation53_spill] sm:$0xff] %v14524_v29  ;;  %v14531_v34 = vadd.f32 %v11167_v53, %v11166_v21  ;;  %v11169_v49 = vpop.f32.mrb[38].mxu0  ;;  %v14536_v28 = vsel %vm865_vm3, %v875_v50, %v877_v63  ;;  %v809_v50 = vrot.slane %v14304_v31, 2  ;;  %v1146_v46 = vrot.slane %v1121_v40, 7  ;;  %v1051_v21 = vld [vmem:[#allocation2] sm:$0xc0] }
 0x218   :  { %17596 = vst [vmem:[#allocation57_spill] sm:$0xff] %v14536_v28  ;;  %v11170_v30 = vpop.f32.mrb[39].mxu0  ;;  %v14583_v53 = vrot.slane %v14350_v19, 6  ;;  %v13275_v40 = vld [vmem:[#allocation8 + $0x288] sm:$0xff]  }
 0x219   :  { %11223 = vmatpush3.bf16.msra.mxu1 %v13267_v1  ;;  %17595 = vst [vmem:[#allocation56_spill] sm:$0xff] %v14531_v34  ;;  %v879_v1 = vrot.slane %v14304_v31, 3  ;;  %v14557_v9 = vsel %vm795_vm4, %v807_v37, %v809_v50  ;;  %v13286_v29 = vld [vmem:[#allocation8 + $0x2e8] sm:$0xff]  }
 0x21a   :  { %11415 = vmatpush3.bf16.msra.mxu0 %v13271_v26  ;;  %11336 = vmatprep.subr.bf16.mxu1 %v13272_v13  ;;  %v14542_v26 = vadd.f32 %v11170_v30, %v11169_v49  ;;  %v14545_v13 = vsel %vm795_vm4, %v805_v12, %v807_v37  ;;  %17600 = vst [vmem:[#allocation61_spill] sm:$0xff] %v14557_v9  ;;  %v17388_v12 = vrot.slane %v14325_v59, 2  ;;  %v13273_v30 = vld [vmem:[#allocation8 + $0x280] sm:$0xff]   ;;  %v13274_v37 = vld [vmem:[#allocation8 + $0x2c8] sm:$0xff]  }
 0x21b   :  { %1936 = vmatmul.mubr.bf16.gmra.mrb[48].mxu1 %v14529_v14  ;;  %2820 = vmatmul.mubr.bf16.gmra.mrb[80].mxu0 %v14262_v0  ;;  %17598 = vst [vmem:[#allocation59_spill] sm:$0xff] %v14545_v13  ;;  %v14550_v0 = vsel %vm865_vm3, %v877_v63, %v879_v1  ;;  %v14567_v63 = vrot.slane %v14350_v19, 7 }
 0x21c   :  { %1943 = vmatprep.mubr.bf16.mxu1 %v14536_v28  ;;  %2827 = vmatprep.mubr.bf16.mxu0 %v14314_v43  ;;  %17597 = vst [vmem:[#allocation58_spill] sm:$0xff] %v14542_v26  ;;  %17599 = vst [vmem:[#allocation60_spill] sm:$0xff] %v14550_v0  ;;  %v13294_v26 = vld [vmem:[#allocation8 + $0x460] sm:$0xff]  }
 0x21d   :  { %11528 = vmatprep.subr.bf16.mxu0 %v13282_v17  ;;  %v1148_v27 = vsel %vm1145_vm5, %v1146_v46, %v14567_v63  ;;  %v1076_v17 = vrot.slane %v1051_v21, 6  ;;  %v1124_v46 = vld [vmem:[#allocation2 + $0x30] sm:$0xff] }
 0x21e   :  { %v1151_v21 = vrot.slane %v1124_v46, 7 }
 0x21f   :  { %v1078_v49 = vsel %vm1075_vm6, %v1076_v17, %v14583_v53  ;;  %v13277_v17 = vld [vmem:[#allocation8 + $0x290] sm:$0xff]  }
 0x223   :  { %1944 = vmatmul.mubr.bf16.gmra.mrb[52].mxu1 %v14545_v13  ;;  %2828 = vmatmul.mubr.bf16.gmra.mrb[84].mxu0 %v14283_v15  ;;  %v14564_v15 = vsel %vm865_vm3, %v879_v1, %v17389_v38  ;;  %v13283_v1 = vld [vmem:[#allocation8 + $0x400] sm:$0xff]  }
 0x224   :  { %1951 = vmatprep.mubr.bf16.mxu1 %v14550_v0  ;;  %2835 = vmatprep.mubr.bf16.mxu0 %v14335_v4  ;;  %17601 = vst [vmem:[#allocation62_spill] sm:$0xff] %v14564_v15 }
 0x22b   :  { %1952 = vmatmul.mubr.bf16.gmra.mrb[56].mxu1 %v14557_v9  ;;  %2836 = vmatmul.mubr.bf16.gmra.mrb[88].mxu0 %v14304_v31  ;;  %v14577_v31 = vsel %vm795_vm4, %v809_v50, %v17388_v12  ;;  %v13284_v50 = vld [vmem:[#allocation8 + $0x448] sm:$0xff]   ;;  %v13278_v12 = vld [vmem:[#allocation8 + $0x2d8] sm:$0xff]  }
 0x22c   :  { %1959 = vmatprep.mubr.bf16.mxu1 %v14564_v15  ;;  %2843 = vmatprep.mubr.bf16.mxu0 %v14372_v36  ;;  %17602 = vst [vmem:[#allocation63_spill] sm:$0xff] %v14577_v31 }
 0x233   :  { %1960 = vmatmul.mubr.bf16.gmra.mrb[60].mxu1 %v14577_v31  ;;  %2844 = vmatmul.mubr.bf16.gmra.mrb[92].mxu0 %v14325_v59 }
 0x234   :  { %2097 = vmatprep.mubr.bf16.mxu1 %v1148_v27  ;;  %2981 = vmatprep.mubr.bf16.mxu0 %v14210_v44  ;;  %v13276_v44 = vld [vmem:[#allocation8 + $0x2d0] sm:$0xff]   ;;  %v13285_v27 = vld [vmem:[#allocation8 + $0x408] sm:$0xff]  }
 0x23b   :  { %2098 = vmatmul.mubr.bf16.vlgmr.msra.gmra.mrb[64].mxu1 %v1078_v49  ;;  %2982 = vmatmul.mubr.bf16.vlgmr.msra.gmra.mrb[96].mxu0 %v14214_v47  ;;  %v13288_v49 = vld [vmem:[#allocation8 + $0x450] sm:$0xff]  }
 0x23c   :  { %11337 = vmatpush3.bf16.msra.mxu1 %v13273_v30  ;;  %2989 = vmatprep.mubr.bf16.mxu0 %v14242_v52  ;;  %v13289_v47 = vld [vmem:[#allocation8 + $0x410] sm:$0xff]   ;;  %v14594_v30 = vsel %vm1145_vm5, %v14567_v63, %v1151_v21 }
 0x23d   :  { %2105 = vmatprep.mubr.bf16.mxu1 %v14567_v63  ;;  %11338 = vmatprep.subr.bf16.mxu1 %v13274_v37  ;;  %17603 = vst [vmem:[#allocation64_spill] sm:$0xff] %v14594_v30  ;;  %v13290_v37 = vld [vmem:[#allocation8 + $0x458] sm:$0xff]  }
 0x23e   :  { %11529 = vmatpush3.bf16.msra.mxu0 %v13283_v1  ;;  %v14598_v1 = vld [vmem:[#allocation2 + $0x40] sm:$0xff] }
 0x23f   :  { %11530 = vmatprep.subr.bf16.mxu0 %v13284_v50  ;;  %v13279_v50 = vld [vmem:[#allocation8 + $0x298] sm:$0xff]   ;;  %v1153_v38 = vrot.slane %v14598_v1, 7 }
 0x240   :  { %11339 = vmatpush3.bf16.msra.mxu1 %v13275_v40  ;;  %v1081_v40 = vrot.slane %v1124_v46, 6  ;;  %v13296_v46 = vld [vmem:[#allocation8 + $0x468] sm:$0xff]  }
 0x241   :  { %11340 = vmatprep.subr.bf16.mxu1 %v13276_v44  ;;  %v13280_v44 = vld [vmem:[#allocation8 + $0x2e0] sm:$0xff]  }
 0x242   :  { %11531 = vmatpush3.bf16.msra.mxu0 %v13285_v27  ;;  %v13291_v27 = vld [vmem:[#allocation8 + $0x418] sm:$0xff]   ;;  %v14603_v34 = vsel %vm1075_vm6, %v14583_v53, %v1081_v40 }
 0x243   :  { %2106 = vmatmul.mubr.bf16.gmra.mrb[68].mxu1 %v14583_v53  ;;  %2990 = vmatmul.mubr.bf16.gmra.mrb[100].mxu0 %v14246_v54  ;;  %17604 = vst [vmem:[#allocation65_spill] sm:$0xff] %v14603_v34 }
 0x244   :  { %2113 = vmatprep.mubr.bf16.mxu1 %v14594_v30  ;;  %2997 = vmatprep.mubr.bf16.mxu0 %v14254_v57 }
 0x245   :  { %11341 = vmatpush3.bf16.msra.mxu1 %v13277_v17  ;;  %11532 = vmatprep.subr.bf16.mxu0 %v13288_v49  ;;  %v13295_v17 = vld [vmem:[#allocation8 + $0x420] sm:$0xff]   ;;  %v1126_v49 = vld [vmem:[#allocation2 + $0x50] sm:$0xff] }
 0x246   :  { %11342 = vmatprep.subr.bf16.mxu1 %v13278_v12  ;;  %11533 = vmatpush3.bf16.msra.mxu0 %v13289_v47  ;;  %v14608_v12 = vsel %vm1145_vm5, %v1151_v21, %v1153_v38  ;;  %v13287_v47 = vld [vmem:[#allocation8 + $0x2a8] sm:$0xff]   ;;  %v13293_v21 = vld [vmem:[#allocation8 + $0x2b0] sm:$0xff]  }
 0x247   :  { %11534 = vmatprep.subr.bf16.mxu0 %v13290_v37  ;;  %17605 = vst [vmem:[#allocation66_spill] sm:$0xff] %v14608_v12  ;;  %v1083_v37 = vrot.slane %v14598_v1, 6  ;;  %v1127_v1 = vld [vmem:[#allocation2 + $0x60] sm:$0xff] }
 0x249   :  { %11343 = vmatpush3.bf16.msra.mxu1 %v13279_v50  ;;  %v13292_v50 = vld [vmem:[#allocation8 + $0x2f0] sm:$0xff]   ;;  %v14614_v48 = vsel %vm1075_vm6, %v1081_v40, %v1083_v37  ;;  %v13299_v40 = vld [vmem:[#allocation8 + $0x2b8] sm:$0xff]  }
 0x24a   :  { %11344 = vmatprep.subr.bf16.mxu1 %v13280_v44  ;;  %11535 = vmatpush3.bf16.msra.mxu0 %v13291_v27  ;;  %v13297_v44 = vld [vmem:[#allocation8 + $0x428] sm:$0xff]   ;;  %v1155_v27 = vrot.slane %v1126_v49, 7  ;;  %17606 = vst [vmem:[#allocation67_spill] sm:$0xff] %v14614_v48 }
 0x24b   :  { %2114 = vmatmul.mubr.bf16.gmra.mrb[72].mxu1 %v14603_v34  ;;  %2998 = vmatmul.mubr.bf16.gmra.mrb[104].mxu0 %v14269_v6 }
 0x24c   :  { %2121 = vmatprep.mubr.bf16.mxu1 %v14608_v12  ;;  %3005 = vmatprep.mubr.bf16.mxu0 %v14275_v8 }
 0x24d   :  { %11345 = vmatpush3.bf16.msra.mxu1 %v13281_v16  ;;  %11536 = vmatprep.subr.bf16.mxu0 %v13294_v26  ;;  %v13301_v16 = vld [vmem:[#allocation8 + $0x430] sm:$0xff]   ;;  %v13302_v26 = vld [vmem:[#allocation8 + $0x478] sm:$0xff]  }
 0x24e   :  { %11346 = vmatprep.subr.bf16.mxu1 %v13286_v29  ;;  %11537 = vmatpush3.bf16.msra.mxu0 %v13295_v17  ;;  %v14619_v29 = vsel %vm1145_vm5, %v1153_v38, %v1155_v27  ;;  %v1085_v17 = vrot.slane %v1126_v49, 6  ;;  %v1087_v49 = vrot.slane %v1127_v1, 6 }
 0x24f   :  { %11538 = vmatprep.subr.bf16.mxu0 %v13296_v46  ;;  %17607 = vst [vmem:[#allocation68_spill] sm:$0xff] %v14619_v29  ;;  %v13303_v46 = vld [vmem:[#allocation8 + $0x438] sm:$0xff]  }
 0x250   :  { %v14624_v38 = vsel %vm1075_vm6, %v1083_v37, %v1085_v17  ;;  %v14634_v37 = vsel %vm1075_vm6, %v1085_v17, %v1087_v49 }
 0x251   :  { %11347 = vmatpush3.bf16.msra.mxu1 %v13287_v47  ;;  %v13304_v47 = vld [vmem:[#allocation8 + $0x3c0] sm:$0xff]  }
 0x252   :  { %11348 = vmatprep.subr.bf16.mxu1 %v13292_v50  ;;  %11539 = vmatpush3.bf16.msra.mxu0 %v13297_v44  ;;  %v1157_v50 = vrot.slane %v1127_v1, 7  ;;  %v13314_v44 = vld [vmem:[#allocation8 + $0x540] sm:$0xff]  }
 0x253   :  { %2122 = vmatmul.mubr.bf16.gmra.mrb[76].mxu1 %v14614_v48  ;;  %3006 = vmatmul.mubr.bf16.gmra.mrb[108].mxu0 %v14290_v22 }
 0x254   :  { %2129 = vmatprep.mubr.bf16.mxu1 %v14619_v29  ;;  %3013 = vmatprep.mubr.bf16.mxu0 %v14296_v24 }
 0x255   :  { %11349 = vmatpush3.bf16.msra.mxu1 %v13293_v21  ;;  %11540 = vmatprep.subr.bf16.mxu0 %v13300_v10  ;;  %v14629_v10 = vsel %vm1145_vm5, %v1155_v27, %v1157_v50  ;;  %v14643_v27 = vld [vmem:[#allocation2 + $0x80] sm:$0xff] }
 0x256   :  { %11350 = vmatprep.subr.bf16.mxu1 %v13298_v25  ;;  %11541 = vmatpush3.bf16.msra.mxu0 %v13301_v16  ;;  %v1128_v25 = vld [vmem:[#allocation2 + $0x70] sm:$0xff]  ;;  %17608 = vst [vmem:[#allocation69_spill] sm:$0xff] %v14643_v27  ;;  %v17391_v1 = vrot.slane %v14643_v27, 7 }
 0x257   :  { %11542 = vmatprep.subr.bf16.mxu0 %v13302_v26  ;;  %v1159_v21 = vrot.slane %v1128_v25, 7  ;;  %v1089_v26 = vrot.slane %v1128_v25, 6 }
 0x259   :  { %11351 = vmatpush3.bf16.msra.mxu1 %v13299_v40  ;;  %v14639_v16 = vsel %vm1145_vm5, %v1157_v50, %v1159_v21  ;;  %v14647_v40 = vsel %vm1075_vm6, %v1087_v49, %v1089_v26  ;;  %v14654_v17 = vsel %vm1145_vm5, %v1159_v21, %v17391_v1  ;;  %v17609_v50 = vrot.slane %v14421_v62, 4  ;;  %v13305_v49 = vld [vmem:[#allocation8 + $0x380] sm:$0xff]   ;;  %v13306_v21 = vld [vmem:[#allocation8 + $0x3c8] sm:$0xff]  }
 0x25a   :  { %11543 = vmatpush3.bf16.msra.mxu0 %v13303_v46  ;;  %11464 = vmatprep.subr.bf16.mxu1 %v13304_v47  ;;  %v17392_v46 = vrot.slane %v14643_v27, 6  ;;  %v13315_v1 = vld [vmem:[#allocation8 + $0x500] sm:$0xff]   ;;  %v13310_v27 = vld [vmem:[#allocation8 + $0x3d8] sm:$0xff]  }
 0x25b   :  { %2130 = vmatmul.mubr.bf16.gmra.mrb[80].mxu1 %v14624_v38  ;;  %3014 = vmatmul.mubr.bf16.gmra.mrb[112].mxu0 %v14311_v42 }
 0x25c   :  { %2137 = vmatprep.mubr.bf16.mxu1 %v14629_v10  ;;  %3021 = vmatprep.mubr.bf16.mxu0 %v14317_v45  ;;  %v14662_v47 = vsel %vm1075_vm6, %v1089_v26, %v17392_v46  ;;  %v13316_v26 = vld [vmem:[#allocation8 + $0x548] sm:$0xff]   ;;  %v13320_v46 = vld [vmem:[#allocation8 + $0x550] sm:$0xff]  }
 0x25d   :  { %11656 = vmatprep.subr.bf16.mxu0 %v13314_v44  ;;  %v17610_v44 = vrot.slane %v14325_v59, 4 }
 0x25f   :  { %v14669_v25 = vsel %vm935_vm2, %v17610_v44, %v17609_v50  ;;  %v13307_v50 = vld [vmem:[#allocation8 + $0x388] sm:$0xff]   ;;  %v13308_v44 = vld [vmem:[#allocation8 + $0x3d0] sm:$0xff]  }
 0x263   :  { %2138 = vmatmul.mubr.bf16.gmra.mrb[84].mxu1 %v14634_v37  ;;  %3022 = vmatmul.mubr.bf16.gmra.mrb[116].mxu0 %v14332_v3 }
 0x264   :  { %2145 = vmatprep.mubr.bf16.mxu1 %v14639_v16  ;;  %3029 = vmatprep.mubr.bf16.mxu0 %v14338_v5 }
 0x26b   :  { %2146 = vmatmul.mubr.bf16.gmra.mrb[88].mxu1 %v14647_v40  ;;  %3030 = vmatmul.mubr.bf16.gmra.mrb[120].mxu0 %v14367_v35 }
 0x26c   :  { %2153 = vmatprep.mubr.bf16.mxu1 %v14654_v17  ;;  %3037 = vmatprep.mubr.bf16.mxu0 %v14377_v41 }
 0x273   :  { %2154 = vmatmul.mubr.bf16.gmra.mrb[92].mxu1 %v14662_v47  ;;  %3038 = vmatmul.mubr.bf16.gmra.mrb[124].mxu0 %v14669_v25 }
 0x274   :  { %3768 = vmatprep.mubr.bf16.mxu0 %v14238_v51  ;;  %2884 = vmatprep.mubr.bf16.mxu1 %v14353_v20  ;;  %v13317_v51 = vld [vmem:[#allocation8 + $0x508] sm:$0xff]   ;;  %v13309_v20 = vld [vmem:[#allocation8 + $0x390] sm:$0xff]  }
 0x27b   :  { %2885 = vmatmul.mubr.bf16.vlgmr.msra.gmra.mrb[96].mxu1 %v14384_v60  ;;  %3769 = vmatmul.mubr.bf16.vlgmr.msra.gmra.mrb[128].mxu0 %v14350_v19  ;;  %v13321_v60 = vld [vmem:[#allocation8 + $0x510] sm:$0xff]  }
 0x27c   :  { %11465 = vmatpush3.bf16.msra.mxu1 %v13305_v49  ;;  %2892 = vmatprep.mubr.bf16.mxu1 %v14459_v61  ;;  %v14680_v19 = vld [vmem:[#allocation2 + $0x30] sm:$0xff]  ;;  %v13322_v49 = vld [vmem:[#allocation8 + $0x558] sm:$0xff]  }
 0x27d   :  { %3776 = vmatprep.mubr.bf16.mxu0 %v14251_v56  ;;  %11466 = vmatprep.subr.bf16.mxu1 %v13306_v21  ;;  %17611 = vst [vmem:[#allocation70_spill] sm:$0xff] %v14680_v19  ;;  %v13312_v21 = vld [vmem:[#allocation8 + $0x3e0] sm:$0xff]  }
 0x27e   :  { %11657 = vmatpush3.bf16.msra.mxu0 %v13315_v1  ;;  %v13311_v1 = vld [vmem:[#allocation8 + $0x398] sm:$0xff]  }
 0x27f   :  { %11658 = vmatprep.subr.bf16.mxu0 %v13316_v26  ;;  %v13323_v26 = vld [vmem:[#allocation8 + $0x518] sm:$0xff]  }
 0x280   :  { %11467 = vmatpush3.bf16.msra.mxu1 %v13307_v50  ;;  %v13313_v50 = vld [vmem:[#allocation8 + $0x3a0] sm:$0xff]  }
 0x281   :  { %11468 = vmatprep.subr.bf16.mxu1 %v13308_v44  ;;  %v13326_v44 = vld [vmem:[#allocation8 + $0x560] sm:$0xff]  }
 0x282   :  { %11659 = vmatpush3.bf16.msra.mxu0 %v13317_v51  ;;  %v13318_v51 = vld [vmem:[#allocation8 + $0x3e8] sm:$0xff]  }
 0x283   :  { %2893 = vmatmul.mubr.bf16.gmra.mrb[100].mxu1 %v14483_v33  ;;  %3777 = vmatmul.mubr.bf16.gmra.mrb[132].mxu0 %v14680_v19  ;;  %v13327_v19 = vld [vmem:[#allocation8 + $0x520] sm:$0xff]  }
 0x284   :  { %2900 = vmatprep.mubr.bf16.mxu1 %v14493_v2  ;;  %3784 = vmatprep.mubr.bf16.mxu0 %v14272_v7  ;;  %v14686_v2 = vld [vmem:[#allocation2 + $0x40] sm:$0xff] }
 0x285   :  { %11469 = vmatpush3.bf16.msra.mxu1 %v13309_v20  ;;  %11660 = vmatprep.subr.bf16.mxu0 %v13320_v46  ;;  %17612 = vst [vmem:[#allocation71_spill] sm:$0xff] %v14686_v2  ;;  %v13328_v20 = vld [vmem:[#allocation8 + $0x568] sm:$0xff]   ;;  %v13324_v46 = vld [vmem:[#allocation8 + $0x3f0] sm:$0xff]  }
 0x286   :  { %11470 = vmatprep.subr.bf16.mxu1 %v13310_v27  ;;  %11661 = vmatpush3.bf16.msra.mxu0 %v13321_v60  ;;  %v13319_v27 = vld [vmem:[#allocation8 + $0x3a8] sm:$0xff]  }
 0x287   :  { %11662 = vmatprep.subr.bf16.mxu0 %v13322_v49  ;;  %v13329_v60 = vld [vmem:[#allocation8 + $0x528] sm:$0xff]   ;;  %v13325_v49 = vld [vmem:[#allocation8 + $0x3b0] sm:$0xff]  }
 0x289   :  { %11471 = vmatpush3.bf16.msra.mxu1 %v13311_v1  ;;  %v13332_v1 = vld [vmem:[#allocation8 + $0x570] sm:$0xff]  }
 0x28a   :  { %11472 = vmatprep.subr.bf16.mxu1 %v13312_v21  ;;  %11663 = vmatpush3.bf16.msra.mxu0 %v13323_v26  ;;  %v13330_v21 = vld [vmem:[#allocation8 + $0x3f8] sm:$0xff]   ;;  %v13333_v26 = vld [vmem:[#allocation8 + $0x530] sm:$0xff]  }
 0x28b   :  { %2901 = vmatmul.mubr.bf16.gmra.mrb[104].mxu1 %v14509_v32  ;;  %3785 = vmatmul.mubr.bf16.gmra.mrb[136].mxu0 %v14686_v2 }
 0x28c   :  { %2908 = vmatprep.mubr.bf16.mxu1 %v14514_v58  ;;  %3792 = vmatprep.mubr.bf16.mxu0 %v14293_v23  ;;  %v14692_v58 = vld [vmem:[#allocation2 + $0x50] sm:$0xff] }
 0x28d   :  { %11473 = vmatpush3.bf16.msra.mxu1 %v13313_v50  ;;  %11664 = vmatprep.subr.bf16.mxu0 %v13326_v44  ;;  %17613 = vst [vmem:[#allocation72_spill] sm:$0xff] %v14692_v58  ;;  %v13334_v50 = vld [vmem:[#allocation8 + $0x578] sm:$0xff]  }
 0x28e   :  { %11474 = vmatprep.subr.bf16.mxu1 %v13318_v51  ;;  %11665 = vmatpush3.bf16.msra.mxu0 %v13327_v19  ;;  %v13331_v19 = vld [vmem:[#allocation8 + $0x3b8] sm:$0xff]   ;;  %v13336_v51 = vld [vmem:[#allocation8 + $0x4c0] sm:$0xff]  }
 0x28f   :  { %11666 = vmatprep.subr.bf16.mxu0 %v13328_v20  ;;  %v13335_v44 = vld [vmem:[#allocation8 + $0x538] sm:$0xff]   ;;  %v13346_v20 = vld [vmem:[#allocation8 + $0x640] sm:$0xff]  }
 0x291   :  { %11475 = vmatpush3.bf16.msra.mxu1 %v13319_v27  ;;  %v14698_v27 = vld [vmem:[#allocation2 + $0x60] sm:$0xff] }
 0x292   :  { %11476 = vmatprep.subr.bf16.mxu1 %v13324_v46  ;;  %11667 = vmatpush3.bf16.msra.mxu0 %v13329_v60  ;;  %17614 = vst [vmem:[#allocation73_spill] sm:$0xff] %v14698_v27 }
 0x293   :  { %2909 = vmatmul.mubr.bf16.gmra.mrb[108].mxu1 %v14529_v14  ;;  %3793 = vmatmul.mubr.bf16.gmra.mrb[140].mxu0 %v14692_v58 }
 0x294   :  { %2916 = vmatprep.mubr.bf16.mxu1 %v14536_v28  ;;  %3800 = vmatprep.mubr.bf16.mxu0 %v14314_v43 }
 0x295   :  { %11477 = vmatpush3.bf16.msra.mxu1 %v13325_v49  ;;  %11668 = vmatprep.subr.bf16.mxu0 %v13332_v1 }
 0x296   :  { %11478 = vmatprep.subr.bf16.mxu1 %v13330_v21  ;;  %11669 = vmatpush3.bf16.msra.mxu0 %v13333_v26 }
 0x297   :  { %11670 = vmatprep.subr.bf16.mxu0 %v13334_v50 }
 0x299   :  { %11479 = vmatpush3.bf16.msra.mxu1 %v13331_v19 }
 0x29a   :  { %11671 = vmatpush3.bf16.msra.mxu0 %v13335_v44  ;;  %11592 = vmatprep.subr.bf16.mxu1 %v13336_v51 }
 0x29b   :  { %2917 = vmatmul.mubr.bf16.gmra.mrb[112].mxu1 %v14545_v13  ;;  %3801 = vmatmul.mubr.bf16.gmra.mrb[144].mxu0 %v14698_v27 }
 0x29c   :  { %2924 = vmatprep.mubr.bf16.mxu1 %v14550_v0  ;;  %3808 = vmatprep.mubr.bf16.mxu0 %v14335_v4  ;;  %v14712_v4 = vld [vmem:[#allocation2 + $0x70] sm:$0xff] }
 0x29d   :  { %11784 = vmatprep.subr.bf16.mxu0 %v13346_v20  ;;  %17615 = vst [vmem:[#allocation74_spill] sm:$0xff] %v14712_v4 }
 0x29e   :  { %v11044_v46 = vpop.f32.mrb[8].mxu1  ;;  %v11172_v60 = vpop.f32.mrb[40].mxu0 }
 0x29f   :  { %v11045_v49 = vpop.f32.mrb[9].mxu1  ;;  %v11173_v1 = vpop.f32.mrb[41].mxu0 }
 0x2a0   :  { %v14703_v21 = vadd.f32 %v11045_v49, %v11044_v46  ;;  %v14705_v26 = vadd.f32 %v11173_v1, %v11172_v60  ;;  %v11047_v50 = vpop.f32.mrb[10].mxu1  ;;  %v11175_v19 = vpop.f32.mrb[42].mxu0  ;;  %v17414_v1 = vrot.slane %v14421_v62, 3 }
 0x2a1   :  { %v11048_v44 = vpop.f32.mrb[11].mxu1  ;;  %v11176_v51 = vpop.f32.mrb[43].mxu0 }
 0x2a2   :  { %v14707_v13 = vadd.f32 %v11048_v44, %v11047_v50  ;;  %v14709_v27 = vadd.f32 %v11176_v51, %v11175_v19  ;;  %v17418_v50 = vrot.slane %v14434_v11, 1 }
 0x2a3   :  { %2925 = vmatmul.mubr.bf16.gmra.mrb[116].mxu1 %v14557_v9  ;;  %3809 = vmatmul.mubr.bf16.gmra.mrb[148].mxu0 %v14712_v4 }
 0x2a4   :  { %2932 = vmatprep.mubr.bf16.mxu1 %v14564_v15  ;;  %3816 = vmatprep.mubr.bf16.mxu0 %v14372_v36  ;;  %v14728_v36 = vld [vmem:[#allocation2 + $0x80] sm:$0xff] }
 0x2a5   :  { %17616 = vst [vmem:[#allocation75_spill] sm:$0xff] %v14728_v36 }
 0x2a6   :  { %v11050_v20 = vpop.f32.mrb[12].mxu1  ;;  %v11178_v46 = vpop.f32.mrb[44].mxu0 }
 0x2a7   :  { %v11051_v60 = vpop.f32.mrb[13].mxu1  ;;  %v11179_v49 = vpop.f32.mrb[45].mxu0 }
 0x2a8   :  { %v14719_v19 = vadd.f32 %v11051_v60, %v11050_v20  ;;  %v14721_v44 = vadd.f32 %v11179_v49, %v11178_v46  ;;  %v11053_v51 = vpop.f32.mrb[14].mxu1  ;;  %v11181_v9 = vpop.f32.mrb[46].mxu0  ;;  %v17617_v20 = vrot.slane %v14325_v59, 3  ;;  %v14747_v49 = vld [vmem:[#allocation2 + $0x90] sm:$0xff] }
 0x2a9   :  { %v11054_v0 = vpop.f32.mrb[15].mxu1  ;;  %v11182_v4 = vpop.f32.mrb[47].mxu0 }
 0x2aa   :  { %v14723_v43 = vadd.f32 %v11054_v0, %v11053_v51  ;;  %v14725_v15 = vadd.f32 %v11182_v4, %v11181_v9  ;;  %v14736_v46 = vsel %vm865_vm3, %v17617_v20, %v17414_v1  ;;  %v17619_v0 = vrot.slane %v14348_v18, 1 }
 0x2ab   :  { %2933 = vmatmul.mubr.bf16.gmra.mrb[120].mxu1 %v14577_v31  ;;  %3817 = vmatmul.mubr.bf16.gmra.mrb[152].mxu0 %v14728_v36  ;;  %17618 = vst [vmem:[#allocation76_spill] sm:$0xff] %v14736_v46  ;;  %v17426_v51 = vrot.slane %v14747_v49, 2 }
 0x2ac   :  { %v14743_v4 = vsel %vm613_vm0, %v17619_v0, %v17418_v50  ;;  %2940 = vmatprep.mubr.bf16.mxu1 %v14736_v46 }
 0x2ad   :  { %17620 = vst [vmem:[#allocation77_spill] sm:$0xff] %v14743_v4  ;;  %3824 = vmatprep.mubr.bf16.mxu0 %v14743_v4  ;;  %v17621_v4 = vrot.slane %v14325_v59, 2 }
 0x2ae   :  { %v11056_v9 = vpop.f32.mrb[16].mxu1  ;;  %v11184_v60 = vpop.f32.mrb[48].mxu0 }
 0x2af   :  { %v11057_v62 = vpop.f32.mrb[17].mxu1  ;;  %v11185_v20 = vpop.f32.mrb[49].mxu0  ;;  %v14763_v28 = vsel %vm795_vm4, %v17621_v4, %v17426_v51  ;;  %v13337_v4 = vld [vmem:[#allocation8 + $0x480] sm:$0xff]  }
 0x2b0   :  { %v14750_v1 = vadd.f32 %v11057_v62, %v11056_v9  ;;  %v14752_v11 = vadd.f32 %v11185_v20, %v11184_v60  ;;  %v11059_v18 = vpop.f32.mrb[18].mxu1  ;;  %v11187_v36 = vpop.f32.mrb[50].mxu0  ;;  %17622 = vst [vmem:[#allocation78_spill] sm:$0xff] %v14763_v28 }
 0x2b1   :  { %v11060_v0 = vpop.f32.mrb[19].mxu1  ;;  %v11188_v50 = vpop.f32.mrb[51].mxu0 }
 0x2b2   :  { %v14754_v31 = vadd.f32 %v11060_v0, %v11059_v18  ;;  %v14756_v46 = vadd.f32 %v11188_v50, %v11187_v36 }
 0x2b3   :  { %2941 = vmatmul.mubr.bf16.gmra.mrb[124].mxu1 %v14763_v28  ;;  %3825 = vmatmul.mubr.bf16.gmra.mrb[156].mxu0 %v14747_v49  ;;  %v13338_v28 = vld [vmem:[#allocation8 + $0x4c8] sm:$0xff]  }
 0x2b4   :  { %3962 = vmatprep.mubr.bf16.mxu0 %v14242_v52  ;;  %3078 = vmatprep.mubr.bf16.mxu1 %v14567_v63  ;;  %v13347_v52 = vld [vmem:[#allocation8 + $0x600] sm:$0xff]   ;;  %v13348_v63 = vld [vmem:[#allocation8 + $0x648] sm:$0xff]  }
 0x2b6   :  { %v11062_v62 = vpop.f32.mrb[20].mxu1  ;;  %v11190_v9 = vpop.f32.mrb[52].mxu0 }
 0x2b7   :  { %v11063_v60 = vpop.f32.mrb[21].mxu1  ;;  %v11191_v36 = vpop.f32.mrb[53].mxu0 }
 0x2b8   :  { %v14769_v50 = vadd.f32 %v11063_v60, %v11062_v62  ;;  %v14771_v20 = vadd.f32 %v11191_v36, %v11190_v9  ;;  %v11065_v59 = vpop.f32.mrb[22].mxu1  ;;  %v11193_v18 = vpop.f32.mrb[54].mxu0  ;;  %v13339_v62 = vld [vmem:[#allocation8 + $0x488] sm:$0xff]   ;;  %v13340_v9 = vld [vmem:[#allocation8 + $0x4d0] sm:$0xff]  }
 0x2b9   :  { %v11066_v0 = vpop.f32.mrb[23].mxu1  ;;  %v11194_v51 = vpop.f32.mrb[55].mxu0 }
 0x2ba   :  { %v14773_v58 = vadd.f32 %v11066_v0, %v11065_v59  ;;  %v14775_v14 = vadd.f32 %v11194_v51, %v11193_v18  ;;  %v13349_v59 = vld [vmem:[#allocation8 + $0x608] sm:$0xff]  }
 0x2bb   :  { %3079 = vmatmul.mubr.bf16.vlgmr.msra.gmra.mrb[128].mxu1 %v14583_v53  ;;  %3963 = vmatmul.mubr.bf16.vlgmr.msra.gmra.mrb[160].mxu0 %v14246_v54 }
 0x2bc   :  { %17623 = vst [vmem:[#allocation79_spill] sm:$0xff] %v14775_v14  ;;  %11593 = vmatpush3.bf16.msra.mxu1 %v13337_v4  ;;  %3086 = vmatprep.mubr.bf16.mxu1 %v14594_v30  ;;  %v13353_v14 = vld [vmem:[#allocation8 + $0x610] sm:$0xff]  }
 0x2bd   :  { %3970 = vmatprep.mubr.bf16.mxu0 %v14254_v57  ;;  %11594 = vmatprep.subr.bf16.mxu1 %v13338_v28  ;;  %v13341_v57 = vld [vmem:[#allocation8 + $0x490] sm:$0xff]  }
 0x2be   :  { %v11068_v60 = vpop.f32.mrb[24].mxu1  ;;  %v11196_v36 = vpop.f32.mrb[56].mxu0  ;;  %11785 = vmatpush3.bf16.msra.mxu0 %v13347_v52  ;;  %v13352_v28 = vld [vmem:[#allocation8 + $0x650] sm:$0xff]   ;;  %v13342_v52 = vld [vmem:[#allocation8 + $0x4d8] sm:$0xff]  }
 0x2bf   :  { %v11069_v51 = vpop.f32.mrb[25].mxu1  ;;  %v11197_v18 = vpop.f32.mrb[57].mxu0  ;;  %11786 = vmatprep.subr.bf16.mxu0 %v13348_v63  ;;  %v13354_v63 = vld [vmem:[#allocation8 + $0x658] sm:$0xff]  }
 0x2c0   :  { %v14781_v0 = vadd.f32 %v11069_v51, %v11068_v60  ;;  %v14783_v53 = vadd.f32 %v11197_v18, %v11196_v36  ;;  %v11071_v54 = vpop.f32.mrb[26].mxu1  ;;  %v11199_v4 = vpop.f32.mrb[58].mxu0  ;;  %11595 = vmatpush3.bf16.msra.mxu1 %v13339_v62  ;;  %v13343_v62 = vld [vmem:[#allocation8 + $0x498] sm:$0xff]  }
 0x2c1   :  { %v11072_v30 = vpop.f32.mrb[27].mxu1  ;;  %v11200_v23 = vpop.f32.mrb[59].mxu0  ;;  %11596 = vmatprep.subr.bf16.mxu1 %v13340_v9  ;;  %v13355_v60 = vld [vmem:[#allocation8 + $0x618] sm:$0xff]  }
 0x2c2   :  { %v14785_v2 = vadd.f32 %v11072_v30, %v11071_v54  ;;  %v14787_v32 = vadd.f32 %v11200_v23, %v11199_v4  ;;  %11787 = vmatpush3.bf16.msra.mxu0 %v13349_v59  ;;  %v13344_v23 = vld [vmem:[#allocation8 + $0x4e0] sm:$0xff]  }
 0x2c3   :  { %3087 = vmatmul.mubr.bf16.gmra.mrb[132].mxu1 %v14603_v34  ;;  %3971 = vmatmul.mubr.bf16.gmra.mrb[164].mxu0 %v14269_v6  ;;  %v13359_v34 = vld [vmem:[#allocation8 + $0x620] sm:$0xff]  }
 0x2c4   :  { %3094 = vmatprep.mubr.bf16.mxu1 %v14608_v12  ;;  %3978 = vmatprep.mubr.bf16.mxu0 %v14275_v8 }
 0x2c5   :  { %11597 = vmatpush3.bf16.msra.mxu1 %v13341_v57  ;;  %11788 = vmatprep.subr.bf16.mxu0 %v13352_v28  ;;  %v13345_v57 = vld [vmem:[#allocation8 + $0x4a0] sm:$0xff]  }
 0x2c6   :  { %v11074_v9 = vpop.f32.mrb[28].mxu1  ;;  %v11202_v30 = vpop.f32.mrb[60].mxu0  ;;  %11598 = vmatprep.subr.bf16.mxu1 %v13342_v52  ;;  %11789 = vmatpush3.bf16.msra.mxu0 %v13353_v14  ;;  %v13358_v28 = vld [vmem:[#allocation8 + $0x660] sm:$0xff]   ;;  %v13350_v14 = vld [vmem:[#allocation8 + $0x4e8] sm:$0xff]  }
 0x2c7   :  { %v11075_v36 = vpop.f32.mrb[29].mxu1  ;;  %v11203_v59 = vpop.f32.mrb[61].mxu0  ;;  %11790 = vmatprep.subr.bf16.mxu0 %v13354_v63  ;;  %v13360_v63 = vld [vmem:[#allocation8 + $0x668] sm:$0xff]  }
 0x2c8   :  { %v14793_v51 = vadd.f32 %v11075_v36, %v11074_v9  ;;  %v14795_v18 = vadd.f32 %v11203_v59, %v11202_v30  ;;  %v11077_v54 = vpop.f32.mrb[30].mxu1  ;;  %v11205_v4 = vpop.f32.mrb[62].mxu0  ;;  %v13361_v30 = vld [vmem:[#allocation8 + $0x628] sm:$0xff]  }
 0x2c9   :  { %v11078_v12 = vpop.f32.mrb[31].mxu1  ;;  %v11206_v8 = vpop.f32.mrb[63].mxu0  ;;  %11599 = vmatpush3.bf16.msra.mxu1 %v13343_v62  ;;  %v13351_v62 = vld [vmem:[#allocation8 + $0x4a8] sm:$0xff]  }
 0x2ca   :  { %v14797_v6 = vadd.f32 %v11078_v12, %v11077_v54  ;;  %v14799_v52 = vadd.f32 %v11206_v8, %v11205_v4  ;;  %11600 = vmatprep.subr.bf16.mxu1 %v13344_v23  ;;  %11791 = vmatpush3.bf16.msra.mxu0 %v13355_v60  ;;  %v13356_v8 = vld [vmem:[#allocation8 + $0x4f0] sm:$0xff]  }
 0x2cb   :  { %3095 = vmatmul.mubr.bf16.gmra.mrb[136].mxu1 %v14614_v48  ;;  %3979 = vmatmul.mubr.bf16.gmra.mrb[168].mxu0 %v14290_v22 }
 0x2cc   :  { %17624 = vst [vmem:[#allocation80_spill] sm:$0xff] %v14799_v52  ;;  %3102 = vmatprep.mubr.bf16.mxu1 %v14619_v29  ;;  %3986 = vmatprep.mubr.bf16.mxu0 %v14296_v24  ;;  %v13364_v24 = vld [vmem:[#allocation8 + $0x670] sm:$0xff]  }
 0x2cd   :  { %11601 = vmatpush3.bf16.msra.mxu1 %v13345_v57  ;;  %11792 = vmatprep.subr.bf16.mxu0 %v13358_v28  ;;  %v13357_v57 = vld [vmem:[#allocation8 + $0x4b0] sm:$0xff]  }
 0x2ce   :  { %v11096_v12 = vpop.f32.mrb[32].mxu1  ;;  %v11288_v9 = vpop.f32.mrb[64].mxu0  ;;  %11602 = vmatprep.subr.bf16.mxu1 %v13350_v14  ;;  %11793 = vmatpush3.bf16.msra.mxu0 %v13359_v34  ;;  %v13362_v34 = vld [vmem:[#allocation8 + $0x4f8] sm:$0xff]   ;;  %v13365_v52 = vld [vmem:[#allocation8 + $0x630] sm:$0xff]  }
 0x2cf   :  { %v11097_v23 = vpop.f32.mrb[33].mxu1  ;;  %v11289_v60 = vpop.f32.mrb[65].mxu0  ;;  %11794 = vmatprep.subr.bf16.mxu0 %v13360_v63  ;;  %v13366_v63 = vld [vmem:[#allocation8 + $0x678] sm:$0xff]  }
 0x2d0   :  { %v11098_v36 = vadd.f32 %v11097_v23, %v11096_v12  ;;  %v11099_v59 = vpop.f32.mrb[34].mxu1  ;;  %v14805_v54 = vadd.f32 %v11289_v60, %v11288_v9  ;;  %v11291_v4 = vpop.f32.mrb[66].mxu0  ;;  %v17628_v23 = vld [vmem:[#allocation54_spill] sm:$0xff] }
 0x2d1   :  { %v11100_v29 = vpop.f32.mrb[35].mxu1  ;;  %v11292_v22 = vpop.f32.mrb[67].mxu0  ;;  %11603 = vmatpush3.bf16.msra.mxu1 %v13351_v62  ;;  %v17627_v62 = vld [vmem:[#allocation52_spill] sm:$0xff] }
 0x2d2   :  { %17625 = vst [vmem:[#allocation81_spill] sm:$0xff] %v14805_v54  ;;  %v1906_v28 = vadd.f32 %v11098_v36, %v14503_v39  ;;  %v11101_v48 = vadd.f32 %v11100_v29, %v11099_v59  ;;  %v14808_v14 = vadd.f32 %v11292_v22, %v11291_v4  ;;  %11604 = vmatprep.subr.bf16.mxu1 %v13356_v8  ;;  %v13363_v22 = vld [vmem:[#allocation8 + $0x4b8] sm:$0xff]  }
 0x2d3   :  { %11795 = vmatpush3.bf16.msra.mxu0 %v13361_v30  ;;  %3103 = vmatmul.mubr.bf16.gmra.mrb[140].mxu1 %v14624_v38  ;;  %v13367_v8 = vld [vmem:[#allocation8 + $0x638] sm:$0xff]   ;;  %v13368_v30 = vld [vmem:[#allocation8 + $0x5c0] sm:$0xff]  }
 0x2d4   :  { %17626 = vst [vmem:[#allocation82_spill] sm:$0xff] %v14808_v14  ;;  %3987 = vmatmul.mubr.bf16.gmra.mrb[172].mxu0 %v14311_v42  ;;  %v1909_v12 = vadd.f32 %v11101_v48, %v14506_v55  ;;  %3110 = vmatprep.mubr.bf16.mxu1 %v14629_v10  ;;  %v14816_v39 = vadd.f32 %v17627_v62, %v1906_v28  ;;  %v17629_v14 = vld [vmem:[#allocation51_spill] sm:$0xff] }
 0x2d5   :  { %3994 = vmatprep.mubr.bf16.mxu0 %v14317_v45  ;;  %11605 = vmatpush3.bf16.msra.mxu1 %v13357_v57 }
 0x2d6   :  { %11796 = vmatprep.subr.bf16.mxu0 %v13364_v24  ;;  %v11102_v29 = vpop.f32.mrb[36].mxu1  ;;  %v11294_v9 = vpop.f32.mrb[68].mxu0  ;;  %11606 = vmatprep.subr.bf16.mxu1 %v13362_v34  ;;  %v14819_v60 = vadd.f32 %v17628_v23, %v1909_v12  ;;  %v13378_v24 = vld [vmem:[#allocation8 + $0x740] sm:$0xff]  }
 0x2d7   :  { %11797 = vmatpush3.bf16.msra.mxu0 %v13365_v52  ;;  %v11103_v48 = vpop.f32.mrb[37].mxu1  ;;  %v11295_v55 = vpop.f32.mrb[69].mxu0  ;;  %v17632_v23 = vld [vmem:[#allocation58_spill] sm:$0xff] }
 0x2d8   :  { %11798 = vmatprep.subr.bf16.mxu0 %v13366_v63  ;;  %v11104_v36 = vadd.f32 %v11103_v48, %v11102_v29  ;;  %v11105_v59 = vpop.f32.mrb[38].mxu1  ;;  %v14821_v4 = vadd.f32 %v11295_v55, %v11294_v9  ;;  %v11297_v28 = vpop.f32.mrb[70].mxu0  ;;  %v17630_v63 = vld [vmem:[#allocation53_spill] sm:$0xff]  ;;  %v17631_v29 = vld [vmem:[#allocation56_spill] sm:$0xff] }
 0x2d9   :  { %v11106_v57 = vpop.f32.mrb[39].mxu1  ;;  %v11298_v62 = vpop.f32.mrb[71].mxu0  ;;  %11607 = vmatpush3.bf16.msra.mxu1 %v13363_v22 }
 0x2da   :  { %v1914_v34 = vadd.f32 %v11104_v36, %v17629_v14  ;;  %v11107_v52 = vadd.f32 %v11106_v57, %v11105_v59  ;;  %v14824_v54 = vadd.f32 %v11298_v62, %v11297_v28  ;;  %11720 = vmatprep.subr.bf16.mxu1 %v13368_v30 }
 0x2db   :  { %11799 = vmatpush3.bf16.msra.mxu0 %v13367_v8  ;;  %3111 = vmatmul.mubr.bf16.gmra.mrb[144].mxu1 %v14634_v37 }
 0x2dc   :  { %3995 = vmatmul.mubr.bf16.gmra.mrb[176].mxu0 %v14332_v3  ;;  %v1917_v12 = vadd.f32 %v11107_v52, %v17630_v63  ;;  %3118 = vmatprep.mubr.bf16.mxu1 %v14639_v16  ;;  %v14832_v22 = vadd.f32 %v17631_v29, %v1914_v34 }
 0x2dd   :  { %4002 = vmatprep.mubr.bf16.mxu0 %v14338_v5  ;;  %11912 = vmatprep.subr.bf16.mxu0 %v13378_v24 }
 0x2de   :  { %v11108_v14 = vpop.f32.mrb[40].mxu1  ;;  %v11300_v9 = vpop.f32.mrb[72].mxu0  ;;  %v14835_v48 = vadd.f32 %v17632_v23, %v1917_v12 }
 0x2df   :  { %v11109_v8 = vpop.f32.mrb[41].mxu1  ;;  %v11301_v30 = vpop.f32.mrb[73].mxu0 }
 0x2e0   :  { %v11110_v55 = vadd.f32 %v11109_v8, %v11108_v14  ;;  %v14837_v36 = vadd.f32 %v11301_v30, %v11300_v9  ;;  %v11111_v59 = vpop.f32.mrb[42].mxu1  ;;  %v11303_v28 = vpop.f32.mrb[74].mxu0  ;;  %v17449_v8 = vrot.slane %v14747_v49, 7 }
 0x2e1   :  { %v11112_v57 = vpop.f32.mrb[43].mxu1  ;;  %v11304_v62 = vpop.f32.mrb[75].mxu0 }
 0x2e2   :  { %v1922_v52 = vadd.f32 %v11110_v55, %v14703_v21  ;;  %v11113_v63 = vadd.f32 %v11112_v57, %v11111_v59  ;;  %v14840_v34 = vadd.f32 %v11304_v62, %v11303_v28 }
 0x2e3   :  { %3119 = vmatmul.mubr.bf16.gmra.mrb[148].mxu1 %v14647_v40 }
 0x2e4   :  { %4003 = vmatmul.mubr.bf16.gmra.mrb[180].mxu0 %v14367_v35  ;;  %v1925_v24 = vadd.f32 %v11113_v63, %v14707_v13  ;;  %3126 = vmatprep.mubr.bf16.mxu1 %v14654_v17  ;;  %v14848_v12 = vadd.f32 %v14705_v26, %v1922_v52 }
 0x2e5   :  { %4010 = vmatprep.mubr.bf16.mxu0 %v14377_v41 }
 0x2e6   :  { %v11114_v29 = vpop.f32.mrb[44].mxu1  ;;  %v11306_v14 = vpop.f32.mrb[76].mxu0  ;;  %v14851_v21 = vadd.f32 %v14709_v27, %v1925_v24  ;;  %v17635_v27 = vld [vmem:[#allocation69_spill] sm:$0xff] }
 0x2e7   :  { %v11115_v9 = vpop.f32.mrb[45].mxu1  ;;  %v11307_v23 = vpop.f32.mrb[77].mxu0  ;;  %v17636_v63 = vrot.slane %v17635_v27, 7 }
 0x2e8   :  { %v11116_v30 = vadd.f32 %v11115_v9, %v11114_v29  ;;  %v14854_v55 = vadd.f32 %v11307_v23, %v11306_v14  ;;  %v11117_v13 = vpop.f32.mrb[46].mxu1  ;;  %v11309_v59 = vpop.f32.mrb[78].mxu0  ;;  %v17637_v14 = vld [vmem:[#allocation41_spill] sm:$0xff] }
 0x2e9   :  { %v11118_v28 = vpop.f32.mrb[47].mxu1  ;;  %v11310_v57 = vpop.f32.mrb[79].mxu0  ;;  %v14866_v24 = vsel %vm1145_vm5, %v17636_v63, %v17449_v8 }
 0x2ea   :  { %17633 = vst [vmem:[#allocation52_spill] sm:$0xff] %v14854_v55  ;;  %v1930_v62 = vadd.f32 %v11116_v30, %v14719_v19  ;;  %v11119_v26 = vadd.f32 %v11118_v28, %v11117_v13  ;;  %v14857_v52 = vadd.f32 %v11310_v57, %v11309_v59  ;;  %v17450_v30 = vrot.slane %v14747_v49, 6 }
 0x2eb   :  { %3127 = vmatmul.mubr.bf16.gmra.mrb[152].mxu1 %v14662_v47 }
 0x2ec   :  { %17634 = vst [vmem:[#allocation54_spill] sm:$0xff] %v14857_v52  ;;  %4011 = vmatmul.mubr.bf16.gmra.mrb[184].mxu0 %v14669_v25  ;;  %v1933_v29 = vadd.f32 %v11119_v26, %v14723_v43  ;;  %3134 = vmatprep.mubr.bf16.mxu1 %v14866_v24  ;;  %v14872_v19 = vadd.f32 %v14721_v44, %v1930_v62 }
 0x2ed   :  { %4018 = vmatprep.mubr.bf16.mxu0 %v17637_v14  ;;  %v17638_v14 = vrot.slane %v17635_v27, 6 }
 0x2ee   :  { %v11120_v9 = vpop.f32.mrb[48].mxu1  ;;  %v11312_v23 = vpop.f32.mrb[80].mxu0  ;;  %v14876_v13 = vadd.f32 %v14725_v15, %v1933_v29  ;;  %v17639_v29 = vld [vmem:[#allocation42_spill] sm:$0xff] }
 0x2ef   :  { %v11121_v59 = vpop.f32.mrb[49].mxu1  ;;  %v11313_v28 = vpop.f32.mrb[81].mxu0  ;;  %v14888_v15 = vsel %vm1075_vm6, %v17638_v14, %v17450_v30  ;;  %v13379_v30 = vld [vmem:[#allocation8 + $0x700] sm:$0xff]  }
 0x2f0   :  { %v11122_v57 = vadd.f32 %v11121_v59, %v11120_v9  ;;  %v14878_v63 = vadd.f32 %v11313_v28, %v11312_v23  ;;  %v11123_v43 = vpop.f32.mrb[50].mxu1  ;;  %v11315_v26 = vpop.f32.mrb[82].mxu0 }
 0x2f1   :  { %v11124_v8 = vpop.f32.mrb[51].mxu1  ;;  %v11316_v52 = vpop.f32.mrb[83].mxu0 }
 0x2f2   :  { %v1938_v55 = vadd.f32 %v11122_v57, %v14750_v1  ;;  %v11125_v44 = vadd.f32 %v11124_v8, %v11123_v43  ;;  %v14881_v62 = vadd.f32 %v11316_v52, %v11315_v26 }
 0x2f3   :  { %3135 = vmatmul.mubr.bf16.gmra.mrb[156].mxu1 %v14888_v15 }
 0x2f4   :  { %4019 = vmatmul.mubr.bf16.gmra.mrb[188].mxu0 %v17639_v29  ;;  %v1941_v9 = vadd.f32 %v11125_v44, %v14754_v31  ;;  %3865 = vmatprep.mubr.bf16.mxu1 %v14459_v61  ;;  %v14896_v1 = vadd.f32 %v14752_v11, %v1938_v55  ;;  %v13369_v31 = vld [vmem:[#allocation8 + $0x580] sm:$0xff]   ;;  %v13370_v44 = vld [vmem:[#allocation8 + $0x5c8] sm:$0xff]  }
 0x2f5   :  { %4749 = vmatprep.mubr.bf16.mxu0 %v14251_v56 }
 0x2f6   :  { %v11126_v8 = vpop.f32.mrb[52].mxu1  ;;  %v11318_v52 = vpop.f32.mrb[84].mxu0  ;;  %v14899_v27 = vadd.f32 %v14756_v46, %v1941_v9  ;;  %v17642_v46 = vld [vmem:[#allocation70_spill] sm:$0xff]  ;;  %v13380_v9 = vld [vmem:[#allocation8 + $0x748] sm:$0xff]  }
 0x2f7   :  { %v11127_v14 = vpop.f32.mrb[53].mxu1  ;;  %v11319_v23 = vpop.f32.mrb[85].mxu0 }
 0x2f8   :  { %v11128_v59 = vadd.f32 %v11127_v14, %v11126_v8  ;;  %v14901_v28 = vadd.f32 %v11319_v23, %v11318_v52  ;;  %v11129_v57 = vpop.f32.mrb[54].mxu1  ;;  %v11321_v43 = vpop.f32.mrb[86].mxu0  ;;  %v17643_v52 = vld [vmem:[#allocation47_spill] sm:$0xff] }
 0x2f9   :  { %v11130_v26 = vpop.f32.mrb[55].mxu1  ;;  %v11322_v61 = vpop.f32.mrb[87].mxu0  ;;  %v13371_v14 = vld [vmem:[#allocation8 + $0x588] sm:$0xff]  }
 0x2fa   :  { %17640 = vst [vmem:[#allocation51_spill] sm:$0xff] %v14901_v28  ;;  %v1946_v56 = vadd.f32 %v11128_v59, %v14769_v50  ;;  %v11131_v11 = vadd.f32 %v11130_v26, %v11129_v57  ;;  %v14904_v55 = vadd.f32 %v11322_v61, %v11321_v43  ;;  %v13372_v50 = vld [vmem:[#allocation8 + $0x5d0] sm:$0xff]   ;;  %v17644_v43 = vld [vmem:[#allocation79_spill] sm:$0xff] }
 0x2fb   :  { %3866 = vmatmul.mubr.bf16.vlgmr.msra.gmra.mrb[160].mxu1 %v14483_v33  ;;  %v13381_v33 = vld [vmem:[#allocation8 + $0x708] sm:$0xff]  }
 0x2fc   :  { %17641 = vst [vmem:[#allocation53_spill] sm:$0xff] %v14904_v55  ;;  %4750 = vmatmul.mubr.bf16.vlgmr.msra.gmra.mrb[192].mxu0 %v17642_v46  ;;  %v1949_v8 = vadd.f32 %v11131_v11, %v14773_v58  ;;  %11721 = vmatpush3.bf16.msra.mxu1 %v13369_v31  ;;  %v14911_v23 = vadd.f32 %v14771_v20, %v1946_v56  ;;  %v13384_v55 = vld [vmem:[#allocation8 + $0x750] sm:$0xff]  }
 0x2fd   :  { %3873 = vmatprep.mubr.bf16.mxu1 %v17643_v52  ;;  %4757 = vmatprep.mubr.bf16.mxu0 %v14272_v7 }
 0x2fe   :  { %11722 = vmatprep.subr.bf16.mxu1 %v13370_v44  ;;  %v11132_v59 = vpop.f32.mrb[56].mxu1  ;;  %v11324_v57 = vpop.f32.mrb[88].mxu0  ;;  %11913 = vmatpush3.bf16.msra.mxu0 %v13379_v30  ;;  %v14915_v26 = vadd.f32 %v17644_v43, %v1949_v8  ;;  %v13373_v44 = vld [vmem:[#allocation8 + $0x590] sm:$0xff]   ;;  %v13374_v8 = vld [vmem:[#allocation8 + $0x5d8] sm:$0xff]  }
 0x2ff   :  { %v11133_v61 = vpop.f32.mrb[57].mxu1  ;;  %v11325_v58 = vpop.f32.mrb[89].mxu0  ;;  %11914 = vmatprep.subr.bf16.mxu0 %v13380_v9  ;;  %v13385_v43 = vld [vmem:[#allocation8 + $0x710] sm:$0xff]  }
 0x300   :  { %v11134_v31 = vadd.f32 %v11133_v61, %v11132_v59  ;;  %v14917_v11 = vadd.f32 %v11325_v58, %v11324_v57  ;;  %v11135_v46 = vpop.f32.mrb[58].mxu1  ;;  %v11327_v20 = vpop.f32.mrb[90].mxu0  ;;  %11723 = vmatpush3.bf16.msra.mxu1 %v13371_v14  ;;  %v17647_v9 = vld [vmem:[#allocation49_spill] sm:$0xff]  ;;  %v17648_v59 = vld [vmem:[#allocation71_spill] sm:$0xff]  ;;  %v17649_v61 = vld [vmem:[#allocation50_spill] sm:$0xff] }
 0x301   :  { %v11136_v56 = vpop.f32.mrb[59].mxu1  ;;  %v11328_v7 = vpop.f32.mrb[91].mxu0  ;;  %11724 = vmatprep.subr.bf16.mxu1 %v13372_v50  ;;  %v13386_v57 = vld [vmem:[#allocation8 + $0x758] sm:$0xff]   ;;  %v17650_v50 = vld [vmem:[#allocation23_spill] sm:$0xff] }
 0x302   :  { %17645 = vst [vmem:[#allocation56_spill] sm:$0xff] %v14917_v11  ;;  %v1954_v30 = vadd.f32 %v11134_v31, %v14781_v0  ;;  %v11137_v28 = vadd.f32 %v11136_v56, %v11135_v46  ;;  %v14920_v52 = vadd.f32 %v11328_v7, %v11327_v20  ;;  %11915 = vmatpush3.bf16.msra.mxu0 %v13381_v33  ;;  %v13375_v0 = vld [vmem:[#allocation8 + $0x598] sm:$0xff]   ;;  %v13376_v46 = vld [vmem:[#allocation8 + $0x5e0] sm:$0xff]  }
 0x303   :  { %3874 = vmatmul.mubr.bf16.gmra.mrb[164].mxu1 %v17647_v9  ;;  %11916 = vmatprep.subr.bf16.mxu0 %v13384_v55  ;;  %v13387_v20 = vld [vmem:[#allocation8 + $0x718] sm:$0xff]   ;;  %v13377_v55 = vld [vmem:[#allocation8 + $0x5a0] sm:$0xff]  }
 0x304   :  { %17646 = vst [vmem:[#allocation58_spill] sm:$0xff] %v14920_v52  ;;  %4758 = vmatmul.mubr.bf16.gmra.mrb[196].mxu0 %v17648_v59  ;;  %v1957_v14 = vadd.f32 %v11137_v28, %v14785_v2  ;;  %3881 = vmatprep.mubr.bf16.mxu1 %v17649_v61  ;;  %v14928_v58 = vadd.f32 %v14783_v53, %v1954_v30  ;;  %v13390_v52 = vld [vmem:[#allocation8 + $0x760] sm:$0xff]  }
 0x305   :  { %4765 = vmatprep.mubr.bf16.mxu0 %v17650_v50  ;;  %11725 = vmatpush3.bf16.msra.mxu1 %v13373_v44  ;;  %v17662_v61 = vld [vmem:[#allocation26_spill] sm:$0xff] }
 0x306   :  { %v11138_v31 = vpop.f32.mrb[60].mxu1  ;;  %v11330_v33 = vpop.f32.mrb[92].mxu0  ;;  %11726 = vmatprep.subr.bf16.mxu1 %v13374_v8  ;;  %11917 = vmatpush3.bf16.msra.mxu0 %v13385_v43  ;;  %v14931_v56 = vadd.f32 %v14787_v32, %v1957_v14  ;;  %v13382_v32 = vld [vmem:[#allocation8 + $0x5e8] sm:$0xff]   ;;  %v13391_v14 = vld [vmem:[#allocation8 + $0x720] sm:$0xff]  }
 0x307   :  { %v11139_v2 = vpop.f32.mrb[61].mxu1  ;;  %v11331_v28 = vpop.f32.mrb[93].mxu0  ;;  %11918 = vmatprep.subr.bf16.mxu0 %v13386_v57  ;;  %v17653_v57 = vld [vmem:[#allocation55_spill] sm:$0xff] }
 0x308   :  { %v11140_v7 = vadd.f32 %v11139_v2, %v11138_v31  ;;  %v14933_v59 = vadd.f32 %v11331_v28, %v11330_v33  ;;  %v11141_v53 = vpop.f32.mrb[62].mxu1  ;;  %v11333_v30 = vpop.f32.mrb[94].mxu0  ;;  %v17654_v31 = vld [vmem:[#allocation72_spill] sm:$0xff]  ;;  %v17655_v28 = vld [vmem:[#allocation57_spill] sm:$0xff] }
 0x309   :  { %v11142_v44 = vpop.f32.mrb[63].mxu1  ;;  %v11334_v50 = vpop.f32.mrb[95].mxu0  ;;  %11727 = vmatpush3.bf16.msra.mxu1 %v13375_v0  ;;  %v13392_v33 = vld [vmem:[#allocation8 + $0x768] sm:$0xff]   ;;  %v17656_v0 = vld [vmem:[#allocation25_spill] sm:$0xff] }
 0x30a   :  { %17651 = vst [vmem:[#allocation69_spill] sm:$0xff] %v14933_v59  ;;  %v1962_v8 = vadd.f32 %v11140_v7, %v14793_v51  ;;  %v11143_v43 = vadd.f32 %v11142_v44, %v11141_v53  ;;  %v14936_v11 = vadd.f32 %v11334_v50, %v11333_v30  ;;  %11728 = vmatprep.subr.bf16.mxu1 %v13376_v46  ;;  %v13383_v7 = vld [vmem:[#allocation8 + $0x5a8] sm:$0xff]   ;;  %v13388_v53 = vld [vmem:[#allocation8 + $0x5f0] sm:$0xff]  }
 0x30b   :  { %11919 = vmatpush3.bf16.msra.mxu0 %v13387_v20  ;;  %3882 = vmatmul.mubr.bf16.gmra.mrb[168].mxu1 %v17653_v57  ;;  %v13393_v30 = vld [vmem:[#allocation8 + $0x728] sm:$0xff]   ;;  %v13389_v59 = vld [vmem:[#allocation8 + $0x5b0] sm:$0xff]  }
 0x30c   :  { %17652 = vst [vmem:[#allocation42_spill] sm:$0xff] %v14936_v11  ;;  %4766 = vmatmul.mubr.bf16.gmra.mrb[200].mxu0 %v17654_v31  ;;  %v1965_v2 = vadd.f32 %v11143_v43, %v14797_v6  ;;  %3889 = vmatprep.mubr.bf16.mxu1 %v17655_v28  ;;  %v14944_v51 = vadd.f32 %v14795_v18, %v1962_v8  ;;  %v17657_v44 = vld [vmem:[#allocation80_spill] sm:$0xff] }
 0x30d   :  { %4773 = vmatprep.mubr.bf16.mxu0 %v17656_v0  ;;  %11729 = vmatpush3.bf16.msra.mxu1 %v13377_v55  ;;  %v10438_v55 = vld [vmem:[#allocation10] ss:$0 sm:$0xff] }
 0x30e   :  { %11920 = vmatprep.subr.bf16.mxu0 %v13390_v52  ;;  %v11224_v46 = vpop.f32.mrb[64].mxu1  ;;  %v11416_v20 = vpop.f32.mrb[96].mxu0  ;;  %11730 = vmatprep.subr.bf16.mxu1 %v13382_v32  ;;  %v14947_v50 = vadd.f32 %v17657_v44, %v1965_v2  ;;  %v13396_v32 = vld [vmem:[#allocation8 + $0x770] sm:$0xff]   ;;  %v13394_v2 = vld [vmem:[#allocation8 + $0x5f8] sm:$0xff]  }
 0x30f   :  { %11921 = vmatpush3.bf16.msra.mxu0 %v13391_v14  ;;  %v11225_v6 = vpop.f32.mrb[65].mxu1  ;;  %v11417_v43 = vpop.f32.mrb[97].mxu0  ;;  %v13398_v44 = vld [vmem:[#allocation8 + $0x778] sm:$0xff]  }
 0x310   :  { %11922 = vmatprep.subr.bf16.mxu0 %v13392_v33  ;;  %v11226_v31 = vadd.f32 %v11225_v6, %v11224_v46  ;;  %v11227_v0 = vpop.f32.mrb[66].mxu1  ;;  %v14949_v11 = vadd.f32 %v11417_v43, %v11416_v20  ;;  %v11419_v18 = vpop.f32.mrb[98].mxu0  ;;  %v13397_v33 = vld [vmem:[#allocation8 + $0x730] sm:$0xff]   ;;  %v17658_v46 = vld [vmem:[#allocation59_spill] sm:$0xff] }
 0x311   :  { %v11228_v8 = vpop.f32.mrb[67].mxu1  ;;  %v11420_v52 = vpop.f32.mrb[99].mxu0  ;;  %11731 = vmatpush3.bf16.msra.mxu1 %v13383_v7  ;;  %v17659_v20 = vld [vmem:[#allocation73_spill] sm:$0xff]  ;;  %v17661_v43 = vld [vmem:[#allocation60_spill] sm:$0xff] }
 0x312   :  { %v2100_v14 = vadd.f32 %v11226_v31, %v14816_v39  ;;  %v11229_v28 = vadd.f32 %v11228_v8, %v11227_v0  ;;  %v14952_v57 = vadd.f32 %v11420_v52, %v11419_v18  ;;  %11732 = vmatprep.subr.bf16.mxu1 %v13388_v53  ;;  %v13395_v39 = vld [vmem:[#allocation8 + $0x5b8] sm:$0xff]   ;;  %v13400_v18 = vld [vmem:[#allocation8 + $0x6c0] sm:$0xff]  }
 0x313   :  { %11923 = vmatpush3.bf16.msra.mxu0 %v13393_v30  ;;  %3890 = vmatmul.mubr.bf16.gmra.mrb[172].mxu1 %v17658_v46  ;;  %v13399_v0 = vld [vmem:[#allocation8 + $0x738] sm:$0xff]  }
 0x314   :  { %4774 = vmatmul.mubr.bf16.gmra.mrb[204].mxu0 %v17659_v20  ;;  %v14956_v6 = vadd.f32 %v10438_v55, %v2100_v14  ;;  %v2103_v7 = vadd.f32 %v11229_v28, %v14819_v60  ;;  %3897 = vmatprep.mubr.bf16.mxu1 %v17661_v43  ;;  %v13406_v43 = vld [vmem:[#allocation8 + $0x6d8] sm:$0xff]  }
 0x315   :  { %4781 = vmatprep.mubr.bf16.mxu0 %v17662_v61  ;;  %11733 = vmatpush3.bf16.msra.mxu1 %v13389_v59 }
 0x316   :  { %17660 = vst [vmem:[#allocation70_spill] sm:$0xff] %v14956_v6  ;;  %11924 = vmatprep.subr.bf16.mxu0 %v13396_v32  ;;  %v14961_v53 = vadd.f32 %v10438_v55, %v2103_v7  ;;  %v11230_v30 = vpop.f32.mrb[68].mxu1  ;;  %v11422_v31 = vpop.f32.mrb[100].mxu0  ;;  %11734 = vmatprep.subr.bf16.mxu1 %v13394_v2  ;;  %v13410_v32 = vld [vmem:[#allocation8 + $0x840] sm:$0xff]   ;;  %v17664_v2 = vld [vmem:[#allocation61_spill] sm:$0xff] }
 0x317   :  { %11925 = vmatpush3.bf16.msra.mxu0 %v13397_v33  ;;  %v11231_v8 = vpop.f32.mrb[69].mxu1  ;;  %v11423_v52 = vpop.f32.mrb[101].mxu0  ;;  %v17665_v33 = vld [vmem:[#allocation74_spill] sm:$0xff] }
 0x318   :  { %17663 = vst [vmem:[#allocation79_spill] sm:$0xff] %v14961_v53  ;;  %11926 = vmatprep.subr.bf16.mxu0 %v13398_v44  ;;  %v11232_v14 = vadd.f32 %v11231_v8, %v11230_v30  ;;  %v14963_v60 = vadd.f32 %v11423_v52, %v11422_v31  ;;  %v11233_v28 = vpop.f32.mrb[70].mxu1  ;;  %v11425_v20 = vpop.f32.mrb[102].mxu0  ;;  %v17667_v31 = vld [vmem:[#allocation62_spill] sm:$0xff]  ;;  %v17668_v8 = vld [vmem:[#allocation28_spill] sm:$0xff] }
 0x319   :  { %v11234_v61 = vpop.f32.mrb[71].mxu1  ;;  %v11426_v59 = vpop.f32.mrb[103].mxu0  ;;  %11735 = vmatpush3.bf16.msra.mxu1 %v13395_v39 }
 0x31a   :  { %v2108_v7 = vadd.f32 %v11232_v14, %v14832_v22  ;;  %v11235_v53 = vadd.f32 %v11234_v61, %v11233_v28  ;;  %v14966_v6 = vadd.f32 %v11426_v59, %v11425_v20  ;;  %11848 = vmatprep.subr.bf16.mxu1 %v13400_v18 }
 0x31b   :  { %11927 = vmatpush3.bf16.msra.mxu0 %v13399_v0  ;;  %3898 = vmatmul.mubr.bf16.gmra.mrb[176].mxu1 %v17664_v2  ;;  %v17695_v2 = vld [vmem:[#allocation21_spill] sm:$0xff] }
 0x31c   :  { %4782 = vmatmul.mubr.bf16.gmra.mrb[208].mxu0 %v17665_v33  ;;  %v14970_v44 = vadd.f32 %v10438_v55, %v2108_v7  ;;  %v2111_v30 = vadd.f32 %v11235_v53, %v14835_v48  ;;  %3905 = vmatprep.mubr.bf16.mxu1 %v17667_v31 }
 0x31d   :  { %4789 = vmatprep.mubr.bf16.mxu0 %v17668_v8  ;;  %12040 = vmatprep.subr.bf16.mxu0 %v13410_v32  ;;  %v17671_v32 = vld [vmem:[#allocation63_spill] sm:$0xff]  ;;  %v17674_v8 = vld [vmem:[#allocation76_spill] sm:$0xff] }
 0x31e   :  { %17666 = vst [vmem:[#allocation49_spill] sm:$0xff] %v14970_v44  ;;  %v14975_v39 = vadd.f32 %v10438_v55, %v2111_v30  ;;  %v11236_v22 = vpop.f32.mrb[72].mxu1  ;;  %v11428_v52 = vpop.f32.mrb[104].mxu0  ;;  %v17672_v55 = vld [vmem:[#allocation75_spill] sm:$0xff]  ;;  %v17677_v44 = vld [vmem:[#allocation78_spill] sm:$0xff] }
 0x31f   :  { %v11237_v14 = vpop.f32.mrb[73].mxu1  ;;  %v11429_v0 = vpop.f32.mrb[105].mxu0 }
 0x320   :  { %17669 = vst [vmem:[#allocation71_spill] sm:$0xff] %v14975_v39  ;;  %v11238_v18 = vadd.f32 %v11237_v14, %v11236_v22  ;;  %v14977_v28 = vadd.f32 %v11429_v0, %v11428_v52  ;;  %v11239_v20 = vpop.f32.mrb[74].mxu1  ;;  %v11431_v61 = vpop.f32.mrb[106].mxu0  ;;  %v17675_v22 = vld [vmem:[#allocation77_spill] sm:$0xff]  ;;  %v14991_v52 = vld [vmem:[#allocation2 + $0xa0] sm:$0xff] }
 0x321   :  { %v11240_v59 = vpop.f32.mrb[75].mxu1  ;;  %v11432_v7 = vpop.f32.mrb[107].mxu0  ;;  %v713_v14 = vld [vmem:[#allocation2 + $0xb0] sm:$0x1] }
 0x322   :  { %v14980_v48 = vadd.f32 %v11238_v18, %v14848_v12  ;;  %v11241_v53 = vadd.f32 %v11240_v59, %v11239_v20  ;;  %v14982_v33 = vadd.f32 %v11432_v7, %v11431_v61  ;;  %v17451_v61 = vrot.slane %v14991_v52, 3 }
 0x323   :  { %3906 = vmatmul.mubr.bf16.gmra.mrb[180].mxu1 %v17671_v32  ;;  %v747_v59 = vrot.slane %v713_v14, 1  ;;  %v17678_v14 = vld [vmem:[#allocation36_spill] sm:$0xff] }
 0x324   :  { %17670 = vst [vmem:[#allocation23_spill] sm:$0xff] %v14980_v48  ;;  %4790 = vmatmul.mubr.bf16.gmra.mrb[212].mxu0 %v17672_v55  ;;  %v14987_v30 = vadd.f32 %v11241_v53, %v14851_v21  ;;  %3913 = vmatprep.mubr.bf16.mxu1 %v17674_v8 }
 0x325   :  { %4797 = vmatprep.mubr.bf16.mxu0 %v17675_v22 }
 0x326   :  { %17673 = vst [vmem:[#allocation72_spill] sm:$0xff] %v14987_v30  ;;  %v11242_v0 = vpop.f32.mrb[76].mxu1  ;;  %v11434_v12 = vpop.f32.mrb[108].mxu0 }
 0x327   :  { %v11243_v18 = vpop.f32.mrb[77].mxu1  ;;  %v11435_v20 = vpop.f32.mrb[109].mxu0 }
 0x328   :  { %v11244_v7 = vadd.f32 %v11243_v18, %v11242_v0  ;;  %v14994_v48 = vadd.f32 %v11435_v20, %v11434_v12  ;;  %v11245_v55 = vpop.f32.mrb[78].mxu1  ;;  %v11437_v21 = vpop.f32.mrb[110].mxu0  ;;  %v17679_v0 = vrot.slane %v17678_v14, 3  ;;  %v17681_v18 = vld [vmem:[#allocation39_spill] sm:$0xff] }
 0x329   :  { %v11246_v53 = vpop.f32.mrb[79].mxu1  ;;  %v11438_v30 = vpop.f32.mrb[111].mxu0  ;;  %v17682_v20 = vrot.slane %v17681_v18, 1 }
 0x32a   :  { %v14997_v39 = vadd.f32 %v11244_v7, %v14872_v19  ;;  %v11247_v22 = vadd.f32 %v11246_v53, %v11245_v55  ;;  %v14999_v8 = vadd.f32 %v11438_v30, %v11437_v21  ;;  %v15008_v12 = vsel %vm865_vm3, %v17679_v0, %v17451_v61 }
 0x32b   :  { %3914 = vmatmul.mubr.bf16.gmra.mrb[184].mxu1 %v17677_v44  ;;  %17680 = vst [vmem:[#allocation80_spill] sm:$0xff] %v15008_v12  ;;  %v748_v32 = vsel %vm613_vm0, %v17682_v20, %v747_v59  ;;  %v17452_v55 = vrot.slane %v14991_v52, 2 }
 0x32c   :  { %17676 = vst [vmem:[#allocation25_spill] sm:$0xff] %v14997_v39  ;;  %4798 = vmatmul.mubr.bf16.gmra.mrb[216].mxu0 %v14747_v49  ;;  %v15014_v19 = vadd.f32 %v11247_v22, %v14876_v13  ;;  %3921 = vmatprep.mubr.bf16.mxu1 %v15008_v12  ;;  %v17692_v12 = vld [vmem:[#allocation20_spill] sm:$0xff] }
 0x32d   :  { %4805 = vmatprep.mubr.bf16.mxu0 %v748_v32  ;;  %v17685_v32 = vrot.slane %v14747_v49, 2 }
 0x32e   :  { %17683 = vst [vmem:[#allocation59_spill] sm:$0xff] %v15014_v19  ;;  %v11248_v30 = vpop.f32.mrb[80].mxu1  ;;  %v11440_v7 = vpop.f32.mrb[112].mxu0 }
 0x32f   :  { %v11249_v21 = vpop.f32.mrb[81].mxu1  ;;  %v11441_v53 = vpop.f32.mrb[113].mxu0  ;;  %v15030_v20 = vsel %vm795_vm4, %v17685_v32, %v17452_v55  ;;  %v13401_v55 = vld [vmem:[#allocation8 + $0x680] sm:$0xff]  }
 0x330   :  { %v11250_v14 = vadd.f32 %v11249_v21, %v11248_v30  ;;  %v15018_v39 = vadd.f32 %v11441_v53, %v11440_v7  ;;  %v11251_v0 = vpop.f32.mrb[82].mxu1  ;;  %v11443_v61 = vpop.f32.mrb[114].mxu0  ;;  %17686 = vst [vmem:[#allocation26_spill] sm:$0xff] %v15030_v20  ;;  %v17688_v7 = vld [vmem:[#allocation64_spill] sm:$0xff] }
 0x331   :  { %v11252_v44 = vpop.f32.mrb[83].mxu1  ;;  %v11444_v31 = vpop.f32.mrb[115].mxu0 }
 0x332   :  { %v15021_v59 = vadd.f32 %v11250_v14, %v14896_v1  ;;  %v11253_v13 = vadd.f32 %v11252_v44, %v11251_v0  ;;  %v15023_v22 = vadd.f32 %v11444_v31, %v11443_v61  ;;  %v17689_v1 = vld [vmem:[#allocation19_spill] sm:$0xff] }
 0x333   :  { %3922 = vmatmul.mubr.bf16.gmra.mrb[188].mxu1 %v15030_v20  ;;  %v13402_v20 = vld [vmem:[#allocation8 + $0x6c8] sm:$0xff]  }
 0x334   :  { %17684 = vst [vmem:[#allocation73_spill] sm:$0xff] %v15021_v59  ;;  %4806 = vmatmul.mubr.bf16.gmra.mrb[220].mxu0 %v14991_v52  ;;  %v15035_v30 = vadd.f32 %v11253_v13, %v14899_v27  ;;  %4059 = vmatprep.mubr.bf16.mxu1 %v17688_v7 }
 0x335   :  { %4943 = vmatprep.mubr.bf16.mxu0 %v17689_v1  ;;  %v13411_v1 = vld [vmem:[#allocation8 + $0x800] sm:$0xff]  }
 0x336   :  { %17687 = vst [vmem:[#allocation74_spill] sm:$0xff] %v15035_v30  ;;  %v11254_v44 = vpop.f32.mrb[84].mxu1  ;;  %v11446_v31 = vpop.f32.mrb[116].mxu0  ;;  %v17691_v30 = vld [vmem:[#allocation65_spill] sm:$0xff] }
 0x337   :  { %v11255_v61 = vpop.f32.mrb[85].mxu1  ;;  %v11447_v21 = vpop.f32.mrb[117].mxu0 }
 0x338   :  { %v11256_v53 = vadd.f32 %v11255_v61, %v11254_v44  ;;  %v15039_v14 = vadd.f32 %v11447_v21, %v11446_v31  ;;  %v11257_v0 = vpop.f32.mrb[86].mxu1  ;;  %v11449_v32 = vpop.f32.mrb[118].mxu0  ;;  %v13412_v44 = vld [vmem:[#allocation8 + $0x848] sm:$0xff]   ;;  %v17694_v61 = vld [vmem:[#allocation66_spill] sm:$0xff] }
 0x339   :  { %v11258_v59 = vpop.f32.mrb[87].mxu1  ;;  %v11450_v19 = vpop.f32.mrb[119].mxu0  ;;  %v13403_v21 = vld [vmem:[#allocation8 + $0x688] sm:$0xff]  }
 0x33a   :  { %v15042_v27 = vadd.f32 %v11256_v53, %v14911_v23  ;;  %v11259_v13 = vadd.f32 %v11258_v59, %v11257_v0  ;;  %v15044_v7 = vadd.f32 %v11450_v19, %v11449_v32  ;;  %v13404_v23 = vld [vmem:[#allocation8 + $0x6d0] sm:$0xff]   ;;  %v13413_v53 = vld [vmem:[#allocation8 + $0x808] sm:$0xff]  }
 0x33b   :  { %4060 = vmatmul.mubr.bf16.vlgmr.msra.gmra.mrb[192].mxu1 %v17691_v30 }
 0x33c   :  { %17690 = vst [vmem:[#allocation28_spill] sm:$0xff] %v15042_v27  ;;  %4944 = vmatmul.mubr.bf16.vlgmr.msra.gmra.mrb[224].mxu0 %v17692_v12  ;;  %v15049_v31 = vadd.f32 %v11259_v13, %v14915_v26  ;;  %11849 = vmatpush3.bf16.msra.mxu1 %v13401_v55  ;;  %v13405_v27 = vld [vmem:[#allocation8 + $0x690] sm:$0xff]  }
 0x33d   :  { %4067 = vmatprep.mubr.bf16.mxu1 %v17694_v61  ;;  %4951 = vmatprep.mubr.bf16.mxu0 %v17695_v2  ;;  %v13416_v2 = vld [vmem:[#allocation8 + $0x850] sm:$0xff]  }
 0x33e   :  { %17693 = vst [vmem:[#allocation75_spill] sm:$0xff] %v15049_v31  ;;  %11850 = vmatprep.subr.bf16.mxu1 %v13402_v20  ;;  %v11260_v59 = vpop.f32.mrb[88].mxu1  ;;  %v11452_v19 = vpop.f32.mrb[120].mxu0  ;;  %12041 = vmatpush3.bf16.msra.mxu0 %v13411_v1 }
 0x33f   :  { %v11261_v0 = vpop.f32.mrb[89].mxu1  ;;  %v11453_v30 = vpop.f32.mrb[121].mxu0  ;;  %12042 = vmatprep.subr.bf16.mxu0 %v13412_v44  ;;  %v13417_v44 = vld [vmem:[#allocation8 + $0x810] sm:$0xff]  }
 0x340   :  { %v11262_v12 = vadd.f32 %v11261_v0, %v11260_v59  ;;  %v15053_v32 = vadd.f32 %v11453_v30, %v11452_v19  ;;  %v11263_v26 = vpop.f32.mrb[90].mxu1  ;;  %v11455_v13 = vpop.f32.mrb[122].mxu0  ;;  %11851 = vmatpush3.bf16.msra.mxu1 %v13403_v21  ;;  %v17697_v59 = vld [vmem:[#allocation67_spill] sm:$0xff]  ;;  %v17698_v19 = vld [vmem:[#allocation22_spill] sm:$0xff]  ;;  %v17701_v30 = vld [vmem:[#allocation24_spill] sm:$0xff] }
 0x341   :  { %v11264_v55 = vpop.f32.mrb[91].mxu1  ;;  %v11456_v31 = vpop.f32.mrb[123].mxu0  ;;  %11852 = vmatprep.subr.bf16.mxu1 %v13404_v23  ;;  %v13418_v0 = vld [vmem:[#allocation8 + $0x858] sm:$0xff]   ;;  %v17700_v23 = vld [vmem:[#allocation68_spill] sm:$0xff] }
 0x342   :  { %v15056_v20 = vadd.f32 %v11262_v12, %v14928_v58  ;;  %v11265_v61 = vadd.f32 %v11264_v55, %v11263_v26  ;;  %v15058_v1 = vadd.f32 %v11456_v31, %v11455_v13  ;;  %12043 = vmatpush3.bf16.msra.mxu0 %v13413_v53  ;;  %v13407_v58 = vld [vmem:[#allocation8 + $0x698] sm:$0xff]   ;;  %v13408_v53 = vld [vmem:[#allocation8 + $0x6e0] sm:$0xff]  }
 0x343   :  { %4068 = vmatmul.mubr.bf16.gmra.mrb[196].mxu1 %v17697_v59  ;;  %12044 = vmatprep.subr.bf16.mxu0 %v13416_v2  ;;  %v13419_v26 = vld [vmem:[#allocation8 + $0x818] sm:$0xff]  }
 0x344   :  { %17696 = vst [vmem:[#allocation77_spill] sm:$0xff] %v15056_v20  ;;  %4952 = vmatmul.mubr.bf16.gmra.mrb[228].mxu0 %v17698_v19  ;;  %v15063_v21 = vadd.f32 %v11265_v61, %v14931_v56  ;;  %4075 = vmatprep.mubr.bf16.mxu1 %v17700_v23 }
 0x345   :  { %4959 = vmatprep.mubr.bf16.mxu0 %v17701_v30  ;;  %11853 = vmatpush3.bf16.msra.mxu1 %v13405_v27  ;;  %v13409_v27 = vld [vmem:[#allocation8 + $0x6a0] sm:$0xff]  }
 0x346   :  { %17699 = vst [vmem:[#allocation36_spill] sm:$0xff] %v15063_v21  ;;  %v11266_v31 = vpop.f32.mrb[92].mxu1  ;;  %v11458_v12 = vpop.f32.mrb[124].mxu0  ;;  %11854 = vmatprep.subr.bf16.mxu1 %v13406_v43  ;;  %12045 = vmatpush3.bf16.msra.mxu0 %v13417_v44  ;;  %v13422_v30 = vld [vmem:[#allocation8 + $0x860] sm:$0xff]   ;;  %v13414_v44 = vld [vmem:[#allocation8 + $0x6e8] sm:$0xff]  }
 0x347   :  { %v11267_v13 = vpop.f32.mrb[93].mxu1  ;;  %v11459_v55 = vpop.f32.mrb[125].mxu0  ;;  %12046 = vmatprep.subr.bf16.mxu0 %v13418_v0  ;;  %v13423_v0 = vld [vmem:[#allocation8 + $0x820] sm:$0xff]  }
 0x348   :  { %v11268_v19 = vadd.f32 %v11267_v13, %v11266_v31  ;;  %v15067_v20 = vadd.f32 %v11459_v55, %v11458_v12  ;;  %v11269_v56 = vpop.f32.mrb[94].mxu1  ;;  %v11461_v61 = vpop.f32.mrb[126].mxu0  ;;  %v13424_v31 = vld [vmem:[#allocation8 + $0x868] sm:$0xff]  }
 0x349   :  { %v11270_v21 = vpop.f32.mrb[95].mxu1  ;;  %v11462_v23 = vpop.f32.mrb[127].mxu0  ;;  %11855 = vmatpush3.bf16.msra.mxu1 %v13407_v58  ;;  %v13420_v58 = vld [vmem:[#allocation8 + $0x6f0] sm:$0xff]  }
 0x34a   :  { %v15070_v2 = vadd.f32 %v11268_v19, %v14944_v51  ;;  %v11271_v43 = vadd.f32 %v11270_v21, %v11269_v56  ;;  %v15072_v59 = vadd.f32 %v11462_v23, %v11461_v61  ;;  %11856 = vmatprep.subr.bf16.mxu1 %v13408_v53  ;;  %12047 = vmatpush3.bf16.msra.mxu0 %v13419_v26  ;;  %v13415_v51 = vld [vmem:[#allocation8 + $0x6a8] sm:$0xff]  }
 0x34b   :  { %4076 = vmatmul.mubr.bf16.gmra.mrb[200].mxu1 %v14624_v38  ;;  %12048 = vmatprep.subr.bf16.mxu0 %v13422_v30  ;;  %v13425_v53 = vld [vmem:[#allocation8 + $0x828] sm:$0xff]   ;;  %v17704_v30 = vld [vmem:[#allocation81_spill] sm:$0xff] }
 0x34c   :  { %17702 = vst [vmem:[#allocation39_spill] sm:$0xff] %v15070_v2  ;;  %4960 = vmatmul.mubr.bf16.gmra.mrb[232].mxu0 %v14311_v42  ;;  %v15077_v12 = vadd.f32 %v11271_v43, %v14947_v50  ;;  %4083 = vmatprep.mubr.bf16.mxu1 %v14629_v10  ;;  %v13429_v2 = vld [vmem:[#allocation8 + $0x830] sm:$0xff]  }
 0x34d   :  { %4967 = vmatprep.mubr.bf16.mxu0 %v14317_v45  ;;  %11857 = vmatpush3.bf16.msra.mxu1 %v13409_v27  ;;  %v13421_v45 = vld [vmem:[#allocation8 + $0x6b0] sm:$0xff]  }
 0x34e   :  { %17703 = vst [vmem:[#allocation64_spill] sm:$0xff] %v15077_v12  ;;  %v11352_v21 = vpop.f32.mrb[96].mxu1  ;;  %v11544_v23 = vpop.f32.mrb[128].mxu0  ;;  %11858 = vmatprep.subr.bf16.mxu1 %v13414_v44  ;;  %12049 = vmatpush3.bf16.msra.mxu0 %v13423_v0  ;;  %v13428_v27 = vld [vmem:[#allocation8 + $0x870] sm:$0xff]   ;;  %v13426_v0 = vld [vmem:[#allocation8 + $0x6f8] sm:$0xff]  }
 0x34f   :  { %v11353_v26 = vpop.f32.mrb[97].mxu1  ;;  %v11545_v13 = vpop.f32.mrb[129].mxu0  ;;  %12050 = vmatprep.subr.bf16.mxu0 %v13424_v31  ;;  %v13430_v31 = vld [vmem:[#allocation8 + $0x878] sm:$0xff]  }
 0x350   :  { %v11354_v42 = vadd.f32 %v11353_v26, %v11352_v21  ;;  %v11355_v55 = vpop.f32.mrb[98].mxu1  ;;  %v15081_v50 = vadd.f32 %v11545_v13, %v11544_v23  ;;  %v11547_v19 = vpop.f32.mrb[130].mxu0  ;;  %v17705_v21 = vld [vmem:[#allocation82_spill] sm:$0xff] }
 0x351   :  { %v11356_v56 = vpop.f32.mrb[99].mxu1  ;;  %v11548_v61 = vpop.f32.mrb[131].mxu0  ;;  %11859 = vmatpush3.bf16.msra.mxu1 %v13415_v51  ;;  %v13427_v26 = vld [vmem:[#allocation8 + $0x6b8] sm:$0xff]  }
 0x352   :  { %v2887_v43 = vadd.f32 %v11354_v42, %v17704_v30  ;;  %v11357_v12 = vadd.f32 %v11356_v56, %v11355_v55  ;;  %v15084_v44 = vadd.f32 %v11548_v61, %v11547_v19  ;;  %11860 = vmatprep.subr.bf16.mxu1 %v13420_v58  ;;  %12051 = vmatpush3.bf16.msra.mxu0 %v13425_v53  ;;  %v13431_v13 = vld [vmem:[#allocation8 + $0x838] sm:$0xff]   ;;  %v13432_v42 = vld [vmem:[#allocation8 + $0x7c0] sm:$0xff]  }
 0x353   :  { %4084 = vmatmul.mubr.bf16.gmra.mrb[204].mxu1 %v14634_v37  ;;  %12052 = vmatprep.subr.bf16.mxu0 %v13428_v27  ;;  %v13442_v27 = vld [vmem:[#allocation8 + $0x940] sm:$0xff]  }
 0x354   :  { %4968 = vmatmul.mubr.bf16.gmra.mrb[236].mxu0 %v14332_v3  ;;  %v2890_v23 = vadd.f32 %v11357_v12, %v17705_v21  ;;  %4091 = vmatprep.mubr.bf16.mxu1 %v14639_v16  ;;  %v15092_v51 = vadd.f32 %v14949_v11, %v2887_v43 }
 0x355   :  { %4975 = vmatprep.mubr.bf16.mxu0 %v14338_v5  ;;  %11861 = vmatpush3.bf16.msra.mxu1 %v13421_v45 }
 0x356   :  { %v11358_v58 = vpop.f32.mrb[100].mxu1  ;;  %v11550_v53 = vpop.f32.mrb[132].mxu0  ;;  %11862 = vmatprep.subr.bf16.mxu1 %v13426_v0  ;;  %12053 = vmatpush3.bf16.msra.mxu0 %v13429_v2  ;;  %v15095_v3 = vadd.f32 %v14952_v57, %v2890_v23 }
 0x357   :  { %v11359_v12 = vpop.f32.mrb[101].mxu1  ;;  %v11551_v55 = vpop.f32.mrb[133].mxu0  ;;  %12054 = vmatprep.subr.bf16.mxu0 %v13430_v31 }
 0x358   :  { %v11360_v19 = vadd.f32 %v11359_v12, %v11358_v58  ;;  %v15097_v5 = vadd.f32 %v11551_v55, %v11550_v53  ;;  %v11361_v11 = vpop.f32.mrb[102].mxu1  ;;  %v11553_v56 = vpop.f32.mrb[134].mxu0  ;;  %v17706_v55 = vld [vmem:[#allocation41_spill] sm:$0xff] }
 0x359   :  { %v11362_v61 = vpop.f32.mrb[103].mxu1  ;;  %v11554_v45 = vpop.f32.mrb[135].mxu0  ;;  %11863 = vmatpush3.bf16.msra.mxu1 %v13427_v26 }
 0x35a   :  { %v2895_v30 = vadd.f32 %v11360_v19, %v14821_v4  ;;  %v11363_v2 = vadd.f32 %v11362_v61, %v11361_v11  ;;  %v15100_v43 = vadd.f32 %v11554_v45, %v11553_v56  ;;  %12055 = vmatpush3.bf16.msra.mxu0 %v13431_v13  ;;  %11976 = vmatprep.subr.bf16.mxu1 %v13432_v42  ;;  %v992_v19 = vld [vmem:[#allocation2 + $0xb0] sm:$0x1f] }
 0x35b   :  { %4092 = vmatmul.mubr.bf16.gmra.mrb[208].mxu1 %v14647_v40  ;;  %12168 = vmatprep.subr.bf16.mxu0 %v13442_v27 }
 0x35c   :  { %4976 = vmatmul.mubr.bf16.gmra.mrb[240].mxu0 %v14367_v35  ;;  %v2898_v57 = vadd.f32 %v11363_v2, %v14824_v54  ;;  %4099 = vmatprep.mubr.bf16.mxu1 %v14654_v17  ;;  %v15108_v0 = vadd.f32 %v14963_v60, %v2895_v30  ;;  %v17456_v30 = vrot.slane %v14991_v52, 7 }
 0x35d   :  { %4983 = vmatprep.mubr.bf16.mxu0 %v14377_v41 }
 0x35e   :  { %v11364_v4 = vpop.f32.mrb[104].mxu1  ;;  %v11556_v31 = vpop.f32.mrb[136].mxu0  ;;  %v15111_v21 = vadd.f32 %v14966_v6, %v2898_v57 }
 0x35f   :  { %v11365_v23 = vpop.f32.mrb[105].mxu1  ;;  %v11557_v26 = vpop.f32.mrb[137].mxu0 }
 0x360   :  { %v11366_v58 = vadd.f32 %v11365_v23, %v11364_v4  ;;  %v15113_v53 = vadd.f32 %v11557_v26, %v11556_v31  ;;  %v11367_v35 = vpop.f32.mrb[106].mxu1  ;;  %v11559_v54 = vpop.f32.mrb[138].mxu0  ;;  %v17707_v26 = vld [vmem:[#allocation52_spill] sm:$0xff] }
 0x361   :  { %v11368_v13 = vpop.f32.mrb[107].mxu1  ;;  %v11560_v42 = vpop.f32.mrb[139].mxu0 }
 0x362   :  { %v2903_v41 = vadd.f32 %v11366_v58, %v14837_v36  ;;  %v11369_v12 = vadd.f32 %v11368_v13, %v11367_v35  ;;  %v15116_v60 = vadd.f32 %v11560_v42, %v11559_v54  ;;  %v5295_v54 = vld [vmem:[#allocation2 + $0x8] sm:$0xfe]  ;;  %v17710_v42 = vrot.slane %v17681_v18, 5 }
 0x363   :  { %4100 = vmatmul.mubr.bf16.gmra.mrb[212].mxu1 %v14662_v47 }
 0x364   :  { %4984 = vmatmul.mubr.bf16.gmra.mrb[244].mxu0 %v14669_v25  ;;  %v2906_v6 = vadd.f32 %v11369_v12, %v14840_v34  ;;  %4107 = vmatprep.mubr.bf16.mxu1 %v14866_v24  ;;  %v15124_v11 = vadd.f32 %v14977_v28, %v2903_v41  ;;  %v1027_v25 = vrot.slane %v992_v19, 5  ;;  %v922_v12 = vld [vmem:[#allocation2 + $0xb0] sm:$0xf] }
 0x365   :  { %4991 = vmatprep.mubr.bf16.mxu0 %v17706_v55 }
 0x366   :  { %v11370_v56 = vpop.f32.mrb[108].mxu1  ;;  %v11562_v61 = vpop.f32.mrb[140].mxu0  ;;  %v15127_v36 = vadd.f32 %v14982_v33, %v2906_v6  ;;  %v17709_v33 = vrot.slane %v14747_v49, 7  ;;  %v1028_v41 = vsel %vm1005_vm1, %v17710_v42, %v1027_v25  ;;  %v17711_v6 = vld [vmem:[#allocation54_spill] sm:$0xff] }
 0x367   :  { %v11371_v45 = vpop.f32.mrb[109].mxu1  ;;  %v11563_v27 = vpop.f32.mrb[141].mxu0 }
 0x368   :  { %v11372_v2 = vadd.f32 %v11371_v45, %v11370_v56  ;;  %v15130_v34 = vadd.f32 %v11563_v27, %v11562_v61  ;;  %v11373_v57 = vpop.f32.mrb[110].mxu1  ;;  %v11565_v4 = vpop.f32.mrb[142].mxu0  ;;  %v15142_v13 = vsel %vm1145_vm5, %v17709_v33, %v17456_v30  ;;  %v5319_v56 = vrot.slane %v5295_v54, 1  ;;  %v17724_v30 = vld [vmem:[#allocation56_spill] sm:$0xff] }
 0x369   :  { %v11374_v31 = vpop.f32.mrb[111].mxu1  ;;  %v11566_v23 = vpop.f32.mrb[143].mxu0  ;;  %v957_v27 = vrot.slane %v922_v12, 4  ;;  %v17714_v33 = vrot.slane %v14747_v49, 6 }
 0x36a   :  { %v2911_v28 = vadd.f32 %v11372_v2, %v17707_v26  ;;  %v11375_v58 = vadd.f32 %v11374_v31, %v11373_v57  ;;  %v15133_v35 = vadd.f32 %v11566_v23, %v11565_v4  ;;  %v15156_v4 = vld [vmem:[#allocation2] sm:$0xff] }
 0x36b   :  { %4108 = vmatmul.mubr.bf16.gmra.mrb[216].mxu1 %v14888_v15  ;;  %v15159_v31 = vrot.slane %v15156_v4, 1 }
 0x36c   :  { %17708 = vst [vmem:[#allocation19_spill] sm:$0xff] %v15133_v35  ;;  %4992 = vmatmul.mubr.bf16.gmra.mrb[248].mxu0 %v17639_v29  ;;  %v2914_v55 = vadd.f32 %v11375_v58, %v17711_v6  ;;  %4115 = vmatprep.mubr.bf16.mxu1 %v15142_v13  ;;  %v15150_v19 = vadd.f32 %v14994_v48, %v2911_v28  ;;  %v17455_v29 = vrot.slane %v14991_v52, 6  ;;  %v17759_v35 = vld [vmem:[#allocation26_spill] sm:$0xff] }
 0x36d   :  { %4999 = vmatprep.mubr.bf16.mxu0 %v1028_v41  ;;  %17712 = vst [vmem:[#allocation65_spill] sm:$0xff] %v15159_v31  ;;  %v5321_v42 = vsel %vm613_vm0, %v5319_v56, %v15159_v31 }
 0x36e   :  { %v11376_v61 = vpop.f32.mrb[112].mxu1  ;;  %v11568_v45 = vpop.f32.mrb[144].mxu0  ;;  %v15154_v2 = vadd.f32 %v14999_v8, %v2914_v55  ;;  %v15168_v8 = vsel %vm1075_vm6, %v17714_v33, %v17455_v29  ;;  %v17716_v55 = vrot.slane %v17681_v18, 4  ;;  %v13437_v29 = vld [vmem:[#allocation8 + $0x790] sm:$0xff]  }
 0x36f   :  { %v11377_v57 = vpop.f32.mrb[113].mxu1  ;;  %v11569_v25 = vpop.f32.mrb[145].mxu0 }
 0x370   :  { %v11378_v23 = vadd.f32 %v11377_v57, %v11376_v61  ;;  %v15161_v26 = vadd.f32 %v11569_v25, %v11568_v45  ;;  %v11379_v48 = vpop.f32.mrb[114].mxu1  ;;  %v11571_v28 = vpop.f32.mrb[146].mxu0  ;;  %v958_v61 = vsel %vm935_vm2, %v17716_v55, %v957_v27  ;;  %v17717_v45 = vld [vmem:[#allocation47_spill] sm:$0xff] }
 0x371   :  { %v11380_v58 = vpop.f32.mrb[115].mxu1  ;;  %v11572_v54 = vpop.f32.mrb[147].mxu0 }
 0x372   :  { %17713 = vst [vmem:[#allocation20_spill] sm:$0xff] %v15161_v26  ;;  %v2919_v41 = vadd.f32 %v11378_v23, %v14878_v63  ;;  %v11381_v12 = vadd.f32 %v11380_v58, %v11379_v48  ;;  %v15173_v6 = vadd.f32 %v11572_v54, %v11571_v28  ;;  %v13433_v54 = vld [vmem:[#allocation8 + $0x780] sm:$0xff]  }
 0x373   :  { %4116 = vmatmul.mubr.bf16.gmra.mrb[220].mxu1 %v15168_v8  ;;  %v13455_v26 = vld [vmem:[#allocation8 + $0x920] sm:$0xff]  }
 0x374   :  { %17715 = vst [vmem:[#allocation21_spill] sm:$0xff] %v15173_v6  ;;  %5000 = vmatmul.mubr.bf16.gmra.mrb[252].mxu0 %v958_v61  ;;  %v2922_v49 = vadd.f32 %v11381_v12, %v14881_v62  ;;  %4846 = vmatprep.mubr.bf16.mxu1 %v17717_v45  ;;  %v15182_v57 = vadd.f32 %v15018_v39, %v2919_v41  ;;  %v13434_v12 = vld [vmem:[#allocation8 + $0x7c8] sm:$0xff]   ;;  %v13443_v61 = vld [vmem:[#allocation8 + $0x900] sm:$0xff]   ;;  %v13449_v6 = vld [vmem:[#allocation8 + $0x910] sm:$0xff]  }
 0x375   :  { %6394 = vmatprep.mubr.bf16.mxu0 %v5321_v42  ;;  %v17719_v42 = vld [vmem:[#allocation51_spill] sm:$0xff] }
 0x376   :  { %v11382_v56 = vpop.f32.mrb[116].mxu1  ;;  %v11574_v63 = vpop.f32.mrb[148].mxu0  ;;  %v15185_v25 = vadd.f32 %v15023_v22, %v2922_v49  ;;  %v13444_v22 = vld [vmem:[#allocation8 + $0x948] sm:$0xff]   ;;  %v17721_v49 = vld [vmem:[#allocation53_spill] sm:$0xff] }
 0x377   :  { %v11383_v23 = vpop.f32.mrb[117].mxu1  ;;  %v11575_v18 = vpop.f32.mrb[149].mxu0 }
 0x378   :  { %v11384_v48 = vadd.f32 %v11383_v23, %v11382_v56  ;;  %v15187_v27 = vadd.f32 %v11575_v18, %v11574_v63  ;;  %v11385_v28 = vpop.f32.mrb[118].mxu1  ;;  %v11577_v58 = vpop.f32.mrb[150].mxu0  ;;  %v17722_v56 = vld [vmem:[#allocation50_spill] sm:$0xff]  ;;  %v13435_v63 = vld [vmem:[#allocation8 + $0x788] sm:$0xff]  }
 0x379   :  { %v11386_v62 = vpop.f32.mrb[119].mxu1  ;;  %v11578_v33 = vpop.f32.mrb[151].mxu0  ;;  %v15196_v23 = vld [vmem:[#allocation2 + $0x38] sm:$0xff] }
 0x37a   :  { %17718 = vst [vmem:[#allocation22_spill] sm:$0xff] %v15187_v27  ;;  %v2927_v55 = vadd.f32 %v11384_v48, %v17719_v42  ;;  %v11387_v39 = vadd.f32 %v11386_v62, %v11385_v28  ;;  %v15190_v41 = vadd.f32 %v11578_v33, %v11577_v58  ;;  %v13436_v48 = vld [vmem:[#allocation8 + $0x7d0] sm:$0xff]   ;;  %v13445_v58 = vld [vmem:[#allocation8 + $0x908] sm:$0xff]   ;;  %v5324_v42 = vrot.slane %v15196_v23, 1  ;;  %v13438_v27 = vld [vmem:[#allocation8 + $0x7d8] sm:$0xff]  }
 0x37b   :  { %4847 = vmatmul.mubr.bf16.vlgmr.msra.gmra.mrb[224].mxu1 %v17647_v9 }
 0x37c   :  { %17720 = vst [vmem:[#allocation24_spill] sm:$0xff] %v15190_v41  ;;  %6395 = vmatmul.mubr.bf16.vlgmr.msra.gmra.mrb[0].mxu0 %v15156_v4  ;;  %v2930_v45 = vadd.f32 %v11387_v39, %v17721_v49  ;;  %11977 = vmatpush3.bf16.msra.mxu1 %v13433_v54  ;;  %v15199_v18 = vadd.f32 %v15039_v14, %v2927_v55 }
 0x37d   :  { %4854 = vmatprep.mubr.bf16.mxu1 %v17722_v56  ;;  %11978 = vmatprep.subr.bf16.mxu1 %v13434_v12 }
 0x37e   :  { %6402 = vmatprep.mubr.bf16.mxu0 %v15159_v31  ;;  %v11388_v28 = vpop.f32.mrb[120].mxu1  ;;  %v11580_v9 = vpop.f32.mrb[152].mxu0  ;;  %12169 = vmatpush3.bf16.msra.mxu0 %v13443_v61  ;;  %v15203_v62 = vadd.f32 %v15044_v7, %v2930_v45  ;;  %v13448_v61 = vld [vmem:[#allocation8 + $0x950] sm:$0xff]  }
 0x37f   :  { %v11389_v54 = vpop.f32.mrb[121].mxu1  ;;  %v11581_v33 = vpop.f32.mrb[153].mxu0  ;;  %12170 = vmatprep.subr.bf16.mxu0 %v13444_v22  ;;  %v17726_v22 = vld [vmem:[#allocation55_spill] sm:$0xff] }
 0x380   :  { %v11390_v39 = vadd.f32 %v11389_v54, %v11388_v28  ;;  %v15206_v49 = vadd.f32 %v11581_v33, %v11580_v9  ;;  %v11391_v14 = vpop.f32.mrb[122].mxu1  ;;  %v11583_v12 = vpop.f32.mrb[154].mxu0  ;;  %11979 = vmatpush3.bf16.msra.mxu1 %v13435_v63  ;;  %v15215_v63 = vsel %vm613_vm0, %v15159_v31, %v5324_v42  ;;  %v13450_v28 = vld [vmem:[#allocation8 + $0x958] sm:$0xff]  }
 0x381   :  { %v11392_v55 = vpop.f32.mrb[123].mxu1  ;;  %v11584_v56 = vpop.f32.mrb[155].mxu0  ;;  %11980 = vmatprep.subr.bf16.mxu1 %v13436_v48  ;;  %17727 = vst [vmem:[#allocation41_spill] sm:$0xff] %v15215_v63  ;;  %v17728_v48 = vld [vmem:[#allocation58_spill] sm:$0xff]  ;;  %v17729_v54 = vld [vmem:[#allocation57_spill] sm:$0xff] }
 0x382   :  { %17723 = vst [vmem:[#allocation81_spill] sm:$0xff] %v15206_v49  ;;  %v2935_v41 = vadd.f32 %v11390_v39, %v17724_v30  ;;  %v11393_v7 = vadd.f32 %v11392_v55, %v11391_v14  ;;  %v15209_v45 = vadd.f32 %v11584_v56, %v11583_v12  ;;  %12171 = vmatpush3.bf16.msra.mxu0 %v13445_v58  ;;  %v15220_v30 = vld [vmem:[#allocation2 + $0x48] sm:$0xff]  ;;  %v13439_v33 = vld [vmem:[#allocation8 + $0x798] sm:$0xff]   ;;  %v13440_v12 = vld [vmem:[#allocation8 + $0x7e0] sm:$0xff]  }
 0x383   :  { %4855 = vmatmul.mubr.bf16.gmra.mrb[228].mxu1 %v17726_v22  ;;  %12172 = vmatprep.subr.bf16.mxu0 %v13448_v61  ;;  %v13451_v55 = vld [vmem:[#allocation8 + $0x918] sm:$0xff]   ;;  %v13454_v49 = vld [vmem:[#allocation8 + $0x960] sm:$0xff]  }
 0x384   :  { %17725 = vst [vmem:[#allocation82_spill] sm:$0xff] %v15209_v45  ;;  %6403 = vmatmul.mubr.bf16.gmra.mrb[4].mxu0 %v15156_v4  ;;  %v2938_v9 = vadd.f32 %v11393_v7, %v17728_v48  ;;  %4862 = vmatprep.mubr.bf16.mxu1 %v17729_v54  ;;  %v15223_v58 = vadd.f32 %v15053_v32, %v2935_v41  ;;  %v5326_v48 = vrot.slane %v15220_v30, 1 }
 0x385   :  { %6410 = vmatprep.mubr.bf16.mxu0 %v15215_v63  ;;  %11981 = vmatpush3.bf16.msra.mxu1 %v13437_v29 }
 0x386   :  { %v11394_v39 = vpop.f32.mrb[124].mxu1  ;;  %v11586_v14 = vpop.f32.mrb[156].mxu0  ;;  %11982 = vmatprep.subr.bf16.mxu1 %v13438_v27  ;;  %12173 = vmatpush3.bf16.msra.mxu0 %v13449_v6  ;;  %v15226_v56 = vadd.f32 %v15058_v1, %v2938_v9  ;;  %v13441_v27 = vld [vmem:[#allocation8 + $0x7a0] sm:$0xff]   ;;  %v17731_v6 = vld [vmem:[#allocation69_spill] sm:$0xff]  ;;  %v13446_v9 = vld [vmem:[#allocation8 + $0x7e8] sm:$0xff]  }
 0x387   :  { %v11395_v7 = vpop.f32.mrb[125].mxu1  ;;  %v11587_v22 = vpop.f32.mrb[157].mxu0  ;;  %12174 = vmatprep.subr.bf16.mxu0 %v13450_v28  ;;  %v15237_v28 = vsel %vm613_vm0, %v5324_v42, %v5326_v48  ;;  %v13452_v42 = vld [vmem:[#allocation8 + $0x7f0] sm:$0xff]  }
 0x388   :  { %v11396_v54 = vadd.f32 %v11395_v7, %v11394_v39  ;;  %v15229_v32 = vadd.f32 %v11587_v22, %v11586_v14  ;;  %v11397_v29 = vpop.f32.mrb[126].mxu1  ;;  %v11589_v41 = vpop.f32.mrb[158].mxu0  ;;  %17733 = vst [vmem:[#allocation47_spill] sm:$0xff] %v15237_v28  ;;  %v13456_v39 = vld [vmem:[#allocation8 + $0x968] sm:$0xff]  }
 0x389   :  { %v11398_v61 = vpop.f32.mrb[127].mxu1  ;;  %v11590_v45 = vpop.f32.mrb[159].mxu0  ;;  %11983 = vmatpush3.bf16.msra.mxu1 %v13439_v33  ;;  %v17734_v33 = vld [vmem:[#allocation42_spill] sm:$0xff]  ;;  %v17735_v7 = vld [vmem:[#allocation60_spill] sm:$0xff] }
 0x38a   :  { %17730 = vst [vmem:[#allocation52_spill] sm:$0xff] %v15229_v32  ;;  %v2943_v63 = vadd.f32 %v11396_v54, %v17731_v6  ;;  %v11399_v31 = vadd.f32 %v11398_v61, %v11397_v29  ;;  %v15232_v1 = vadd.f32 %v11590_v45, %v11589_v41  ;;  %11984 = vmatprep.subr.bf16.mxu1 %v13440_v12  ;;  %v15242_v45 = vld [vmem:[#allocation2 + $0x58] sm:$0xff]  ;;  %v13457_v54 = vld [vmem:[#allocation8 + $0x928] sm:$0xff]   ;;  %v13461_v32 = vld [vmem:[#allocation8 + $0x930] sm:$0xff]  }
 0x38b   :  { %12175 = vmatpush3.bf16.msra.mxu0 %v13451_v55  ;;  %4863 = vmatmul.mubr.bf16.gmra.mrb[232].mxu1 %v17658_v46  ;;  %v13447_v55 = vld [vmem:[#allocation8 + $0x7a8] sm:$0xff]   ;;  %v5328_v61 = vrot.slane %v15242_v45, 1 }
 0x38c   :  { %17732 = vst [vmem:[#allocation54_spill] sm:$0xff] %v15232_v1  ;;  %6411 = vmatmul.mubr.bf16.gmra.mrb[8].mxu0 %v15156_v4  ;;  %v2946_v14 = vadd.f32 %v11399_v31, %v17734_v33  ;;  %4870 = vmatprep.mubr.bf16.mxu1 %v17735_v7  ;;  %v15245_v12 = vadd.f32 %v15067_v20, %v2943_v63  ;;  %v13460_v7 = vld [vmem:[#allocation8 + $0x970] sm:$0xff]  }
 0x38d   :  { %6418 = vmatprep.mubr.bf16.mxu0 %v15237_v28  ;;  %11985 = vmatpush3.bf16.msra.mxu1 %v13441_v27  ;;  %v5571_v28 = vld [vmem:[#allocation2 + $0x8] sm:$0xe0] }
 0x38e   :  { %12176 = vmatprep.subr.bf16.mxu0 %v13454_v49  ;;  %v11480_v46 = vpop.f32.mrb[128].mxu1  ;;  %v11672_v22 = vpop.f32.mrb[160].mxu0  ;;  %11986 = vmatprep.subr.bf16.mxu1 %v13446_v9  ;;  %v15248_v31 = vadd.f32 %v15072_v59, %v2946_v14  ;;  %v13453_v9 = vld [vmem:[#allocation8 + $0x7b0] sm:$0xff]   ;;  %v13458_v14 = vld [vmem:[#allocation8 + $0x7f8] sm:$0xff]  }
 0x38f   :  { %12177 = vmatpush3.bf16.msra.mxu0 %v13455_v26  ;;  %v11481_v29 = vpop.f32.mrb[129].mxu1  ;;  %v11673_v41 = vpop.f32.mrb[161].mxu0 }
 0x390   :  { %12178 = vmatprep.subr.bf16.mxu0 %v13456_v39  ;;  %v11482_v6 = vadd.f32 %v11481_v29, %v11480_v46  ;;  %v15251_v20 = vadd.f32 %v11673_v41, %v11672_v22  ;;  %v11483_v63 = vpop.f32.mrb[130].mxu1  ;;  %v11675_v27 = vpop.f32.mrb[162].mxu0  ;;  %v17736_v39 = vld [vmem:[#allocation61_spill] sm:$0xff]  ;;  %v15259_v46 = vsel %vm613_vm0, %v5326_v48, %v5328_v61  ;;  %v17740_v41 = vld [vmem:[#allocation62_spill] sm:$0xff] }
 0x391   :  { %v11484_v49 = vpop.f32.mrb[131].mxu1  ;;  %v11676_v33 = vpop.f32.mrb[163].mxu0  ;;  %11987 = vmatpush3.bf16.msra.mxu1 %v13447_v55  ;;  %17737 = vst [vmem:[#allocation51_spill] sm:$0xff] %v15259_v46  ;;  %v13462_v22 = vld [vmem:[#allocation8 + $0x978] sm:$0xff]  }
 0x392   :  { %v3081_v26 = vadd.f32 %v11482_v6, %v15092_v51  ;;  %v11485_v1 = vadd.f32 %v11484_v49, %v11483_v63  ;;  %v15254_v59 = vadd.f32 %v11676_v33, %v11675_v27  ;;  %11988 = vmatprep.subr.bf16.mxu1 %v13452_v42  ;;  %v17738_v55 = vld [vmem:[#allocation70_spill] sm:$0xff]  ;;  %v15267_v42 = vld [vmem:[#allocation2 + $0x68] sm:$0xff] }
 0x393   :  { %12179 = vmatpush3.bf16.msra.mxu0 %v13457_v54  ;;  %4871 = vmatmul.mubr.bf16.gmra.mrb[236].mxu1 %v17736_v39  ;;  %v13459_v54 = vld [vmem:[#allocation8 + $0x7b8] sm:$0xff]   ;;  %v17741_v6 = vld [vmem:[#allocation79_spill] sm:$0xff] }
 0x394   :  { %6419 = vmatmul.mubr.bf16.gmra.mrb[12].mxu0 %v15196_v23  ;;  %v15262_v29 = vadd.f32 %v3081_v26, %v17738_v55  ;;  %v3084_v51 = vadd.f32 %v11485_v1, %v15095_v3  ;;  %4878 = vmatprep.mubr.bf16.mxu1 %v17740_v41  ;;  %v13463_v49 = vld [vmem:[#allocation8 + $0x938] sm:$0xff]   ;;  %v13464_v33 = vld [vmem:[#allocation8 + $0x8c0] sm:$0xff]   ;;  %v5330_v1 = vrot.slane %v15267_v42, 1 }
 0x395   :  { %6426 = vmatprep.mubr.bf16.mxu0 %v15259_v46  ;;  %11989 = vmatpush3.bf16.msra.mxu1 %v13453_v9 }
 0x396   :  { %17739 = vst [vmem:[#allocation53_spill] sm:$0xff] %v15262_v29  ;;  %12180 = vmatprep.subr.bf16.mxu0 %v13460_v7  ;;  %v15270_v63 = vadd.f32 %v3084_v51, %v17741_v6  ;;  %v11486_v48 = vpop.f32.mrb[132].mxu1  ;;  %v11678_v27 = vpop.f32.mrb[164].mxu0  ;;  %11990 = vmatprep.subr.bf16.mxu1 %v13458_v14  ;;  %v13474_v51 = vld [vmem:[#allocation8 + $0xa40] sm:$0xff]  }
 0x397   :  { %12181 = vmatpush3.bf16.msra.mxu0 %v13461_v32  ;;  %v11487_v26 = vpop.f32.mrb[133].mxu1  ;;  %v11679_v3 = vpop.f32.mrb[165].mxu0 }
 0x398   :  { %17742 = vst [vmem:[#allocation50_spill] sm:$0xff] %v15270_v63  ;;  %12182 = vmatprep.subr.bf16.mxu0 %v13462_v22  ;;  %v11488_v39 = vadd.f32 %v11487_v26, %v11486_v48  ;;  %v15273_v55 = vadd.f32 %v11679_v3, %v11678_v27  ;;  %v11489_v9 = vpop.f32.mrb[134].mxu1  ;;  %v11681_v41 = vpop.f32.mrb[166].mxu0  ;;  %v17743_v63 = vld [vmem:[#allocation63_spill] sm:$0xff]  ;;  %v15281_v22 = vsel %vm613_vm0, %v5328_v61, %v5330_v1  ;;  %v17745_v48 = vld [vmem:[#allocation49_spill] sm:$0xff]  ;;  %v17747_v26 = vld [vmem:[#allocation76_spill] sm:$0xff] }
 0x399   :  { %v11490_v7 = vpop.f32.mrb[135].mxu1  ;;  %v11682_v29 = vpop.f32.mrb[167].mxu0  ;;  %11991 = vmatpush3.bf16.msra.mxu1 %v13459_v54  ;;  %17744 = vst [vmem:[#allocation56_spill] sm:$0xff] %v15281_v22 }
 0x39a   :  { %v3089_v6 = vadd.f32 %v11488_v39, %v15108_v0  ;;  %v11491_v14 = vadd.f32 %v11490_v7, %v11489_v9  ;;  %v15276_v32 = vadd.f32 %v11682_v29, %v11681_v41  ;;  %12104 = vmatprep.subr.bf16.mxu1 %v13464_v33  ;;  %v15289_v0 = vld [vmem:[#allocation2 + $0x78] sm:$0xff]  ;;  %v17748_v29 = vld [vmem:[#allocation71_spill] sm:$0xff] }
 0x39b   :  { %12183 = vmatpush3.bf16.msra.mxu0 %v13463_v49  ;;  %4879 = vmatmul.mubr.bf16.gmra.mrb[240].mxu1 %v17743_v63  ;;  %v5332_v39 = vrot.slane %v15289_v0, 1 }
 0x39c   :  { %6427 = vmatmul.mubr.bf16.gmra.mrb[16].mxu0 %v15220_v30  ;;  %v15284_v27 = vadd.f32 %v3089_v6, %v17745_v48  ;;  %v3092_v54 = vadd.f32 %v11491_v14, %v15111_v21  ;;  %4886 = vmatprep.mubr.bf16.mxu1 %v17747_v26  ;;  %v15297_v48 = vld [vmem:[#allocation10] ss:$0 sm:$0xff]  ;;  %v17750_v26 = vld [vmem:[#allocation23_spill] sm:$0xff] }
 0x39d   :  { %6434 = vmatprep.mubr.bf16.mxu0 %v15281_v22  ;;  %12296 = vmatprep.subr.bf16.mxu0 %v13474_v51  ;;  %v2166_v51 = vadd.f32 %v15297_v48, %v17750_v26  ;;  %v17755_v26 = vld [vmem:[#allocation80_spill] sm:$0xff] }
 0x39e   :  { %17746 = vst [vmem:[#allocation55_spill] sm:$0xff] %v15284_v27  ;;  %v15292_v49 = vadd.f32 %v3092_v54, %v17748_v29  ;;  %v11492_v63 = vpop.f32.mrb[136].mxu1  ;;  %v11684_v33 = vpop.f32.mrb[168].mxu0  ;;  %v17751_v27 = vld [vmem:[#allocation78_spill] sm:$0xff] }
 0x39f   :  { %v11493_v3 = vpop.f32.mrb[137].mxu1  ;;  %v11685_v61 = vpop.f32.mrb[169].mxu0 }
 0x3a0   :  { %17749 = vst [vmem:[#allocation58_spill] sm:$0xff] %v15292_v49  ;;  %v11494_v9 = vadd.f32 %v11493_v3, %v11492_v63  ;;  %v15295_v41 = vadd.f32 %v11685_v61, %v11684_v33  ;;  %v11495_v21 = vpop.f32.mrb[138].mxu1  ;;  %v11687_v7 = vpop.f32.mrb[170].mxu0  ;;  %v15307_v63 = vsel %vm613_vm0, %v5330_v1, %v5332_v39  ;;  %v17753_v33 = vld [vmem:[#allocation72_spill] sm:$0xff] }
 0x3a1   :  { %v11496_v6 = vpop.f32.mrb[139].mxu1  ;;  %v11688_v14 = vpop.f32.mrb[171].mxu0  ;;  %17752 = vst [vmem:[#allocation57_spill] sm:$0xff] %v15307_v63  ;;  %v2167_v3 = vadd.f32 %v15297_v48, %v17753_v33 }
 0x3a2   :  { %v3097_v54 = vadd.f32 %v11494_v9, %v15124_v11  ;;  %v11497_v29 = vadd.f32 %v11496_v6, %v11495_v21  ;;  %v15302_v49 = vadd.f32 %v11688_v14, %v11687_v7  ;;  %v852_v11 = vld [vmem:[#allocation2 + $0xb0] sm:$0x7]  ;;  %v15318_v14 = vld [vmem:[#allocation2 + $0x88] sm:$0xff] }
 0x3a3   :  { %4887 = vmatmul.mubr.bf16.gmra.mrb[244].mxu1 %v17751_v27  ;;  %v887_v1 = vrot.slane %v852_v11, 3  ;;  %17757 = vst [vmem:[#allocation60_spill] sm:$0xff] %v15318_v14  ;;  %v17468_v33 = vrot.slane %v15318_v14, 1  ;;  %v782_v11 = vld [vmem:[#allocation2 + $0xb0] sm:$0x3] }
 0x3a4   :  { %6435 = vmatmul.mubr.bf16.gmra.mrb[20].mxu0 %v15242_v45  ;;  %v15311_v61 = vadd.f32 %v3097_v54, %v2166_v51  ;;  %v3100_v22 = vadd.f32 %v11497_v29, %v15127_v36  ;;  %4894 = vmatprep.mubr.bf16.mxu1 %v17755_v26 }
 0x3a5   :  { %6442 = vmatprep.mubr.bf16.mxu0 %v15307_v63  ;;  %v17758_v63 = vld [vmem:[#allocation25_spill] sm:$0xff] }
 0x3a6   :  { %17754 = vst [vmem:[#allocation69_spill] sm:$0xff] %v15311_v61  ;;  %v15316_v9 = vadd.f32 %v3100_v22, %v2167_v3  ;;  %v11498_v27 = vpop.f32.mrb[140].mxu1  ;;  %v2168_v22 = vadd.f32 %v15297_v48, %v17758_v63  ;;  %v17762_v63 = vld [vmem:[#allocation59_spill] sm:$0xff] }
 0x3a7   :  { %v11690_v21 = vpop.f32.mrb[172].mxu0  ;;  %v11499_v7 = vpop.f32.mrb[141].mxu1 }
 0x3a8   :  { %17756 = vst [vmem:[#allocation42_spill] sm:$0xff] %v15316_v9  ;;  %v11691_v6 = vpop.f32.mrb[173].mxu0  ;;  %v11500_v51 = vadd.f32 %v11499_v7, %v11498_v27  ;;  %v11501_v36 = vpop.f32.mrb[142].mxu1  ;;  %v17760_v27 = vrot.slane %v14991_v52, 3  ;;  %v15336_v7 = vsel %vm613_vm0, %v5332_v39, %v17468_v33  ;;  %v15347_v39 = vrot.slane %v15156_v4, 5 }
 0x3a9   :  { %v15321_v54 = vadd.f32 %v11691_v6, %v11690_v21  ;;  %v11693_v29 = vpop.f32.mrb[174].mxu0  ;;  %v11502_v26 = vpop.f32.mrb[143].mxu1  ;;  %17761 = vst [vmem:[#allocation61_spill] sm:$0xff] %v15336_v7 }
 0x3aa   :  { %v11694_v61 = vpop.f32.mrb[175].mxu0  ;;  %v3105_v3 = vadd.f32 %v11500_v51, %v15150_v19  ;;  %v11503_v9 = vadd.f32 %v11502_v26, %v11501_v36  ;;  %v888_v21 = vsel %vm865_vm3, %v17760_v27, %v887_v1  ;;  %v2169_v19 = vadd.f32 %v15297_v48, %v17762_v63 }
 0x3ab   :  { %v15326_v46 = vadd.f32 %v11694_v61, %v11693_v29  ;;  %4895 = vmatmul.mubr.bf16.gmra.mrb[248].mxu1 %v17759_v35  ;;  %v817_v35 = vrot.slane %v782_v11, 2  ;;  %v5595_v51 = vrot.slane %v5571_v28, 5 }
 0x3ac   :  { %6443 = vmatmul.mubr.bf16.gmra.mrb[24].mxu0 %v15267_v42  ;;  %v15340_v61 = vadd.f32 %v3105_v3, %v2168_v22  ;;  %v3108_v6 = vadd.f32 %v11503_v9, %v15154_v2  ;;  %4902 = vmatprep.mubr.bf16.mxu1 %v888_v21  ;;  %v17765_v21 = vrot.slane %v14991_v52, 2 }
 0x3ad   :  { %6450 = vmatprep.mubr.bf16.mxu0 %v15336_v7  ;;  %v5597_v11 = vsel %vm1005_vm1, %v5595_v51, %v15347_v39  ;;  %v17769_v51 = vld [vmem:[#allocation66_spill] sm:$0xff]  ;;  %v17776_v7 = vld [vmem:[#allocation68_spill] sm:$0xff] }
 0x3ae   :  { %17763 = vst [vmem:[#allocation70_spill] sm:$0xff] %v15340_v61  ;;  %v15344_v36 = vadd.f32 %v3108_v6, %v2169_v19  ;;  %v11504_v1 = vpop.f32.mrb[144].mxu1  ;;  %v818_v28 = vsel %vm795_vm4, %v17765_v21, %v817_v35  ;;  %v5502_v19 = vld [vmem:[#allocation2 + $0x8] sm:$0xf0]  ;;  %v17766_v6 = vld [vmem:[#allocation73_spill] sm:$0xff] }
 0x3af   :  { %v11696_v29 = vpop.f32.mrb[176].mxu0  ;;  %v11505_v26 = vpop.f32.mrb[145].mxu1  ;;  %v5526_v21 = vrot.slane %v5502_v19, 4 }
 0x3b0   :  { %17764 = vst [vmem:[#allocation62_spill] sm:$0xff] %v15344_v36  ;;  %v11697_v27 = vpop.f32.mrb[177].mxu0  ;;  %v11506_v33 = vadd.f32 %v11505_v26, %v11504_v1  ;;  %v11507_v22 = vpop.f32.mrb[146].mxu1  ;;  %v2170_v36 = vadd.f32 %v15297_v48, %v17766_v6  ;;  %v17767_v26 = vld [vmem:[#allocation74_spill] sm:$0xff] }
 0x3b1   :  { %v15349_v63 = vadd.f32 %v11697_v27, %v11696_v29  ;;  %v11699_v3 = vpop.f32.mrb[178].mxu0  ;;  %v11508_v2 = vpop.f32.mrb[147].mxu1  ;;  %v2171_v27 = vadd.f32 %v15297_v48, %v17767_v26  ;;  %v13465_v26 = vld [vmem:[#allocation8 + $0x880] sm:$0xff]  }
 0x3b2   :  { %v11700_v9 = vpop.f32.mrb[179].mxu0  ;;  %v3113_v61 = vadd.f32 %v11506_v33, %v15182_v57  ;;  %v11509_v1 = vadd.f32 %v11508_v2, %v11507_v22  ;;  %v15371_v22 = vrot.slane %v15156_v4, 4 }
 0x3b3   :  { %v15359_v29 = vadd.f32 %v11700_v9, %v11699_v3  ;;  %4903 = vmatmul.mubr.bf16.gmra.mrb[252].mxu1 %v818_v28 }
 0x3b4   :  { %6451 = vmatmul.mubr.bf16.gmra.mrb[28].mxu0 %v15289_v0  ;;  %v15364_v14 = vadd.f32 %v3113_v61, %v2170_v36  ;;  %v3116_v35 = vadd.f32 %v11509_v1, %v15185_v25  ;;  %5040 = vmatprep.mubr.bf16.mxu1 %v17769_v51  ;;  %v5528_v25 = vsel %vm935_vm2, %v5526_v21, %v15371_v22 }
 0x3b5   :  { %6588 = vmatprep.mubr.bf16.mxu0 %v5597_v11  ;;  %v17772_v11 = vld [vmem:[#allocation28_spill] sm:$0xff] }
 0x3b6   :  { %17768 = vst [vmem:[#allocation79_spill] sm:$0xff] %v15364_v14  ;;  %v15368_v6 = vadd.f32 %v3116_v35, %v2171_v27  ;;  %v11510_v57 = vpop.f32.mrb[148].mxu1  ;;  %v2172_v19 = vadd.f32 %v15297_v48, %v17772_v11  ;;  %v13466_v35 = vld [vmem:[#allocation8 + $0x8c8] sm:$0xff]  }
 0x3b7   :  { %v11702_v33 = vpop.f32.mrb[180].mxu0  ;;  %v11511_v3 = vpop.f32.mrb[149].mxu1 }
 0x3b8   :  { %17770 = vst [vmem:[#allocation63_spill] sm:$0xff] %v15368_v6  ;;  %v11703_v2 = vpop.f32.mrb[181].mxu0  ;;  %v11512_v9 = vadd.f32 %v11511_v3, %v11510_v57  ;;  %v11513_v61 = vpop.f32.mrb[150].mxu1  ;;  %v13475_v57 = vld [vmem:[#allocation8 + $0xa00] sm:$0xff]   ;;  %v13476_v3 = vld [vmem:[#allocation8 + $0xa48] sm:$0xff]  }
 0x3b9   :  { %v15373_v28 = vadd.f32 %v11703_v2, %v11702_v33  ;;  %v11705_v36 = vpop.f32.mrb[182].mxu0  ;;  %v11514_v1 = vpop.f32.mrb[151].mxu1  ;;  %v17773_v33 = vld [vmem:[#allocation67_spill] sm:$0xff] }
 0x3ba   :  { %v11706_v27 = vpop.f32.mrb[183].mxu0  ;;  %v3121_v4 = vadd.f32 %v11512_v9, %v15199_v18  ;;  %v11515_v51 = vadd.f32 %v11514_v1, %v11513_v61  ;;  %v17774_v2 = vld [vmem:[#allocation75_spill] sm:$0xff]  ;;  %v13468_v18 = vld [vmem:[#allocation8 + $0x8d0] sm:$0xff]  }
 0x3bb   :  { %17771 = vst [vmem:[#allocation49_spill] sm:$0xff] %v15373_v28  ;;  %v15380_v6 = vadd.f32 %v11706_v27, %v11705_v36  ;;  %5041 = vmatmul.mubr.bf16.vlgmr.msra.gmra.mrb[0].mxu1 %v17773_v33  ;;  %v2173_v14 = vadd.f32 %v15297_v48, %v17774_v2  ;;  %v13467_v28 = vld [vmem:[#allocation8 + $0x888] sm:$0xff]   ;;  %v13480_v33 = vld [vmem:[#allocation8 + $0xa50] sm:$0xff]  }
 0x3bc   :  { %6589 = vmatmul.mubr.bf16.vlgmr.msra.gmra.mrb[32].mxu0 %v5528_v25  ;;  %v15385_v21 = vadd.f32 %v3121_v4, %v2172_v19  ;;  %v3124_v11 = vadd.f32 %v11515_v51, %v15203_v62  ;;  %12105 = vmatpush3.bf16.msra.mxu1 %v13465_v26  ;;  %v13477_v25 = vld [vmem:[#allocation8 + $0xa08] sm:$0xff]   ;;  %v17472_v19 = vrot.slane %v15196_v23, 5  ;;  %v17778_v2 = vld [vmem:[#allocation77_spill] sm:$0xff] }
 0x3bd   :  { %5048 = vmatprep.mubr.bf16.mxu1 %v17776_v7  ;;  %12106 = vmatprep.subr.bf16.mxu1 %v13466_v35 }
 0x3be   :  { %17775 = vst [vmem:[#allocation76_spill] sm:$0xff] %v15385_v21  ;;  %6596 = vmatprep.mubr.bf16.mxu0 %v15347_v39  ;;  %v15390_v9 = vadd.f32 %v3124_v11, %v2173_v14  ;;  %v11516_v61 = vpop.f32.mrb[152].mxu1  ;;  %12297 = vmatpush3.bf16.msra.mxu0 %v13475_v57  ;;  %v13469_v14 = vld [vmem:[#allocation8 + $0x890] sm:$0xff]   ;;  %v2174_v57 = vadd.f32 %v15297_v48, %v17778_v2 }
 0x3bf   :  { %v11708_v36 = vpop.f32.mrb[184].mxu0  ;;  %v11517_v1 = vpop.f32.mrb[153].mxu1  ;;  %12298 = vmatprep.subr.bf16.mxu0 %v13476_v3  ;;  %v13470_v3 = vld [vmem:[#allocation8 + $0x8d8] sm:$0xff]  }
 0x3c0   :  { %17777 = vst [vmem:[#allocation71_spill] sm:$0xff] %v15390_v9  ;;  %v11709_v27 = vpop.f32.mrb[185].mxu0  ;;  %v11518_v62 = vadd.f32 %v11517_v1, %v11516_v61  ;;  %v11519_v7 = vpop.f32.mrb[154].mxu1  ;;  %12107 = vmatpush3.bf16.msra.mxu1 %v13467_v28  ;;  %v13481_v61 = vld [vmem:[#allocation8 + $0xa10] sm:$0xff]   ;;  %v15406_v28 = vsel %vm1005_vm1, %v15347_v39, %v17472_v19  ;;  %v13486_v19 = vld [vmem:[#allocation8 + $0xa60] sm:$0xff]  }
 0x3c1   :  { %v15393_v26 = vadd.f32 %v11709_v27, %v11708_v36  ;;  %v11711_v4 = vpop.f32.mrb[186].mxu0  ;;  %v11520_v35 = vpop.f32.mrb[155].mxu1  ;;  %12108 = vmatprep.subr.bf16.mxu1 %v13468_v18  ;;  %17779 = vst [vmem:[#allocation23_spill] sm:$0xff] %v15406_v28  ;;  %v13482_v18 = vld [vmem:[#allocation8 + $0xa58] sm:$0xff]   ;;  %v17780_v36 = vld [vmem:[#allocation36_spill] sm:$0xff] }
 0x3c2   :  { %v11712_v51 = vpop.f32.mrb[187].mxu0  ;;  %v3129_v11 = vadd.f32 %v11518_v62, %v15223_v58  ;;  %v11521_v9 = vadd.f32 %v11520_v35, %v11519_v7  ;;  %12299 = vmatpush3.bf16.msra.mxu0 %v13477_v25  ;;  %v2175_v58 = vadd.f32 %v15297_v48, %v17780_v36  ;;  %v13471_v25 = vld [vmem:[#allocation8 + $0x898] sm:$0xff]   ;;  %v13472_v35 = vld [vmem:[#allocation8 + $0x8e0] sm:$0xff]  }
 0x3c3   :  { %v15398_v21 = vadd.f32 %v11712_v51, %v11711_v4  ;;  %5049 = vmatmul.mubr.bf16.gmra.mrb[4].mxu1 %v14624_v38  ;;  %v17473_v38 = vrot.slane %v15196_v23, 4  ;;  %12300 = vmatprep.subr.bf16.mxu0 %v13480_v33  ;;  %v13483_v51 = vld [vmem:[#allocation8 + $0xa18] sm:$0xff]   ;;  %v17782_v36 = vld [vmem:[#allocation39_spill] sm:$0xff] }
 0x3c4   :  { %6597 = vmatmul.mubr.bf16.gmra.mrb[36].mxu0 %v15371_v22  ;;  %v15410_v1 = vadd.f32 %v3129_v11, %v2174_v57  ;;  %v3132_v27 = vadd.f32 %v11521_v9, %v15226_v56  ;;  %5056 = vmatprep.mubr.bf16.mxu1 %v14629_v10  ;;  %v17474_v56 = vrot.slane %v15220_v30, 5  ;;  %v2176_v33 = vadd.f32 %v15297_v48, %v17782_v36 }
 0x3c5   :  { %6604 = vmatprep.mubr.bf16.mxu0 %v15406_v28  ;;  %12109 = vmatpush3.bf16.msra.mxu1 %v13469_v14  ;;  %v17783_v36 = vrot.slane %v15196_v23, 5 }
 0x3c6   :  { %v15416_v62 = vadd.f32 %v3132_v27, %v2175_v58  ;;  %v11522_v7 = vpop.f32.mrb[156].mxu1  ;;  %12110 = vmatprep.subr.bf16.mxu1 %v13470_v3  ;;  %12301 = vmatpush3.bf16.msra.mxu0 %v13481_v61  ;;  %v15427_v3 = vsel %vm935_vm2, %v15371_v22, %v17473_v38  ;;  %v13473_v61 = vld [vmem:[#allocation8 + $0x8a0] sm:$0xff]   ;;  %v13488_v38 = vld [vmem:[#allocation8 + $0xa68] sm:$0xff]  }
 0x3c7   :  { %v11714_v4 = vpop.f32.mrb[188].mxu0  ;;  %v11523_v2 = vpop.f32.mrb[157].mxu1  ;;  %12302 = vmatprep.subr.bf16.mxu0 %v13482_v18 }
 0x3c8   :  { %17781 = vst [vmem:[#allocation78_spill] sm:$0xff] %v15416_v62  ;;  %v11715_v57 = vpop.f32.mrb[189].mxu0  ;;  %v11524_v10 = vadd.f32 %v11523_v2, %v11522_v7  ;;  %v11525_v14 = vpop.f32.mrb[158].mxu1  ;;  %v13478_v2 = vld [vmem:[#allocation8 + $0x8e8] sm:$0xff]  }
 0x3c9   :  { %v15419_v9 = vadd.f32 %v11715_v57, %v11714_v4  ;;  %v11717_v11 = vpop.f32.mrb[190].mxu0  ;;  %v11526_v58 = vpop.f32.mrb[159].mxu1  ;;  %12111 = vmatpush3.bf16.msra.mxu1 %v13471_v25  ;;  %v13487_v57 = vld [vmem:[#allocation8 + $0xa20] sm:$0xff]   ;;  %v15439_v25 = vsel %vm1005_vm1, %v17783_v36, %v17474_v56  ;;  %v13484_v36 = vld [vmem:[#allocation8 + $0x8f0] sm:$0xff]  }
 0x3ca   :  { %v11718_v27 = vpop.f32.mrb[191].mxu0  ;;  %v3137_v18 = vadd.f32 %v11524_v10, %v15245_v12  ;;  %v11527_v7 = vadd.f32 %v11526_v58, %v11525_v14  ;;  %12112 = vmatprep.subr.bf16.mxu1 %v13472_v35  ;;  %12303 = vmatpush3.bf16.msra.mxu0 %v13483_v51  ;;  %v17784_v12 = vld [vmem:[#allocation64_spill] sm:$0xff] }
 0x3cb   :  { %v15430_v4 = vadd.f32 %v11718_v27, %v11717_v11  ;;  %5057 = vmatmul.mubr.bf16.gmra.mrb[8].mxu1 %v14634_v37  ;;  %v2177_v10 = vadd.f32 %v15297_v48, %v17784_v12  ;;  %v5533_v37 = vrot.slane %v15220_v30, 4  ;;  %v13479_v51 = vld [vmem:[#allocation8 + $0x8a8] sm:$0xff]   ;;  %12304 = vmatprep.subr.bf16.mxu0 %v13486_v19 }
 0x3cc   :  { %6605 = vmatmul.mubr.bf16.gmra.mrb[40].mxu0 %v15427_v3  ;;  %v15443_v14 = vadd.f32 %v3137_v18, %v2176_v33  ;;  %v3140_v35 = vadd.f32 %v11527_v7, %v15248_v31  ;;  %5064 = vmatprep.mubr.bf16.mxu1 %v14639_v16  ;;  %v13489_v48 = vld [vmem:[#allocation8 + $0xa28] sm:$0xff]   ;;  %v5604_v31 = vrot.slane %v15242_v45, 5 }
 0x3cd   :  { %6612 = vmatprep.mubr.bf16.mxu0 %v15439_v25  ;;  %12113 = vmatpush3.bf16.msra.mxu1 %v13473_v61 }
 0x3ce   :  { %17785 = vst [vmem:[#allocation72_spill] sm:$0xff] %v15443_v14  ;;  %v15449_v11 = vadd.f32 %v3140_v35, %v2177_v10  ;;  %v11608_v58 = vpop.f32.mrb[160].mxu1  ;;  %12114 = vmatprep.subr.bf16.mxu1 %v13478_v2  ;;  %12305 = vmatpush3.bf16.msra.mxu0 %v13487_v57  ;;  %v17787_v10 = vrot.slane %v15196_v23, 4  ;;  %v13485_v2 = vld [vmem:[#allocation8 + $0x8b0] sm:$0xff]   ;;  %v17789_v23 = vrot.slane %v15220_v30, 5 }
 0x3cf   :  { %v11800_v27 = vpop.f32.mrb[192].mxu0  ;;  %v11609_v33 = vpop.f32.mrb[161].mxu1  ;;  %12306 = vmatprep.subr.bf16.mxu0 %v13488_v38  ;;  %v13492_v57 = vld [vmem:[#allocation8 + $0xa70] sm:$0xff]   ;;  %v13490_v38 = vld [vmem:[#allocation8 + $0x8f8] sm:$0xff]  }
 0x3d0   :  { %17786 = vst [vmem:[#allocation80_spill] sm:$0xff] %v15449_v11  ;;  %v11801_v18 = vpop.f32.mrb[193].mxu0  ;;  %v11610_v16 = vadd.f32 %v11609_v33, %v11608_v58  ;;  %v11611_v12 = vpop.f32.mrb[162].mxu1  ;;  %v15457_v35 = vsel %vm935_vm2, %v17787_v10, %v5533_v37  ;;  %v13493_v58 = vld [vmem:[#allocation8 + $0xa30] sm:$0xff]  }
 0x3d1   :  { %v15452_v7 = vadd.f32 %v11801_v18, %v11800_v27  ;;  %v11803_v61 = vpop.f32.mrb[194].mxu0  ;;  %v11612_v56 = vpop.f32.mrb[163].mxu1  ;;  %17788 = vst [vmem:[#allocation25_spill] sm:$0xff] %v15457_v35  ;;  %12115 = vmatpush3.bf16.msra.mxu1 %v13479_v51  ;;  %v15467_v27 = vsel %vm1005_vm1, %v17789_v23, %v5604_v31  ;;  %v13494_v51 = vld [vmem:[#allocation8 + $0xa78] sm:$0xff]   ;;  %v13496_v18 = vld [vmem:[#allocation8 + $0x9c0] sm:$0xff]  }
 0x3d2   :  { %v11804_v19 = vpop.f32.mrb[195].mxu0  ;;  %v3868_v11 = vadd.f32 %v11610_v16, %v15081_v50  ;;  %v11613_v14 = vadd.f32 %v11612_v56, %v11611_v12  ;;  %12116 = vmatprep.subr.bf16.mxu1 %v13484_v36  ;;  %12307 = vmatpush3.bf16.msra.mxu0 %v13489_v48  ;;  %17790 = vst [vmem:[#allocation26_spill] sm:$0xff] %v15467_v27  ;;  %v5535_v56 = vrot.slane %v15242_v45, 4  ;;  %v13495_v48 = vld [vmem:[#allocation8 + $0xa38] sm:$0xff]   ;;  %v5606_v16 = vrot.slane %v15267_v42, 5 }
 0x3d3   :  { %v15460_v62 = vadd.f32 %v11804_v19, %v11803_v61  ;;  %5065 = vmatmul.mubr.bf16.gmra.mrb[12].mxu1 %v14647_v40  ;;  %v13491_v40 = vld [vmem:[#allocation8 + $0x8b8] sm:$0xff]   ;;  %12308 = vmatprep.subr.bf16.mxu0 %v13492_v57 }
 0x3d4   :  { %6613 = vmatmul.mubr.bf16.gmra.mrb[44].mxu0 %v15457_v35  ;;  %v3871_v33 = vadd.f32 %v11613_v14, %v15084_v44  ;;  %5072 = vmatprep.mubr.bf16.mxu1 %v14654_v17  ;;  %v15473_v50 = vadd.f32 %v15251_v20, %v3868_v11  ;;  %v15483_v10 = vsel %vm935_vm2, %v5533_v37, %v5535_v56 }
 0x3d5   :  { %6620 = vmatprep.mubr.bf16.mxu0 %v15467_v27  ;;  %12117 = vmatpush3.bf16.msra.mxu1 %v13485_v2  ;;  %v13506_v2 = vld [vmem:[#allocation8 + $0xb40] sm:$0xff]  }
 0x3d6   :  { %v11614_v36 = vpop.f32.mrb[164].mxu1  ;;  %12118 = vmatprep.subr.bf16.mxu1 %v13490_v38  ;;  %12309 = vmatpush3.bf16.msra.mxu0 %v13493_v58  ;;  %v15477_v44 = vadd.f32 %v15254_v59, %v3871_v33  ;;  %v15491_v58 = vsel %vm1005_vm1, %v5604_v31, %v5606_v16  ;;  %v5537_v33 = vrot.slane %v15267_v42, 4 }
 0x3d7   :  { %v11806_v30 = vpop.f32.mrb[196].mxu0  ;;  %v11615_v17 = vpop.f32.mrb[165].mxu1  ;;  %12310 = vmatprep.subr.bf16.mxu0 %v13494_v51 }
 0x3d8   :  { %v11807_v14 = vpop.f32.mrb[197].mxu0  ;;  %v11616_v20 = vadd.f32 %v11615_v17, %v11614_v36  ;;  %v11617_v45 = vpop.f32.mrb[166].mxu1  ;;  %v5608_v36 = vrot.slane %v15289_v0, 5  ;;  %v15510_v42 = vsel %vm935_vm2, %v5535_v56, %v5537_v33 }
 0x3d9   :  { %v15480_v11 = vadd.f32 %v11807_v14, %v11806_v30  ;;  %v11809_v12 = vpop.f32.mrb[198].mxu0  ;;  %v11618_v61 = vpop.f32.mrb[167].mxu1  ;;  %12119 = vmatpush3.bf16.msra.mxu1 %v13491_v40 }
 0x3da   :  { %v11810_v19 = vpop.f32.mrb[199].mxu0  ;;  %v3876_v59 = vadd.f32 %v11616_v20, %v15097_v5  ;;  %v11619_v57 = vadd.f32 %v11618_v61, %v11617_v45  ;;  %12311 = vmatpush3.bf16.msra.mxu0 %v13495_v48  ;;  %12232 = vmatprep.subr.bf16.mxu1 %v13496_v18 }
 0x3db   :  { %v15486_v38 = vadd.f32 %v11810_v19, %v11809_v12  ;;  %5073 = vmatmul.mubr.bf16.gmra.mrb[16].mxu1 %v14662_v47  ;;  %12424 = vmatprep.subr.bf16.mxu0 %v13506_v2  ;;  %v5539_v19 = vrot.slane %v15289_v0, 4 }
 0x3dc   :  { %6621 = vmatmul.mubr.bf16.gmra.mrb[48].mxu0 %v15483_v10  ;;  %v3879_v23 = vadd.f32 %v11619_v57, %v15100_v43  ;;  %5080 = vmatprep.mubr.bf16.mxu1 %v14866_v24  ;;  %v15497_v5 = vadd.f32 %v15273_v55, %v3876_v59 }
 0x3dd   :  { %6628 = vmatprep.mubr.bf16.mxu0 %v15491_v58  ;;  %v15533_v0 = vsel %vm935_vm2, %v5537_v33, %v5539_v19 }
 0x3de   :  { %v11620_v37 = vpop.f32.mrb[168].mxu1  ;;  %v15501_v47 = vadd.f32 %v15276_v32, %v3879_v23  ;;  %v15515_v32 = vsel %vm1005_vm1, %v5606_v16, %v5608_v36 }
 0x3df   :  { %v11812_v51 = vpop.f32.mrb[200].mxu0  ;;  %v11621_v40 = vpop.f32.mrb[169].mxu1 }
 0x3e0   :  { %v11813_v31 = vpop.f32.mrb[201].mxu0  ;;  %v11622_v43 = vadd.f32 %v11621_v40, %v11620_v37  ;;  %v11623_v24 = vpop.f32.mrb[170].mxu1 }
 0x3e1   :  { %v15504_v30 = vadd.f32 %v11813_v31, %v11812_v51  ;;  %v11815_v48 = vpop.f32.mrb[202].mxu0  ;;  %v11624_v18 = vpop.f32.mrb[171].mxu1 }
 0x3e2   :  { %v11816_v55 = vpop.f32.mrb[203].mxu0  ;;  %v3884_v17 = vadd.f32 %v11622_v43, %v15113_v53  ;;  %v11625_v14 = vadd.f32 %v11624_v18, %v11623_v24  ;;  %v1132_v53 = vld [vmem:[#allocation2 + $0xb0] sm:$0x7f]  ;;  %v17792_v24 = vrot.slane %v14991_v52, 7 }
 0x3e3   :  { %v15507_v20 = vadd.f32 %v11816_v55, %v11815_v48  ;;  %5081 = vmatmul.mubr.bf16.gmra.mrb[20].mxu1 %v14888_v15  ;;  %v1167_v59 = vrot.slane %v1132_v53, 7  ;;  %v1062_v43 = vld [vmem:[#allocation2 + $0xb0] sm:$0x3f] }
 0x3e4   :  { %6629 = vmatmul.mubr.bf16.gmra.mrb[52].mxu0 %v15510_v42  ;;  %v3887_v45 = vadd.f32 %v11625_v14, %v15116_v60  ;;  %5088 = vmatprep.mubr.bf16.mxu1 %v15142_v13  ;;  %v15521_v12 = vadd.f32 %v15295_v41, %v3884_v17  ;;  %v17793_v18 = vld [vmem:[#allocation40_spill] sm:$0xff]  ;;  %v17796_v17 = vld [vmem:[#allocation19_spill] sm:$0xff] }
 0x3e5   :  { %6636 = vmatprep.mubr.bf16.mxu0 %v15515_v32  ;;  %v1168_v48 = vsel %vm1145_vm5, %v17792_v24, %v1167_v59  ;;  %v17794_v55 = vrot.slane %v17793_v18, 5  ;;  %v15553_v59 = vld [vmem:[#allocation2] sm:$0xff] }
 0x3e6   :  { %v11626_v61 = vpop.f32.mrb[172].mxu1  ;;  %v15525_v15 = vadd.f32 %v15302_v49, %v3887_v45  ;;  %v5433_v49 = vld [vmem:[#allocation2 + $0x8] sm:$0xf8]  ;;  %v1097_v45 = vrot.slane %v1062_v43, 6  ;;  %v17801_v43 = vrot.slane %v14991_v52, 6 }
 0x3e7   :  { %v11818_v56 = vpop.f32.mrb[204].mxu0  ;;  %v11627_v2 = vpop.f32.mrb[173].mxu1 }
 0x3e8   :  { %v11819_v16 = vpop.f32.mrb[205].mxu0  ;;  %v11628_v57 = vadd.f32 %v11627_v2, %v11626_v61  ;;  %v11629_v13 = vpop.f32.mrb[174].mxu1  ;;  %v1098_v24 = vsel %vm1075_vm6, %v17801_v43, %v1097_v45  ;;  %v15580_v45 = vrot.slane %v15553_v59, 2 }
 0x3e9   :  { %v15527_v60 = vadd.f32 %v11819_v16, %v11818_v56  ;;  %v11821_v23 = vpop.f32.mrb[206].mxu0  ;;  %v11630_v37 = vpop.f32.mrb[175].mxu1 }
 0x3ea   :  { %v11822_v51 = vpop.f32.mrb[207].mxu0  ;;  %v3892_v41 = vadd.f32 %v11628_v57, %v15130_v34  ;;  %v11631_v40 = vadd.f32 %v11630_v37, %v11629_v13  ;;  %v15543_v34 = vsel %vm1005_vm1, %v5608_v36, %v17794_v55  ;;  %v15556_v36 = vrot.slane %v15553_v59, 3  ;;  %17806 = vst [vmem:[#allocation75_spill] sm:$0xff] %v15580_v45 }
 0x3eb   :  { %v15530_v31 = vadd.f32 %v11822_v51, %v11821_v23  ;;  %5089 = vmatmul.mubr.bf16.gmra.mrb[24].mxu1 %v15168_v8  ;;  %17795 = vst [vmem:[#allocation73_spill] sm:$0xff] %v15543_v34  ;;  %v5457_v8 = vrot.slane %v5433_v49, 3  ;;  %v5364_v49 = vld [vmem:[#allocation2 + $0x8] sm:$0xfc] }
 0x3ec   :  { %6637 = vmatmul.mubr.bf16.gmra.mrb[56].mxu0 %v15533_v0  ;;  %v3895_v14 = vadd.f32 %v11631_v40, %v17796_v17  ;;  %5096 = vmatprep.mubr.bf16.mxu1 %v1168_v48  ;;  %v15548_v33 = vadd.f32 %v15321_v54, %v3892_v41  ;;  %17797 = vst [vmem:[#allocation74_spill] sm:$0xff] %v15556_v36  ;;  %v17799_v41 = vrot.slane %v17793_v18, 4  ;;  %v17802_v48 = vld [vmem:[#allocation20_spill] sm:$0xff]  ;;  %v17804_v18 = vld [vmem:[#allocation21_spill] sm:$0xff] }
 0x3ed   :  { %17791 = vst [vmem:[#allocation59_spill] sm:$0xff] %v15530_v31  ;;  %6644 = vmatprep.mubr.bf16.mxu0 %v15543_v34  ;;  %v13502_v31 = vld [vmem:[#allocation8 + $0x9d8] sm:$0xff]  }
 0x3ee   :  { %v11632_v53 = vpop.f32.mrb[176].mxu1  ;;  %v15551_v56 = vadd.f32 %v15326_v46, %v3895_v14  ;;  %v15563_v40 = vsel %vm935_vm2, %v5539_v19, %v17799_v41  ;;  %v5459_v46 = vsel %vm865_vm3, %v5457_v8, %v15556_v36  ;;  %v17805_v19 = vld [vmem:[#allocation65_spill] sm:$0xff] }
 0x3ef   :  { %v11824_v61 = vpop.f32.mrb[208].mxu0  ;;  %v11633_v2 = vpop.f32.mrb[177].mxu1  ;;  %17800 = vst [vmem:[#allocation28_spill] sm:$0xff] %v15563_v40 }
 0x3f0   :  { %v11825_v16 = vpop.f32.mrb[209].mxu0  ;;  %v11634_v57 = vadd.f32 %v11633_v2, %v11632_v53  ;;  %v11635_v23 = vpop.f32.mrb[178].mxu1 }
 0x3f1   :  { %v15558_v13 = vadd.f32 %v11825_v16, %v11824_v61  ;;  %v11827_v54 = vpop.f32.mrb[210].mxu0  ;;  %v11636_v37 = vpop.f32.mrb[179].mxu1  ;;  %v5388_v61 = vrot.slane %v5364_v49, 2 }
 0x3f2   :  { %v11828_v51 = vpop.f32.mrb[211].mxu0  ;;  %v3900_v55 = vadd.f32 %v11634_v57, %v17802_v48  ;;  %v11637_v17 = vadd.f32 %v11636_v37, %v11635_v23  ;;  %v17808_v48 = vld [vmem:[#allocation22_spill] sm:$0xff] }
 0x3f3   :  { %17798 = vst [vmem:[#allocation66_spill] sm:$0xff] %v15558_v13  ;;  %v15571_v14 = vadd.f32 %v11828_v51, %v11827_v54  ;;  %5097 = vmatmul.mubr.bf16.gmra.mrb[28].mxu1 %v1098_v24  ;;  %v13498_v24 = vld [vmem:[#allocation8 + $0x9c8] sm:$0xff]  }
 0x3f4   :  { %6645 = vmatmul.mubr.bf16.gmra.mrb[60].mxu0 %v15563_v40  ;;  %v3903_v53 = vadd.f32 %v11637_v17, %v17804_v18  ;;  %6491 = vmatprep.mubr.bf16.mxu1 %v5459_v46  ;;  %v15577_v8 = vadd.f32 %v15349_v63, %v3900_v55  ;;  %v5390_v46 = vsel %vm795_vm4, %v5388_v61, %v15580_v45  ;;  %v13497_v63 = vld [vmem:[#allocation8 + $0x980] sm:$0xff]   ;;  %v13499_v61 = vld [vmem:[#allocation8 + $0x988] sm:$0xff]  }
 0x3f5   :  { %17803 = vst [vmem:[#allocation67_spill] sm:$0xff] %v15571_v14  ;;  %7375 = vmatprep.mubr.bf16.mxu0 %v17805_v19  ;;  %v17810_v19 = vld [vmem:[#allocation24_spill] sm:$0xff] }
 0x3f6   :  { %v11638_v52 = vpop.f32.mrb[180].mxu1  ;;  %v15583_v16 = vadd.f32 %v15359_v29, %v3903_v53  ;;  %v13507_v29 = vld [vmem:[#allocation8 + $0xb00] sm:$0xff]   ;;  %v13508_v53 = vld [vmem:[#allocation8 + $0xb48] sm:$0xff]  }
 0x3f7   :  { %v11830_v2 = vpop.f32.mrb[212].mxu0  ;;  %v11639_v57 = vpop.f32.mrb[181].mxu1 }
 0x3f8   :  { %v11831_v23 = vpop.f32.mrb[213].mxu0  ;;  %v11640_v54 = vadd.f32 %v11639_v57, %v11638_v52  ;;  %v11641_v51 = vpop.f32.mrb[182].mxu1  ;;  %v17812_v57 = vld [vmem:[#allocation49_spill] sm:$0xff] }
 0x3f9   :  { %v15585_v37 = vadd.f32 %v11831_v23, %v11830_v2  ;;  %v11833_v41 = vpop.f32.mrb[214].mxu0  ;;  %v11642_v49 = vpop.f32.mrb[183].mxu1  ;;  %v17811_v2 = vld [vmem:[#allocation41_spill] sm:$0xff] }
 0x3fa   :  { %v11834_v43 = vpop.f32.mrb[215].mxu0  ;;  %v3908_v55 = vadd.f32 %v11640_v54, %v17808_v48  ;;  %v11643_v17 = vadd.f32 %v11642_v49, %v11641_v51  ;;  %v13500_v54 = vld [vmem:[#allocation8 + $0x9d0] sm:$0xff]  }
 0x3fb   :  { %17807 = vst [vmem:[#allocation68_spill] sm:$0xff] %v15585_v37  ;;  %v15590_v18 = vadd.f32 %v11834_v43, %v11833_v41  ;;  %6492 = vmatmul.mubr.bf16.vlgmr.msra.gmra.mrb[32].mxu1 %v5390_v46  ;;  %v13509_v46 = vld [vmem:[#allocation8 + $0xb08] sm:$0xff]  }
 0x3fc   :  { %7376 = vmatmul.mubr.bf16.vlgmr.msra.gmra.mrb[64].mxu0 %v15553_v59  ;;  %v3911_v52 = vadd.f32 %v11643_v17, %v17810_v19  ;;  %12233 = vmatpush3.bf16.msra.mxu1 %v13497_v63  ;;  %v15596_v23 = vadd.f32 %v17812_v57, %v3908_v55  ;;  %v15602_v63 = vld [vmem:[#allocation2 + $0x38] sm:$0xff]  ;;  %v13513_v17 = vld [vmem:[#allocation8 + $0xb10] sm:$0xff]  }
 0x3fd   :  { %17809 = vst [vmem:[#allocation77_spill] sm:$0xff] %v15590_v18  ;;  %7383 = vmatprep.mubr.bf16.mxu0 %v17811_v2  ;;  %6499 = vmatprep.mubr.bf16.mxu1 %v15556_v36  ;;  %v13512_v2 = vld [vmem:[#allocation8 + $0xb50] sm:$0xff]  }
 0x3fe   :  { %12234 = vmatprep.subr.bf16.mxu1 %v13498_v24  ;;  %v11644_v51 = vpop.f32.mrb[184].mxu1  ;;  %12425 = vmatpush3.bf16.msra.mxu0 %v13507_v29  ;;  %v15600_v49 = vadd.f32 %v15380_v6, %v3911_v52  ;;  %v13501_v29 = vld [vmem:[#allocation8 + $0x990] sm:$0xff]  }
 0x3ff   :  { %v11836_v41 = vpop.f32.mrb[216].mxu0  ;;  %v11645_v43 = vpop.f32.mrb[185].mxu1  ;;  %12426 = vmatprep.subr.bf16.mxu0 %v13508_v53  ;;  %v17814_v6 = vld [vmem:[#allocation81_spill] sm:$0xff]  ;;  %v17816_v53 = vrot.slane %v15602_v63, 3 }
 0x400   :  { %v11837_v48 = vpop.f32.mrb[217].mxu0  ;;  %v11646_v55 = vadd.f32 %v11645_v43, %v11644_v51  ;;  %v11647_v57 = vpop.f32.mrb[186].mxu1  ;;  %12235 = vmatpush3.bf16.msra.mxu1 %v13499_v61  ;;  %v17818_v51 = vld [vmem:[#allocation82_spill] sm:$0xff] }
 0x401   :  { %v15605_v19 = vadd.f32 %v11837_v48, %v11836_v41  ;;  %v11839_v24 = vpop.f32.mrb[218].mxu0  ;;  %v11648_v18 = vpop.f32.mrb[187].mxu1  ;;  %12236 = vmatprep.subr.bf16.mxu1 %v13500_v54  ;;  %v15616_v61 = vsel %vm865_vm3, %v15556_v36, %v17816_v53  ;;  %v13514_v54 = vld [vmem:[#allocation8 + $0xb58] sm:$0xff]  }
 0x402   :  { %v11840_v37 = vpop.f32.mrb[219].mxu0  ;;  %v3916_v52 = vadd.f32 %v11646_v55, %v17814_v6  ;;  %v11649_v14 = vadd.f32 %v11648_v18, %v11647_v57  ;;  %12427 = vmatpush3.bf16.msra.mxu0 %v13509_v46  ;;  %17817 = vst [vmem:[#allocation64_spill] sm:$0xff] %v15616_v61  ;;  %v13503_v43 = vld [vmem:[#allocation8 + $0x998] sm:$0xff]   ;;  %v13504_v57 = vld [vmem:[#allocation8 + $0x9e0] sm:$0xff]  }
 0x403   :  { %17813 = vst [vmem:[#allocation36_spill] sm:$0xff] %v15605_v19  ;;  %v15608_v13 = vadd.f32 %v11840_v37, %v11839_v24  ;;  %6500 = vmatmul.mubr.bf16.gmra.mrb[36].mxu1 %v15580_v45  ;;  %v17819_v37 = vld [vmem:[#allocation47_spill] sm:$0xff]  ;;  %12428 = vmatprep.subr.bf16.mxu0 %v13512_v2  ;;  %v13515_v24 = vld [vmem:[#allocation8 + $0xb18] sm:$0xff]  }
 0x404   :  { %7384 = vmatmul.mubr.bf16.gmra.mrb[68].mxu0 %v15553_v59  ;;  %v3919_v41 = vadd.f32 %v11649_v14, %v17818_v51  ;;  %6507 = vmatprep.mubr.bf16.mxu1 %v15616_v61  ;;  %v15622_v18 = vadd.f32 %v15393_v26, %v3916_v52  ;;  %v15628_v51 = vld [vmem:[#allocation2 + $0x48] sm:$0xff]  ;;  %v13518_v19 = vld [vmem:[#allocation8 + $0xb60] sm:$0xff]  }
 0x405   :  { %17815 = vst [vmem:[#allocation39_spill] sm:$0xff] %v15608_v13  ;;  %7391 = vmatprep.mubr.bf16.mxu0 %v17819_v37  ;;  %12237 = vmatpush3.bf16.msra.mxu1 %v13501_v29  ;;  %v17823_v37 = vld [vmem:[#allocation52_spill] sm:$0xff] }
 0x406   :  { %v11650_v48 = vpop.f32.mrb[188].mxu1  ;;  %12238 = vmatprep.subr.bf16.mxu1 %v13502_v31  ;;  %12429 = vmatpush3.bf16.msra.mxu0 %v13513_v17  ;;  %v15626_v14 = vadd.f32 %v15398_v21, %v3919_v41  ;;  %v17821_v17 = vrot.slane %v15602_v63, 2  ;;  %v13505_v41 = vld [vmem:[#allocation8 + $0x9a0] sm:$0xff]  }
 0x407   :  { %v11842_v55 = vpop.f32.mrb[220].mxu0  ;;  %v11651_v6 = vpop.f32.mrb[189].mxu1  ;;  %12430 = vmatprep.subr.bf16.mxu0 %v13514_v54 }
 0x408   :  { %v11843_v53 = vpop.f32.mrb[221].mxu0  ;;  %v11652_v52 = vadd.f32 %v11651_v6, %v11650_v48  ;;  %v11653_v2 = vpop.f32.mrb[190].mxu1  ;;  %v15637_v21 = vsel %vm795_vm4, %v15580_v45, %v17821_v17  ;;  %v13510_v48 = vld [vmem:[#allocation8 + $0x9e8] sm:$0xff]   ;;  %v15643_v6 = vld [vmem:[#allocation2 + $0x38] sm:$0xff] }
 0x409   :  { %v15631_v29 = vadd.f32 %v11843_v53, %v11842_v55  ;;  %v11845_v46 = vpop.f32.mrb[222].mxu0  ;;  %v11654_v13 = vpop.f32.mrb[191].mxu1  ;;  %17822 = vst [vmem:[#allocation19_spill] sm:$0xff] %v15637_v21  ;;  %12239 = vmatpush3.bf16.msra.mxu1 %v13503_v43  ;;  %v13519_v55 = vld [vmem:[#allocation8 + $0xb20] sm:$0xff]   ;;  %17825 = vst [vmem:[#allocation21_spill] sm:$0xff] %v15643_v6  ;;  %v17826_v53 = vrot.slane %v15628_v51, 3 }
 0x40a   :  { %v11846_v31 = vpop.f32.mrb[223].mxu0  ;;  %v3924_v61 = vadd.f32 %v11652_v52, %v17823_v37  ;;  %v11655_v26 = vadd.f32 %v11654_v13, %v11653_v2  ;;  %12240 = vmatprep.subr.bf16.mxu1 %v13504_v57  ;;  %12431 = vmatpush3.bf16.msra.mxu0 %v13515_v24  ;;  %v17827_v43 = vrot.slane %v15602_v63, 3  ;;  %v13520_v13 = vld [vmem:[#allocation8 + $0xb68] sm:$0xff]   ;;  %v17829_v37 = vld [vmem:[#allocation54_spill] sm:$0xff] }
 0x40b   :  { %17820 = vst [vmem:[#allocation40_spill] sm:$0xff] %v15631_v29  ;;  %v15640_v54 = vadd.f32 %v11846_v31, %v11845_v46  ;;  %6508 = vmatmul.mubr.bf16.gmra.mrb[40].mxu1 %v15637_v21  ;;  %v17830_v57 = vld [vmem:[#allocation51_spill] sm:$0xff]  ;;  %12432 = vmatprep.subr.bf16.mxu0 %v13518_v19  ;;  %v13524_v21 = vld [vmem:[#allocation8 + $0xb70] sm:$0xff]  }
 0x40c   :  { %7392 = vmatmul.mubr.bf16.gmra.mrb[72].mxu0 %v15643_v6  ;;  %v15651_v17 = vsel %vm865_vm3, %v17827_v43, %v17826_v53  ;;  %v3927_v46 = vadd.f32 %v11655_v26, %v17829_v37  ;;  %v15657_v24 = vadd.f32 %v15419_v9, %v3924_v61  ;;  %v13511_v2 = vld [vmem:[#allocation8 + $0x9a8] sm:$0xff]   ;;  %v13516_v53 = vld [vmem:[#allocation8 + $0x9f0] sm:$0xff]   ;;  %v17832_v6 = vrot.slane %v15602_v63, 2 }
 0x40d   :  { %17824 = vst [vmem:[#allocation20_spill] sm:$0xff] %v15640_v54  ;;  %17828 = vst [vmem:[#allocation65_spill] sm:$0xff] %v15651_v17  ;;  %6515 = vmatprep.mubr.bf16.mxu1 %v15651_v17  ;;  %7399 = vmatprep.mubr.bf16.mxu0 %v17830_v57  ;;  %v13521_v43 = vld [vmem:[#allocation8 + $0xb28] sm:$0xff]   ;;  %v15663_v57 = vld [vmem:[#allocation2 + $0x58] sm:$0xff]  ;;  %v17835_v63 = vrot.slane %v15628_v51, 3 }
 0x40e   :  { %12241 = vmatpush3.bf16.msra.mxu1 %v13505_v41  ;;  %v11736_v31 = vpop.f32.mrb[192].mxu1  ;;  %12433 = vmatpush3.bf16.msra.mxu0 %v13519_v55  ;;  %v15661_v26 = vadd.f32 %v15430_v4, %v3927_v46  ;;  %v5466_v9 = vrot.slane %v15663_v57, 3  ;;  %v17831_v55 = vrot.slane %v15628_v51, 2  ;;  %v13517_v46 = vld [vmem:[#allocation8 + $0x9b0] sm:$0xff]  }
 0x40f   :  { %v11928_v54 = vpop.f32.mrb[224].mxu0  ;;  %12242 = vmatprep.subr.bf16.mxu1 %v13510_v48  ;;  %v11737_v37 = vpop.f32.mrb[193].mxu1  ;;  %12434 = vmatprep.subr.bf16.mxu0 %v13520_v13 }
 0x410   :  { %v11929_v29 = vpop.f32.mrb[225].mxu0  ;;  %v11738_v61 = vadd.f32 %v11737_v37, %v11736_v31  ;;  %v11739_v19 = vpop.f32.mrb[194].mxu1  ;;  %v15673_v4 = vsel %vm795_vm4, %v17832_v6, %v17831_v55  ;;  %v15679_v37 = vld [vmem:[#allocation2 + $0x48] sm:$0xff]  ;;  %v15685_v6 = vsel %vm865_vm3, %v17835_v63, %v5466_v9 }
 0x411   :  { %v15666_v41 = vadd.f32 %v11929_v29, %v11928_v54  ;;  %v11931_v52 = vpop.f32.mrb[226].mxu0  ;;  %v11740_v17 = vpop.f32.mrb[195].mxu1  ;;  %17833 = vst [vmem:[#allocation22_spill] sm:$0xff] %v15673_v4  ;;  %v13522_v29 = vld [vmem:[#allocation8 + $0x9f8] sm:$0xff]   ;;  %v13525_v54 = vld [vmem:[#allocation8 + $0xb30] sm:$0xff]   ;;  %17834 = vst [vmem:[#allocation24_spill] sm:$0xff] %v15679_v37 }
 0x412   :  { %v11932_v48 = vpop.f32.mrb[227].mxu0  ;;  %12243 = vmatpush3.bf16.msra.mxu1 %v13511_v2  ;;  %v4062_v45 = vadd.f32 %v11738_v61, %v15473_v50  ;;  %v11741_v13 = vadd.f32 %v11740_v17, %v11739_v19  ;;  %12435 = vmatpush3.bf16.msra.mxu0 %v13521_v43  ;;  %17836 = vst [vmem:[#allocation49_spill] sm:$0xff] %v15685_v6  ;;  %v13526_v2 = vld [vmem:[#allocation8 + $0xb78] sm:$0xff]   ;;  %v5397_v43 = vrot.slane %v15663_v57, 2 }
 0x413   :  { %v15676_v31 = vadd.f32 %v11932_v48, %v11931_v52  ;;  %12244 = vmatprep.subr.bf16.mxu1 %v13516_v53  ;;  %6516 = vmatmul.mubr.bf16.gmra.mrb[44].mxu1 %v15673_v4  ;;  %v17837_v50 = vld [vmem:[#allocation53_spill] sm:$0xff]  ;;  %v17839_v53 = vld [vmem:[#allocation56_spill] sm:$0xff]  ;;  %v17840_v19 = vld [vmem:[#allocation50_spill] sm:$0xff] }
 0x414   :  { %7400 = vmatmul.mubr.bf16.gmra.mrb[76].mxu0 %v15679_v37  ;;  %v15688_v17 = vadd.f32 %v4062_v45, %v17837_v50  ;;  %v4065_v52 = vadd.f32 %v11741_v13, %v15477_v44  ;;  %6523 = vmatprep.mubr.bf16.mxu1 %v15685_v6  ;;  %v13523_v61 = vld [vmem:[#allocation8 + $0x9b8] sm:$0xff]   ;;  %v13528_v50 = vld [vmem:[#allocation8 + $0xac0] sm:$0xff]   ;;  %v15697_v13 = vld [vmem:[#allocation2 + $0x68] sm:$0xff] }
 0x415   :  { %7407 = vmatprep.mubr.bf16.mxu0 %v17839_v53  ;;  %12436 = vmatprep.subr.bf16.mxu0 %v13524_v21  ;;  %v13527_v45 = vld [vmem:[#allocation8 + $0xb38] sm:$0xff]   ;;  %v5468_v53 = vrot.slane %v15697_v13, 3 }
 0x416   :  { %17838 = vst [vmem:[#allocation81_spill] sm:$0xff] %v15688_v17  ;;  %12245 = vmatpush3.bf16.msra.mxu1 %v13517_v46  ;;  %v15695_v48 = vadd.f32 %v4065_v52, %v17840_v19  ;;  %v11742_v55 = vpop.f32.mrb[196].mxu1  ;;  %12437 = vmatpush3.bf16.msra.mxu0 %v13525_v54  ;;  %v13538_v54 = vld [vmem:[#allocation8 + $0xc40] sm:$0xff]  }
 0x417   :  { %v11934_v63 = vpop.f32.mrb[228].mxu0  ;;  %12246 = vmatprep.subr.bf16.mxu1 %v13522_v29  ;;  %v11743_v17 = vpop.f32.mrb[197].mxu1  ;;  %12438 = vmatprep.subr.bf16.mxu0 %v13526_v2  ;;  %v15711_v2 = vld [vmem:[#allocation2 + $0x58] sm:$0xff] }
 0x418   :  { %17841 = vst [vmem:[#allocation82_spill] sm:$0xff] %v15695_v48  ;;  %v11935_v44 = vpop.f32.mrb[229].mxu0  ;;  %v11744_v57 = vadd.f32 %v11743_v17, %v11742_v55  ;;  %v11745_v21 = vpop.f32.mrb[198].mxu1  ;;  %v17842_v48 = vrot.slane %v15628_v51, 2  ;;  %v15715_v51 = vsel %vm865_vm3, %v5466_v9, %v5468_v53  ;;  %v17845_v17 = vld [vmem:[#allocation55_spill] sm:$0xff] }
 0x419   :  { %v15700_v46 = vadd.f32 %v11935_v44, %v11934_v63  ;;  %v11937_v6 = vpop.f32.mrb[230].mxu0  ;;  %v11746_v52 = vpop.f32.mrb[199].mxu1  ;;  %17844 = vst [vmem:[#allocation54_spill] sm:$0xff] %v15715_v51 }
 0x41a   :  { %v11938_v19 = vpop.f32.mrb[231].mxu0  ;;  %v15705_v29 = vsel %vm795_vm4, %v17842_v48, %v5397_v43  ;;  %12247 = vmatpush3.bf16.msra.mxu1 %v13523_v61  ;;  %v4070_v37 = vadd.f32 %v11744_v57, %v15497_v5  ;;  %v11747_v4 = vadd.f32 %v11746_v52, %v11745_v21  ;;  %12439 = vmatpush3.bf16.msra.mxu0 %v13527_v45  ;;  %v17847_v5 = vld [vmem:[#allocation57_spill] sm:$0xff] }
 0x41b   :  { %17843 = vst [vmem:[#allocation52_spill] sm:$0xff] %v15705_v29  ;;  %v15708_v36 = vadd.f32 %v11938_v19, %v11937_v6  ;;  %12360 = vmatprep.subr.bf16.mxu1 %v13528_v50  ;;  %6524 = vmatmul.mubr.bf16.gmra.mrb[48].mxu1 %v15705_v29  ;;  %v17848_v6 = vld [vmem:[#allocation58_spill] sm:$0xff]  ;;  %v5399_v50 = vrot.slane %v15697_v13, 2 }
 0x41c   :  { %7408 = vmatmul.mubr.bf16.gmra.mrb[80].mxu0 %v15711_v2  ;;  %v15718_v48 = vadd.f32 %v4070_v37, %v17845_v17  ;;  %v4073_v61 = vadd.f32 %v11747_v4, %v15501_v47  ;;  %6531 = vmatprep.mubr.bf16.mxu1 %v15715_v51  ;;  %v15727_v57 = vld [vmem:[#allocation2 + $0x78] sm:$0xff] }
 0x41d   :  { %7415 = vmatprep.mubr.bf16.mxu0 %v17847_v5  ;;  %12552 = vmatprep.subr.bf16.mxu0 %v13538_v54  ;;  %v5470_v37 = vrot.slane %v15727_v57, 3  ;;  %v15736_v13 = vsel %vm795_vm4, %v5397_v43, %v5399_v50  ;;  %v15751_v43 = vld [vmem:[#allocation2 + $0x88] sm:$0xff]  ;;  %v15770_v5 = vld [vmem:[#allocation2 + $0x78] sm:$0xff] }
 0x41e   :  { %17846 = vst [vmem:[#allocation53_spill] sm:$0xff] %v15718_v48  ;;  %v15724_v55 = vadd.f32 %v4073_v61, %v17848_v6  ;;  %v11748_v63 = vpop.f32.mrb[200].mxu1  ;;  %17850 = vst [vmem:[#allocation55_spill] sm:$0xff] %v15736_v13 }
 0x41f   :  { %v11940_v45 = vpop.f32.mrb[232].mxu0  ;;  %v11749_v44 = vpop.f32.mrb[201].mxu1  ;;  %17860 = vst [vmem:[#allocation86_spill] sm:$0xff] %v15770_v5 }
 0x420   :  { %17849 = vst [vmem:[#allocation50_spill] sm:$0xff] %v15724_v55  ;;  %v11941_v9 = vpop.f32.mrb[233].mxu0  ;;  %v11750_v21 = vadd.f32 %v11749_v44, %v11748_v63  ;;  %v11751_v4 = vpop.f32.mrb[202].mxu1  ;;  %v15739_v55 = vld [vmem:[#allocation2 + $0x68] sm:$0xff]  ;;  %v15743_v63 = vsel %vm865_vm3, %v5468_v53, %v5470_v37 }
 0x421   :  { %v15730_v47 = vadd.f32 %v11941_v9, %v11940_v45  ;;  %v11943_v52 = vpop.f32.mrb[234].mxu0  ;;  %v11752_v19 = vpop.f32.mrb[203].mxu1  ;;  %17851 = vst [vmem:[#allocation58_spill] sm:$0xff] %v15739_v55  ;;  %17852 = vst [vmem:[#allocation83_spill] sm:$0xff] %v15743_v63  ;;  %v17853_v45 = vld [vmem:[#allocation69_spill] sm:$0xff] }
 0x422   :  { %v11944_v54 = vpop.f32.mrb[235].mxu0  ;;  %v4078_v17 = vadd.f32 %v11750_v21, %v15521_v12  ;;  %v11753_v61 = vadd.f32 %v11752_v19, %v11751_v4  ;;  %v17855_v9 = vld [vmem:[#allocation61_spill] sm:$0xff]  ;;  %v17856_v21 = vld [vmem:[#allocation42_spill] sm:$0xff] }
 0x423   :  { %v15733_v6 = vadd.f32 %v11944_v54, %v11943_v52  ;;  %6532 = vmatmul.mubr.bf16.gmra.mrb[52].mxu1 %v15736_v13  ;;  %v5401_v54 = vrot.slane %v15727_v57, 2 }
 0x424   :  { %7416 = vmatmul.mubr.bf16.gmra.mrb[84].mxu0 %v15739_v55  ;;  %v15746_v44 = vadd.f32 %v4078_v17, %v17853_v45  ;;  %v4081_v12 = vadd.f32 %v11753_v61, %v15525_v15  ;;  %6539 = vmatprep.mubr.bf16.mxu1 %v15743_v63  ;;  %v15758_v45 = vld [vmem:[#allocation2 + $0x98] sm:$0xff]  ;;  %v5709_v17 = vld [vmem:[#allocation2 + $0x8] sm:$0x80] }
 0x425   :  { %7423 = vmatprep.mubr.bf16.mxu0 %v17855_v9  ;;  %17858 = vst [vmem:[#allocation84_spill] sm:$0xff] %v15758_v45  ;;  %v17495_v15 = vrot.slane %v15758_v45, 1  ;;  %v15767_v57 = vsel %vm795_vm4, %v5399_v50, %v5401_v54  ;;  %v17866_v50 = vld [vmem:[#allocation70_spill] sm:$0xff] }
 0x426   :  { %17854 = vst [vmem:[#allocation69_spill] sm:$0xff] %v15746_v44  ;;  %v15754_v4 = vadd.f32 %v4081_v12, %v17856_v21  ;;  %v11754_v52 = vpop.f32.mrb[204].mxu1  ;;  %17859 = vst [vmem:[#allocation85_spill] sm:$0xff] %v15767_v57 }
 0x427   :  { %v11946_v19 = vpop.f32.mrb[236].mxu0  ;;  %v11755_v53 = vpop.f32.mrb[205].mxu1 }
 0x428   :  { %17857 = vst [vmem:[#allocation42_spill] sm:$0xff] %v15754_v4  ;;  %v11947_v48 = vpop.f32.mrb[237].mxu0  ;;  %v11756_v61 = vadd.f32 %v11755_v53, %v11754_v52  ;;  %v11757_v9 = vpop.f32.mrb[206].mxu1  ;;  %v5733_v53 = vrot.slane %v5709_v17, 7 }
 0x429   :  { %v15761_v44 = vadd.f32 %v11947_v48, %v11946_v19  ;;  %v11949_v63 = vpop.f32.mrb[238].mxu0  ;;  %v11758_v55 = vpop.f32.mrb[207].mxu1  ;;  %v17861_v48 = vrot.slane %v15751_v43, 3 }
 0x42a   :  { %v11950_v12 = vpop.f32.mrb[239].mxu0  ;;  %v4086_v21 = vadd.f32 %v11756_v61, %v15548_v33  ;;  %v11759_v4 = vadd.f32 %v11758_v55, %v11757_v9  ;;  %v17863_v33 = vld [vmem:[#allocation60_spill] sm:$0xff]  ;;  %v17868_v61 = vld [vmem:[#allocation62_spill] sm:$0xff] }
 0x42b   :  { %v15764_v13 = vadd.f32 %v11950_v12, %v11949_v63  ;;  %6540 = vmatmul.mubr.bf16.gmra.mrb[56].mxu1 %v15767_v57  ;;  %v15776_v52 = vsel %vm865_vm3, %v5470_v37, %v17861_v48  ;;  %v17864_v55 = vrot.slane %v17863_v33, 1 }
 0x42c   :  { %7424 = vmatmul.mubr.bf16.gmra.mrb[88].mxu0 %v15770_v5  ;;  %17862 = vst [vmem:[#allocation87_spill] sm:$0xff] %v15776_v52  ;;  %v15786_v9 = vadd.f32 %v4086_v21, %v17866_v50  ;;  %v4089_v19 = vadd.f32 %v11759_v4, %v15551_v56  ;;  %6547 = vmatprep.mubr.bf16.mxu1 %v15776_v52  ;;  %v17870_v52 = vrot.slane %v15751_v43, 2 }
 0x42d   :  { %v15783_v63 = vsel %vm613_vm0, %v17864_v55, %v17495_v15  ;;  %v15796_v15 = vrot.slane %v15553_v59, 7 }
 0x42e   :  { %17865 = vst [vmem:[#allocation60_spill] sm:$0xff] %v15783_v63  ;;  %17867 = vst [vmem:[#allocation70_spill] sm:$0xff] %v15786_v9  ;;  %7431 = vmatprep.mubr.bf16.mxu0 %v15783_v63  ;;  %v15792_v37 = vadd.f32 %v4089_v19, %v17868_v61  ;;  %v11760_v12 = vpop.f32.mrb[208].mxu1  ;;  %v5640_v19 = vld [vmem:[#allocation2 + $0x8] sm:$0xc0]  ;;  %v15808_v5 = vsel %vm795_vm4, %v5401_v54, %v17870_v52  ;;  %v15821_v54 = vrot.slane %v15553_v59, 6 }
 0x42f   :  { %v11952_v48 = vpop.f32.mrb[240].mxu0  ;;  %v11761_v45 = vpop.f32.mrb[209].mxu1  ;;  %v5735_v17 = vsel %vm1145_vm5, %v5733_v53, %v15796_v15  ;;  %17871 = vst [vmem:[#allocation88_spill] sm:$0xff] %v15808_v5  ;;  %v13539_v59 = vld [vmem:[#allocation8 + $0xc00] sm:$0xff]  }
 0x430   :  { %17869 = vst [vmem:[#allocation62_spill] sm:$0xff] %v15792_v37  ;;  %v11953_v55 = vpop.f32.mrb[241].mxu0  ;;  %v11762_v21 = vadd.f32 %v11761_v45, %v11760_v12  ;;  %v11763_v56 = vpop.f32.mrb[210].mxu1  ;;  %v17872_v45 = vld [vmem:[#allocation79_spill] sm:$0xff] }
 0x431   :  { %v15798_v50 = vadd.f32 %v11953_v55, %v11952_v48  ;;  %v11955_v4 = vpop.f32.mrb[242].mxu0  ;;  %v11764_v9 = vpop.f32.mrb[211].mxu1 }
 0x432   :  { %v11956_v63 = vpop.f32.mrb[243].mxu0  ;;  %v4094_v61 = vadd.f32 %v11762_v21, %v15577_v8  ;;  %v11765_v37 = vadd.f32 %v11764_v9, %v11763_v56  ;;  %v5664_v8 = vrot.slane %v5640_v19, 6  ;;  %v13530_v19 = vld [vmem:[#allocation8 + $0xac8] sm:$0xff]  }
 0x433   :  { %v15803_v33 = vadd.f32 %v11956_v63, %v11955_v4  ;;  %6548 = vmatmul.mubr.bf16.gmra.mrb[60].mxu1 %v15808_v5  ;;  %v17874_v63 = vld [vmem:[#allocation63_spill] sm:$0xff] }
 0x434   :  { %7432 = vmatmul.mubr.bf16.gmra.mrb[92].mxu0 %v15751_v43  ;;  %v15813_v12 = vadd.f32 %v4094_v61, %v17872_v45  ;;  %v4097_v53 = vadd.f32 %v11765_v37, %v15583_v16  ;;  %6685 = vmatprep.mubr.bf16.mxu1 %v5735_v17  ;;  %v5666_v16 = vsel %vm1075_vm6, %v5664_v8, %v15821_v54  ;;  %v13531_v8 = vld [vmem:[#allocation8 + $0xa88] sm:$0xff]  }
 0x435   :  { %7569 = vmatprep.mubr.bf16.mxu0 %v15347_v39  ;;  %v13529_v39 = vld [vmem:[#allocation8 + $0xa80] sm:$0xff]  }
 0x436   :  { %17873 = vst [vmem:[#allocation79_spill] sm:$0xff] %v15813_v12  ;;  %v15818_v9 = vadd.f32 %v4097_v53, %v17874_v63  ;;  %v11766_v48 = vpop.f32.mrb[212].mxu1  ;;  %v13545_v12 = vld [vmem:[#allocation8 + $0xc10] sm:$0xff]  }
 0x437   :  { %v11958_v55 = vpop.f32.mrb[244].mxu0  ;;  %v11767_v52 = vpop.f32.mrb[213].mxu1 }
 0x438   :  { %17875 = vst [vmem:[#allocation63_spill] sm:$0xff] %v15818_v9  ;;  %v11959_v21 = vpop.f32.mrb[245].mxu0  ;;  %v11768_v56 = vadd.f32 %v11767_v52, %v11766_v48  ;;  %v11769_v61 = vpop.f32.mrb[214].mxu1  ;;  %v13540_v48 = vld [vmem:[#allocation8 + $0xc48] sm:$0xff]  }
 0x439   :  { %v15823_v4 = vadd.f32 %v11959_v21, %v11958_v55  ;;  %v11961_v45 = vpop.f32.mrb[246].mxu0  ;;  %v11770_v37 = vpop.f32.mrb[215].mxu1  ;;  %v17876_v55 = vld [vmem:[#allocation76_spill] sm:$0xff] }
 0x43a   :  { %v11962_v17 = vpop.f32.mrb[247].mxu0  ;;  %v4102_v53 = vadd.f32 %v11768_v56, %v15596_v23  ;;  %v11771_v63 = vadd.f32 %v11770_v37, %v11769_v61  ;;  %v13532_v23 = vld [vmem:[#allocation8 + $0xad0] sm:$0xff]   ;;  %v17878_v56 = vld [vmem:[#allocation71_spill] sm:$0xff] }
 0x43b   :  { %v15828_v9 = vadd.f32 %v11962_v17, %v11961_v45  ;;  %6686 = vmatmul.mubr.bf16.vlgmr.msra.gmra.mrb[64].mxu1 %v5666_v16 }
 0x43c   :  { %7570 = vmatmul.mubr.bf16.vlgmr.msra.gmra.mrb[96].mxu0 %v15371_v22  ;;  %v15832_v52 = vadd.f32 %v4102_v53, %v17876_v55  ;;  %v4105_v21 = vadd.f32 %v11771_v63, %v15600_v49  ;;  %12361 = vmatpush3.bf16.msra.mxu1 %v13529_v39  ;;  %v13541_v22 = vld [vmem:[#allocation8 + $0xc08] sm:$0xff]  }
 0x43d   :  { %7577 = vmatprep.mubr.bf16.mxu0 %v15406_v28  ;;  %6693 = vmatprep.mubr.bf16.mxu1 %v15796_v15  ;;  %v13544_v28 = vld [vmem:[#allocation8 + $0xc50] sm:$0xff]  }
 0x43e   :  { %17877 = vst [vmem:[#allocation76_spill] sm:$0xff] %v15832_v52  ;;  %12362 = vmatprep.subr.bf16.mxu1 %v13530_v19  ;;  %v15838_v61 = vadd.f32 %v4105_v21, %v17878_v56  ;;  %v11772_v45 = vpop.f32.mrb[216].mxu1  ;;  %12553 = vmatpush3.bf16.msra.mxu0 %v13539_v59  ;;  %v13533_v19 = vld [vmem:[#allocation8 + $0xa90] sm:$0xff]   ;;  %v13534_v59 = vld [vmem:[#allocation8 + $0xad8] sm:$0xff]  }
 0x43f   :  { %v11964_v16 = vpop.f32.mrb[248].mxu0  ;;  %v11773_v37 = vpop.f32.mrb[217].mxu1  ;;  %12554 = vmatprep.subr.bf16.mxu0 %v13540_v48  ;;  %v17880_v48 = vld [vmem:[#allocation27_spill] sm:$0xff] }
 0x440   :  { %17879 = vst [vmem:[#allocation71_spill] sm:$0xff] %v15838_v61  ;;  %v11965_v17 = vpop.f32.mrb[249].mxu0  ;;  %v11774_v53 = vadd.f32 %v11773_v37, %v11772_v45  ;;  %v11775_v39 = vpop.f32.mrb[218].mxu1  ;;  %12363 = vmatpush3.bf16.msra.mxu1 %v13531_v8  ;;  %v17881_v45 = vrot.slane %v17880_v48, 7 }
 0x441   :  { %v15840_v49 = vadd.f32 %v11965_v17, %v11964_v16  ;;  %v11967_v63 = vpop.f32.mrb[250].mxu0  ;;  %v11776_v55 = vpop.f32.mrb[219].mxu1  ;;  %12364 = vmatprep.subr.bf16.mxu1 %v13532_v23  ;;  %v13546_v23 = vld [vmem:[#allocation8 + $0xc58] sm:$0xff]  }
 0x442   :  { %v11968_v52 = vpop.f32.mrb[251].mxu0  ;;  %v4110_v21 = vadd.f32 %v11774_v53, %v15622_v18  ;;  %v11777_v56 = vadd.f32 %v11776_v55, %v11775_v39  ;;  %12555 = vmatpush3.bf16.msra.mxu0 %v13541_v22  ;;  %v15851_v8 = vsel %vm1145_vm5, %v15796_v15, %v17881_v45  ;;  %v17883_v22 = vld [vmem:[#allocation78_spill] sm:$0xff] }
 0x443   :  { %v15843_v61 = vadd.f32 %v11968_v52, %v11967_v63  ;;  %6694 = vmatmul.mubr.bf16.gmra.mrb[68].mxu1 %v15821_v54  ;;  %v13535_v52 = vld [vmem:[#allocation8 + $0xa98] sm:$0xff]   ;;  %12556 = vmatprep.subr.bf16.mxu0 %v13544_v28  ;;  %v13536_v39 = vld [vmem:[#allocation8 + $0xae0] sm:$0xff]   ;;  %v17885_v28 = vrot.slane %v17880_v48, 6  ;;  %v13552_v48 = vld [vmem:[#allocation8 + $0xc68] sm:$0xff]  }
 0x444   :  { %7578 = vmatmul.mubr.bf16.gmra.mrb[100].mxu0 %v15427_v3  ;;  %v15854_v16 = vadd.f32 %v4110_v21, %v15410_v1  ;;  %v4113_v18 = vadd.f32 %v11777_v56, %v15626_v14  ;;  %6701 = vmatprep.mubr.bf16.mxu1 %v15851_v8  ;;  %v13547_v63 = vld [vmem:[#allocation8 + $0xc18] sm:$0xff]  }
 0x445   :  { %7585 = vmatprep.mubr.bf16.mxu0 %v15439_v25  ;;  %12365 = vmatpush3.bf16.msra.mxu1 %v13533_v19 }
 0x446   :  { %17882 = vst [vmem:[#allocation27_spill] sm:$0xff] %v15854_v16  ;;  %v15860_v37 = vadd.f32 %v4113_v18, %v17883_v22  ;;  %v11778_v17 = vpop.f32.mrb[220].mxu1  ;;  %12366 = vmatprep.subr.bf16.mxu1 %v13534_v59  ;;  %12557 = vmatpush3.bf16.msra.mxu0 %v13545_v12  ;;  %v15868_v18 = vsel %vm1075_vm6, %v15821_v54, %v17885_v28  ;;  %v13537_v59 = vld [vmem:[#allocation8 + $0xaa0] sm:$0xff]   ;;  %v17888_v28 = vld [vmem:[#allocation29_spill] sm:$0xff] }
 0x447   :  { %v11970_v53 = vpop.f32.mrb[252].mxu0  ;;  %v11779_v1 = vpop.f32.mrb[221].mxu1  ;;  %12558 = vmatprep.subr.bf16.mxu0 %v13546_v23  ;;  %v13550_v12 = vld [vmem:[#allocation8 + $0xc60] sm:$0xff]  }
 0x448   :  { %17884 = vst [vmem:[#allocation78_spill] sm:$0xff] %v15860_v37  ;;  %v11971_v55 = vpop.f32.mrb[253].mxu0  ;;  %v11780_v14 = vadd.f32 %v11779_v1, %v11778_v17  ;;  %v11781_v56 = vpop.f32.mrb[222].mxu1  ;;  %v13542_v17 = vld [vmem:[#allocation8 + $0xae8] sm:$0xff]  }
 0x449   :  { %v15862_v21 = vadd.f32 %v11971_v55, %v11970_v53  ;;  %v11973_v45 = vpop.f32.mrb[254].mxu0  ;;  %v11782_v19 = vpop.f32.mrb[223].mxu1  ;;  %12367 = vmatpush3.bf16.msra.mxu1 %v13535_v52  ;;  %v13551_v53 = vld [vmem:[#allocation8 + $0xc20] sm:$0xff]   ;;  %v17886_v1 = vld [vmem:[#allocation72_spill] sm:$0xff] }
 0x44a   :  { %v11974_v16 = vpop.f32.mrb[255].mxu0  ;;  %v4118_v22 = vadd.f32 %v11780_v14, %v15657_v24  ;;  %v11783_v37 = vadd.f32 %v11782_v19, %v11781_v56  ;;  %12368 = vmatprep.subr.bf16.mxu1 %v13536_v39  ;;  %12559 = vmatpush3.bf16.msra.mxu0 %v13547_v63  ;;  %v13543_v24 = vld [vmem:[#allocation8 + $0xaa8] sm:$0xff]   ;;  %v13548_v56 = vld [vmem:[#allocation8 + $0xaf0] sm:$0xff]  }
 0x44b   :  { %v15871_v23 = vadd.f32 %v11974_v16, %v11973_v45  ;;  %6702 = vmatmul.mubr.bf16.gmra.mrb[72].mxu1 %v15868_v18  ;;  %12560 = vmatprep.subr.bf16.mxu0 %v13550_v12  ;;  %v17889_v16 = vld [vmem:[#allocation80_spill] sm:$0xff] }
 0x44c   :  { %7586 = vmatmul.mubr.bf16.gmra.mrb[104].mxu0 %v15457_v35  ;;  %v15876_v55 = vadd.f32 %v4118_v22, %v17886_v1  ;;  %v4121_v52 = vadd.f32 %v11783_v37, %v15661_v26  ;;  %6709 = vmatprep.mubr.bf16.mxu1 %v17888_v28  ;;  %v13553_v45 = vld [vmem:[#allocation8 + $0xc28] sm:$0xff]   ;;  %v13549_v12 = vld [vmem:[#allocation8 + $0xab0] sm:$0xff]  }
 0x44d   :  { %7593 = vmatprep.mubr.bf16.mxu0 %v15467_v27  ;;  %12369 = vmatpush3.bf16.msra.mxu1 %v13537_v59  ;;  %v13557_v28 = vld [vmem:[#allocation8 + $0xc30] sm:$0xff]  }
 0x44e   :  { %17887 = vst [vmem:[#allocation72_spill] sm:$0xff] %v15876_v55  ;;  %v15882_v39 = vadd.f32 %v4121_v52, %v17889_v16  ;;  %v11864_v63 = vpop.f32.mrb[224].mxu1  ;;  %12370 = vmatprep.subr.bf16.mxu1 %v13542_v17  ;;  %12561 = vmatpush3.bf16.msra.mxu0 %v13551_v53  ;;  %v13556_v52 = vld [vmem:[#allocation8 + $0xc70] sm:$0xff]   ;;  %v13554_v53 = vld [vmem:[#allocation8 + $0xaf8] sm:$0xff]  }
 0x44f   :  { %v12056_v14 = vpop.f32.mrb[0].mxu0  ;;  %v11865_v19 = vpop.f32.mrb[225].mxu1  ;;  %12562 = vmatprep.subr.bf16.mxu0 %v13552_v48  ;;  %v17892_v48 = vld [vmem:[#allocation31_spill] sm:$0xff] }
 0x450   :  { %17890 = vst [vmem:[#allocation80_spill] sm:$0xff] %v15882_v39  ;;  %v12057_v22 = vpop.f32.mrb[1].mxu0  ;;  %v11866_v26 = vadd.f32 %v11865_v19, %v11864_v63  ;;  %v11867_v37 = vpop.f32.mrb[226].mxu1  ;;  %v13558_v63 = vld [vmem:[#allocation8 + $0xc78] sm:$0xff]   ;;  %v17893_v19 = vld [vmem:[#allocation32_spill] sm:$0xff] }
 0x451   :  { %v15884_v1 = vadd.f32 %v12057_v22, %v12056_v14  ;;  %v12059_v55 = vpop.f32.mrb[2].mxu0  ;;  %v11868_v59 = vpop.f32.mrb[227].mxu1  ;;  %12371 = vmatpush3.bf16.msra.mxu1 %v13543_v24 }
 0x452   :  { %v12060_v27 = vpop.f32.mrb[3].mxu0  ;;  %v4849_v16 = vadd.f32 %v11866_v26, %v15452_v7  ;;  %v11869_v39 = vadd.f32 %v11868_v59, %v11867_v37  ;;  %12372 = vmatprep.subr.bf16.mxu1 %v13548_v56  ;;  %12563 = vmatpush3.bf16.msra.mxu0 %v13553_v45  ;;  %v13559_v56 = vld [vmem:[#allocation8 + $0xc38] sm:$0xff]   ;;  %v13560_v45 = vld [vmem:[#allocation8 + $0xbc0] sm:$0xff]  }
 0x453   :  { %v15887_v17 = vadd.f32 %v12060_v27, %v12059_v55  ;;  %6710 = vmatmul.mubr.bf16.gmra.mrb[76].mxu1 %v17892_v48  ;;  %v13555_v27 = vld [vmem:[#allocation8 + $0xab8] sm:$0xff]   ;;  %12564 = vmatprep.subr.bf16.mxu0 %v13556_v52  ;;  %v13570_v52 = vld [vmem:[#allocation8 + $0xd40] sm:$0xff]  }
 0x454   :  { %7594 = vmatmul.mubr.bf16.gmra.mrb[108].mxu0 %v15483_v10  ;;  %v4852_v14 = vadd.f32 %v11869_v39, %v15460_v62  ;;  %6717 = vmatprep.mubr.bf16.mxu1 %v17893_v19  ;;  %v15895_v7 = vadd.f32 %v15666_v41, %v4849_v16 }
 0x455   :  { %17891 = vst [vmem:[#allocation89_spill] sm:$0xff] %v15887_v17  ;;  %7601 = vmatprep.mubr.bf16.mxu0 %v15491_v58  ;;  %12373 = vmatpush3.bf16.msra.mxu1 %v13549_v12 }
 0x456   :  { %v11870_v55 = vpop.f32.mrb[228].mxu1  ;;  %12374 = vmatprep.subr.bf16.mxu1 %v13554_v53  ;;  %12565 = vmatpush3.bf16.msra.mxu0 %v13557_v28  ;;  %v15898_v22 = vadd.f32 %v15676_v31, %v4852_v14  ;;  %v17894_v31 = vld [vmem:[#allocation33_spill] sm:$0xff]  ;;  %v17895_v14 = vld [vmem:[#allocation34_spill] sm:$0xff] }
 0x457   :  { %v12062_v24 = vpop.f32.mrb[4].mxu0  ;;  %v11871_v62 = vpop.f32.mrb[229].mxu1  ;;  %12566 = vmatprep.subr.bf16.mxu0 %v13558_v63 }
 0x458   :  { %v12063_v39 = vpop.f32.mrb[5].mxu0  ;;  %v11872_v26 = vadd.f32 %v11871_v62, %v11870_v55  ;;  %v11873_v37 = vpop.f32.mrb[230].mxu1 }
 0x459   :  { %v15900_v59 = vadd.f32 %v12063_v39, %v12062_v24  ;;  %v12065_v41 = vpop.f32.mrb[6].mxu0  ;;  %v11874_v12 = vpop.f32.mrb[231].mxu1  ;;  %12375 = vmatpush3.bf16.msra.mxu1 %v13555_v27 }
 0x45a   :  { %v12066_v16 = vpop.f32.mrb[7].mxu0  ;;  %v4857_v53 = vadd.f32 %v11872_v26, %v15480_v11  ;;  %v11875_v28 = vadd.f32 %v11874_v12, %v11873_v37  ;;  %12567 = vmatpush3.bf16.msra.mxu0 %v13559_v56  ;;  %12488 = vmatprep.subr.bf16.mxu1 %v13560_v45 }
 0x45b   :  { %v15903_v17 = vadd.f32 %v12066_v16, %v12065_v41  ;;  %6718 = vmatmul.mubr.bf16.gmra.mrb[80].mxu1 %v17894_v31  ;;  %12680 = vmatprep.subr.bf16.mxu0 %v13570_v52  ;;  %v17898_v52 = vld [vmem:[#allocation35_spill] sm:$0xff] }
 0x45c   :  { %7602 = vmatmul.mubr.bf16.gmra.mrb[112].mxu0 %v15510_v42  ;;  %v4860_v63 = vadd.f32 %v11875_v28, %v15486_v38  ;;  %6725 = vmatprep.mubr.bf16.mxu1 %v17895_v14  ;;  %v15911_v27 = vadd.f32 %v15700_v46, %v4857_v53  ;;  %v17899_v53 = vld [vmem:[#allocation37_spill] sm:$0xff] }
 0x45d   :  { %7609 = vmatprep.mubr.bf16.mxu0 %v15515_v32 }
 0x45e   :  { %v11876_v11 = vpop.f32.mrb[232].mxu1  ;;  %v15914_v24 = vadd.f32 %v15708_v36, %v4860_v63 }
 0x45f   :  { %v12068_v55 = vpop.f32.mrb[8].mxu0  ;;  %v11877_v56 = vpop.f32.mrb[233].mxu1 }
 0x460   :  { %v12069_v45 = vpop.f32.mrb[9].mxu0  ;;  %v11878_v62 = vadd.f32 %v11877_v56, %v11876_v11  ;;  %v11879_v39 = vpop.f32.mrb[234].mxu1 }
 0x461   :  { %v15916_v26 = vadd.f32 %v12069_v45, %v12068_v55  ;;  %v12071_v38 = vpop.f32.mrb[10].mxu0  ;;  %v11880_v37 = vpop.f32.mrb[235].mxu1  ;;  %v17504_v45 = vrot.slane %v15751_v43, 7 }
 0x462   :  { %v12072_v41 = vpop.f32.mrb[11].mxu0  ;;  %v4865_v12 = vadd.f32 %v11878_v62, %v15504_v30  ;;  %v11881_v16 = vadd.f32 %v11880_v37, %v11879_v39 }
 0x463   :  { %17896 = vst [vmem:[#allocation31_spill] sm:$0xff] %v15916_v26  ;;  %v15919_v46 = vadd.f32 %v12072_v41, %v12071_v38  ;;  %6726 = vmatmul.mubr.bf16.gmra.mrb[84].mxu1 %v17898_v52  ;;  %v17920_v26 = vld [vmem:[#allocation75_spill] sm:$0xff] }
 0x464   :  { %7610 = vmatmul.mubr.bf16.gmra.mrb[116].mxu0 %v15533_v0  ;;  %v4868_v36 = vadd.f32 %v11881_v16, %v15507_v20  ;;  %6733 = vmatprep.mubr.bf16.mxu1 %v17899_v53  ;;  %v15927_v28 = vadd.f32 %v15730_v47, %v4865_v12 }
 0x465   :  { %17897 = vst [vmem:[#allocation32_spill] sm:$0xff] %v15919_v46  ;;  %7617 = vmatprep.mubr.bf16.mxu0 %v15543_v34  ;;  %v17902_v46 = vld [vmem:[#allocation38_spill] sm:$0xff]  ;;  %v17923_v34 = vld [vmem:[#allocation47_spill] sm:$0xff] }
 0x466   :  { %v11882_v63 = vpop.f32.mrb[236].mxu1  ;;  %v15930_v30 = vadd.f32 %v15733_v6, %v4868_v36  ;;  %v17903_v6 = vld [vmem:[#allocation30_spill] sm:$0xff] }
 0x467   :  { %v12074_v11 = vpop.f32.mrb[12].mxu0  ;;  %v11883_v55 = vpop.f32.mrb[237].mxu1  ;;  %v17904_v36 = vrot.slane %v17903_v6, 7 }
 0x468   :  { %v12075_v56 = vpop.f32.mrb[13].mxu0  ;;  %v11884_v62 = vadd.f32 %v11883_v55, %v11882_v63  ;;  %v11885_v20 = vpop.f32.mrb[238].mxu1 }
 0x469   :  { %v15933_v39 = vadd.f32 %v12075_v56, %v12074_v11  ;;  %v12077_v38 = vpop.f32.mrb[14].mxu0  ;;  %v11886_v37 = vpop.f32.mrb[239].mxu1  ;;  %v15945_v63 = vsel %vm1145_vm5, %v17904_v36, %v17504_v45  ;;  %v17906_v11 = vld [vmem:[#allocation59_spill] sm:$0xff] }
 0x46a   :  { %v12078_v41 = vpop.f32.mrb[15].mxu0  ;;  %v4873_v16 = vadd.f32 %v11884_v62, %v15527_v60  ;;  %v11887_v47 = vadd.f32 %v11886_v37, %v11885_v20  ;;  %17905 = vst [vmem:[#allocation35_spill] sm:$0xff] %v15945_v63  ;;  %v17907_v56 = vld [vmem:[#allocation43_spill] sm:$0xff] }
 0x46b   :  { %17900 = vst [vmem:[#allocation33_spill] sm:$0xff] %v15933_v39  ;;  %v15936_v12 = vadd.f32 %v12078_v41, %v12077_v38  ;;  %6734 = vmatmul.mubr.bf16.gmra.mrb[88].mxu1 %v17902_v46  ;;  %v17509_v38 = vrot.slane %v15751_v43, 6  ;;  %v17911_v46 = vrot.slane %v17903_v6, 6 }
 0x46c   :  { %7618 = vmatmul.mubr.bf16.gmra.mrb[120].mxu0 %v15563_v40  ;;  %v4876_v55 = vadd.f32 %v11887_v47, %v17906_v11  ;;  %6741 = vmatprep.mubr.bf16.mxu1 %v15945_v63  ;;  %v15951_v60 = vadd.f32 %v15761_v44, %v4873_v16 }
 0x46d   :  { %17901 = vst [vmem:[#allocation34_spill] sm:$0xff] %v15936_v12  ;;  %7625 = vmatprep.mubr.bf16.mxu0 %v17907_v56  ;;  %v17909_v56 = vld [vmem:[#allocation66_spill] sm:$0xff] }
 0x46e   :  { %v11888_v62 = vpop.f32.mrb[240].mxu1  ;;  %v15955_v37 = vadd.f32 %v15764_v13, %v4876_v55  ;;  %v15967_v13 = vsel %vm1075_vm6, %v17911_v46, %v17509_v38  ;;  %v17914_v55 = vld [vmem:[#allocation67_spill] sm:$0xff] }
 0x46f   :  { %v12080_v20 = vpop.f32.mrb[16].mxu0  ;;  %v11889_v41 = vpop.f32.mrb[241].mxu1  ;;  %17912 = vst [vmem:[#allocation66_spill] sm:$0xff] %v15967_v13 }
 0x470   :  { %v12081_v12 = vpop.f32.mrb[17].mxu0  ;;  %v11890_v36 = vadd.f32 %v11889_v41, %v11888_v62  ;;  %v11891_v47 = vpop.f32.mrb[242].mxu1  ;;  %v17916_v41 = vld [vmem:[#allocation74_spill] sm:$0xff] }
 0x471   :  { %v15957_v45 = vadd.f32 %v12081_v12, %v12080_v20  ;;  %v12083_v11 = vpop.f32.mrb[18].mxu0  ;;  %v11892_v39 = vpop.f32.mrb[243].mxu1  ;;  %v17913_v12 = vld [vmem:[#allocation45_spill] sm:$0xff] }
 0x472   :  { %v12084_v63 = vpop.f32.mrb[19].mxu0  ;;  %v4881_v40 = vadd.f32 %v11890_v36, %v17909_v56  ;;  %v11893_v44 = vadd.f32 %v11892_v39, %v11891_v47  ;;  %v17915_v20 = vld [vmem:[#allocation41_spill] sm:$0xff] }
 0x473   :  { %17908 = vst [vmem:[#allocation30_spill] sm:$0xff] %v15957_v45  ;;  %v15960_v16 = vadd.f32 %v12084_v63, %v12083_v11  ;;  %6742 = vmatmul.mubr.bf16.gmra.mrb[92].mxu1 %v15967_v13  ;;  %v13562_v45 = vld [vmem:[#allocation8 + $0xbc8] sm:$0xff]   ;;  %v13571_v13 = vld [vmem:[#allocation8 + $0xd00] sm:$0xff]  }
 0x474   :  { %7626 = vmatmul.mubr.bf16.gmra.mrb[124].mxu0 %v17913_v12  ;;  %v4884_v62 = vadd.f32 %v11893_v44, %v17914_v55  ;;  %7472 = vmatprep.mubr.bf16.mxu1 %v17916_v41  ;;  %v15975_v39 = vadd.f32 %v15798_v50, %v4881_v40  ;;  %v13561_v44 = vld [vmem:[#allocation8 + $0xb80] sm:$0xff]   ;;  %v17918_v41 = vld [vmem:[#allocation68_spill] sm:$0xff] }
 0x475   :  { %17910 = vst [vmem:[#allocation59_spill] sm:$0xff] %v15960_v16  ;;  %8356 = vmatprep.mubr.bf16.mxu0 %v17915_v20 }
 0x476   :  { %v11894_v63 = vpop.f32.mrb[244].mxu1  ;;  %v15978_v6 = vadd.f32 %v15803_v33, %v4884_v62  ;;  %v13824_v33 = vld [vmem:[#allocation2] sm:$0xff]  ;;  %v13572_v62 = vld [vmem:[#allocation8 + $0xd48] sm:$0xff]  }
 0x477   :  { %v12086_v56 = vpop.f32.mrb[20].mxu0  ;;  %v11895_v46 = vpop.f32.mrb[245].mxu1 }
 0x478   :  { %v12087_v36 = vpop.f32.mrb[21].mxu0  ;;  %v11896_v47 = vadd.f32 %v11895_v46, %v11894_v63  ;;  %v11897_v38 = vpop.f32.mrb[246].mxu1  ;;  %v17921_v63 = vld [vmem:[#allocation77_spill] sm:$0xff]  ;;  %v17922_v46 = vld [vmem:[#allocation64_spill] sm:$0xff] }
 0x479   :  { %v15980_v11 = vadd.f32 %v12087_v36, %v12086_v56  ;;  %v12089_v16 = vpop.f32.mrb[22].mxu0  ;;  %v11898_v55 = vpop.f32.mrb[247].mxu1  ;;  %v13563_v36 = vld [vmem:[#allocation8 + $0xb88] sm:$0xff]  }
 0x47a   :  { %v12090_v20 = vpop.f32.mrb[23].mxu0  ;;  %v4889_v12 = vadd.f32 %v11896_v47, %v17918_v41  ;;  %v11899_v40 = vadd.f32 %v11898_v55, %v11897_v38  ;;  %v13564_v38 = vld [vmem:[#allocation8 + $0xbd0] sm:$0xff]  }
 0x47b   :  { %17917 = vst [vmem:[#allocation67_spill] sm:$0xff] %v15980_v11  ;;  %v15983_v50 = vadd.f32 %v12090_v20, %v12089_v16  ;;  %7473 = vmatmul.mubr.bf16.vlgmr.msra.gmra.mrb[96].mxu1 %v17920_v26  ;;  %v13573_v26 = vld [vmem:[#allocation8 + $0xd08] sm:$0xff]  }
 0x47c   :  { %8357 = vmatmul.mubr.bf16.vlgmr.msra.gmra.mrb[128].mxu0 %v13824_v33  ;;  %v4892_v56 = vadd.f32 %v11899_v40, %v17921_v63  ;;  %12489 = vmatpush3.bf16.msra.mxu1 %v13561_v44  ;;  %v15989_v11 = vadd.f32 %v15823_v4, %v4889_v12 }
 0x47d   :  { %17919 = vst [vmem:[#allocation41_spill] sm:$0xff] %v15983_v50  ;;  %7480 = vmatprep.mubr.bf16.mxu1 %v17922_v46  ;;  %8364 = vmatprep.mubr.bf16.mxu0 %v17923_v34  ;;  %v13576_v50 = vld [vmem:[#allocation8 + $0xd50] sm:$0xff]  }
 0x47e   :  { %12490 = vmatprep.subr.bf16.mxu1 %v13562_v45  ;;  %v11900_v16 = vpop.f32.mrb[248].mxu1  ;;  %12681 = vmatpush3.bf16.msra.mxu0 %v13571_v13  ;;  %v15993_v55 = vadd.f32 %v15828_v9, %v4892_v56  ;;  %v13565_v45 = vld [vmem:[#allocation8 + $0xb90] sm:$0xff]   ;;  %v13566_v9 = vld [vmem:[#allocation8 + $0xbd8] sm:$0xff]  }
 0x47f   :  { %v12092_v47 = vpop.f32.mrb[24].mxu0  ;;  %v11901_v20 = vpop.f32.mrb[249].mxu1  ;;  %12682 = vmatprep.subr.bf16.mxu0 %v13572_v62  ;;  %v17925_v34 = vld [vmem:[#allocation36_spill] sm:$0xff]  ;;  %v17927_v62 = vld [vmem:[#allocation19_spill] sm:$0xff] }
 0x480   :  { %v12093_v41 = vpop.f32.mrb[25].mxu0  ;;  %v11902_v44 = vadd.f32 %v11901_v20, %v11900_v16  ;;  %v11903_v33 = vpop.f32.mrb[250].mxu1  ;;  %12491 = vmatpush3.bf16.msra.mxu1 %v13563_v36  ;;  %v13577_v56 = vld [vmem:[#allocation8 + $0xd10] sm:$0xff]   ;;  %v17929_v20 = vld [vmem:[#allocation39_spill] sm:$0xff] }
 0x481   :  { %v15995_v40 = vadd.f32 %v12093_v41, %v12092_v47  ;;  %v12095_v4 = vpop.f32.mrb[26].mxu0  ;;  %v11904_v12 = vpop.f32.mrb[251].mxu1  ;;  %12492 = vmatprep.subr.bf16.mxu1 %v13564_v38  ;;  %v17928_v16 = vld [vmem:[#allocation21_spill] sm:$0xff]  ;;  %v17931_v38 = vld [vmem:[#allocation51_spill] sm:$0xff] }
 0x482   :  { %v12096_v63 = vpop.f32.mrb[27].mxu0  ;;  %v4897_v13 = vadd.f32 %v11902_v44, %v17925_v34  ;;  %v11905_v46 = vadd.f32 %v11904_v12, %v11903_v33  ;;  %12683 = vmatpush3.bf16.msra.mxu0 %v13573_v26  ;;  %v13578_v47 = vld [vmem:[#allocation8 + $0xd58] sm:$0xff]   ;;  %v13568_v33 = vld [vmem:[#allocation8 + $0xbe0] sm:$0xff]  }
 0x483   :  { %17924 = vst [vmem:[#allocation74_spill] sm:$0xff] %v15995_v40  ;;  %v15998_v53 = vadd.f32 %v12096_v63, %v12095_v4  ;;  %7481 = vmatmul.mubr.bf16.gmra.mrb[100].mxu1 %v17927_v62  ;;  %v17930_v41 = vld [vmem:[#allocation65_spill] sm:$0xff]  ;;  %12684 = vmatprep.subr.bf16.mxu0 %v13576_v50  ;;  %v13569_v50 = vld [vmem:[#allocation8 + $0xba0] sm:$0xff]  }
 0x484   :  { %8365 = vmatmul.mubr.bf16.gmra.mrb[132].mxu0 %v17928_v16  ;;  %v4900_v36 = vadd.f32 %v11905_v46, %v17929_v20  ;;  %7488 = vmatprep.mubr.bf16.mxu1 %v17930_v41  ;;  %v16006_v40 = vadd.f32 %v15840_v49, %v4897_v13  ;;  %v13567_v34 = vld [vmem:[#allocation8 + $0xb98] sm:$0xff]  }
 0x485   :  { %17926 = vst [vmem:[#allocation68_spill] sm:$0xff] %v15998_v53  ;;  %8372 = vmatprep.mubr.bf16.mxu0 %v17931_v38  ;;  %12493 = vmatpush3.bf16.msra.mxu1 %v13565_v45  ;;  %v13579_v4 = vld [vmem:[#allocation8 + $0xd18] sm:$0xff]   ;;  %v13582_v38 = vld [vmem:[#allocation8 + $0xd60] sm:$0xff]  }
 0x486   :  { %v11906_v44 = vpop.f32.mrb[252].mxu1  ;;  %12494 = vmatprep.subr.bf16.mxu1 %v13566_v9  ;;  %12685 = vmatpush3.bf16.msra.mxu0 %v13577_v56  ;;  %v16009_v12 = vadd.f32 %v15843_v61, %v4900_v36  ;;  %v17933_v9 = vld [vmem:[#allocation40_spill] sm:$0xff]  ;;  %v13583_v36 = vld [vmem:[#allocation8 + $0xd20] sm:$0xff]  }
 0x487   :  { %v12098_v26 = vpop.f32.mrb[28].mxu0  ;;  %v11907_v46 = vpop.f32.mrb[253].mxu1  ;;  %12686 = vmatprep.subr.bf16.mxu0 %v13578_v47  ;;  %v13574_v61 = vld [vmem:[#allocation8 + $0xbe8] sm:$0xff]   ;;  %v17935_v47 = vld [vmem:[#allocation22_spill] sm:$0xff] }
 0x488   :  { %v12099_v63 = vpop.f32.mrb[29].mxu0  ;;  %v11908_v16 = vadd.f32 %v11907_v46, %v11906_v44  ;;  %v11909_v49 = vpop.f32.mrb[254].mxu1  ;;  %v17936_v44 = vld [vmem:[#allocation24_spill] sm:$0xff] }
 0x489   :  { %v16011_v20 = vadd.f32 %v12099_v63, %v12098_v26  ;;  %v12101_v13 = vpop.f32.mrb[30].mxu0  ;;  %v11910_v45 = vpop.f32.mrb[255].mxu1  ;;  %12495 = vmatpush3.bf16.msra.mxu1 %v13567_v34  ;;  %v13584_v26 = vld [vmem:[#allocation8 + $0xd68] sm:$0xff]  }
 0x48a   :  { %v12102_v53 = vpop.f32.mrb[31].mxu0  ;;  %v4905_v41 = vadd.f32 %v11908_v16, %v17933_v9  ;;  %v11911_v56 = vadd.f32 %v11910_v45, %v11909_v49  ;;  %12496 = vmatprep.subr.bf16.mxu1 %v13568_v33  ;;  %12687 = vmatpush3.bf16.msra.mxu0 %v13579_v4  ;;  %v17937_v46 = vld [vmem:[#allocation20_spill] sm:$0xff] }
 0x48b   :  { %17932 = vst [vmem:[#allocation75_spill] sm:$0xff] %v16011_v20  ;;  %v16014_v62 = vadd.f32 %v12102_v53, %v12101_v13  ;;  %7489 = vmatmul.mubr.bf16.gmra.mrb[104].mxu1 %v17935_v47  ;;  %v17938_v20 = vld [vmem:[#allocation49_spill] sm:$0xff]  ;;  %v17939_v34 = vld [vmem:[#allocation56_spill] sm:$0xff]  ;;  %12688 = vmatprep.subr.bf16.mxu0 %v13582_v38 }
 0x48c   :  { %8373 = vmatmul.mubr.bf16.gmra.mrb[136].mxu0 %v17936_v44  ;;  %v4908_v63 = vadd.f32 %v11911_v56, %v17937_v46  ;;  %7496 = vmatprep.mubr.bf16.mxu1 %v17938_v20  ;;  %v16022_v16 = vadd.f32 %v15862_v21, %v4905_v41  ;;  %v13575_v53 = vld [vmem:[#allocation8 + $0xba8] sm:$0xff]   ;;  %v13580_v49 = vld [vmem:[#allocation8 + $0xbf0] sm:$0xff]  }
 0x48d   :  { %17934 = vst [vmem:[#allocation77_spill] sm:$0xff] %v16014_v62  ;;  %8380 = vmatprep.mubr.bf16.mxu0 %v17939_v34  ;;  %12497 = vmatpush3.bf16.msra.mxu1 %v13569_v50  ;;  %v13585_v13 = vld [vmem:[#allocation8 + $0xd28] sm:$0xff]   ;;  %v13581_v38 = vld [vmem:[#allocation8 + $0xbb0] sm:$0xff]  }
 0x48e   :  { %v11992_v33 = vpop.f32.mrb[0].mxu1  ;;  %12498 = vmatprep.subr.bf16.mxu1 %v13574_v61  ;;  %12689 = vmatpush3.bf16.msra.mxu0 %v13583_v36  ;;  %v16025_v45 = vadd.f32 %v15871_v23, %v4908_v63  ;;  %v13588_v34 = vld [vmem:[#allocation8 + $0xd70] sm:$0xff]   ;;  %v13586_v23 = vld [vmem:[#allocation8 + $0xbf8] sm:$0xff]  }
 0x48f   :  { %v12184_v4 = vpop.f32.mrb[32].mxu0  ;;  %v11993_v9 = vpop.f32.mrb[1].mxu1  ;;  %12690 = vmatprep.subr.bf16.mxu0 %v13584_v26  ;;  %v13589_v63 = vld [vmem:[#allocation8 + $0xd30] sm:$0xff]   ;;  %v13590_v26 = vld [vmem:[#allocation8 + $0xd78] sm:$0xff]  }
 0x490   :  { %v12185_v56 = vpop.f32.mrb[33].mxu0  ;;  %v11994_v44 = vadd.f32 %v11993_v9, %v11992_v33  ;;  %v11995_v46 = vpop.f32.mrb[2].mxu1  ;;  %v17940_v33 = vld [vmem:[#allocation81_spill] sm:$0xff] }
 0x491   :  { %v16027_v62 = vadd.f32 %v12185_v56, %v12184_v4  ;;  %v12187_v21 = vpop.f32.mrb[34].mxu0  ;;  %v11996_v41 = vpop.f32.mrb[3].mxu1  ;;  %12499 = vmatpush3.bf16.msra.mxu1 %v13575_v53  ;;  %v13587_v9 = vld [vmem:[#allocation8 + $0xbb8] sm:$0xff]  }
 0x492   :  { %v12188_v50 = vpop.f32.mrb[35].mxu0  ;;  %v5043_v61 = vadd.f32 %v11994_v44, %v15895_v7  ;;  %v11997_v36 = vadd.f32 %v11996_v41, %v11995_v46  ;;  %12500 = vmatprep.subr.bf16.mxu1 %v13580_v49  ;;  %12691 = vmatpush3.bf16.msra.mxu0 %v13585_v13  ;;  %v17941_v7 = vld [vmem:[#allocation57_spill] sm:$0xff]  ;;  %v17942_v13 = vld [vmem:[#allocation82_spill] sm:$0xff] }
 0x493   :  { %v16030_v20 = vadd.f32 %v12188_v50, %v12187_v21  ;;  %7497 = vmatmul.mubr.bf16.gmra.mrb[108].mxu1 %v15705_v29  ;;  %12692 = vmatprep.subr.bf16.mxu0 %v13588_v34  ;;  %v13591_v46 = vld [vmem:[#allocation8 + $0xd38] sm:$0xff]   ;;  %v13592_v21 = vld [vmem:[#allocation8 + $0xcc0] sm:$0xff]  }
 0x494   :  { %8381 = vmatmul.mubr.bf16.gmra.mrb[140].mxu0 %v15711_v2  ;;  %v16035_v4 = vadd.f32 %v5043_v61, %v17940_v33  ;;  %v5046_v53 = vadd.f32 %v11997_v36, %v15898_v22  ;;  %7504 = vmatprep.mubr.bf16.mxu1 %v15715_v51 }
 0x495   :  { %8388 = vmatprep.mubr.bf16.mxu0 %v17941_v7  ;;  %12501 = vmatpush3.bf16.msra.mxu1 %v13581_v38 }
 0x496   :  { %v5137_v49 = vmin.f32 %v16035_v4, 0.0  ;;  %v16042_v56 = vadd.f32 %v5046_v53, %v17942_v13  ;;  %v11998_v44 = vpop.f32.mrb[4].mxu1  ;;  %12502 = vmatprep.subr.bf16.mxu1 %v13586_v23  ;;  %12693 = vmatpush3.bf16.msra.mxu0 %v13589_v63  ;;  %v13602_v13 = vld [vmem:[#allocation8 + $0xe40] sm:$0xff]   ;;  %vm5121_vm7 = vcmp.gt.f32.partialorder %v16035_v4, 0.0 }
 0x497   :  { %v12190_v2 = vpop.f32.mrb[36].mxu0  ;;  %v11999_v41 = vpop.f32.mrb[5].mxu1  ;;  %12694 = vmatprep.subr.bf16.mxu0 %v13590_v26  ;;  %v17944_v26 = vld [vmem:[#allocation55_spill] sm:$0xff] }
 0x498   :  { %v12191_v22 = vpop.f32.mrb[37].mxu0  ;;  %v5153_v50 = vmul.f32 1.442695, %v5137_v49  ;;  %v5138_v61 = vmin.f32 %v16042_v56, 0.0  ;;  %v12000_v38 = vadd.f32 %v11999_v41, %v11998_v44  ;;  %v12001_v36 = vpop.f32.mrb[6].mxu1  ;;  %v17945_v49 = vld [vmem:[#allocation58_spill] sm:$0xff] }
 0x499   :  { %v12193_v34 = vpop.f32.mrb[38].mxu0  ;;  %v12002_v33 = vpop.f32.mrb[7].mxu1  ;;  %v16045_v7 = vadd.f32 %v12191_v22, %v12190_v2  ;;  %12503 = vmatpush3.bf16.msra.mxu1 %v13587_v9  ;;  %v17947_v41 = vld [vmem:[#allocation53_spill] sm:$0xff]  ;;  %v17948_v22 = vld [vmem:[#allocation83_spill] sm:$0xff]  ;;  %vm5122_vm8 = vcmp.gt.f32.partialorder %v16042_v56, 0.0 }
 0x49a   :  { %v12194_v53 = vpop.f32.mrb[39].mxu0  ;;  %13736 = vpow2.f32 %v5153_v50  ;;  %v5155_v23 = vmul.f32 1.442695, %v5138_v61  ;;  %v5051_v63 = vadd.f32 %v12000_v38, %v15911_v27  ;;  %v12003_v51 = vadd.f32 %v12002_v33, %v12001_v36  ;;  %12695 = vmatpush3.bf16.msra.mxu0 %v13591_v46  ;;  %12616 = vmatprep.subr.bf16.mxu1 %v13592_v21  ;;  %v17949_v50 = vld [vmem:[#allocation61_spill] sm:$0xff]  ;;  %v17950_v46 = vld [vmem:[#allocation50_spill] sm:$0xff] }
 0x49b   :  { %17943 = vst [vmem:[#allocation36_spill] sm:$0xff] %v16045_v7  ;;  %7505 = vmatmul.mubr.bf16.gmra.mrb[112].mxu1 %v17944_v26  ;;  %v16050_v44 = vadd.f32 %v12194_v53, %v12193_v34  ;;  %12808 = vmatprep.subr.bf16.mxu0 %v13602_v13  ;;  %v17954_v26 = vld [vmem:[#allocation69_spill] sm:$0xff]  ;;  %v17963_v7 = vld [vmem:[#allocation84_spill] sm:$0xff] }
 0x49c   :  { %8389 = vmatmul.mubr.bf16.gmra.mrb[144].mxu0 %v17945_v49  ;;  %13738 = vpow2.f32 %v5155_v23  ;;  %v16053_v2 = vadd.f32 %v5051_v63, %v17947_v41  ;;  %v5054_v9 = vadd.f32 %v12003_v51, %v15914_v24  ;;  %7512 = vmatprep.mubr.bf16.mxu1 %v17948_v22  ;;  %v16063_v24 = vld [vmem:[#allocation2 + $0x98] sm:$0xff] }
 0x49d   :  { %17946 = vst [vmem:[#allocation21_spill] sm:$0xff] %v16050_v44  ;;  %8396 = vmatprep.mubr.bf16.mxu0 %v17949_v50 }
 0x49e   :  { %v5139_v27 = vmin.f32 %v16053_v2, 0.0  ;;  %v16060_v21 = vadd.f32 %v5054_v9, %v17950_v46  ;;  %v12004_v61 = vpop.f32.mrb[8].mxu1  ;;  %vm5123_vm9 = vcmp.gt.f32.partialorder %v16053_v2, 0.0 }
 0x49f   :  { %v12196_v38 = vpop.f32.mrb[40].mxu0  ;;  %v12005_v36 = vpop.f32.mrb[9].mxu1 }
 0x4a0   :  { %v12197_v34 = vpop.f32.mrb[41].mxu0  ;;  %v5157_v33 = vmul.f32 1.442695, %v5139_v27  ;;  %v5140_v53 = vmin.f32 %v16060_v21, 0.0  ;;  %v12006_v23 = vadd.f32 %v12005_v36, %v12004_v61  ;;  %v12007_v63 = vpop.f32.mrb[10].mxu1  ;;  %v17953_v27 = vld [vmem:[#allocation86_spill] sm:$0xff] }
 0x4a1   :  { %v12199_v51 = vpop.f32.mrb[42].mxu0  ;;  %v16065_v49 = vadd.f32 %v12197_v34, %v12196_v38  ;;  %v12008_v13 = vpop.f32.mrb[11].mxu1  ;;  %vm5124_vm10 = vcmp.gt.f32.partialorder %v16060_v21, 0.0 }
 0x4a2   :  { %v12200_v41 = vpop.f32.mrb[43].mxu0  ;;  %13740 = vpow2.f32 %v5157_v33  ;;  %v5159_v50 = vmul.f32 1.442695, %v5140_v53  ;;  %v5059_v9 = vadd.f32 %v12006_v23, %v15927_v28  ;;  %v12009_v46 = vadd.f32 %v12008_v13, %v12007_v63  ;;  %v17955_v33 = vld [vmem:[#allocation87_spill] sm:$0xff]  ;;  %v17956_v53 = vld [vmem:[#allocation60_spill] sm:$0xff] }
 0x4a3   :  { %17951 = vst [vmem:[#allocation39_spill] sm:$0xff] %v16065_v49  ;;  %v16068_v22 = vadd.f32 %v12200_v41, %v12199_v51  ;;  %7513 = vmatmul.mubr.bf16.gmra.mrb[116].mxu1 %v15767_v57  ;;  %v16079_v23 = vld [vmem:[#allocation2 + $0xa8] sm:$0xff]  ;;  %v17958_v41 = vld [vmem:[#allocation42_spill] sm:$0xff] }
 0x4a4   :  { %8397 = vmatmul.mubr.bf16.gmra.mrb[148].mxu0 %v17953_v27  ;;  %v13737_v36 = vpop.eup %13736  ;;  %13742 = vpow2.f32 %v5159_v50  ;;  %v16074_v38 = vadd.f32 %v5059_v9, %v17954_v26  ;;  %v5062_v34 = vadd.f32 %v12009_v46, %v15930_v30  ;;  %7520 = vmatprep.mubr.bf16.mxu1 %v17955_v33  ;;  %17957 = vst [vmem:[#allocation24_spill] sm:$0xff] %v16079_v23  ;;  %v17959_v33 = vrot.slane %v16063_v24, 3 }
 0x4a5   :  { %17952 = vst [vmem:[#allocation40_spill] sm:$0xff] %v16068_v22  ;;  %8404 = vmatprep.mubr.bf16.mxu0 %v17956_v53  ;;  %v10695_v28 = vadd.f32 -1.0, %v13737_v36  ;;  %v17960_v36 = vrot.slane %v15751_v43, 3  ;;  %v17962_v44 = vrot.slane %v16079_v23, 1 }
 0x4a6   :  { %v13739_v51 = vpop.eup %13738  ;;  %v5141_v13 = vmin.f32 %v16074_v38, 0.0  ;;  %v16084_v27 = vadd.f32 %v5062_v34, %v17958_v41  ;;  %v12010_v50 = vpop.f32.mrb[12].mxu1  ;;  %vm5125_vm11 = vcmp.gt.f32.partialorder %v16074_v38, 0.0 }
 0x4a7   :  { %v12202_v26 = vpop.f32.mrb[44].mxu0  ;;  %v5201_v9 = vmul.f32 1.6732632, %v10695_v28  ;;  %v10696_v61 = vadd.f32 -1.0, %v13739_v51  ;;  %v12011_v30 = vpop.f32.mrb[13].mxu1  ;;  %v16091_v53 = vsel %vm865_vm3, %v17960_v36, %v17959_v33  ;;  %v17964_v33 = vrot.slane %v17963_v7, 1 }
 0x4a8   :  { %v12203_v46 = vpop.f32.mrb[45].mxu0  ;;  %17961 = vst [vmem:[#allocation20_spill] sm:$0xff] %v16091_v53  ;;  %v5161_v63 = vmul.f32 1.442695, %v5141_v13  ;;  %v5142_v57 = vmin.f32 %v16084_v27, 0.0  ;;  %v12012_v34 = vadd.f32 %v12011_v30, %v12010_v50  ;;  %v12013_v41 = vpop.f32.mrb[14].mxu1 }
 0x4a9   :  { %v12205_v29 = vpop.f32.mrb[46].mxu0  ;;  %v5217_v28 = vsel %vm5121_vm7, %v16035_v4, %v5201_v9  ;;  %v5202_v51 = vmul.f32 1.6732632, %v10696_v61  ;;  %v16096_v47 = vadd.f32 %v12203_v46, %v12202_v26  ;;  %v12014_v22 = vpop.f32.mrb[15].mxu1  ;;  %v16103_v36 = vsel %vm613_vm0, %v17964_v33, %v17962_v44  ;;  %v13826_v9 = vld [vmem:[#allocation2 + $0x88] sm:$0xff]  ;;  %v17967_v46 = vld [vmem:[#allocation70_spill] sm:$0xff] }
 0x4aa   :  { %v12206_v49 = vpop.f32.mrb[47].mxu0  ;;  %13744 = vpow2.f32 %v5161_v63  ;;  %v5163_v13 = vmul.f32 1.442695, %v5142_v57  ;;  %v5067_v50 = vadd.f32 %v12012_v34, %v15951_v60  ;;  %v12015_v61 = vadd.f32 %v12014_v22, %v12013_v41  ;;  %v17968_v33 = vld [vmem:[#allocation62_spill] sm:$0xff] }
 0x4ab   :  { %v5218_v4 = vsel %vm5122_vm8, %v16042_v56, %v5202_v51  ;;  %v16108_v26 = vadd.f32 %v12206_v49, %v12205_v29  ;;  %7521 = vmatmul.mubr.bf16.gmra.mrb[120].mxu1 %v15808_v5  ;;  %v16111_v7 = vmul.f32 1.050701, %v5217_v28  ;;  %vm5126_vm12 = vcmp.gt.f32.partialorder %v16084_v27, 0.0 }
 0x4ac   :  { %8405 = vmatmul.mubr.bf16.gmra.mrb[152].mxu0 %v13826_v9  ;;  %v13741_v30 = vpop.eup %13740  ;;  %v16113_v44 = vmul.f32 1.050701, %v5218_v4  ;;  %13746 = vpow2.f32 %v5163_v13  ;;  %v16116_v63 = vadd.f32 %v5067_v50, %v17967_v46  ;;  %7528 = vmatprep.mubr.bf16.mxu1 %v16091_v53  ;;  %v5070_v29 = vadd.f32 %v12015_v61, %v15955_v37 }
 0x4ad   :  { %17965 = vst [vmem:[#allocation81_spill] sm:$0xff] %v16111_v7  ;;  %8412 = vmatprep.mubr.bf16.mxu0 %v16103_v36  ;;  %v10697_v57 = vadd.f32 -1.0, %v13741_v30 }
 0x4ae   :  { %17966 = vst [vmem:[#allocation82_spill] sm:$0xff] %v16113_v44  ;;  %v13743_v56 = vpop.eup %13742  ;;  %v5143_v49 = vmin.f32 %v16116_v63, 0.0  ;;  %v12016_v34 = vpop.f32.mrb[16].mxu1  ;;  %v16126_v13 = vadd.f32 %v5070_v29, %v17968_v33  ;;  %v17969_v29 = vrot.slane %v16063_v24, 2  ;;  %v17970_v33 = vrot.slane %v15751_v43, 2 }
 0x4af   :  { %v12208_v41 = vpop.f32.mrb[48].mxu0  ;;  %v5203_v28 = vmul.f32 1.6732632, %v10697_v57  ;;  %v10698_v51 = vadd.f32 -1.0, %v13743_v56  ;;  %v12017_v50 = vpop.f32.mrb[17].mxu1  ;;  %vm5127_vm13 = vcmp.gt.f32.partialorder %v16116_v63, 0.0 }
 0x4b0   :  { %v12209_v4 = vpop.f32.mrb[49].mxu0  ;;  %v5165_v37 = vmul.f32 1.442695, %v5143_v49  ;;  %v12018_v61 = vadd.f32 %v12017_v50, %v12016_v34  ;;  %v12019_v30 = vpop.f32.mrb[18].mxu1  ;;  %v5144_v7 = vmin.f32 %v16126_v13, 0.0  ;;  %v16138_v44 = vsel %vm795_vm4, %v17970_v33, %v17969_v29  ;;  %v17974_v29 = vld [vmem:[#allocation79_spill] sm:$0xff] }
 0x4b1   :  { %v16129_v9 = vadd.f32 %v12209_v4, %v12208_v41  ;;  %v12211_v46 = vpop.f32.mrb[50].mxu0  ;;  %v5219_v22 = vsel %vm5123_vm9, %v16053_v2, %v5203_v28  ;;  %v5204_v60 = vmul.f32 1.6732632, %v10698_v51  ;;  %v12020_v57 = vpop.f32.mrb[19].mxu1  ;;  %17971 = vst [vmem:[#allocation58_spill] sm:$0xff] %v16138_v44  ;;  %vm5128_vm14 = vcmp.gt.f32.partialorder %v16126_v13, 0.0 }
 0x4b2   :  { %v12212_v56 = vpop.f32.mrb[51].mxu0  ;;  %13748 = vpow2.f32 %v5165_v37  ;;  %v5075_v49 = vadd.f32 %v12018_v61, %v15975_v39  ;;  %v12021_v34 = vadd.f32 %v12020_v57, %v12019_v30  ;;  %v5167_v41 = vmul.f32 1.442695, %v5144_v7  ;;  %v17975_v37 = vld [vmem:[#allocation23_spill] sm:$0xff] }
 0x4b3   :  { %v5220_v2 = vsel %vm5124_vm10, %v16060_v21, %v5204_v60  ;;  %v16143_v28 = vadd.f32 %v12212_v56, %v12211_v46  ;;  %7529 = vmatmul.mubr.bf16.gmra.mrb[124].mxu1 %v16138_v44  ;;  %v16147_v50 = vmul.f32 1.050701, %v5219_v22  ;;  %v17976_v61 = vld [vmem:[#allocation63_spill] sm:$0xff] }
 0x4b4   :  { %8413 = vmatmul.mubr.bf16.gmra.mrb[156].mxu0 %v16063_v24  ;;  %v13745_v51 = vpop.eup %13744  ;;  %v16149_v4 = vmul.f32 1.050701, %v5220_v2  ;;  %v16152_v33 = vadd.f32 %v5075_v49, %v17974_v29  ;;  %v5078_v39 = vadd.f32 %v12021_v34, %v15978_v6  ;;  %7666 = vmatprep.mubr.bf16.mxu1 %v15796_v15  ;;  %13750 = vpow2.f32 %v5167_v41  ;;  %v13593_v2 = vld [vmem:[#allocation8 + $0xc80] sm:$0xff]  }
 0x4b5   :  { %17972 = vst [vmem:[#allocation53_spill] sm:$0xff] %v16147_v50  ;;  %8550 = vmatprep.mubr.bf16.mxu0 %v17975_v37  ;;  %v10699_v21 = vadd.f32 -1.0, %v13745_v51 }
 0x4b6   :  { %17973 = vst [vmem:[#allocation50_spill] sm:$0xff] %v16149_v4  ;;  %v13747_v7 = vpop.eup %13746  ;;  %v5145_v22 = vmin.f32 %v16152_v33, 0.0  ;;  %v16161_v30 = vadd.f32 %v5078_v39, %v17976_v61  ;;  %v12022_v46 = vpop.f32.mrb[20].mxu1  ;;  %vm5129_vm15 = vcmp.gt.f32.partialorder %v16152_v33, 0.0 }
 0x4b7   :  { %v12214_v57 = vpop.f32.mrb[52].mxu0  ;;  %v5205_v56 = vmul.f32 1.6732632, %v10699_v21  ;;  %v10700_v49 = vadd.f32 -1.0, %v13747_v7  ;;  %v12023_v6 = vpop.f32.mrb[21].mxu1  ;;  %v13594_v21 = vld [vmem:[#allocation8 + $0xcc8] sm:$0xff]  }
 0x4b8   :  { %v12215_v34 = vpop.f32.mrb[53].mxu0  ;;  %v5169_v15 = vmul.f32 1.442695, %v5145_v22  ;;  %v5146_v41 = vmin.f32 %v16161_v30, 0.0  ;;  %v12024_v51 = vadd.f32 %v12023_v6, %v12022_v46  ;;  %v12025_v29 = vpop.f32.mrb[22].mxu1  ;;  %v13603_v22 = vld [vmem:[#allocation8 + $0xe00] sm:$0xff]  }
 0x4b9   :  { %v12217_v37 = vpop.f32.mrb[54].mxu0  ;;  %v5221_v60 = vsel %vm5125_vm11, %v16074_v38, %v5205_v56  ;;  %v5206_v50 = vmul.f32 1.6732632, %v10700_v49  ;;  %v16166_v39 = vadd.f32 %v12215_v34, %v12214_v57  ;;  %v12026_v61 = vpop.f32.mrb[23].mxu1  ;;  %v13604_v38 = vld [vmem:[#allocation8 + $0xe48] sm:$0xff]   ;;  %vm5130_vm7 = vcmp.gt.f32.partialorder %v16161_v30, 0.0 }
 0x4ba   :  { %v12218_v4 = vpop.f32.mrb[55].mxu0  ;;  %13752 = vpow2.f32 %v5169_v15  ;;  %v5171_v7 = vmul.f32 1.442695, %v5146_v41  ;;  %v5083_v23 = vadd.f32 %v12024_v51, %v15989_v11  ;;  %v12027_v46 = vadd.f32 %v12026_v61, %v12025_v29  ;;  %v17979_v34 = vld [vmem:[#allocation76_spill] sm:$0xff]  ;;  %v17980_v51 = vld [vmem:[#allocation71_spill] sm:$0xff] }
 0x4bb   :  { %v5222_v44 = vsel %vm5126_vm12, %v16084_v27, %v5206_v50  ;;  %v16171_v6 = vadd.f32 %v12218_v4, %v12217_v37  ;;  %7667 = vmatmul.mubr.bf16.vlgmr.msra.gmra.mrb[128].mxu1 %v15821_v54  ;;  %v16175_v56 = vmul.f32 1.050701, %v5221_v60  ;;  %v13595_v11 = vld [vmem:[#allocation8 + $0xc88] sm:$0xff]  }
 0x4bc   :  { %8551 = vmatmul.mubr.bf16.vlgmr.msra.gmra.mrb[160].mxu0 %v15427_v3  ;;  %v13749_v57 = vpop.eup %13748  ;;  %v16177_v49 = vmul.f32 1.050701, %v5222_v44  ;;  %13754 = vpow2.f32 %v5171_v7  ;;  %v16180_v15 = vadd.f32 %v5083_v23, %v17979_v34  ;;  %12617 = vmatpush3.bf16.msra.mxu1 %v13593_v2  ;;  %v5086_v50 = vadd.f32 %v12027_v46, %v15993_v55  ;;  %v13596_v3 = vld [vmem:[#allocation8 + $0xcd0] sm:$0xff]   ;;  %v13605_v23 = vld [vmem:[#allocation8 + $0xe08] sm:$0xff]  }
 0x4bd   :  { %17977 = vst [vmem:[#allocation86_spill] sm:$0xff] %v16175_v56  ;;  %7674 = vmatprep.mubr.bf16.mxu1 %v15851_v8  ;;  %v10701_v27 = vadd.f32 -1.0, %v13749_v57  ;;  %8558 = vmatprep.mubr.bf16.mxu0 %v15439_v25 }
 0x4be   :  { %17978 = vst [vmem:[#allocation69_spill] sm:$0xff] %v16177_v49  ;;  %12618 = vmatprep.subr.bf16.mxu1 %v13594_v21  ;;  %v5147_v44 = vmin.f32 %v16180_v15, 0.0  ;;  %v12028_v4 = vpop.f32.mrb[24].mxu1  ;;  %12809 = vmatpush3.bf16.msra.mxu0 %v13603_v22  ;;  %v13751_v2 = vpop.eup %13750  ;;  %v16190_v29 = vadd.f32 %v5086_v50, %v17980_v51  ;;  %v13597_v50 = vld [vmem:[#allocation8 + $0xc90] sm:$0xff]   ;;  %vm5131_vm8 = vcmp.gt.f32.partialorder %v16180_v15, 0.0 }
 0x4bf   :  { %v12220_v60 = vpop.f32.mrb[56].mxu0  ;;  %v5207_v41 = vmul.f32 1.6732632, %v10701_v27  ;;  %v12029_v55 = vpop.f32.mrb[25].mxu1  ;;  %12810 = vmatprep.subr.bf16.mxu0 %v13604_v38  ;;  %v10702_v61 = vadd.f32 -1.0, %v13751_v2  ;;  %v13608_v51 = vld [vmem:[#allocation8 + $0xe50] sm:$0xff]  }
 0x4c0   :  { %v12221_v37 = vpop.f32.mrb[57].mxu0  ;;  %v5173_v21 = vmul.f32 1.442695, %v5147_v44  ;;  %v12030_v7 = vadd.f32 %v12029_v55, %v12028_v4  ;;  %v12031_v57 = vpop.f32.mrb[26].mxu1  ;;  %12619 = vmatpush3.bf16.msra.mxu1 %v13595_v11  ;;  %v5148_v54 = vmin.f32 %v16190_v29, 0.0  ;;  %v13598_v44 = vld [vmem:[#allocation8 + $0xcd8] sm:$0xff]  }
 0x4c1   :  { %v16192_v46 = vadd.f32 %v12221_v37, %v12220_v60  ;;  %v12223_v34 = vpop.f32.mrb[58].mxu0  ;;  %v5223_v22 = vsel %vm5127_vm13, %v16116_v63, %v5207_v41  ;;  %v12032_v56 = vpop.f32.mrb[27].mxu1  ;;  %12620 = vmatprep.subr.bf16.mxu1 %v13596_v3  ;;  %v5208_v49 = vmul.f32 1.6732632, %v10702_v61  ;;  %v13609_v4 = vld [vmem:[#allocation8 + $0xe10] sm:$0xff]   ;;  %v13610_v63 = vld [vmem:[#allocation8 + $0xe58] sm:$0xff]  }
 0x4c2   :  { %v12224_v27 = vpop.f32.mrb[59].mxu0  ;;  %13756 = vpow2.f32 %v5173_v21  ;;  %v5091_v38 = vadd.f32 %v12030_v7, %v16006_v40  ;;  %12811 = vmatpush3.bf16.msra.mxu0 %v13605_v23  ;;  %v5175_v60 = vmul.f32 1.442695, %v5148_v54  ;;  %v12033_v11 = vadd.f32 %v12032_v56, %v12031_v57  ;;  %v17982_v40 = vld [vmem:[#allocation27_spill] sm:$0xff]  ;;  %v17983_v23 = vld [vmem:[#allocation29_spill] sm:$0xff]  ;;  %v17984_v61 = vld [vmem:[#allocation26_spill] sm:$0xff] }
 0x4c3   :  { %v16198_v2 = vadd.f32 %v12224_v27, %v12223_v34  ;;  %7675 = vmatmul.mubr.bf16.gmra.mrb[132].mxu1 %v15868_v18  ;;  %v16202_v41 = vmul.f32 1.050701, %v5223_v22  ;;  %v5224_v55 = vsel %vm5128_vm14, %v16126_v13, %v5208_v49  ;;  %v13599_v7 = vld [vmem:[#allocation8 + $0xc98] sm:$0xff]   ;;  %12812 = vmatprep.subr.bf16.mxu0 %v13608_v51  ;;  %v13600_v22 = vld [vmem:[#allocation8 + $0xce0] sm:$0xff]   ;;  %vm5132_vm9 = vcmp.gt.f32.partialorder %v16190_v29, 0.0 }
 0x4c4   :  { %8559 = vmatmul.mubr.bf16.gmra.mrb[164].mxu0 %v15457_v35  ;;  %v13753_v3 = vpop.eup %13752  ;;  %v16206_v37 = vadd.f32 %v5091_v38, %v17982_v40  ;;  %7682 = vmatprep.mubr.bf16.mxu1 %v17983_v23  ;;  %v16210_v56 = vmul.f32 1.050701, %v5224_v55  ;;  %13758 = vpow2.f32 %v5175_v60  ;;  %v5094_v21 = vadd.f32 %v12033_v11, %v16009_v12  ;;  %v13611_v27 = vld [vmem:[#allocation8 + $0xe18] sm:$0xff]   ;;  %v13601_v23 = vld [vmem:[#allocation8 + $0xca0] sm:$0xff]  }
 0x4c5   :  { %17981 = vst [vmem:[#allocation42_spill] sm:$0xff] %v16202_v41  ;;  %8566 = vmatprep.mubr.bf16.mxu0 %v17984_v61  ;;  %v10703_v54 = vadd.f32 -1.0, %v13753_v3  ;;  %12621 = vmatpush3.bf16.msra.mxu1 %v13597_v50  ;;  %v17986_v60 = vld [vmem:[#allocation78_spill] sm:$0xff] }
 0x4c6   :  { %17985 = vst [vmem:[#allocation84_spill] sm:$0xff] %v16210_v56  ;;  %v13755_v57 = vpop.eup %13754  ;;  %v5149_v34 = vmin.f32 %v16206_v37, 0.0  ;;  %v12034_v13 = vpop.f32.mrb[28].mxu1  ;;  %12622 = vmatprep.subr.bf16.mxu1 %v13598_v44  ;;  %12813 = vmatpush3.bf16.msra.mxu0 %v13609_v4  ;;  %v16217_v40 = vadd.f32 %v5094_v21, %v17986_v60  ;;  %v13614_v60 = vld [vmem:[#allocation8 + $0xe60] sm:$0xff]   ;;  %vm5133_vm10 = vcmp.gt.f32.partialorder %v16206_v37, 0.0 }
 0x4c7   :  { %v12226_v49 = vpop.f32.mrb[60].mxu0  ;;  %v5209_v55 = vmul.f32 1.6732632, %v10703_v54  ;;  %v10704_v3 = vadd.f32 -1.0, %v13755_v57  ;;  %v12035_v12 = vpop.f32.mrb[29].mxu1  ;;  %12814 = vmatprep.subr.bf16.mxu0 %v13610_v63 }
 0x4c8   :  { %v12227_v50 = vpop.f32.mrb[61].mxu0  ;;  %v5177_v51 = vmul.f32 1.442695, %v5149_v34  ;;  %v12036_v11 = vadd.f32 %v12035_v12, %v12034_v13  ;;  %v12037_v44 = vpop.f32.mrb[30].mxu1  ;;  %v5150_v54 = vmin.f32 %v16217_v40, 0.0  ;;  %v13606_v13 = vld [vmem:[#allocation8 + $0xce8] sm:$0xff]  }
 0x4c9   :  { %v16220_v61 = vadd.f32 %v12227_v50, %v12226_v49  ;;  %v12229_v4 = vpop.f32.mrb[62].mxu0  ;;  %v5225_v35 = vsel %vm5129_vm15, %v16152_v33, %v5209_v55  ;;  %v5210_v38 = vmul.f32 1.6732632, %v10704_v3  ;;  %v12038_v57 = vpop.f32.mrb[31].mxu1  ;;  %12623 = vmatpush3.bf16.msra.mxu1 %v13599_v7  ;;  %v13615_v49 = vld [vmem:[#allocation8 + $0xe20] sm:$0xff]   ;;  %v13616_v7 = vld [vmem:[#allocation8 + $0xe68] sm:$0xff]  }
 0x4ca   :  { %v12230_v21 = vpop.f32.mrb[63].mxu0  ;;  %13760 = vpow2.f32 %v5177_v51  ;;  %v5099_v63 = vadd.f32 %v12036_v11, %v16022_v16  ;;  %v12039_v34 = vadd.f32 %v12038_v57, %v12037_v44  ;;  %12624 = vmatprep.subr.bf16.mxu1 %v13600_v22  ;;  %12815 = vmatpush3.bf16.msra.mxu0 %v13611_v27  ;;  %v5179_v33 = vmul.f32 1.442695, %v5150_v54  ;;  %v17989_v16 = vld [vmem:[#allocation72_spill] sm:$0xff] }
 0x4cb   :  { %v5226_v12 = vsel %vm5130_vm7, %v16161_v30, %v5210_v38  ;;  %v16227_v55 = vadd.f32 %v12230_v21, %v12229_v4  ;;  %7683 = vmatmul.mubr.bf16.gmra.mrb[136].mxu1 %v17892_v48  ;;  %v16231_v50 = vmul.f32 1.050701, %v5225_v35  ;;  %v13607_v38 = vld [vmem:[#allocation8 + $0xca8] sm:$0xff]   ;;  %12816 = vmatprep.subr.bf16.mxu0 %v13614_v60  ;;  %vm5134_vm11 = vcmp.gt.f32.partialorder %v16217_v40, 0.0 }
 0x4cc   :  { %8567 = vmatmul.mubr.bf16.gmra.mrb[168].mxu0 %v15483_v10  ;;  %v13757_v3 = vpop.eup %13756  ;;  %v16233_v51 = vmul.f32 1.050701, %v5226_v12  ;;  %v16236_v22 = vadd.f32 %v5099_v63, %v17989_v16  ;;  %v5102_v27 = vadd.f32 %v12039_v34, %v16025_v45  ;;  %7690 = vmatprep.mubr.bf16.mxu1 %v17893_v19  ;;  %13762 = vpow2.f32 %v5179_v33  ;;  %v17990_v44 = vld [vmem:[#allocation80_spill] sm:$0xff] }
 0x4cd   :  { %17987 = vst [vmem:[#allocation70_spill] sm:$0xff] %v16231_v50  ;;  %8574 = vmatprep.mubr.bf16.mxu0 %v15491_v58  ;;  %v10705_v30 = vadd.f32 -1.0, %v13757_v3  ;;  %12625 = vmatpush3.bf16.msra.mxu1 %v13601_v23  ;;  %v13612_v45 = vld [vmem:[#allocation8 + $0xcf0] sm:$0xff]   ;;  %v13617_v21 = vld [vmem:[#allocation8 + $0xe28] sm:$0xff]  }
 0x4ce   :  { %17988 = vst [vmem:[#allocation62_spill] sm:$0xff] %v16233_v51  ;;  %v5151_v11 = vmin.f32 %v16236_v22, 0.0  ;;  %v16245_v4 = vadd.f32 %v5102_v27, %v17990_v44  ;;  %v12120_v54 = vpop.f32.mrb[32].mxu1  ;;  %12626 = vmatprep.subr.bf16.mxu1 %v13606_v13  ;;  %12817 = vmatpush3.bf16.msra.mxu0 %v13615_v49  ;;  %v13759_v63 = vpop.eup %13758  ;;  %v13613_v50 = vld [vmem:[#allocation8 + $0xcb0] sm:$0xff]   ;;  %vm5135_vm12 = vcmp.gt.f32.partialorder %v16236_v22, 0.0 }
 0x4cf   :  { %v12312_v57 = vpop.f32.mrb[64].mxu0  ;;  %v5211_v34 = vmul.f32 1.6732632, %v10705_v30  ;;  %v12121_v12 = vpop.f32.mrb[33].mxu1  ;;  %12818 = vmatprep.subr.bf16.mxu0 %v13616_v7  ;;  %v10706_v60 = vadd.f32 -1.0, %v13759_v63  ;;  %v13620_v30 = vld [vmem:[#allocation8 + $0xe70] sm:$0xff]  }
 0x4d0   :  { %v12313_v23 = vpop.f32.mrb[65].mxu0  ;;  %v5181_v33 = vmul.f32 1.442695, %v5151_v11  ;;  %v5152_v3 = vmin.f32 %v16245_v4, 0.0  ;;  %v12123_v16 = vpop.f32.mrb[34].mxu1  ;;  %v12122_v44 = vadd.f32 %v12121_v12, %v12120_v54  ;;  %v13618_v63 = vld [vmem:[#allocation8 + $0xcf8] sm:$0xff]  }
 0x4d1   :  { %v5227_v27 = vsel %vm5131_vm8, %v16180_v15, %v5211_v34  ;;  %v12124_v35 = vpop.f32.mrb[35].mxu1  ;;  %v16250_v13 = vadd.f32 %v12313_v23, %v12312_v57  ;;  %v12315_v49 = vpop.f32.mrb[66].mxu0  ;;  %12627 = vmatpush3.bf16.msra.mxu1 %v13607_v38  ;;  %v5212_v51 = vmul.f32 1.6732632, %v10706_v60  ;;  %v13621_v11 = vld [vmem:[#allocation8 + $0xe30] sm:$0xff]   ;;  %v13622_v38 = vld [vmem:[#allocation8 + $0xe78] sm:$0xff]  }
 0x4d2   :  { %13764 = vpow2.f32 %v5181_v33  ;;  %v5183_v7 = vmul.f32 1.442695, %v5152_v3  ;;  %12628 = vmatprep.subr.bf16.mxu1 %v13612_v45  ;;  %12819 = vmatpush3.bf16.msra.mxu0 %v13617_v21  ;;  %v6494_v41 = vadd.f32 %v12122_v44, %v15884_v1  ;;  %v12125_v15 = vadd.f32 %v12124_v35, %v12123_v16  ;;  %v12316_v54 = vpop.f32.mrb[67].mxu0  ;;  %v17993_v21 = vld [vmem:[#allocation89_spill] sm:$0xff]  ;;  %v13624_v16 = vld [vmem:[#allocation8 + $0xdc0] sm:$0xff]  }
 0x4d3   :  { %7691 = vmatmul.mubr.bf16.gmra.mrb[140].mxu1 %v17894_v31  ;;  %v16256_v34 = vmul.f32 1.050701, %v5227_v27  ;;  %v5228_v12 = vsel %vm5132_vm9, %v16190_v29, %v5212_v51  ;;  %v16261_v45 = vadd.f32 %v12316_v54, %v12315_v49  ;;  %v13619_v60 = vld [vmem:[#allocation8 + $0xcb8] sm:$0xff]   ;;  %12820 = vmatprep.subr.bf16.mxu0 %v13620_v30  ;;  %vm5136_vm13 = vcmp.gt.f32.partialorder %v16245_v4, 0.0 }
 0x4d4   :  { %8575 = vmatmul.mubr.bf16.gmra.mrb[172].mxu0 %v15510_v42  ;;  %v13761_v57 = vpop.eup %13760  ;;  %13766 = vpow2.f32 %v5183_v7  ;;  %7698 = vmatprep.mubr.bf16.mxu1 %v17895_v14  ;;  %v16263_v1 = vmul.f32 1.050701, %v5228_v12  ;;  %v6497_v23 = vadd.f32 %v12125_v15, %v17993_v21  ;;  %v16267_v33 = vadd.f32 %v16027_v62, %v6494_v41  ;;  %v13623_v51 = vld [vmem:[#allocation8 + $0xe38] sm:$0xff]   ;;  %v13634_v12 = vld [vmem:[#allocation8 + $0xf40] sm:$0xff]  }
 0x4d5   :  { %17991 = vst [vmem:[#allocation79_spill] sm:$0xff] %v16256_v34  ;;  %8582 = vmatprep.mubr.bf16.mxu0 %v15515_v32  ;;  %v10707_v35 = vadd.f32 -1.0, %v13761_v57  ;;  %12629 = vmatpush3.bf16.msra.mxu1 %v13613_v50 }
 0x4d6   :  { %17992 = vst [vmem:[#allocation23_spill] sm:$0xff] %v16263_v1  ;;  %v12126_v3 = vpop.f32.mrb[36].mxu1  ;;  %12630 = vmatprep.subr.bf16.mxu1 %v13618_v63  ;;  %12821 = vmatpush3.bf16.msra.mxu0 %v13621_v11  ;;  %v13763_v27 = vpop.eup %13762  ;;  %v16272_v50 = vadd.f32 %v16030_v20, %v6497_v23 }
 0x4d7   :  { %v12318_v29 = vpop.f32.mrb[68].mxu0  ;;  %v5213_v49 = vmul.f32 1.6732632, %v10707_v35  ;;  %v12127_v7 = vpop.f32.mrb[37].mxu1  ;;  %12822 = vmatprep.subr.bf16.mxu0 %v13622_v38  ;;  %v10708_v30 = vadd.f32 -1.0, %v13763_v27 }
 0x4d8   :  { %v12319_v54 = vpop.f32.mrb[69].mxu0  ;;  %v12128_v62 = vadd.f32 %v12127_v7, %v12126_v3  ;;  %v12129_v41 = vpop.f32.mrb[38].mxu1 }
 0x4d9   :  { %v16274_v15 = vadd.f32 %v12319_v54, %v12318_v29  ;;  %v12321_v63 = vpop.f32.mrb[70].mxu0  ;;  %v12130_v11 = vpop.f32.mrb[39].mxu1  ;;  %12631 = vmatpush3.bf16.msra.mxu1 %v13619_v60  ;;  %v5229_v35 = vsel %vm5133_vm10, %v16206_v37, %v5213_v49  ;;  %v5214_v21 = vmul.f32 1.6732632, %v10708_v30  ;;  %v17994_v37 = vld [vmem:[#allocation37_spill] sm:$0xff] }
 0x4da   :  { %v12322_v57 = vpop.f32.mrb[71].mxu0  ;;  %v6502_v38 = vadd.f32 %v12128_v62, %v15900_v59  ;;  %v12131_v44 = vadd.f32 %v12130_v11, %v12129_v41  ;;  %12823 = vmatpush3.bf16.msra.mxu0 %v13623_v51  ;;  %12744 = vmatprep.subr.bf16.mxu1 %v13624_v16  ;;  %v17995_v29 = vld [vmem:[#allocation73_spill] sm:$0xff]  ;;  %v17996_v59 = vld [vmem:[#allocation36_spill] sm:$0xff]  ;;  %v16291_v16 = vmul.f32 1.050701, %v5229_v35 }
 0x4db   :  { %7699 = vmatmul.mubr.bf16.gmra.mrb[144].mxu1 %v17898_v52  ;;  %v16282_v20 = vadd.f32 %v12322_v57, %v12321_v63  ;;  %v5230_v60 = vsel %vm5134_vm11, %v16217_v40, %v5214_v21  ;;  %12936 = vmatprep.subr.bf16.mxu0 %v13634_v12  ;;  %v17999_v62 = vld [vmem:[#allocation21_spill] sm:$0xff] }
 0x4dc   :  { %8583 = vmatmul.mubr.bf16.gmra.mrb[176].mxu0 %v15533_v0  ;;  %v13765_v23 = vpop.eup %13764  ;;  %v6505_v3 = vadd.f32 %v12131_v44, %v15903_v17  ;;  %7706 = vmatprep.mubr.bf16.mxu1 %v17994_v37  ;;  %v16289_v51 = vadd.f32 %v17996_v59, %v6502_v38  ;;  %17997 = vst [vmem:[#allocation63_spill] sm:$0xff] %v16291_v16  ;;  %v16293_v27 = vmul.f32 1.050701, %v5230_v60  ;;  %v18001_v59 = vld [vmem:[#allocation31_spill] sm:$0xff]  ;;  %v18003_v16 = vld [vmem:[#allocation38_spill] sm:$0xff] }
 0x4dd   :  { %8590 = vmatprep.mubr.bf16.mxu0 %v17995_v29  ;;  %v10709_v49 = vadd.f32 -1.0, %v13765_v23 }
 0x4de   :  { %17998 = vst [vmem:[#allocation76_spill] sm:$0xff] %v16293_v27  ;;  %v13767_v7 = vpop.eup %13766  ;;  %v12132_v54 = vpop.f32.mrb[40].mxu1  ;;  %v16296_v40 = vadd.f32 %v17999_v62, %v6505_v3 }
 0x4df   :  { %v12324_v30 = vpop.f32.mrb[72].mxu0  ;;  %v5215_v44 = vmul.f32 1.6732632, %v10709_v49  ;;  %v10710_v41 = vadd.f32 -1.0, %v13767_v7  ;;  %v12133_v63 = vpop.f32.mrb[41].mxu1 }
 0x4e0   :  { %v12325_v11 = vpop.f32.mrb[73].mxu0  ;;  %v12134_v57 = vadd.f32 %v12133_v63, %v12132_v54  ;;  %v12135_v21 = vpop.f32.mrb[42].mxu1  ;;  %v18004_v54 = vld [vmem:[#allocation28_spill] sm:$0xff] }
 0x4e1   :  { %v16301_v35 = vadd.f32 %v12325_v11, %v12324_v30  ;;  %v12327_v12 = vpop.f32.mrb[74].mxu0  ;;  %v5231_v38 = vsel %vm5135_vm12, %v16236_v22, %v5215_v44  ;;  %v5216_v23 = vmul.f32 1.6732632, %v10710_v41  ;;  %v12136_v60 = vpop.f32.mrb[43].mxu1  ;;  %v18007_v22 = vld [vmem:[#allocation32_spill] sm:$0xff]  ;;  %v18008_v41 = vld [vmem:[#allocation35_spill] sm:$0xff] }
 0x4e2   :  { %v12328_v3 = vpop.f32.mrb[75].mxu0  ;;  %v6510_v62 = vadd.f32 %v12134_v57, %v18001_v59  ;;  %v12137_v49 = vadd.f32 %v12136_v60, %v12135_v21  ;;  %v16311_v30 = vmul.f32 1.050701, %v5231_v38  ;;  %v18009_v11 = vld [vmem:[#allocation43_spill] sm:$0xff]  ;;  %v18011_v60 = vld [vmem:[#allocation40_spill] sm:$0xff]  ;;  %v17540_v59 = vrot.slane %v16063_v24, 7 }
 0x4e3   :  { %18000 = vst [vmem:[#allocation71_spill] sm:$0xff] %v16301_v35  ;;  %v16306_v7 = vadd.f32 %v12328_v3, %v12327_v12  ;;  %v5232_v17 = vsel %vm5136_vm13, %v16245_v4, %v5216_v23  ;;  %7707 = vmatmul.mubr.bf16.gmra.mrb[148].mxu1 %v18003_v16  ;;  %v18010_v57 = vld [vmem:[#allocation39_spill] sm:$0xff] }
 0x4e4   :  { %8591 = vmatmul.mubr.bf16.gmra.mrb[180].mxu0 %v18004_v54  ;;  %18005 = vst [vmem:[#allocation78_spill] sm:$0xff] %v16311_v30  ;;  %v16313_v63 = vmul.f32 1.050701, %v5232_v17  ;;  %v6513_v44 = vadd.f32 %v12137_v49, %v18007_v22  ;;  %7714 = vmatprep.mubr.bf16.mxu1 %v18008_v41  ;;  %v16319_v21 = vadd.f32 %v18010_v57, %v6510_v62  ;;  %v18013_v57 = vld [vmem:[#allocation33_spill] sm:$0xff]  ;;  %v18015_v30 = vld [vmem:[#allocation66_spill] sm:$0xff]  ;;  %v18036_v35 = vld [vmem:[#allocation51_spill] sm:$0xff] }
 0x4e5   :  { %18002 = vst [vmem:[#allocation27_spill] sm:$0xff] %v16306_v7  ;;  %8598 = vmatprep.mubr.bf16.mxu0 %v18009_v11 }
 0x4e6   :  { %18006 = vst [vmem:[#allocation72_spill] sm:$0xff] %v16313_v63  ;;  %v12138_v12 = vpop.f32.mrb[44].mxu1  ;;  %v16324_v3 = vadd.f32 %v18011_v60, %v6513_v44  ;;  %v18016_v44 = vld [vmem:[#allocation45_spill] sm:$0xff]  ;;  %v18017_v60 = vrot.slane %v15751_v43, 7 }
 0x4e7   :  { %v12330_v23 = vpop.f32.mrb[76].mxu0  ;;  %v12139_v38 = vpop.f32.mrb[45].mxu1 }
 0x4e8   :  { %v12331_v17 = vpop.f32.mrb[77].mxu0  ;;  %v12140_v49 = vadd.f32 %v12139_v38, %v12138_v12  ;;  %v12141_v27 = vpop.f32.mrb[46].mxu1  ;;  %v16339_v12 = vsel %vm1145_vm5, %v18017_v60, %v17540_v59 }
 0x4e9   :  { %v16327_v22 = vadd.f32 %v12331_v17, %v12330_v23  ;;  %v12333_v34 = vpop.f32.mrb[78].mxu0  ;;  %v12142_v1 = vpop.f32.mrb[47].mxu1  ;;  %18018 = vst [vmem:[#allocation37_spill] sm:$0xff] %v16339_v12  ;;  %v18019_v23 = vld [vmem:[#allocation34_spill] sm:$0xff] }
 0x4ea   :  { %v12334_v62 = vpop.f32.mrb[79].mxu0  ;;  %v6518_v56 = vadd.f32 %v12140_v49, %v18013_v57  ;;  %v12143_v7 = vadd.f32 %v12142_v1, %v12141_v27  ;;  %v18020_v17 = vld [vmem:[#allocation46_spill] sm:$0xff]  ;;  %v17543_v49 = vrot.slane %v16063_v24, 6 }
 0x4eb   :  { %18012 = vst [vmem:[#allocation80_spill] sm:$0xff] %v16327_v22  ;;  %v16330_v4 = vadd.f32 %v12334_v62, %v12333_v34  ;;  %7715 = vmatmul.mubr.bf16.gmra.mrb[152].mxu1 %v18015_v30  ;;  %v18033_v30 = vld [vmem:[#allocation19_spill] sm:$0xff] }
 0x4ec   :  { %8599 = vmatmul.mubr.bf16.gmra.mrb[184].mxu0 %v18016_v44  ;;  %v6521_v38 = vadd.f32 %v12143_v7, %v18019_v23  ;;  %7722 = vmatprep.mubr.bf16.mxu1 %v16339_v12  ;;  %v16345_v34 = vadd.f32 %v16096_v47, %v6518_v56  ;;  %v18024_v44 = vrot.slane %v15751_v43, 6 }
 0x4ed   :  { %18014 = vst [vmem:[#allocation89_spill] sm:$0xff] %v16330_v4  ;;  %8606 = vmatprep.mubr.bf16.mxu0 %v18020_v17  ;;  %v18022_v17 = vld [vmem:[#allocation30_spill] sm:$0xff] }
 0x4ee   :  { %v12144_v1 = vpop.f32.mrb[48].mxu1  ;;  %v16349_v62 = vadd.f32 %v16108_v26, %v6521_v38  ;;  %v16361_v26 = vsel %vm1075_vm6, %v18024_v44, %v17543_v49  ;;  %v18027_v38 = vld [vmem:[#allocation59_spill] sm:$0xff] }
 0x4ef   :  { %v12336_v27 = vpop.f32.mrb[80].mxu0  ;;  %v12145_v57 = vpop.f32.mrb[49].mxu1  ;;  %18025 = vst [vmem:[#allocation21_spill] sm:$0xff] %v16361_v26 }
 0x4f0   :  { %v12337_v63 = vpop.f32.mrb[81].mxu0  ;;  %v12146_v60 = vadd.f32 %v12145_v57, %v12144_v1  ;;  %v12147_v7 = vpop.f32.mrb[50].mxu1  ;;  %v18029_v57 = vld [vmem:[#allocation47_spill] sm:$0xff] }
 0x4f1   :  { %v16351_v59 = vadd.f32 %v12337_v63, %v12336_v27  ;;  %v12339_v23 = vpop.f32.mrb[82].mxu0  ;;  %v12148_v4 = vpop.f32.mrb[51].mxu1  ;;  %v18026_v63 = vld [vmem:[#allocation48_spill] sm:$0xff] }
 0x4f2   :  { %v12340_v22 = vpop.f32.mrb[83].mxu0  ;;  %v6526_v12 = vadd.f32 %v12146_v60, %v18022_v17  ;;  %v12149_v47 = vadd.f32 %v12148_v4, %v12147_v7  ;;  %v18028_v27 = vld [vmem:[#allocation64_spill] sm:$0xff] }
 0x4f3   :  { %18021 = vst [vmem:[#allocation73_spill] sm:$0xff] %v16351_v59  ;;  %v16354_v56 = vadd.f32 %v12340_v22, %v12339_v23  ;;  %7723 = vmatmul.mubr.bf16.gmra.mrb[156].mxu1 %v16361_v26  ;;  %v13626_v59 = vld [vmem:[#allocation8 + $0xdc8] sm:$0xff]   ;;  %v13635_v26 = vld [vmem:[#allocation8 + $0xf00] sm:$0xff]  }
 0x4f4   :  { %8607 = vmatmul.mubr.bf16.gmra.mrb[188].mxu0 %v18026_v63  ;;  %v6529_v1 = vadd.f32 %v12149_v47, %v18027_v38  ;;  %8453 = vmatprep.mubr.bf16.mxu1 %v18028_v27  ;;  %v16369_v4 = vadd.f32 %v16129_v9, %v6526_v12  ;;  %v13625_v47 = vld [vmem:[#allocation8 + $0xd80] sm:$0xff]  }
 0x4f5   :  { %18023 = vst [vmem:[#allocation36_spill] sm:$0xff] %v16354_v56  ;;  %9337 = vmatprep.mubr.bf16.mxu0 %v18029_v57  ;;  %v18031_v57 = vld [vmem:[#allocation67_spill] sm:$0xff] }
 0x4f6   :  { %v12150_v22 = vpop.f32.mrb[52].mxu1  ;;  %v16372_v43 = vadd.f32 %v16143_v28, %v6529_v1  ;;  %v13827_v28 = vld [vmem:[#allocation2 + $0x38] sm:$0xff]  ;;  %v13636_v1 = vld [vmem:[#allocation8 + $0xf48] sm:$0xff]  }
 0x4f7   :  { %v12342_v17 = vpop.f32.mrb[84].mxu0  ;;  %v12151_v44 = vpop.f32.mrb[53].mxu1 }
 0x4f8   :  { %v12343_v60 = vpop.f32.mrb[85].mxu0  ;;  %v12152_v7 = vadd.f32 %v12151_v44, %v12150_v22  ;;  %v12153_v49 = vpop.f32.mrb[54].mxu1  ;;  %v18034_v22 = vld [vmem:[#allocation41_spill] sm:$0xff] }
 0x4f9   :  { %v16374_v23 = vadd.f32 %v12343_v60, %v12342_v17  ;;  %v12345_v56 = vpop.f32.mrb[86].mxu0  ;;  %v12154_v38 = vpop.f32.mrb[55].mxu1  ;;  %v18035_v44 = vld [vmem:[#allocation65_spill] sm:$0xff]  ;;  %v13627_v60 = vld [vmem:[#allocation8 + $0xd88] sm:$0xff]  }
 0x4fa   :  { %v12346_v27 = vpop.f32.mrb[87].mxu0  ;;  %v6534_v63 = vadd.f32 %v12152_v7, %v18031_v57  ;;  %v12155_v9 = vadd.f32 %v12154_v38, %v12153_v49  ;;  %v13628_v49 = vld [vmem:[#allocation8 + $0xdd0] sm:$0xff]  }
 0x4fb   :  { %18030 = vst [vmem:[#allocation31_spill] sm:$0xff] %v16374_v23  ;;  %v16377_v12 = vadd.f32 %v12346_v27, %v12345_v56  ;;  %8454 = vmatmul.mubr.bf16.vlgmr.msra.gmra.mrb[160].mxu1 %v18033_v30  ;;  %v13637_v30 = vld [vmem:[#allocation8 + $0xf08] sm:$0xff]  }
 0x4fc   :  { %9338 = vmatmul.mubr.bf16.vlgmr.msra.gmra.mrb[192].mxu0 %v13827_v28  ;;  %v6537_v17 = vadd.f32 %v12155_v9, %v18034_v22  ;;  %12745 = vmatpush3.bf16.msra.mxu1 %v13625_v47  ;;  %v16383_v23 = vadd.f32 %v16166_v39, %v6534_v63  ;;  %v13640_v22 = vld [vmem:[#allocation8 + $0xf50] sm:$0xff]  }
 0x4fd   :  { %18032 = vst [vmem:[#allocation38_spill] sm:$0xff] %v16377_v12  ;;  %8461 = vmatprep.mubr.bf16.mxu1 %v18035_v44  ;;  %9345 = vmatprep.mubr.bf16.mxu0 %v18036_v35  ;;  %v18038_v12 = vld [vmem:[#allocation74_spill] sm:$0xff] }
 0x4fe   :  { %12746 = vmatprep.subr.bf16.mxu1 %v13626_v59  ;;  %v12156_v56 = vpop.f32.mrb[56].mxu1  ;;  %12937 = vmatpush3.bf16.msra.mxu0 %v13635_v26  ;;  %v16387_v38 = vadd.f32 %v16171_v6, %v6537_v17  ;;  %v13629_v59 = vld [vmem:[#allocation8 + $0xd90] sm:$0xff]   ;;  %v13630_v6 = vld [vmem:[#allocation8 + $0xdd8] sm:$0xff]  }
 0x4ff   :  { %v12348_v7 = vpop.f32.mrb[88].mxu0  ;;  %v12157_v27 = vpop.f32.mrb[57].mxu1  ;;  %12938 = vmatprep.subr.bf16.mxu0 %v13636_v1  ;;  %v13641_v17 = vld [vmem:[#allocation8 + $0xf10] sm:$0xff]   ;;  %v18040_v1 = vld [vmem:[#allocation22_spill] sm:$0xff] }
 0x500   :  { %v12349_v57 = vpop.f32.mrb[89].mxu0  ;;  %v12158_v47 = vadd.f32 %v12157_v27, %v12156_v56  ;;  %v12159_v28 = vpop.f32.mrb[58].mxu1  ;;  %12747 = vmatpush3.bf16.msra.mxu1 %v13627_v60  ;;  %v13828_v56 = vld [vmem:[#allocation2 + $0x48] sm:$0xff] }
 0x501   :  { %v16389_v9 = vadd.f32 %v12349_v57, %v12348_v7  ;;  %v12351_v39 = vpop.f32.mrb[90].mxu0  ;;  %v12160_v63 = vpop.f32.mrb[59].mxu1  ;;  %12748 = vmatprep.subr.bf16.mxu1 %v13628_v49  ;;  %v13642_v7 = vld [vmem:[#allocation8 + $0xf58] sm:$0xff]   ;;  %v18041_v27 = vld [vmem:[#allocation68_spill] sm:$0xff] }
 0x502   :  { %v12352_v35 = vpop.f32.mrb[91].mxu0  ;;  %v6542_v26 = vadd.f32 %v12158_v47, %v18038_v12  ;;  %v12161_v44 = vadd.f32 %v12160_v63, %v12159_v28  ;;  %12939 = vmatpush3.bf16.msra.mxu0 %v13637_v30  ;;  %v18042_v57 = vld [vmem:[#allocation49_spill] sm:$0xff]  ;;  %v18043_v49 = vld [vmem:[#allocation56_spill] sm:$0xff]  ;;  %v13632_v28 = vld [vmem:[#allocation8 + $0xde0] sm:$0xff]  }
 0x503   :  { %18037 = vst [vmem:[#allocation28_spill] sm:$0xff] %v16389_v9  ;;  %v16392_v11 = vadd.f32 %v12352_v35, %v12351_v39  ;;  %8462 = vmatmul.mubr.bf16.gmra.mrb[164].mxu1 %v18040_v1  ;;  %v13631_v12 = vld [vmem:[#allocation8 + $0xd98] sm:$0xff]   ;;  %12940 = vmatprep.subr.bf16.mxu0 %v13640_v22  ;;  %v13633_v22 = vld [vmem:[#allocation8 + $0xda0] sm:$0xff]  }
 0x504   :  { %9346 = vmatmul.mubr.bf16.gmra.mrb[196].mxu0 %v13828_v56  ;;  %v6545_v60 = vadd.f32 %v12161_v44, %v18041_v27  ;;  %8469 = vmatprep.mubr.bf16.mxu1 %v18042_v57  ;;  %v16399_v9 = vadd.f32 %v16192_v46, %v6542_v26  ;;  %v13643_v39 = vld [vmem:[#allocation8 + $0xf18] sm:$0xff]  }
 0x505   :  { %18039 = vst [vmem:[#allocation32_spill] sm:$0xff] %v16392_v11  ;;  %9353 = vmatprep.mubr.bf16.mxu0 %v18043_v49  ;;  %12749 = vmatpush3.bf16.msra.mxu1 %v13629_v59  ;;  %v13646_v11 = vld [vmem:[#allocation8 + $0xf60] sm:$0xff]  }
 0x506   :  { %v12162_v47 = vpop.f32.mrb[60].mxu1  ;;  %12750 = vmatprep.subr.bf16.mxu1 %v13630_v6  ;;  %12941 = vmatpush3.bf16.msra.mxu0 %v13641_v17  ;;  %v16402_v63 = vadd.f32 %v16198_v2, %v6545_v60  ;;  %v18045_v6 = vld [vmem:[#allocation75_spill] sm:$0xff] }
 0x507   :  { %v12354_v30 = vpop.f32.mrb[92].mxu0  ;;  %v12163_v44 = vpop.f32.mrb[61].mxu1  ;;  %12942 = vmatprep.subr.bf16.mxu0 %v13642_v7  ;;  %v13638_v2 = vld [vmem:[#allocation8 + $0xde8] sm:$0xff]   ;;  %v13647_v60 = vld [vmem:[#allocation8 + $0xf20] sm:$0xff]  }
 0x508   :  { %v12355_v35 = vpop.f32.mrb[93].mxu0  ;;  %v12164_v56 = vadd.f32 %v12163_v44, %v12162_v47  ;;  %v12165_v46 = vpop.f32.mrb[62].mxu1  ;;  %v18047_v7 = vld [vmem:[#allocation52_spill] sm:$0xff]  ;;  %v13829_v47 = vld [vmem:[#allocation2 + $0x58] sm:$0xff] }
 0x509   :  { %v16404_v27 = vadd.f32 %v12355_v35, %v12354_v30  ;;  %v12357_v26 = vpop.f32.mrb[94].mxu0  ;;  %v12166_v59 = vpop.f32.mrb[63].mxu1  ;;  %12751 = vmatpush3.bf16.msra.mxu1 %v13631_v12  ;;  %v13648_v30 = vld [vmem:[#allocation8 + $0xf68] sm:$0xff]   ;;  %v18048_v44 = vld [vmem:[#allocation77_spill] sm:$0xff] }
 0x50a   :  { %v12358_v49 = vpop.f32.mrb[95].mxu0  ;;  %v6550_v57 = vadd.f32 %v12164_v56, %v18045_v6  ;;  %v12167_v17 = vadd.f32 %v12166_v59, %v12165_v46  ;;  %12752 = vmatprep.subr.bf16.mxu1 %v13632_v28  ;;  %12943 = vmatpush3.bf16.msra.mxu0 %v13643_v39  ;;  %v18050_v12 = vld [vmem:[#allocation57_spill] sm:$0xff]  ;;  %v13639_v46 = vld [vmem:[#allocation8 + $0xda8] sm:$0xff]  }
 0x50b   :  { %18044 = vst [vmem:[#allocation35_spill] sm:$0xff] %v16404_v27  ;;  %v16407_v1 = vadd.f32 %v12358_v49, %v12357_v26  ;;  %8470 = vmatmul.mubr.bf16.gmra.mrb[168].mxu1 %v18047_v7  ;;  %v18049_v27 = vld [vmem:[#allocation54_spill] sm:$0xff]  ;;  %12944 = vmatprep.subr.bf16.mxu0 %v13646_v11  ;;  %v13644_v26 = vld [vmem:[#allocation8 + $0xdf0] sm:$0xff]   ;;  %v13649_v59 = vld [vmem:[#allocation8 + $0xf28] sm:$0xff]  }
 0x50c   :  { %9354 = vmatmul.mubr.bf16.gmra.mrb[200].mxu0 %v13829_v47  ;;  %v6553_v35 = vadd.f32 %v12167_v17, %v18048_v44  ;;  %8477 = vmatprep.mubr.bf16.mxu1 %v18049_v27  ;;  %v16414_v56 = vadd.f32 %v16220_v61, %v6550_v57  ;;  %v13645_v11 = vld [vmem:[#allocation8 + $0xdb0] sm:$0xff]  }
 0x50d   :  { %18046 = vst [vmem:[#allocation39_spill] sm:$0xff] %v16407_v1  ;;  %9361 = vmatprep.mubr.bf16.mxu0 %v18050_v12  ;;  %12753 = vmatpush3.bf16.msra.mxu1 %v13633_v22  ;;  %v13652_v1 = vld [vmem:[#allocation8 + $0xf70] sm:$0xff]  }
 0x50e   :  { %v12248_v28 = vpop.f32.mrb[64].mxu1  ;;  %12754 = vmatprep.subr.bf16.mxu1 %v13638_v2  ;;  %12945 = vmatpush3.bf16.msra.mxu0 %v13647_v60  ;;  %v16417_v49 = vadd.f32 %v16227_v55, %v6553_v35  ;;  %v13650_v55 = vld [vmem:[#allocation8 + $0xdf8] sm:$0xff]   ;;  %v18052_v35 = vld [vmem:[#allocation55_spill] sm:$0xff] }
 0x50f   :  { %v12440_v39 = vpop.f32.mrb[96].mxu0  ;;  %v12249_v6 = vpop.f32.mrb[65].mxu1  ;;  %12946 = vmatprep.subr.bf16.mxu0 %v13648_v30  ;;  %v13653_v30 = vld [vmem:[#allocation8 + $0xf30] sm:$0xff]  }
 0x510   :  { %v12441_v17 = vpop.f32.mrb[97].mxu0  ;;  %v12250_v47 = vadd.f32 %v12249_v6, %v12248_v28  ;;  %v12251_v44 = vpop.f32.mrb[66].mxu1  ;;  %v13830_v28 = vld [vmem:[#allocation2 + $0x68] sm:$0xff] }
 0x511   :  { %v16419_v12 = vadd.f32 %v12441_v17, %v12440_v39  ;;  %v12443_v61 = vpop.f32.mrb[98].mxu0  ;;  %v12252_v57 = vpop.f32.mrb[67].mxu1  ;;  %12755 = vmatpush3.bf16.msra.mxu1 %v13639_v46  ;;  %v13654_v39 = vld [vmem:[#allocation8 + $0xf78] sm:$0xff]   ;;  %v18054_v46 = vld [vmem:[#allocation83_spill] sm:$0xff] }
 0x512   :  { %v12444_v22 = vpop.f32.mrb[99].mxu0  ;;  %v16422_v2 = vadd.f32 %v12250_v47, %v16267_v33  ;;  %v12253_v60 = vadd.f32 %v12252_v57, %v12251_v44  ;;  %12756 = vmatprep.subr.bf16.mxu1 %v13644_v26  ;;  %12947 = vmatpush3.bf16.msra.mxu0 %v13649_v59  ;;  %v18055_v17 = vld [vmem:[#allocation61_spill] sm:$0xff]  ;;  %v13656_v44 = vld [vmem:[#allocation8 + $0xec0] sm:$0xff]  }
 0x513   :  { %v16424_v27 = vadd.f32 %v12444_v22, %v12443_v61  ;;  %8478 = vmatmul.mubr.bf16.gmra.mrb[172].mxu1 %v18052_v35  ;;  %v13651_v33 = vld [vmem:[#allocation8 + $0xdb8] sm:$0xff]   ;;  %12948 = vmatprep.subr.bf16.mxu0 %v13652_v1 }
 0x514   :  { %18051 = vst [vmem:[#allocation40_spill] sm:$0xff] %v16422_v2  ;;  %9362 = vmatmul.mubr.bf16.gmra.mrb[204].mxu0 %v13830_v28  ;;  %v16428_v6 = vadd.f32 %v12253_v60, %v16272_v50  ;;  %8485 = vmatprep.mubr.bf16.mxu1 %v18054_v46  ;;  %v13655_v59 = vld [vmem:[#allocation8 + $0xf38] sm:$0xff]  }
 0x515   :  { %9369 = vmatprep.mubr.bf16.mxu0 %v18055_v17  ;;  %12757 = vmatpush3.bf16.msra.mxu1 %v13645_v11 }
 0x516   :  { %18053 = vst [vmem:[#allocation33_spill] sm:$0xff] %v16428_v6  ;;  %v12254_v47 = vpop.f32.mrb[68].mxu1  ;;  %12758 = vmatprep.subr.bf16.mxu1 %v13650_v55  ;;  %12949 = vmatpush3.bf16.msra.mxu0 %v13653_v30  ;;  %v18056_v55 = vld [vmem:[#allocation85_spill] sm:$0xff] }
 0x517   :  { %v12446_v26 = vpop.f32.mrb[100].mxu0  ;;  %v12255_v61 = vpop.f32.mrb[69].mxu1  ;;  %12950 = vmatprep.subr.bf16.mxu0 %v13654_v39  ;;  %v13831_v30 = vld [vmem:[#allocation2 + $0x78] sm:$0xff] }
 0x518   :  { %v12447_v57 = vpop.f32.mrb[101].mxu0  ;;  %v12256_v22 = vadd.f32 %v12255_v61, %v12254_v47  ;;  %v12257_v50 = vpop.f32.mrb[70].mxu1  ;;  %v18058_v47 = vld [vmem:[#allocation87_spill] sm:$0xff] }
 0x519   :  { %v16432_v28 = vadd.f32 %v12447_v57, %v12446_v26  ;;  %v12449_v60 = vpop.f32.mrb[102].mxu0  ;;  %v12258_v6 = vpop.f32.mrb[71].mxu1  ;;  %12759 = vmatpush3.bf16.msra.mxu1 %v13651_v33  ;;  %v18059_v26 = vld [vmem:[#allocation60_spill] sm:$0xff] }
 0x51a   :  { %v12450_v2 = vpop.f32.mrb[103].mxu0  ;;  %v16435_v11 = vadd.f32 %v12256_v22, %v16289_v51  ;;  %v12259_v1 = vadd.f32 %v12258_v6, %v12257_v50  ;;  %12951 = vmatpush3.bf16.msra.mxu0 %v13655_v59  ;;  %12872 = vmatprep.subr.bf16.mxu1 %v13656_v44 }
 0x51b   :  { %v16437_v17 = vadd.f32 %v12450_v2, %v12449_v60  ;;  %8486 = vmatmul.mubr.bf16.gmra.mrb[176].mxu1 %v18056_v55 }
 0x51c   :  { %9370 = vmatmul.mubr.bf16.gmra.mrb[208].mxu0 %v13831_v30  ;;  %v16441_v39 = vadd.f32 %v12259_v1, %v16296_v40  ;;  %8493 = vmatprep.mubr.bf16.mxu1 %v18058_v47  ;;  %v13832_v30 = vld [vmem:[#allocation2 + $0x88] sm:$0xff] }
 0x51d   :  { %9377 = vmatprep.mubr.bf16.mxu0 %v18059_v26 }
 0x51e   :  { %18057 = vst [vmem:[#allocation34_spill] sm:$0xff] %v16441_v39  ;;  %v12260_v33 = vpop.f32.mrb[72].mxu1  ;;  %v18063_v39 = vld [vmem:[#allocation58_spill] sm:$0xff] }
 0x51f   :  { %v12452_v61 = vpop.f32.mrb[104].mxu0  ;;  %v12261_v51 = vpop.f32.mrb[73].mxu1 }
 0x520   :  { %v12453_v57 = vpop.f32.mrb[105].mxu0  ;;  %v12262_v6 = vadd.f32 %v12261_v51, %v12260_v33  ;;  %v12263_v59 = vpop.f32.mrb[74].mxu1  ;;  %v16458_v33 = vld [vmem:[#allocation2 + $0xa8] sm:$0xff] }
 0x521   :  { %v16445_v2 = vadd.f32 %v12453_v57, %v12452_v61  ;;  %v12455_v44 = vpop.f32.mrb[106].mxu0  ;;  %v12264_v22 = vpop.f32.mrb[75].mxu1  ;;  %v5306_v61 = vld [vmem:[#allocation2 + $0xb8] sm:$0x1] }
 0x522   :  { %v12456_v50 = vpop.f32.mrb[107].mxu0  ;;  %v16448_v60 = vadd.f32 %v12262_v6, %v16319_v21  ;;  %v12265_v40 = vadd.f32 %v12264_v22, %v12263_v59  ;;  %v17548_v59 = vrot.slane %v16458_v33, 3 }
 0x523   :  { %v16450_v1 = vadd.f32 %v12456_v50, %v12455_v44  ;;  %8494 = vmatmul.mubr.bf16.gmra.mrb[180].mxu1 %v15808_v5  ;;  %v5340_v44 = vrot.slane %v5306_v61, 1  ;;  %v13833_v5 = vld [vmem:[#allocation2 + $0x98] sm:$0xff]  ;;  %v18064_v61 = vrot.slane %v16063_v24, 3 }
 0x524   :  { %18060 = vst [vmem:[#allocation30_spill] sm:$0xff] %v16448_v60  ;;  %9378 = vmatmul.mubr.bf16.gmra.mrb[212].mxu0 %v13832_v30  ;;  %v16454_v26 = vadd.f32 %v12265_v40, %v16324_v3  ;;  %8501 = vmatprep.mubr.bf16.mxu1 %v16091_v53 }
 0x525   :  { %9385 = vmatprep.mubr.bf16.mxu0 %v16103_v36 }
 0x526   :  { %18061 = vst [vmem:[#allocation59_spill] sm:$0xff] %v16454_v26  ;;  %v12266_v51 = vpop.f32.mrb[76].mxu1 }
 0x527   :  { %v12458_v21 = vpop.f32.mrb[108].mxu0  ;;  %v12267_v57 = vpop.f32.mrb[77].mxu1 }
 0x528   :  { %v12459_v6 = vpop.f32.mrb[109].mxu0  ;;  %v12268_v22 = vadd.f32 %v12267_v57, %v12266_v51  ;;  %v12269_v30 = vpop.f32.mrb[78].mxu1  ;;  %v16474_v51 = vsel %vm865_vm3, %v18064_v61, %v17548_v59 }
 0x529   :  { %v16461_v50 = vadd.f32 %v12459_v6, %v12458_v21  ;;  %v12461_v3 = vpop.f32.mrb[110].mxu0  ;;  %v12270_v40 = vpop.f32.mrb[79].mxu1  ;;  %v18065_v21 = vld [vmem:[#allocation24_spill] sm:$0xff] }
 0x52a   :  { %v12462_v26 = vpop.f32.mrb[111].mxu0  ;;  %v16464_v60 = vadd.f32 %v12268_v22, %v16345_v34  ;;  %v12271_v36 = vadd.f32 %v12270_v40, %v12269_v30  ;;  %v18066_v57 = vrot.slane %v18065_v21, 1 }
 0x52b   :  { %v16466_v53 = vadd.f32 %v12462_v26, %v12461_v3  ;;  %8502 = vmatmul.mubr.bf16.gmra.mrb[184].mxu1 %v18063_v39 }
 0x52c   :  { %18062 = vst [vmem:[#allocation64_spill] sm:$0xff] %v16464_v60  ;;  %9386 = vmatmul.mubr.bf16.gmra.mrb[216].mxu0 %v13833_v5  ;;  %v5341_v6 = vsel %vm613_vm0, %v18066_v57, %v5340_v44  ;;  %v16480_v34 = vadd.f32 %v12271_v36, %v16349_v62  ;;  %8509 = vmatprep.mubr.bf16.mxu1 %v16474_v51  ;;  %v17549_v5 = vrot.slane %v16458_v33, 2  ;;  %v18068_v57 = vrot.slane %v16063_v24, 2 }
 0x52d   :  { %9393 = vmatprep.mubr.bf16.mxu0 %v5341_v6 }
 0x52e   :  { %v12272_v26 = vpop.f32.mrb[80].mxu1  ;;  %v16496_v6 = vsel %vm795_vm4, %v18068_v57, %v17549_v5 }
 0x52f   :  { %v12464_v22 = vpop.f32.mrb[112].mxu0  ;;  %v12273_v30 = vpop.f32.mrb[81].mxu1 }
 0x530   :  { %v12465_v3 = vpop.f32.mrb[113].mxu0  ;;  %v12274_v40 = vadd.f32 %v12273_v30, %v12272_v26  ;;  %v12275_v61 = vpop.f32.mrb[82].mxu1 }
 0x531   :  { %v16484_v60 = vadd.f32 %v12465_v3, %v12464_v22  ;;  %v12467_v59 = vpop.f32.mrb[114].mxu0  ;;  %v12276_v21 = vpop.f32.mrb[83].mxu1 }
 0x532   :  { %v12468_v39 = vpop.f32.mrb[115].mxu0  ;;  %v16487_v44 = vadd.f32 %v12274_v40, %v16369_v4  ;;  %v12277_v62 = vadd.f32 %v12276_v21, %v12275_v61  ;;  %v13657_v21 = vld [vmem:[#allocation8 + $0xe80] sm:$0xff]  }
 0x533   :  { %v16489_v36 = vadd.f32 %v12468_v39, %v12467_v59  ;;  %8510 = vmatmul.mubr.bf16.gmra.mrb[188].mxu1 %v16496_v6 }
 0x534   :  { %18067 = vst [vmem:[#allocation47_spill] sm:$0xff] %v16487_v44  ;;  %9394 = vmatmul.mubr.bf16.gmra.mrb[220].mxu0 %v16458_v33  ;;  %v16501_v26 = vadd.f32 %v12277_v62, %v16372_v43  ;;  %8647 = vmatprep.mubr.bf16.mxu1 %v15851_v8  ;;  %v13658_v44 = vld [vmem:[#allocation8 + $0xec8] sm:$0xff]  }
 0x535   :  { %9531 = vmatprep.mubr.bf16.mxu0 %v15439_v25  ;;  %v18071_v25 = vld [vmem:[#allocation25_spill] sm:$0xff] }
 0x536   :  { %18069 = vst [vmem:[#allocation67_spill] sm:$0xff] %v16501_v26  ;;  %v12278_v4 = vpop.f32.mrb[84].mxu1  ;;  %v13660_v26 = vld [vmem:[#allocation8 + $0xed0] sm:$0xff]  }
 0x537   :  { %v12470_v39 = vpop.f32.mrb[116].mxu0  ;;  %v12279_v59 = vpop.f32.mrb[85].mxu1 }
 0x538   :  { %v12471_v22 = vpop.f32.mrb[117].mxu0  ;;  %v12280_v30 = vadd.f32 %v12279_v59, %v12278_v4  ;;  %v12281_v40 = vpop.f32.mrb[86].mxu1  ;;  %v13659_v59 = vld [vmem:[#allocation8 + $0xe88] sm:$0xff]  }
 0x539   :  { %v16505_v3 = vadd.f32 %v12471_v22, %v12470_v39  ;;  %v12473_v61 = vpop.f32.mrb[118].mxu0  ;;  %v12282_v57 = vpop.f32.mrb[87].mxu1  ;;  %v18073_v39 = vld [vmem:[#allocation29_spill] sm:$0xff]  ;;  %v18074_v22 = vld [vmem:[#allocation26_spill] sm:$0xff] }
 0x53a   :  { %v12474_v5 = vpop.f32.mrb[119].mxu0  ;;  %v16508_v43 = vadd.f32 %v12280_v30, %v16383_v23  ;;  %v12283_v62 = vadd.f32 %v12282_v57, %v12281_v40 }
 0x53b   :  { %v16510_v8 = vadd.f32 %v12474_v5, %v12473_v61  ;;  %8648 = vmatmul.mubr.bf16.vlgmr.msra.gmra.mrb[192].mxu1 %v15868_v18 }
 0x53c   :  { %18070 = vst [vmem:[#allocation19_spill] sm:$0xff] %v16508_v43  ;;  %9532 = vmatmul.mubr.bf16.vlgmr.msra.gmra.mrb[224].mxu0 %v18071_v25  ;;  %v16515_v4 = vadd.f32 %v12283_v62, %v16387_v38  ;;  %12873 = vmatpush3.bf16.msra.mxu1 %v13657_v21  ;;  %v13661_v21 = vld [vmem:[#allocation8 + $0xe90] sm:$0xff]   ;;  %v13662_v43 = vld [vmem:[#allocation8 + $0xed8] sm:$0xff]  }
 0x53d   :  { %8655 = vmatprep.mubr.bf16.mxu1 %v18073_v39  ;;  %9539 = vmatprep.mubr.bf16.mxu0 %v18074_v22 }
 0x53e   :  { %18072 = vst [vmem:[#allocation41_spill] sm:$0xff] %v16515_v4  ;;  %12874 = vmatprep.subr.bf16.mxu1 %v13658_v44  ;;  %v12284_v23 = vpop.f32.mrb[88].mxu1 }
 0x53f   :  { %v12476_v30 = vpop.f32.mrb[120].mxu0  ;;  %v12285_v40 = vpop.f32.mrb[89].mxu1 }
 0x540   :  { %v12477_v5 = vpop.f32.mrb[121].mxu0  ;;  %v12286_v61 = vadd.f32 %v12285_v40, %v12284_v23  ;;  %v12287_v18 = vpop.f32.mrb[90].mxu1  ;;  %12875 = vmatpush3.bf16.msra.mxu1 %v13659_v59 }
 0x541   :  { %v16519_v57 = vadd.f32 %v12477_v5, %v12476_v30  ;;  %v12479_v25 = vpop.f32.mrb[122].mxu0  ;;  %v12288_v38 = vpop.f32.mrb[91].mxu1  ;;  %12876 = vmatprep.subr.bf16.mxu1 %v13660_v26  ;;  %v13663_v26 = vld [vmem:[#allocation8 + $0xe98] sm:$0xff]   ;;  %v13664_v30 = vld [vmem:[#allocation8 + $0xee0] sm:$0xff]  }
 0x542   :  { %v12480_v62 = vpop.f32.mrb[123].mxu0  ;;  %v16522_v4 = vadd.f32 %v12286_v61, %v16399_v9  ;;  %v12289_v22 = vadd.f32 %v12288_v38, %v12287_v18 }
 0x543   :  { %v16524_v44 = vadd.f32 %v12480_v62, %v12479_v25  ;;  %8656 = vmatmul.mubr.bf16.gmra.mrb[196].mxu1 %v17892_v48  ;;  %v13665_v62 = vld [vmem:[#allocation8 + $0xea0] sm:$0xff]  }
 0x544   :  { %9540 = vmatmul.mubr.bf16.gmra.mrb[228].mxu0 %v15483_v10  ;;  %v16529_v23 = vadd.f32 %v12289_v22, %v16402_v63  ;;  %8663 = vmatprep.mubr.bf16.mxu1 %v17893_v19 }
 0x545   :  { %9547 = vmatprep.mubr.bf16.mxu0 %v15491_v58  ;;  %12877 = vmatpush3.bf16.msra.mxu1 %v13661_v21 }
 0x546   :  { %v12290_v59 = vpop.f32.mrb[92].mxu1  ;;  %12878 = vmatprep.subr.bf16.mxu1 %v13662_v43  ;;  %v13666_v43 = vld [vmem:[#allocation8 + $0xee8] sm:$0xff]  }
 0x547   :  { %v12482_v9 = vpop.f32.mrb[124].mxu0  ;;  %v12291_v40 = vpop.f32.mrb[93].mxu1 }
 0x548   :  { %v12483_v5 = vpop.f32.mrb[125].mxu0  ;;  %v12292_v61 = vadd.f32 %v12291_v40, %v12290_v59  ;;  %v12293_v25 = vpop.f32.mrb[94].mxu1  ;;  %v13668_v40 = vld [vmem:[#allocation8 + $0xef0] sm:$0xff]  }
 0x549   :  { %v16533_v18 = vadd.f32 %v12483_v5, %v12482_v9  ;;  %v12485_v10 = vpop.f32.mrb[126].mxu0  ;;  %v12294_v38 = vpop.f32.mrb[95].mxu1  ;;  %12879 = vmatpush3.bf16.msra.mxu1 %v13663_v26  ;;  %v13667_v26 = vld [vmem:[#allocation8 + $0xea8] sm:$0xff]  }
 0x54a   :  { %v12486_v63 = vpop.f32.mrb[127].mxu0  ;;  %v16536_v22 = vadd.f32 %v12292_v61, %v16414_v56  ;;  %v12295_v58 = vadd.f32 %v12294_v38, %v12293_v25  ;;  %12880 = vmatprep.subr.bf16.mxu1 %v13664_v30 }
 0x54b   :  { %v16538_v21 = vadd.f32 %v12486_v63, %v12485_v10  ;;  %8664 = vmatmul.mubr.bf16.gmra.mrb[200].mxu1 %v17894_v31  ;;  %v13669_v63 = vld [vmem:[#allocation8 + $0xeb0] sm:$0xff]  }
 0x54c   :  { %9548 = vmatmul.mubr.bf16.gmra.mrb[232].mxu0 %v15510_v42  ;;  %v16543_v59 = vadd.f32 %v12295_v58, %v16417_v49  ;;  %8671 = vmatprep.mubr.bf16.mxu1 %v17895_v14 }
 0x54d   :  { %9555 = vmatprep.mubr.bf16.mxu0 %v15515_v32  ;;  %12881 = vmatpush3.bf16.msra.mxu1 %v13665_v62 }
 0x54e   :  { %18075 = vst [vmem:[#allocation51_spill] sm:$0xff] %v16543_v59  ;;  %v12376_v56 = vpop.f32.mrb[96].mxu1  ;;  %12882 = vmatprep.subr.bf16.mxu1 %v13666_v43  ;;  %v13670_v59 = vld [vmem:[#allocation8 + $0xef8] sm:$0xff]  }
 0x54f   :  { %v12568_v9 = vpop.f32.mrb[128].mxu0  ;;  %v12377_v5 = vpop.f32.mrb[97].mxu1 }
 0x550   :  { %v12569_v30 = vpop.f32.mrb[129].mxu0  ;;  %v12378_v61 = vadd.f32 %v12377_v5, %v12376_v56  ;;  %v12379_v25 = vpop.f32.mrb[98].mxu1 }
 0x551   :  { %v16547_v10 = vadd.f32 %v12569_v30, %v12568_v9  ;;  %v12571_v42 = vpop.f32.mrb[130].mxu0  ;;  %v12380_v38 = vpop.f32.mrb[99].mxu1  ;;  %12883 = vmatpush3.bf16.msra.mxu1 %v13667_v26 }
 0x552   :  { %v12572_v49 = vpop.f32.mrb[131].mxu0  ;;  %v7475_v58 = vadd.f32 %v12378_v61, %v16250_v13  ;;  %v12381_v32 = vadd.f32 %v12380_v38, %v12379_v25  ;;  %12884 = vmatprep.subr.bf16.mxu1 %v13668_v40  ;;  %v13671_v13 = vld [vmem:[#allocation8 + $0xeb8] sm:$0xff]   ;;  %v13672_v40 = vld [vmem:[#allocation8 + $0xfc0] sm:$0xff]  }
 0x553   :  { %v16550_v62 = vadd.f32 %v12572_v49, %v12571_v42  ;;  %8672 = vmatmul.mubr.bf16.gmra.mrb[204].mxu1 %v17898_v52 }
 0x554   :  { %9556 = vmatmul.mubr.bf16.gmra.mrb[236].mxu0 %v15533_v0  ;;  %v7478_v43 = vadd.f32 %v12381_v32, %v16261_v45  ;;  %8679 = vmatprep.mubr.bf16.mxu1 %v17994_v37  ;;  %v16558_v26 = vadd.f32 %v16419_v12, %v7475_v58 }
 0x555   :  { %9563 = vmatprep.mubr.bf16.mxu0 %v17995_v29  ;;  %12885 = vmatpush3.bf16.msra.mxu1 %v13669_v63 }
 0x556   :  { %v12382_v56 = vpop.f32.mrb[100].mxu1  ;;  %12886 = vmatprep.subr.bf16.mxu1 %v13670_v59  ;;  %v16561_v5 = vadd.f32 %v16424_v27, %v7478_v43  ;;  %v18076_v59 = vld [vmem:[#allocation43_spill] sm:$0xff] }
 0x557   :  { %v12574_v9 = vpop.f32.mrb[132].mxu0  ;;  %v12383_v30 = vpop.f32.mrb[101].mxu1 }
 0x558   :  { %v12575_v0 = vpop.f32.mrb[133].mxu0  ;;  %v12384_v61 = vadd.f32 %v12383_v30, %v12382_v56  ;;  %v12385_v25 = vpop.f32.mrb[102].mxu1 }
 0x559   :  { %v16563_v45 = vadd.f32 %v12575_v0, %v12574_v9  ;;  %v12577_v42 = vpop.f32.mrb[134].mxu0  ;;  %v12386_v29 = vpop.f32.mrb[103].mxu1  ;;  %12887 = vmatpush3.bf16.msra.mxu1 %v13671_v13 }
 0x55a   :  { %v12578_v38 = vpop.f32.mrb[135].mxu0  ;;  %v7483_v12 = vadd.f32 %v12384_v61, %v16274_v15  ;;  %v12387_v49 = vadd.f32 %v12386_v29, %v12385_v25  ;;  %13000 = vmatprep.subr.bf16.mxu1 %v13672_v40  ;;  %v18078_v61 = vld [vmem:[#allocation71_spill] sm:$0xff] }
 0x55b   :  { %v16566_v63 = vadd.f32 %v12578_v38, %v12577_v42  ;;  %8680 = vmatmul.mubr.bf16.gmra.mrb[208].mxu1 %v18003_v16  ;;  %v18081_v38 = vld [vmem:[#allocation45_spill] sm:$0xff] }
 0x55c   :  { %9564 = vmatmul.mubr.bf16.gmra.mrb[240].mxu0 %v18004_v54  ;;  %v7486_v27 = vadd.f32 %v12387_v49, %v16282_v20  ;;  %8687 = vmatprep.mubr.bf16.mxu1 %v18008_v41  ;;  %v16574_v58 = vadd.f32 %v16432_v28, %v7483_v12  ;;  %v18080_v28 = vld [vmem:[#allocation66_spill] sm:$0xff]  ;;  %v18083_v49 = vld [vmem:[#allocation37_spill] sm:$0xff] }
 0x55d   :  { %9571 = vmatprep.mubr.bf16.mxu0 %v18076_v59  ;;  %v5582_v59 = vld [vmem:[#allocation2 + $0xb8] sm:$0x1f] }
 0x55e   :  { %v12388_v32 = vpop.f32.mrb[104].mxu1  ;;  %v16577_v15 = vadd.f32 %v16437_v17, %v7486_v27  ;;  %v18082_v17 = vld [vmem:[#allocation27_spill] sm:$0xff]  ;;  %v18084_v27 = vld [vmem:[#allocation46_spill] sm:$0xff] }
 0x55f   :  { %v12580_v43 = vpop.f32.mrb[136].mxu0  ;;  %v12389_v13 = vpop.f32.mrb[105].mxu1 }
 0x560   :  { %v12581_v56 = vpop.f32.mrb[137].mxu0  ;;  %v12390_v9 = vadd.f32 %v12389_v13, %v12388_v32  ;;  %v12391_v54 = vpop.f32.mrb[106].mxu1 }
 0x561   :  { %v16579_v40 = vadd.f32 %v12581_v56, %v12580_v43  ;;  %v12583_v30 = vpop.f32.mrb[138].mxu0  ;;  %v12392_v20 = vpop.f32.mrb[107].mxu1 }
 0x562   :  { %v12584_v0 = vpop.f32.mrb[139].mxu0  ;;  %v7491_v25 = vadd.f32 %v12390_v9, %v18078_v61  ;;  %v12393_v42 = vadd.f32 %v12392_v20, %v12391_v54  ;;  %v5616_v20 = vrot.slane %v5582_v59, 5 }
 0x563   :  { %18077 = vst [vmem:[#allocation74_spill] sm:$0xff] %v16579_v40  ;;  %v16582_v29 = vadd.f32 %v12584_v0, %v12583_v30  ;;  %8688 = vmatmul.mubr.bf16.gmra.mrb[212].mxu1 %v18080_v28  ;;  %v17550_v30 = vrot.slane %v16458_v33, 7 }
 0x564   :  { %9572 = vmatmul.mubr.bf16.gmra.mrb[244].mxu0 %v18081_v38  ;;  %v7494_v12 = vadd.f32 %v12393_v42, %v18082_v17  ;;  %8695 = vmatprep.mubr.bf16.mxu1 %v18083_v49  ;;  %v16590_v32 = vadd.f32 %v16445_v2, %v7491_v25  ;;  %v18088_v49 = vld [vmem:[#allocation21_spill] sm:$0xff] }
 0x565   :  { %18079 = vst [vmem:[#allocation68_spill] sm:$0xff] %v16582_v29  ;;  %9579 = vmatprep.mubr.bf16.mxu0 %v18084_v27  ;;  %v18086_v29 = vld [vmem:[#allocation80_spill] sm:$0xff] }
 0x566   :  { %v12394_v43 = vpop.f32.mrb[108].mxu1  ;;  %v16593_v56 = vadd.f32 %v16450_v1, %v7494_v12  ;;  %v18089_v1 = vld [vmem:[#allocation48_spill] sm:$0xff]  ;;  %v18090_v12 = vrot.slane %v16063_v24, 7 }
 0x567   :  { %v12586_v13 = vpop.f32.mrb[140].mxu0  ;;  %v12395_v9 = vpop.f32.mrb[109].mxu1 }
 0x568   :  { %v12587_v54 = vpop.f32.mrb[141].mxu0  ;;  %v12396_v0 = vadd.f32 %v12395_v9, %v12394_v43  ;;  %v12397_v42 = vpop.f32.mrb[110].mxu1  ;;  %v16608_v59 = vsel %vm1145_vm5, %v18090_v12, %v17550_v30  ;;  %v18092_v43 = vld [vmem:[#allocation44_spill] sm:$0xff] }
 0x569   :  { %v16596_v61 = vadd.f32 %v12587_v54, %v12586_v13  ;;  %v12589_v38 = vpop.f32.mrb[142].mxu0  ;;  %v12398_v17 = vpop.f32.mrb[111].mxu1  ;;  %18091 = vst [vmem:[#allocation52_spill] sm:$0xff] %v16608_v59  ;;  %v18093_v13 = vrot.slane %v18092_v43, 5  ;;  %v5513_v54 = vld [vmem:[#allocation2 + $0xb8] sm:$0xf] }
 0x56a   :  { %v12590_v27 = vpop.f32.mrb[143].mxu0  ;;  %v7499_v2 = vadd.f32 %v12396_v0, %v18086_v29  ;;  %v12399_v25 = vadd.f32 %v12398_v17, %v12397_v42  ;;  %v18094_v29 = vld [vmem:[#allocation89_spill] sm:$0xff] }
 0x56b   :  { %18085 = vst [vmem:[#allocation56_spill] sm:$0xff] %v16596_v61  ;;  %v16599_v40 = vadd.f32 %v12590_v27, %v12589_v38  ;;  %8696 = vmatmul.mubr.bf16.gmra.mrb[216].mxu1 %v18088_v49  ;;  %v5617_v9 = vsel %vm1005_vm1, %v18093_v13, %v5616_v20  ;;  %v17552_v38 = vrot.slane %v16458_v33, 6 }
 0x56c   :  { %9580 = vmatmul.mubr.bf16.gmra.mrb[248].mxu0 %v18089_v1  ;;  %v7502_v0 = vadd.f32 %v12399_v25, %v18094_v29  ;;  %8703 = vmatprep.mubr.bf16.mxu1 %v16608_v59  ;;  %v16616_v42 = vadd.f32 %v16461_v50, %v7499_v2  ;;  %v5547_v1 = vrot.slane %v5513_v54, 4  ;;  %v18096_v50 = vrot.slane %v16063_v24, 6  ;;  %v18098_v54 = vld [vmem:[#allocation73_spill] sm:$0xff] }
 0x56d   :  { %18087 = vst [vmem:[#allocation75_spill] sm:$0xff] %v16599_v40  ;;  %9587 = vmatprep.mubr.bf16.mxu0 %v5617_v9 }
 0x56e   :  { %v12400_v17 = vpop.f32.mrb[112].mxu1  ;;  %v16620_v12 = vadd.f32 %v16466_v53, %v7502_v0  ;;  %v16629_v2 = vsel %vm1075_vm6, %v18096_v50, %v17552_v38  ;;  %v16643_v50 = vld [vmem:[#allocation2] sm:$0xff] }
 0x56f   :  { %v12592_v27 = vpop.f32.mrb[144].mxu0  ;;  %v12401_v30 = vpop.f32.mrb[113].mxu1  ;;  %18097 = vst [vmem:[#allocation57_spill] sm:$0xff] %v16629_v2  ;;  %18103 = vst [vmem:[#allocation83_spill] sm:$0xff] %v16643_v50 }
 0x570   :  { %v12593_v40 = vpop.f32.mrb[145].mxu0  ;;  %v12402_v20 = vadd.f32 %v12401_v30, %v12400_v17  ;;  %v12403_v25 = vpop.f32.mrb[114].mxu1  ;;  %v18100_v30 = vrot.slane %v18092_v43, 4  ;;  %v18101_v17 = vld [vmem:[#allocation36_spill] sm:$0xff] }
 0x571   :  { %v16622_v13 = vadd.f32 %v12593_v40, %v12592_v27  ;;  %v12595_v29 = vpop.f32.mrb[146].mxu0  ;;  %v12404_v61 = vpop.f32.mrb[115].mxu1 }
 0x572   :  { %v12596_v9 = vpop.f32.mrb[147].mxu0  ;;  %v7507_v59 = vadd.f32 %v12402_v20, %v18098_v54  ;;  %v12405_v53 = vadd.f32 %v12404_v61, %v12403_v25  ;;  %v5548_v40 = vsel %vm935_vm2, %v18100_v30, %v5547_v1 }
 0x573   :  { %18095 = vst [vmem:[#allocation77_spill] sm:$0xff] %v16622_v13  ;;  %v16632_v0 = vadd.f32 %v12596_v9, %v12595_v29  ;;  %8704 = vmatmul.mubr.bf16.gmra.mrb[220].mxu1 %v16629_v2  ;;  %v18102_v13 = vld [vmem:[#allocation65_spill] sm:$0xff] }
 0x574   :  { %9588 = vmatmul.mubr.bf16.gmra.mrb[252].mxu0 %v5548_v40  ;;  %v7510_v27 = vadd.f32 %v12405_v53, %v18101_v17  ;;  %9434 = vmatprep.mubr.bf16.mxu1 %v18102_v13  ;;  %v16641_v24 = vadd.f32 %v16484_v60, %v7507_v59  ;;  %v13673_v13 = vld [vmem:[#allocation8 + $0xf80] sm:$0xff]   ;;  %v13674_v59 = vld [vmem:[#allocation8 + $0xfc8] sm:$0xff]   ;;  %v18109_v2 = vld [vmem:[#allocation49_spill] sm:$0xff] }
 0x575   :  { %18099 = vst [vmem:[#allocation55_spill] sm:$0xff] %v16632_v0  ;;  %9973 = vmatprep.mubr.bf16.mxu0 %v16643_v50  ;;  %v18105_v40 = vld [vmem:[#allocation31_spill] sm:$0xff]  ;;  %v18107_v0 = vld [vmem:[#allocation22_spill] sm:$0xff] }
 0x576   :  { %v12406_v61 = vpop.f32.mrb[116].mxu1  ;;  %v16647_v43 = vadd.f32 %v16489_v36, %v7510_v27  ;;  %v18108_v36 = vld [vmem:[#allocation38_spill] sm:$0xff] }
 0x577   :  { %v12598_v20 = vpop.f32.mrb[148].mxu0  ;;  %v12407_v1 = vpop.f32.mrb[117].mxu1 }
 0x578   :  { %v12599_v25 = vpop.f32.mrb[149].mxu0  ;;  %v12408_v29 = vadd.f32 %v12407_v1, %v12406_v61  ;;  %v12409_v54 = vpop.f32.mrb[118].mxu1  ;;  %v13675_v61 = vld [vmem:[#allocation8 + $0xf88] sm:$0xff]   ;;  %v13676_v1 = vld [vmem:[#allocation8 + $0xfd0] sm:$0xff]  }
 0x579   :  { %v16649_v9 = vadd.f32 %v12599_v25, %v12598_v20  ;;  %v12601_v53 = vpop.f32.mrb[150].mxu0  ;;  %v12410_v30 = vpop.f32.mrb[119].mxu1 }
 0x57a   :  { %v12602_v60 = vpop.f32.mrb[151].mxu0  ;;  %v7515_v17 = vadd.f32 %v12408_v29, %v18105_v40  ;;  %v12411_v38 = vadd.f32 %v12410_v30, %v12409_v54 }
 0x57b   :  { %18104 = vst [vmem:[#allocation61_spill] sm:$0xff] %v16649_v9  ;;  %v16652_v50 = vadd.f32 %v12602_v60, %v12601_v53  ;;  %9435 = vmatmul.mubr.bf16.vlgmr.msra.gmra.mrb[224].mxu1 %v18107_v0 }
 0x57c   :  { %v7518_v27 = vadd.f32 %v12411_v38, %v18108_v36  ;;  %13001 = vmatpush3.bf16.msra.mxu1 %v13673_v13  ;;  %9442 = vmatprep.mubr.bf16.mxu1 %v18109_v2  ;;  %v16658_v20 = vadd.f32 %v16505_v3, %v7515_v17  ;;  %v13677_v2 = vld [vmem:[#allocation8 + $0xf90] sm:$0xff]   ;;  %v13678_v3 = vld [vmem:[#allocation8 + $0xfd8] sm:$0xff]  }
 0x57d   :  { %18106 = vst [vmem:[#allocation85_spill] sm:$0xff] %v16652_v50  ;;  %13002 = vmatprep.subr.bf16.mxu1 %v13674_v59  ;;  %v18110_v59 = vld [vmem:[#allocation28_spill] sm:$0xff] }
 0x57e   :  { %v12412_v25 = vpop.f32.mrb[120].mxu1  ;;  %v16661_v29 = vadd.f32 %v16510_v8, %v7518_v27  ;;  %v18112_v8 = vld [vmem:[#allocation32_spill] sm:$0xff] }
 0x57f   :  { %v12604_v9 = vpop.f32.mrb[152].mxu0  ;;  %v12413_v54 = vpop.f32.mrb[121].mxu1 }
 0x580   :  { %v12605_v53 = vpop.f32.mrb[153].mxu0  ;;  %v12414_v30 = vadd.f32 %v12413_v54, %v12412_v25  ;;  %v12415_v38 = vpop.f32.mrb[122].mxu1  ;;  %13003 = vmatpush3.bf16.msra.mxu1 %v13675_v61  ;;  %v18113_v25 = vld [vmem:[#allocation54_spill] sm:$0xff] }
 0x581   :  { %v16663_v0 = vadd.f32 %v12605_v53, %v12604_v9  ;;  %v12607_v13 = vpop.f32.mrb[154].mxu0  ;;  %v12416_v60 = vpop.f32.mrb[123].mxu1  ;;  %13004 = vmatprep.subr.bf16.mxu1 %v13676_v1  ;;  %v13679_v9 = vld [vmem:[#allocation8 + $0xf98] sm:$0xff]   ;;  %v13680_v54 = vld [vmem:[#allocation8 + $0xfe0] sm:$0xff]  }
 0x582   :  { %v12608_v40 = vpop.f32.mrb[155].mxu0  ;;  %v7523_v17 = vadd.f32 %v12414_v30, %v18110_v59  ;;  %v12417_v36 = vadd.f32 %v12416_v60, %v12415_v38 }
 0x583   :  { %v16666_v50 = vadd.f32 %v12608_v40, %v12607_v13  ;;  %9443 = vmatmul.mubr.bf16.gmra.mrb[228].mxu1 %v18047_v7 }
 0x584   :  { %v7526_v27 = vadd.f32 %v12417_v36, %v18112_v8  ;;  %9450 = vmatprep.mubr.bf16.mxu1 %v18113_v25  ;;  %13005 = vmatpush3.bf16.msra.mxu1 %v13677_v2  ;;  %v16672_v61 = vadd.f32 %v16519_v57, %v7523_v17  ;;  %v13681_v2 = vld [vmem:[#allocation8 + $0xfa0] sm:$0xff]   ;;  %v13682_v57 = vld [vmem:[#allocation8 + $0xfe8] sm:$0xff]  }
 0x585   :  { %18111 = vst [vmem:[#allocation87_spill] sm:$0xff] %v16666_v50  ;;  %13006 = vmatprep.subr.bf16.mxu1 %v13678_v3  ;;  %v18114_v3 = vld [vmem:[#allocation35_spill] sm:$0xff] }
 0x586   :  { %v12418_v1 = vpop.f32.mrb[124].mxu1  ;;  %v16675_v30 = vadd.f32 %v16524_v44, %v7526_v27  ;;  %v18115_v44 = vld [vmem:[#allocation39_spill] sm:$0xff] }
 0x587   :  { %v12610_v53 = vpop.f32.mrb[156].mxu0  ;;  %v12419_v38 = vpop.f32.mrb[125].mxu1 }
 0x588   :  { %v12611_v13 = vpop.f32.mrb[157].mxu0  ;;  %v12420_v60 = vadd.f32 %v12419_v38, %v12418_v1  ;;  %v12421_v40 = vpop.f32.mrb[126].mxu1  ;;  %13007 = vmatpush3.bf16.msra.mxu1 %v13679_v9  ;;  %v13683_v1 = vld [vmem:[#allocation8 + $0xfa8] sm:$0xff]  }
 0x589   :  { %v16677_v7 = vadd.f32 %v12611_v13, %v12610_v53  ;;  %v12613_v59 = vpop.f32.mrb[158].mxu0  ;;  %v12422_v36 = vpop.f32.mrb[127].mxu1  ;;  %13008 = vmatprep.subr.bf16.mxu1 %v13680_v54  ;;  %v13684_v53 = vld [vmem:[#allocation8 + $0xff0] sm:$0xff]  }
 0x58a   :  { %v12614_v8 = vpop.f32.mrb[159].mxu0  ;;  %v7531_v17 = vadd.f32 %v12420_v60, %v18114_v3  ;;  %v12423_v25 = vadd.f32 %v12422_v36, %v12421_v40  ;;  %v16691_v60 = vld [vmem:[#allocation10 + $0x1] ss:$0 sm:$0xff] }
 0x58b   :  { %v16680_v50 = vadd.f32 %v12614_v8, %v12613_v59  ;;  %9451 = vmatmul.mubr.bf16.gmra.mrb[232].mxu1 %v18052_v35  ;;  %v13685_v8 = vld [vmem:[#allocation8 + $0xfb0] sm:$0xff]  }
 0x58c   :  { %v7534_v27 = vadd.f32 %v12423_v25, %v18115_v44  ;;  %9458 = vmatprep.mubr.bf16.mxu1 %v18054_v46  ;;  %13009 = vmatpush3.bf16.msra.mxu1 %v13681_v2  ;;  %v16686_v9 = vadd.f32 %v16533_v18, %v7531_v17  ;;  %v18116_v17 = vld [vmem:[#allocation40_spill] sm:$0xff] }
 0x58d   :  { %13010 = vmatprep.subr.bf16.mxu1 %v13682_v57  ;;  %v13686_v57 = vld [vmem:[#allocation8 + $0xff8] sm:$0xff]   ;;  %v6750_v25 = vadd.f32 %v16691_v60, %v18116_v17 }
 0x58e   :  { %v12504_v54 = vpop.f32.mrb[128].mxu1  ;;  %v16689_v13 = vadd.f32 %v16538_v21, %v7534_v27 }
 0x58f   :  { %v12696_v38 = vpop.f32.mrb[160].mxu0  ;;  %v12505_v40 = vpop.f32.mrb[129].mxu1 }
 0x590   :  { %v12697_v35 = vpop.f32.mrb[161].mxu0  ;;  %v12506_v59 = vadd.f32 %v12505_v40, %v12504_v54  ;;  %v12507_v46 = vpop.f32.mrb[130].mxu1  ;;  %13011 = vmatpush3.bf16.msra.mxu1 %v13683_v1  ;;  %v18117_v54 = vld [vmem:[#allocation33_spill] sm:$0xff] }
 0x591   :  { %v16693_v36 = vadd.f32 %v12697_v35, %v12696_v38  ;;  %v12699_v2 = vpop.f32.mrb[162].mxu0  ;;  %v12508_v18 = vpop.f32.mrb[131].mxu1  ;;  %13012 = vmatprep.subr.bf16.mxu1 %v13684_v53  ;;  %v6751_v38 = vadd.f32 %v16691_v60, %v18117_v54  ;;  %v13687_v53 = vld [vmem:[#allocation8 + $0xfb8] sm:$0xff]   ;;  %v16707_v35 = vld [vmem:[#allocation11 + $0x4] ss:$8 sps:$4 sm:$0xff]  }
 0x592   :  { %v12700_v3 = vpop.f32.mrb[163].mxu0  ;;  %v7669_v21 = vadd.f32 %v12506_v59, %v16558_v26  ;;  %v12509_v44 = vadd.f32 %v12508_v18, %v12507_v46  ;;  %18118 = vst [vmem:[#allocation60_spill] sm:$0xff] %v16707_v35  ;;  %v18119_v54 = vld [vmem:[#allocation88_spill] sm:$0xff] }
 0x593   :  { %v16698_v27 = vadd.f32 %v12700_v3, %v12699_v2  ;;  %9459 = vmatmul.mubr.bf16.gmra.mrb[236].mxu1 %v18056_v55 }
 0x594   :  { %v16703_v40 = vadd.f32 %v7669_v21, %v6750_v25  ;;  %v7672_v1 = vadd.f32 %v12509_v44, %v16561_v5  ;;  %9466 = vmatprep.mubr.bf16.mxu1 %v18058_v47  ;;  %13013 = vmatpush3.bf16.msra.mxu1 %v13685_v8  ;;  %v6752_v47 = vadd.f32 %v16691_v60, %v16435_v11 }
 0x595   :  { %13014 = vmatprep.subr.bf16.mxu1 %v13686_v57 }
 0x596   :  { %v16709_v26 = vadd.f32 %v7672_v1, %v6751_v38  ;;  %v12510_v59 = vpop.f32.mrb[132].mxu1  ;;  %v18120_v38 = vld [vmem:[#allocation34_spill] sm:$0xff] }
 0x597   :  { %v12702_v46 = vpop.f32.mrb[164].mxu0  ;;  %v12511_v2 = vpop.f32.mrb[133].mxu1  ;;  %v6753_v1 = vadd.f32 %v16691_v60, %v18120_v38  ;;  %v18123_v38 = vld [vmem:[#allocation30_spill] sm:$0xff] }
 0x598   :  { %v12703_v55 = vpop.f32.mrb[165].mxu0  ;;  %v12512_v18 = vadd.f32 %v12511_v2, %v12510_v59  ;;  %v12513_v17 = vpop.f32.mrb[134].mxu1  ;;  %13015 = vmatpush3.bf16.msra.mxu1 %v13687_v53 }
 0x599   :  { %v16711_v3 = vadd.f32 %v12703_v55, %v12702_v46  ;;  %v12705_v25 = vpop.f32.mrb[166].mxu0  ;;  %v12514_v5 = vpop.f32.mrb[135].mxu1  ;;  %13064 = vmatprep.subr.bf16.mxu1 %v16707_v35  ;;  %v18121_v46 = vld [vmem:[#allocation20_spill] sm:$0xff] }
 0x59a   :  { %v12706_v21 = vpop.f32.mrb[167].mxu0  ;;  %v7677_v8 = vadd.f32 %v12512_v18, %v16574_v58  ;;  %v12515_v57 = vadd.f32 %v12514_v5, %v12513_v17 }
 0x59b   :  { %v16717_v44 = vadd.f32 %v12706_v21, %v12705_v25  ;;  %9467 = vmatmul.mubr.bf16.gmra.mrb[240].mxu1 %v18119_v54 }
 0x59c   :  { %v16722_v59 = vadd.f32 %v7677_v8, %v6752_v47  ;;  %v7680_v53 = vadd.f32 %v12515_v57, %v16577_v15  ;;  %9474 = vmatprep.mubr.bf16.mxu1 %v18121_v46  ;;  %v6754_v47 = vadd.f32 %v16691_v60, %v18123_v38 }
 0x59e   :  { %v16726_v2 = vadd.f32 %v7680_v53, %v6753_v1  ;;  %v12516_v55 = vpop.f32.mrb[136].mxu1  ;;  %v18124_v1 = vld [vmem:[#allocation58_spill] sm:$0xff]  ;;  %v18125_v53 = vld [vmem:[#allocation59_spill] sm:$0xff] }
 0x59f   :  { %v12708_v11 = vpop.f32.mrb[168].mxu0  ;;  %v12517_v35 = vpop.f32.mrb[137].mxu1  ;;  %v6755_v46 = vadd.f32 %v16691_v60, %v18125_v53 }
 0x5a0   :  { %18122 = vst [vmem:[#allocation24_spill] sm:$0xff] %v16726_v2  ;;  %v12709_v58 = vpop.f32.mrb[169].mxu0  ;;  %v12518_v18 = vadd.f32 %v12517_v35, %v12516_v55  ;;  %v12519_v25 = vpop.f32.mrb[138].mxu1 }
 0x5a1   :  { %v16728_v17 = vadd.f32 %v12709_v58, %v12708_v11  ;;  %v12711_v5 = vpop.f32.mrb[170].mxu0  ;;  %v12520_v21 = vpop.f32.mrb[139].mxu1  ;;  %v5444_v11 = vld [vmem:[#allocation2 + $0xb8] sm:$0x7] }
 0x5a2   :  { %v12712_v54 = vpop.f32.mrb[171].mxu0  ;;  %v7685_v15 = vadd.f32 %v12518_v18, %v16590_v32  ;;  %v12521_v8 = vadd.f32 %v12520_v21, %v12519_v25  ;;  %v5478_v25 = vrot.slane %v5444_v11, 3  ;;  %v18129_v11 = vrot.slane %v16458_v33, 3 }
 0x5a3   :  { %v16733_v57 = vadd.f32 %v12712_v54, %v12711_v5  ;;  %9475 = vmatmul.mubr.bf16.gmra.mrb[244].mxu1 %v18124_v1 }
 0x5a4   :  { %v16738_v35 = vadd.f32 %v7685_v15, %v6754_v47  ;;  %v7688_v55 = vadd.f32 %v12521_v8, %v16593_v56  ;;  %9482 = vmatprep.mubr.bf16.mxu1 %v16474_v51  ;;  %v18128_v15 = vld [vmem:[#allocation64_spill] sm:$0xff] }
 0x5a5   :  { %v6756_v56 = vadd.f32 %v16691_v60, %v18128_v15 }
 0x5a6   :  { %18126 = vst [vmem:[#allocation25_spill] sm:$0xff] %v16738_v35  ;;  %v16742_v58 = vadd.f32 %v7688_v55, %v6755_v46  ;;  %v12522_v38 = vpop.f32.mrb[140].mxu1  ;;  %v5375_v55 = vld [vmem:[#allocation2 + $0xb8] sm:$0x3] }
 0x5a7   :  { %v12714_v2 = vpop.f32.mrb[172].mxu0  ;;  %v12523_v32 = vpop.f32.mrb[141].mxu1  ;;  %v5409_v15 = vrot.slane %v5375_v55, 2 }
 0x5a8   :  { %18127 = vst [vmem:[#allocation29_spill] sm:$0xff] %v16742_v58  ;;  %v12715_v18 = vpop.f32.mrb[173].mxu0  ;;  %v12524_v5 = vadd.f32 %v12523_v32, %v12522_v38  ;;  %v12525_v54 = vpop.f32.mrb[142].mxu1  ;;  %v6757_v38 = vadd.f32 %v16691_v60, %v16480_v34  ;;  %v18130_v34 = vrot.slane %v16458_v33, 2 }
 0x5a9   :  { %v16744_v21 = vadd.f32 %v12715_v18, %v12714_v2  ;;  %v12717_v1 = vpop.f32.mrb[174].mxu0  ;;  %v12526_v53 = vpop.f32.mrb[143].mxu1  ;;  %v5479_v2 = vsel %vm865_vm3, %v18129_v11, %v5478_v25 }
 0x5aa   :  { %v12718_v47 = vpop.f32.mrb[175].mxu0  ;;  %v7693_v51 = vadd.f32 %v12524_v5, %v16616_v42  ;;  %v12527_v8 = vadd.f32 %v12526_v53, %v12525_v54 }
 0x5ab   :  { %v16749_v46 = vadd.f32 %v12718_v47, %v12717_v1  ;;  %9483 = vmatmul.mubr.bf16.gmra.mrb[248].mxu1 %v16496_v6 }
 0x5ac   :  { %v16757_v32 = vadd.f32 %v7693_v51, %v6756_v56  ;;  %v7696_v18 = vadd.f32 %v12527_v8, %v16620_v12  ;;  %9490 = vmatprep.mubr.bf16.mxu1 %v5479_v2  ;;  %v5410_v56 = vsel %vm795_vm4, %v18130_v34, %v5409_v15  ;;  %v18131_v12 = vld [vmem:[#allocation47_spill] sm:$0xff] }
 0x5ad   :  { %v6758_v51 = vadd.f32 %v16691_v60, %v18131_v12 }
 0x5ae   :  { %v16760_v42 = vadd.f32 %v7696_v18, %v6757_v38  ;;  %v12528_v5 = vpop.f32.mrb[144].mxu1  ;;  %v18132_v38 = vld [vmem:[#allocation67_spill] sm:$0xff] }
 0x5af   :  { %v12720_v54 = vpop.f32.mrb[176].mxu0  ;;  %v12529_v1 = vpop.f32.mrb[145].mxu1  ;;  %v6759_v18 = vadd.f32 %v16691_v60, %v18132_v38 }
 0x5b0   :  { %v12721_v53 = vpop.f32.mrb[177].mxu0  ;;  %v12530_v6 = vadd.f32 %v12529_v1, %v12528_v5  ;;  %v12531_v58 = vpop.f32.mrb[146].mxu1 }
 0x5b1   :  { %v16762_v47 = vadd.f32 %v12721_v53, %v12720_v54  ;;  %v12723_v25 = vpop.f32.mrb[178].mxu0  ;;  %v12532_v11 = vpop.f32.mrb[147].mxu1 }
 0x5b2   :  { %v12724_v35 = vpop.f32.mrb[179].mxu0  ;;  %v7701_v8 = vadd.f32 %v12530_v6, %v16641_v24  ;;  %v12533_v55 = vadd.f32 %v12532_v11, %v12531_v58 }
 0x5b3   :  { %v16770_v2 = vadd.f32 %v12724_v35, %v12723_v25  ;;  %9491 = vmatmul.mubr.bf16.gmra.mrb[252].mxu1 %v5410_v56  ;;  %v13688_v25 = vld [vmem:[#allocation11] ss:$8 sps:$4 sm:$0xff]  }
 0x5b4   :  { %v16774_v5 = vadd.f32 %v7701_v8, %v6758_v51  ;;  %v7704_v54 = vadd.f32 %v12533_v55, %v16647_v43  ;;  %9628 = vmatprep.mubr.bf16.mxu1 %v18073_v39  ;;  %v13693_v51 = vld [vmem:[#allocation11 + $0x14] ss:$8 sps:$4 sm:$0xff]   ;;  %v18133_v8 = vld [vmem:[#allocation19_spill] sm:$0xff] }
 0x5b5   :  { %v6760_v43 = vadd.f32 %v16691_v60, %v18133_v8 }
 0x5b6   :  { %v16778_v1 = vadd.f32 %v7704_v54, %v6759_v18  ;;  %v12534_v15 = vpop.f32.mrb[148].mxu1  ;;  %v18134_v18 = vld [vmem:[#allocation41_spill] sm:$0xff] }
 0x5b7   :  { %v12726_v53 = vpop.f32.mrb[180].mxu0  ;;  %v12535_v34 = vpop.f32.mrb[149].mxu1  ;;  %v6761_v54 = vadd.f32 %v16691_v60, %v18134_v18 }
 0x5b8   :  { %v12727_v12 = vpop.f32.mrb[181].mxu0  ;;  %v12536_v24 = vadd.f32 %v12535_v34, %v12534_v15  ;;  %v12537_v35 = vpop.f32.mrb[150].mxu1  ;;  %v13691_v34 = vld [vmem:[#allocation11 + $0x10] ss:$8 sps:$4 sm:$0xff]  }
 0x5b9   :  { %v16780_v58 = vadd.f32 %v12727_v12, %v12726_v53  ;;  %v12729_v6 = vpop.f32.mrb[182].mxu0  ;;  %v12538_v11 = vpop.f32.mrb[151].mxu1  ;;  %v13696_v12 = vld [vmem:[#allocation11 + $0x24] ss:$8 sps:$4 sm:$0xff]  }
 0x5ba   :  { %v12730_v56 = vpop.f32.mrb[183].mxu0  ;;  %v7709_v39 = vadd.f32 %v12536_v24, %v16658_v20  ;;  %v12539_v55 = vadd.f32 %v12538_v11, %v12537_v35 }
 0x5bb   :  { %v16785_v38 = vadd.f32 %v12730_v56, %v12729_v6  ;;  %9629 = vmatmul.mubr.bf16.vlgmr.msra.gmra.mrb[0].mxu1 %v17892_v48 }
 0x5bc   :  { %v16790_v15 = vadd.f32 %v7709_v39, %v6760_v43  ;;  %v7712_v53 = vadd.f32 %v12539_v55, %v16661_v29  ;;  %9636 = vmatprep.mubr.bf16.mxu1 %v17893_v19  ;;  %13072 = vmatpush1.bf16.msra.mxu1 %v13688_v25  ;;  %v13694_v39 = vld [vmem:[#allocation11 + $0x20] ss:$8 sps:$4 sm:$0xff]   ;;  %v13699_v19 = vld [vmem:[#allocation11 + $0x34] ss:$8 sps:$4 sm:$0xff]   ;;  %v6762_v25 = vadd.f32 %v16691_v60, %v16522_v4  ;;  %v13702_v4 = vld [vmem:[#allocation11 + $0x44] ss:$8 sps:$4 sm:$0xff]  }
 0x5bd   :  { %13065 = vmatprep.subr.bf16.mxu1 %v13693_v51 }
 0x5be   :  { %v16794_v8 = vadd.f32 %v7712_v53, %v6761_v54  ;;  %v12540_v20 = vpop.f32.mrb[152].mxu1  ;;  %v6763_v53 = vadd.f32 %v16691_v60, %v16529_v23 }
 0x5bf   :  { %v12732_v24 = vpop.f32.mrb[184].mxu0  ;;  %v12541_v35 = vpop.f32.mrb[153].mxu1 }
 0x5c0   :  { %v12733_v6 = vpop.f32.mrb[185].mxu0  ;;  %v12542_v48 = vadd.f32 %v12541_v35, %v12540_v20  ;;  %v12543_v56 = vpop.f32.mrb[154].mxu1  ;;  %13073 = vmatpush1.bf16.msra.mxu1 %v13691_v34 }
 0x5c1   :  { %v16796_v11 = vadd.f32 %v12733_v6, %v12732_v24  ;;  %v12735_v43 = vpop.f32.mrb[186].mxu0  ;;  %v12544_v29 = vpop.f32.mrb[155].mxu1  ;;  %13066 = vmatprep.subr.bf16.mxu1 %v13696_v12  ;;  %v13697_v12 = vld [vmem:[#allocation11 + $0x30] ss:$8 sps:$4 sm:$0xff]  }
 0x5c2   :  { %v12736_v55 = vpop.f32.mrb[187].mxu0  ;;  %v7717_v51 = vadd.f32 %v12542_v48, %v16672_v61  ;;  %v12545_v18 = vadd.f32 %v12544_v29, %v12543_v56  ;;  %v13700_v29 = vld [vmem:[#allocation11 + $0x40] ss:$8 sps:$4 sm:$0xff]  }
 0x5c3   :  { %v16801_v54 = vadd.f32 %v12736_v55, %v12735_v43  ;;  %9637 = vmatmul.mubr.bf16.gmra.mrb[4].mxu1 %v17894_v31 }
 0x5c4   :  { %v16806_v20 = vadd.f32 %v7717_v51, %v6762_v25  ;;  %v7720_v34 = vadd.f32 %v12545_v18, %v16675_v30  ;;  %9644 = vmatprep.mubr.bf16.mxu1 %v17895_v14  ;;  %13074 = vmatpush1.bf16.msra.mxu1 %v13694_v39  ;;  %v13705_v14 = vld [vmem:[#allocation11 + $0x54] ss:$8 sps:$4 sm:$0xff]   ;;  %v6764_v39 = vadd.f32 %v16691_v60, %v16536_v22  ;;  %v18135_v18 = vld [vmem:[#allocation51_spill] sm:$0xff] }
 0x5c5   :  { %13067 = vmatprep.subr.bf16.mxu1 %v13699_v19  ;;  %v13708_v22 = vld [vmem:[#allocation11 + $0x64] ss:$8 sps:$4 sm:$0xff]  }
 0x5c6   :  { %v16810_v24 = vadd.f32 %v7720_v34, %v6763_v53  ;;  %v12546_v61 = vpop.f32.mrb[156].mxu1  ;;  %v6765_v53 = vadd.f32 %v16691_v60, %v18135_v18 }
 0x5c7   :  { %v12738_v35 = vpop.f32.mrb[188].mxu0  ;;  %v12547_v6 = vpop.f32.mrb[157].mxu1 }
 0x5c8   :  { %v12739_v48 = vpop.f32.mrb[189].mxu0  ;;  %v12548_v31 = vadd.f32 %v12547_v6, %v12546_v61  ;;  %v12549_v23 = vpop.f32.mrb[158].mxu1  ;;  %13075 = vmatpush1.bf16.msra.mxu1 %v13697_v12 }
 0x5c9   :  { %v16812_v56 = vadd.f32 %v12739_v48, %v12738_v35  ;;  %v12741_v43 = vpop.f32.mrb[190].mxu0  ;;  %v12550_v30 = vpop.f32.mrb[159].mxu1  ;;  %13068 = vmatprep.subr.bf16.mxu1 %v13702_v4  ;;  %v13703_v4 = vld [vmem:[#allocation11 + $0x50] ss:$8 sps:$4 sm:$0xff]  }
 0x5ca   :  { %v12742_v55 = vpop.f32.mrb[191].mxu0  ;;  %v7725_v19 = vadd.f32 %v12548_v31, %v16686_v9  ;;  %v12551_v25 = vadd.f32 %v12550_v30, %v12549_v23 }
 0x5cb   :  { %v16817_v51 = vadd.f32 %v12742_v55, %v12741_v43  ;;  %9645 = vmatmul.mubr.bf16.gmra.mrb[8].mxu1 %v17898_v52  ;;  %v13706_v43 = vld [vmem:[#allocation11 + $0x60] ss:$8 sps:$4 sm:$0xff]  }
 0x5cc   :  { %v16822_v34 = vadd.f32 %v7725_v19, %v6764_v39  ;;  %v7728_v12 = vadd.f32 %v12551_v25, %v16689_v13  ;;  %9652 = vmatprep.mubr.bf16.mxu1 %v17994_v37  ;;  %13076 = vmatpush1.bf16.msra.mxu1 %v13700_v29  ;;  %v13711_v37 = vld [vmem:[#allocation11 + $0x74] ss:$8 sps:$4 sm:$0xff]   ;;  %v13709_v19 = vld [vmem:[#allocation11 + $0x70] ss:$8 sps:$4 sm:$0xff]  }
 0x5cd   :  { %13069 = vmatprep.subr.bf16.mxu1 %v13705_v14 }
 0x5ce   :  { %v16826_v61 = vadd.f32 %v7728_v12, %v6765_v53  ;;  %v12632_v9 = vpop.f32.mrb[160].mxu1 }
 0x5cf   :  { %v12824_v35 = vpop.f32.mrb[192].mxu0  ;;  %v12633_v6 = vpop.f32.mrb[161].mxu1 }
 0x5d0   :  { %v12825_v48 = vpop.f32.mrb[193].mxu0  ;;  %v12634_v52 = vadd.f32 %v12633_v6, %v12632_v9  ;;  %v12635_v60 = vpop.f32.mrb[162].mxu1  ;;  %13077 = vmatpush1.bf16.msra.mxu1 %v13703_v4 }
 0x5d1   :  { %v16828_v31 = vadd.f32 %v12825_v48, %v12824_v35  ;;  %v12827_v23 = vpop.f32.mrb[194].mxu0  ;;  %v12636_v13 = vpop.f32.mrb[163].mxu1  ;;  %13070 = vmatprep.subr.bf16.mxu1 %v13708_v22 }
 0x5d2   :  { %v12828_v30 = vpop.f32.mrb[195].mxu0  ;;  %v8456_v29 = vadd.f32 %v12634_v52, %v16547_v10  ;;  %v12637_v55 = vadd.f32 %v12636_v13, %v12635_v60  ;;  %v18136_v52 = vld [vmem:[#allocation37_spill] sm:$0xff] }
 0x5d3   :  { %v16831_v14 = vadd.f32 %v12828_v30, %v12827_v23  ;;  %9653 = vmatmul.mubr.bf16.gmra.mrb[12].mxu1 %v18003_v16 }
 0x5d4   :  { %v8459_v39 = vadd.f32 %v12637_v55, %v16550_v62  ;;  %9660 = vmatprep.mubr.bf16.mxu1 %v18008_v41  ;;  %13078 = vmatpush1.bf16.msra.mxu1 %v13706_v43  ;;  %v16837_v25 = vadd.f32 %v16693_v36, %v8456_v29 }
 0x5d5   :  { %13071 = vmatprep.subr.bf16.mxu1 %v13711_v37 }
 0x5d6   :  { %v12638_v18 = vpop.f32.mrb[164].mxu1  ;;  %v16840_v12 = vadd.f32 %v16698_v27, %v8459_v39 }
 0x5d7   :  { %v12830_v53 = vpop.f32.mrb[196].mxu0  ;;  %v12639_v10 = vpop.f32.mrb[165].mxu1 }
 0x5d8   :  { %v12831_v4 = vpop.f32.mrb[197].mxu0  ;;  %v12640_v22 = vadd.f32 %v12639_v10, %v12638_v18  ;;  %v12641_v16 = vpop.f32.mrb[166].mxu1  ;;  %13079 = vmatpush1.bf16.msra.mxu1 %v13709_v19 }
 0x5d9   :  { %v16842_v9 = vadd.f32 %v12831_v4, %v12830_v53  ;;  %v12833_v62 = vpop.f32.mrb[198].mxu0  ;;  %v12642_v41 = vpop.f32.mrb[167].mxu1 }
 0x5da   :  { %v12834_v35 = vpop.f32.mrb[199].mxu0  ;;  %v8464_v6 = vadd.f32 %v12640_v22, %v16563_v45  ;;  %v12643_v36 = vadd.f32 %v12642_v41, %v12641_v16  ;;  %v5720_v22 = vld [vmem:[#allocation2 + $0xb8] sm:$0x7f] }
 0x5db   :  { %v16845_v48 = vadd.f32 %v12834_v35, %v12833_v62  ;;  %9661 = vmatmul.mubr.bf16.gmra.mrb[16].mxu1 %v18080_v28 }
 0x5dc   :  { %v8467_v27 = vadd.f32 %v12643_v36, %v16566_v63  ;;  %9668 = vmatprep.mubr.bf16.mxu1 %v18136_v52  ;;  %v16851_v60 = vadd.f32 %v16711_v3, %v8464_v6  ;;  %v18137_v63 = vld [vmem:[#allocation74_spill] sm:$0xff]  ;;  %v18138_v3 = vld [vmem:[#allocation68_spill] sm:$0xff] }
 0x5de   :  { %v12644_v23 = vpop.f32.mrb[168].mxu1  ;;  %v16854_v13 = vadd.f32 %v16717_v44, %v8467_v27  ;;  %v18139_v44 = vld [vmem:[#allocation52_spill] sm:$0xff]  ;;  %v5754_v27 = vrot.slane %v5720_v22, 7 }
 0x5df   :  { %v12836_v43 = vpop.f32.mrb[200].mxu0  ;;  %v12645_v30 = vpop.f32.mrb[169].mxu1 }
 0x5e0   :  { %v12837_v37 = vpop.f32.mrb[201].mxu0  ;;  %v12646_v45 = vadd.f32 %v12645_v30, %v12644_v23  ;;  %v12647_v55 = vpop.f32.mrb[170].mxu1 }
 0x5e1   :  { %v16856_v29 = vadd.f32 %v12837_v37, %v12836_v43  ;;  %v12839_v39 = vpop.f32.mrb[202].mxu0  ;;  %v12648_v28 = vpop.f32.mrb[171].mxu1 }
 0x5e2   :  { %v12840_v19 = vpop.f32.mrb[203].mxu0  ;;  %v8472_v18 = vadd.f32 %v12646_v45, %v18137_v63  ;;  %v12649_v53 = vadd.f32 %v12648_v28, %v12647_v55  ;;  %v18140_v45 = vld [vmem:[#allocation56_spill] sm:$0xff]  ;;  %v18141_v28 = vld [vmem:[#allocation57_spill] sm:$0xff] }
 0x5e3   :  { %v16859_v10 = vadd.f32 %v12840_v19, %v12839_v39  ;;  %9669 = vmatmul.mubr.bf16.gmra.mrb[20].mxu1 %v18088_v49  ;;  %v5651_v63 = vld [vmem:[#allocation2 + $0xb8] sm:$0x3f] }
 0x5e4   :  { %v8475_v4 = vadd.f32 %v12649_v53, %v18138_v3  ;;  %9676 = vmatprep.mubr.bf16.mxu1 %v18139_v44  ;;  %v16865_v16 = vadd.f32 %v16728_v17, %v8472_v18  ;;  %v18143_v18 = vld [vmem:[#allocation75_spill] sm:$0xff]  ;;  %v5685_v22 = vrot.slane %v5651_v63, 6 }
 0x5e6   :  { %v12650_v62 = vpop.f32.mrb[172].mxu1  ;;  %v16868_v35 = vadd.f32 %v16733_v57, %v8475_v4  ;;  %v18142_v57 = vrot.slane %v16458_v33, 7 }
 0x5e7   :  { %v12842_v41 = vpop.f32.mrb[204].mxu0  ;;  %v12651_v6 = vpop.f32.mrb[173].mxu1 }
 0x5e8   :  { %v12843_v36 = vpop.f32.mrb[205].mxu0  ;;  %v12652_v52 = vadd.f32 %v12651_v6, %v12650_v62  ;;  %v12653_v49 = vpop.f32.mrb[174].mxu1  ;;  %v5755_v19 = vsel %vm1145_vm5, %v18142_v57, %v5754_v27  ;;  %v13714_v57 = vld [vmem:[#allocation11 + $0x84] ss:$8 sps:$4 sm:$0xff]  }
 0x5e9   :  { %v16870_v23 = vadd.f32 %v12843_v36, %v12842_v41  ;;  %v12845_v43 = vpop.f32.mrb[206].mxu0  ;;  %v12654_v30 = vpop.f32.mrb[175].mxu1  ;;  %9941 = vmatprep.subr.bf16.mxu0 %v13714_v57  ;;  %v18151_v57 = vld [vmem:[#allocation86_spill] sm:$0xff] }
 0x5ea   :  { %v12846_v37 = vpop.f32.mrb[207].mxu0  ;;  %v8480_v55 = vadd.f32 %v12652_v52, %v18140_v45  ;;  %v12655_v39 = vadd.f32 %v12654_v30, %v12653_v49 }
 0x5eb   :  { %v16873_v17 = vadd.f32 %v12846_v37, %v12845_v43  ;;  %9677 = vmatmul.mubr.bf16.gmra.mrb[24].mxu1 %v18141_v28  ;;  %v18144_v37 = vld [vmem:[#allocation77_spill] sm:$0xff] }
 0x5ec   :  { %v8483_v53 = vadd.f32 %v12655_v39, %v18143_v18  ;;  %9684 = vmatprep.mubr.bf16.mxu1 %v5755_v19  ;;  %v16881_v3 = vadd.f32 %v16744_v21, %v8480_v55  ;;  %v18145_v55 = vrot.slane %v16458_v33, 6  ;;  %v18146_v19 = vld [vmem:[#allocation55_spill] sm:$0xff] }
 0x5ed   :  { %v18147_v18 = vld [vmem:[#allocation83_spill] sm:$0xff] }
 0x5ee   :  { %v12656_v4 = vpop.f32.mrb[176].mxu1  ;;  %v16884_v62 = vadd.f32 %v16749_v46, %v8483_v53  ;;  %v5686_v28 = vsel %vm1075_vm6, %v18145_v55, %v5685_v22  ;;  %v13712_v46 = vld [vmem:[#allocation11 + $0x80] ss:$8 sps:$4 sm:$0xff]   ;;  %v13715_v55 = vld [vmem:[#allocation11 + $0x90] ss:$8 sps:$4 sm:$0xff]  }
 0x5ef   :  { %v12848_v44 = vpop.f32.mrb[208].mxu0  ;;  %v12657_v41 = vpop.f32.mrb[177].mxu1  ;;  %9942 = vmatpush1.bf16.msra.mxu0 %v13712_v46  ;;  %v18150_v46 = vld [vmem:[#allocation69_spill] sm:$0xff] }
 0x5f0   :  { %v12849_v6 = vpop.f32.mrb[209].mxu0  ;;  %v12658_v36 = vadd.f32 %v12657_v41, %v12656_v4  ;;  %v12659_v49 = vpop.f32.mrb[178].mxu1 }
 0x5f1   :  { %v16886_v52 = vadd.f32 %v12849_v6, %v12848_v44  ;;  %v12851_v27 = vpop.f32.mrb[210].mxu0  ;;  %v12660_v43 = vpop.f32.mrb[179].mxu1 }
 0x5f2   :  { %v12852_v30 = vpop.f32.mrb[211].mxu0  ;;  %v8488_v45 = vadd.f32 %v12658_v36, %v18144_v37  ;;  %v12661_v39 = vadd.f32 %v12660_v43, %v12659_v49  ;;  %v18148_v37 = vld [vmem:[#allocation61_spill] sm:$0xff] }
 0x5f3   :  { %v16889_v21 = vadd.f32 %v12852_v30, %v12851_v27  ;;  %9685 = vmatmul.mubr.bf16.gmra.mrb[28].mxu1 %v5686_v28  ;;  %v13717_v28 = vld [vmem:[#allocation11 + $0x94] ss:$8 sps:$4 sm:$0xff]  }
 0x5f4   :  { %v8491_v63 = vadd.f32 %v12661_v39, %v18146_v19  ;;  %10186 = vmatprep.mubr.bf16.mxu1 %v18147_v18  ;;  %v16897_v53 = vadd.f32 %v16762_v47, %v8488_v45  ;;  %v18153_v19 = vld [vmem:[#allocation85_spill] sm:$0xff]  ;;  %9943 = vmatprep.subr.bf16.mxu0 %v13717_v28  ;;  %v13720_v28 = vld [vmem:[#allocation11 + $0xa4] ss:$8 sps:$4 sm:$0xff]  }
 0x5f5   :  { %9944 = vmatpush1.bf16.msra.mxu0 %v13715_v55  ;;  %v13718_v55 = vld [vmem:[#allocation11 + $0xa0] ss:$8 sps:$4 sm:$0xff]  }
 0x5f6   :  { %v12662_v4 = vpop.f32.mrb[180].mxu1  ;;  %v16900_v41 = vadd.f32 %v16770_v2, %v8491_v63  ;;  %v18152_v2 = vpack.c.bf16 %v18150_v46, %v18151_v57  ;;  %9945 = vmatprep.subr.bf16.mxu0 %v13720_v28  ;;  %v13723_v28 = vld [vmem:[#allocation11 + $0xb4] ss:$8 sps:$4 sm:$0xff]  }
 0x5f7   :  { %v12854_v44 = vpop.f32.mrb[212].mxu0  ;;  %v12663_v33 = vpop.f32.mrb[181].mxu1 }
 0x5f8   :  { %v12855_v6 = vpop.f32.mrb[213].mxu0  ;;  %v12664_v22 = vadd.f32 %v12663_v33, %v12662_v4  ;;  %v12665_v49 = vpop.f32.mrb[182].mxu1 }
 0x5f9   :  { %v16902_v36 = vadd.f32 %v12855_v6, %v12854_v44  ;;  %v12857_v27 = vpop.f32.mrb[214].mxu0  ;;  %v12666_v43 = vpop.f32.mrb[183].mxu1  ;;  %9946 = vmatpush1.bf16.msra.mxu0 %v13718_v55  ;;  %v13721_v55 = vld [vmem:[#allocation11 + $0xb0] ss:$8 sps:$4 sm:$0xff]  }
 0x5fa   :  { %v12858_v30 = vpop.f32.mrb[215].mxu0  ;;  %v8496_v39 = vadd.f32 %v12664_v22, %v18148_v37  ;;  %v12667_v47 = vadd.f32 %v12666_v43, %v12665_v49  ;;  %9947 = vmatprep.subr.bf16.mxu0 %v13723_v28  ;;  %v18162_v28 = vld [vmem:[#allocation79_spill] sm:$0xff] }
 0x5fb   :  { %v16905_v45 = vadd.f32 %v12858_v30, %v12857_v27  ;;  %10187 = vmatmul.mubr.bf16.vlgmr.msra.gmra.mrb[32].mxu1 %v18152_v2  ;;  %v18154_v2 = vld [vmem:[#allocation84_spill] sm:$0xff] }
 0x5fc   :  { %v8499_v63 = vadd.f32 %v12667_v47, %v18153_v19  ;;  %10196 = vmatprep.mubr.bf16.mxu1 %v18147_v18  ;;  %v16913_v4 = vadd.f32 %v16780_v58, %v8496_v39  ;;  %v18155_v19 = vld [vmem:[#allocation42_spill] sm:$0xff] }
 0x5fd   :  { %18149 = vst [vmem:[#allocation26_spill] sm:$0xff] %v16905_v45  ;;  %9948 = vmatpush1.bf16.msra.mxu0 %v13721_v55  ;;  %v18161_v55 = vld [vmem:[#allocation23_spill] sm:$0xff] }
 0x5fe   :  { %v12668_v44 = vpop.f32.mrb[184].mxu1  ;;  %v16916_v6 = vadd.f32 %v16785_v38, %v8499_v63  ;;  %v18156_v38 = vpack.c.bf16 %v18154_v2, %v18155_v19  ;;  %v18157_v63 = vld [vmem:[#allocation87_spill] sm:$0xff] }
 0x5ff   :  { %v12860_v33 = vpop.f32.mrb[216].mxu0  ;;  %v12669_v22 = vpop.f32.mrb[185].mxu1 }
 0x600   :  { %v12861_v49 = vpop.f32.mrb[217].mxu0  ;;  %v12670_v27 = vadd.f32 %v12669_v22, %v12668_v44  ;;  %v12671_v30 = vpop.f32.mrb[186].mxu1 }
 0x601   :  { %v16918_v43 = vadd.f32 %v12861_v49, %v12860_v33  ;;  %v12863_v37 = vpop.f32.mrb[218].mxu0  ;;  %v12672_v47 = vpop.f32.mrb[187].mxu1 }
 0x602   :  { %v12864_v46 = vpop.f32.mrb[219].mxu0  ;;  %v8504_v57 = vadd.f32 %v12670_v27, %v16663_v0  ;;  %v12673_v58 = vadd.f32 %v12672_v47, %v12671_v30 }
 0x603   :  { %v16921_v39 = vadd.f32 %v12864_v46, %v12863_v37  ;;  %10197 = vmatmul.mubr.bf16.gmra.mrb[36].mxu1 %v18156_v38  ;;  %v18158_v38 = vld [vmem:[#allocation62_spill] sm:$0xff] }
 0x604   :  { %v8507_v45 = vadd.f32 %v12673_v58, %v18157_v63  ;;  %10206 = vmatprep.mubr.bf16.mxu1 %v18147_v18  ;;  %v16929_v44 = vadd.f32 %v16796_v11, %v8504_v57  ;;  %v18159_v63 = vld [vmem:[#allocation70_spill] sm:$0xff] }
 0x606   :  { %v12674_v33 = vpop.f32.mrb[188].mxu1  ;;  %v16932_v22 = vadd.f32 %v16801_v54, %v8507_v45  ;;  %v18160_v54 = vpack.c.bf16 %v18158_v38, %v18159_v63  ;;  %v18163_v63 = vpack.c.bf16 %v18161_v55, %v18162_v28  ;;  %v18165_v55 = vld [vmem:[#allocation63_spill] sm:$0xff] }
 0x607   :  { %v12866_v0 = vpop.f32.mrb[220].mxu0  ;;  %v12675_v49 = vpop.f32.mrb[189].mxu1 }
 0x608   :  { %v12867_v27 = vpop.f32.mrb[221].mxu0  ;;  %v12676_v30 = vadd.f32 %v12675_v49, %v12674_v33  ;;  %v12677_v47 = vpop.f32.mrb[190].mxu1 }
 0x609   :  { %v16934_v37 = vadd.f32 %v12867_v27, %v12866_v0  ;;  %v12869_v46 = vpop.f32.mrb[222].mxu0  ;;  %v12678_v58 = vpop.f32.mrb[191].mxu1 }
 0x60a   :  { %v12870_v2 = vpop.f32.mrb[223].mxu0  ;;  %v8512_v19 = vadd.f32 %v12676_v30, %v16677_v7  ;;  %v12679_v11 = vadd.f32 %v12678_v58, %v12677_v47 }
 0x60b   :  { %v16937_v57 = vadd.f32 %v12870_v2, %v12869_v46  ;;  %10207 = vmatmul.mubr.bf16.gmra.mrb[40].mxu1 %v18160_v54 }
 0x60c   :  { %v8515_v45 = vadd.f32 %v12679_v11, %v16680_v50  ;;  %10216 = vmatprep.mubr.bf16.mxu1 %v18147_v18  ;;  %v16945_v33 = vadd.f32 %v16812_v56, %v8512_v19 }
 0x60e   :  { %v12760_v0 = vpop.f32.mrb[192].mxu1  ;;  %v16948_v49 = vadd.f32 %v16817_v51, %v8515_v45 }
 0x60f   :  { %v12952_v7 = vpop.f32.mrb[224].mxu0  ;;  %v12761_v27 = vpop.f32.mrb[193].mxu1 }
 0x610   :  { %v12953_v30 = vpop.f32.mrb[225].mxu0  ;;  %v12762_v47 = vadd.f32 %v12761_v27, %v12760_v0  ;;  %v12763_v58 = vpop.f32.mrb[194].mxu1 }
 0x611   :  { %v16950_v46 = vadd.f32 %v12953_v30, %v12952_v7  ;;  %v12955_v2 = vpop.f32.mrb[226].mxu0  ;;  %v12764_v50 = vpop.f32.mrb[195].mxu1 }
 0x612   :  { %v12956_v11 = vpop.f32.mrb[227].mxu0  ;;  %v8650_v38 = vadd.f32 %v12762_v47, %v16837_v25  ;;  %v12765_v56 = vadd.f32 %v12764_v50, %v12763_v58 }
 0x613   :  { %v16953_v19 = vadd.f32 %v12956_v11, %v12955_v2  ;;  %10217 = vmatmul.mubr.bf16.gmra.mrb[44].mxu1 %v18163_v63 }
 0x614   :  { %v16959_v51 = vadd.f32 %v8650_v38, %v16703_v40  ;;  %v8653_v54 = vadd.f32 %v12765_v56, %v16840_v12  ;;  %10226 = vmatprep.mubr.bf16.mxu1 %v18147_v18  ;;  %v18164_v56 = vld [vmem:[#allocation76_spill] sm:$0xff] }
 0x616   :  { %v16964_v45 = vadd.f32 %v8653_v54, %v16709_v26  ;;  %v12766_v0 = vpop.f32.mrb[196].mxu1  ;;  %v18166_v26 = vpack.c.bf16 %v18164_v56, %v18165_v55  ;;  %v18168_v54 = vld [vmem:[#allocation24_spill] sm:$0xff] }
 0x617   :  { %v12958_v7 = vpop.f32.mrb[228].mxu0  ;;  %v12767_v25 = vpop.f32.mrb[197].mxu1 }
 0x618   :  { %v12959_v27 = vpop.f32.mrb[229].mxu0  ;;  %v12768_v30 = vadd.f32 %v12767_v25, %v12766_v0  ;;  %v12769_v58 = vpop.f32.mrb[198].mxu1 }
 0x619   :  { %v16966_v47 = vadd.f32 %v12959_v27, %v12958_v7  ;;  %v12961_v2 = vpop.f32.mrb[230].mxu0  ;;  %v12770_v50 = vpop.f32.mrb[199].mxu1 }
 0x61a   :  { %v12962_v11 = vpop.f32.mrb[231].mxu0  ;;  %v8658_v40 = vadd.f32 %v12768_v30, %v16851_v60  ;;  %v12771_v38 = vadd.f32 %v12770_v50, %v12769_v58 }
 0x61b   :  { %v16969_v12 = vadd.f32 %v12962_v11, %v12961_v2  ;;  %10227 = vmatmul.mubr.bf16.gmra.mrb[48].mxu1 %v18166_v26  ;;  %v18173_v26 = vld [vmem:[#allocation25_spill] sm:$0xff] }
 0x61c   :  { %v16975_v28 = vadd.f32 %v8658_v40, %v16722_v59  ;;  %v8661_v63 = vadd.f32 %v12771_v38, %v16854_v13  ;;  %10236 = vmatprep.mubr.bf16.mxu1 %v18147_v18  ;;  %v18170_v18 = vld [vmem:[#allocation72_spill] sm:$0xff]  ;;  %v18171_v38 = vld [vmem:[#allocation78_spill] sm:$0xff] }
 0x61d   :  { %v18172_v55 = vpack.c.bf16 %v18170_v18, %v18171_v38 }
 0x61e   :  { %18167 = vst [vmem:[#allocation43_spill] sm:$0xff] %v16975_v28  ;;  %v16980_v0 = vadd.f32 %v8661_v63, %v18168_v54  ;;  %v12772_v7 = vpop.f32.mrb[200].mxu1 }
 0x61f   :  { %v12964_v25 = vpop.f32.mrb[232].mxu0  ;;  %v12773_v60 = vpop.f32.mrb[201].mxu1 }
 0x620   :  { %18169 = vst [vmem:[#allocation71_spill] sm:$0xff] %v16980_v0  ;;  %v12965_v27 = vpop.f32.mrb[233].mxu0  ;;  %v12774_v30 = vadd.f32 %v12773_v60, %v12772_v7  ;;  %v12775_v2 = vpop.f32.mrb[202].mxu1  ;;  %v18174_v7 = vld [vmem:[#allocation29_spill] sm:$0xff] }
 0x621   :  { %v16982_v58 = vadd.f32 %v12965_v27, %v12964_v25  ;;  %v12967_v50 = vpop.f32.mrb[234].mxu0  ;;  %v12776_v11 = vpop.f32.mrb[203].mxu1 }
 0x622   :  { %v12968_v56 = vpop.f32.mrb[235].mxu0  ;;  %v8666_v59 = vadd.f32 %v12774_v30, %v16865_v16  ;;  %v12777_v40 = vadd.f32 %v12776_v11, %v12775_v2 }
 0x623   :  { %v16985_v13 = vadd.f32 %v12968_v56, %v12967_v50  ;;  %10237 = vmatmul.mubr.bf16.gmra.mrb[52].mxu1 %v18172_v55 }
 0x624   :  { %v16991_v63 = vadd.f32 %v8666_v59, %v18173_v26  ;;  %v8669_v54 = vadd.f32 %v12777_v40, %v16868_v35  ;;  %v13724_v35 = vld [vmem:[#allocation11 + $0xc0] ss:$8 sps:$4 sm:$0xff]   ;;  %v13726_v40 = vld [vmem:[#allocation11 + $0xc4] ss:$8 sps:$4 sm:$0xff]  }
 0x625   :  { %9949 = vmatprep.subr.bf16.mxu0 %v13726_v40 }
 0x626   :  { %v16995_v25 = vadd.f32 %v8669_v54, %v18174_v7  ;;  %v12778_v60 = vpop.f32.mrb[204].mxu1  ;;  %9950 = vmatpush1.bf16.msra.mxu0 %v13724_v35 }
 0x627   :  { %v12970_v27 = vpop.f32.mrb[236].mxu0  ;;  %v12779_v0 = vpop.f32.mrb[205].mxu1 }
 0x628   :  { %v12971_v28 = vpop.f32.mrb[237].mxu0  ;;  %v12780_v16 = vadd.f32 %v12779_v0, %v12778_v60  ;;  %v12781_v2 = vpop.f32.mrb[206].mxu1 }
 0x629   :  { %v16997_v30 = vadd.f32 %v12971_v28, %v12970_v27  ;;  %v12973_v50 = vpop.f32.mrb[238].mxu0  ;;  %v12782_v11 = vpop.f32.mrb[207].mxu1 }
 0x62a   :  { %v12974_v56 = vpop.f32.mrb[239].mxu0  ;;  %v8674_v18 = vadd.f32 %v12780_v16, %v16881_v3  ;;  %v12783_v59 = vadd.f32 %v12782_v11, %v12781_v2 }
 0x62b   :  { %v17000_v38 = vadd.f32 %v12974_v56, %v12973_v50 }
 0x62c   :  { %v17003_v55 = vadd.f32 %v8674_v18, %v16757_v32  ;;  %v8677_v26 = vadd.f32 %v12783_v59, %v16884_v62  ;;  %v13727_v18 = vld [vmem:[#allocation11 + $0xd0] ss:$8 sps:$4 sm:$0xff]   ;;  %v13729_v59 = vld [vmem:[#allocation11 + $0xd4] ss:$8 sps:$4 sm:$0xff]  }
 0x62d   :  { %9951 = vmatprep.subr.bf16.mxu0 %v13729_v59 }
 0x62e   :  { %v17007_v28 = vadd.f32 %v8677_v26, %v16760_v42  ;;  %v12784_v0 = vpop.f32.mrb[208].mxu1  ;;  %9952 = vmatpush1.bf16.msra.mxu0 %v13727_v18 }
 0x62f   :  { %v12976_v54 = vpop.f32.mrb[240].mxu0  ;;  %v12785_v7 = vpop.f32.mrb[209].mxu1 }
 0x630   :  { %v12977_v60 = vpop.f32.mrb[241].mxu0  ;;  %v12786_v3 = vadd.f32 %v12785_v7, %v12784_v0  ;;  %v12787_v16 = vpop.f32.mrb[210].mxu1 }
 0x631   :  { %v17009_v27 = vadd.f32 %v12977_v60, %v12976_v54  ;;  %v12979_v2 = vpop.f32.mrb[242].mxu0  ;;  %v12788_v50 = vpop.f32.mrb[211].mxu1 }
 0x632   :  { %v12980_v11 = vpop.f32.mrb[243].mxu0  ;;  %v8682_v32 = vadd.f32 %v12786_v3, %v16897_v53  ;;  %v12789_v56 = vadd.f32 %v12788_v50, %v12787_v16 }
 0x633   :  { %v17012_v62 = vadd.f32 %v12980_v11, %v12979_v2 }
 0x634   :  { %v17015_v42 = vadd.f32 %v8682_v32, %v16774_v5  ;;  %v8685_v35 = vadd.f32 %v12789_v56, %v16900_v41  ;;  %v13730_v32 = vld [vmem:[#allocation11 + $0xe0] ss:$8 sps:$4 sm:$0xff]   ;;  %v13732_v56 = vld [vmem:[#allocation11 + $0xe4] ss:$8 sps:$4 sm:$0xff]  }
 0x635   :  { %9953 = vmatprep.subr.bf16.mxu0 %v13732_v56 }
 0x636   :  { %v17019_v40 = vadd.f32 %v8685_v35, %v16778_v1  ;;  %v12790_v26 = vpop.f32.mrb[212].mxu1  ;;  %9954 = vmatpush1.bf16.msra.mxu0 %v13730_v32 }
 0x637   :  { %v12982_v0 = vpop.f32.mrb[244].mxu0  ;;  %v12791_v54 = vpop.f32.mrb[213].mxu1 }
 0x638   :  { %v12983_v7 = vpop.f32.mrb[245].mxu0  ;;  %v12792_v53 = vadd.f32 %v12791_v54, %v12790_v26  ;;  %v12793_v3 = vpop.f32.mrb[214].mxu1 }
 0x639   :  { %v17021_v60 = vadd.f32 %v12983_v7, %v12982_v0  ;;  %v12985_v16 = vpop.f32.mrb[246].mxu0  ;;  %v12794_v2 = vpop.f32.mrb[215].mxu1 }
 0x63a   :  { %v12986_v50 = vpop.f32.mrb[247].mxu0  ;;  %v8690_v5 = vadd.f32 %v12792_v53, %v16913_v4  ;;  %v12795_v11 = vadd.f32 %v12794_v2, %v12793_v3 }
 0x63b   :  { %v17024_v41 = vadd.f32 %v12986_v50, %v12985_v16 }
 0x63c   :  { %v17027_v1 = vadd.f32 %v8690_v5, %v16790_v15  ;;  %v8693_v18 = vadd.f32 %v12795_v11, %v16916_v6  ;;  %v13733_v5 = vld [vmem:[#allocation11 + $0xf0] ss:$8 sps:$4 sm:$0xff]   ;;  %v13735_v11 = vld [vmem:[#allocation11 + $0xf4] ss:$8 sps:$4 sm:$0xff]  }
 0x63d   :  { %9955 = vmatprep.subr.bf16.mxu0 %v13735_v11 }
 0x63e   :  { %v17031_v59 = vadd.f32 %v8693_v18, %v16794_v8  ;;  %v12796_v35 = vpop.f32.mrb[216].mxu1  ;;  %9956 = vmatpush1.bf16.msra.mxu0 %v13733_v5 }
 0x63f   :  { %v12988_v26 = vpop.f32.mrb[248].mxu0  ;;  %v12797_v0 = vpop.f32.mrb[217].mxu1 }
 0x640   :  { %v12989_v54 = vpop.f32.mrb[249].mxu0  ;;  %v12798_v4 = vadd.f32 %v12797_v0, %v12796_v35  ;;  %v12799_v53 = vpop.f32.mrb[218].mxu1 }
 0x641   :  { %v17033_v7 = vadd.f32 %v12989_v54, %v12988_v26  ;;  %v12991_v3 = vpop.f32.mrb[250].mxu0  ;;  %v12800_v16 = vpop.f32.mrb[219].mxu1  ;;  %v18175_v26 = vld [vmem:[#allocation60_spill] sm:$0xff] }
 0x642   :  { %v12992_v2 = vpop.f32.mrb[251].mxu0  ;;  %v8698_v15 = vadd.f32 %v12798_v4, %v16929_v44  ;;  %v12801_v50 = vadd.f32 %v12800_v16, %v12799_v53  ;;  %10134 = vmatprep.subr.bf16.mxu0 %v18175_v26 }
 0x643   :  { %v17036_v6 = vadd.f32 %v12992_v2, %v12991_v3 }
 0x644   :  { %v17039_v8 = vadd.f32 %v8698_v15, %v16806_v20  ;;  %v8701_v32 = vadd.f32 %v12801_v50, %v16932_v22 }
 0x646   :  { %v17043_v56 = vadd.f32 %v8701_v32, %v16810_v24  ;;  %v12802_v18 = vpop.f32.mrb[220].mxu1 }
 0x647   :  { %v12994_v35 = vpop.f32.mrb[252].mxu0  ;;  %v12803_v44 = vpop.f32.mrb[221].mxu1 }
 0x648   :  { %v12995_v0 = vpop.f32.mrb[253].mxu0  ;;  %v12804_v54 = vadd.f32 %v12803_v44, %v12802_v18  ;;  %v12805_v53 = vpop.f32.mrb[222].mxu1 }
 0x649   :  { %v17046_v4 = vadd.f32 %v12995_v0, %v12994_v35  ;;  %v12997_v3 = vpop.f32.mrb[254].mxu0  ;;  %v12806_v20 = vpop.f32.mrb[223].mxu1 }
 0x64a   :  { %v12998_v16 = vpop.f32.mrb[255].mxu0  ;;  %v8706_v22 = vadd.f32 %v12804_v54, %v16945_v33  ;;  %v12807_v2 = vadd.f32 %v12806_v20, %v12805_v53 }
 0x64b   :  { %v17049_v15 = vadd.f32 %v12998_v16, %v12997_v3 }
 0x64c   :  { %v17052_v24 = vadd.f32 %v8706_v22, %v16822_v34  ;;  %v8709_v50 = vadd.f32 %v12807_v2, %v16948_v49 }
 0x64e   :  { %v17056_v5 = vadd.f32 %v8709_v50, %v16826_v61  ;;  %v12888_v11 = vpop.f32.mrb[224].mxu1 }
 0x64f   :  { %v12889_v32 = vpop.f32.mrb[225].mxu1 }
 0x650   :  { %v12890_v18 = vadd.f32 %v12889_v32, %v12888_v11  ;;  %v12891_v35 = vpop.f32.mrb[226].mxu1 }
 0x651   :  { %v12892_v26 = vpop.f32.mrb[227].mxu1 }
 0x652   :  { %v9437_v44 = vadd.f32 %v12890_v18, %v16828_v31  ;;  %v12893_v0 = vadd.f32 %v12892_v26, %v12891_v35 }
 0x654   :  { %v9440_v33 = vadd.f32 %v12893_v0, %v16831_v14  ;;  %v17061_v54 = vadd.f32 %v16950_v46, %v9437_v44 }
 0x656   :  { %v12894_v34 = vpop.f32.mrb[228].mxu1  ;;  %v17064_v53 = vadd.f32 %v16953_v19, %v9440_v33 }
 0x657   :  { %v12895_v49 = vpop.f32.mrb[229].mxu1 }
 0x658   :  { %v12896_v61 = vadd.f32 %v12895_v49, %v12894_v34  ;;  %v12897_v3 = vpop.f32.mrb[230].mxu1 }
 0x659   :  { %v12898_v20 = vpop.f32.mrb[231].mxu1 }
 0x65a   :  { %v9445_v16 = vadd.f32 %v12896_v61, %v16842_v9  ;;  %v12899_v22 = vadd.f32 %v12898_v20, %v12897_v3 }
 0x65c   :  { %v9448_v2 = vadd.f32 %v12899_v22, %v16845_v48  ;;  %v17069_v31 = vadd.f32 %v16966_v47, %v9445_v16 }
 0x65e   :  { %v12900_v14 = vpop.f32.mrb[232].mxu1  ;;  %v17072_v46 = vadd.f32 %v16969_v12, %v9448_v2 }
 0x65f   :  { %v12901_v50 = vpop.f32.mrb[233].mxu1 }
 0x660   :  { %v12902_v11 = vadd.f32 %v12901_v50, %v12900_v14  ;;  %v12903_v19 = vpop.f32.mrb[234].mxu1 }
 0x661   :  { %v12904_v32 = vpop.f32.mrb[235].mxu1 }
 0x662   :  { %v9453_v18 = vadd.f32 %v12902_v11, %v16856_v29  ;;  %v12905_v35 = vadd.f32 %v12904_v32, %v12903_v19 }
 0x664   :  { %v9456_v26 = vadd.f32 %v12905_v35, %v16859_v10  ;;  %v17077_v9 = vadd.f32 %v16982_v58, %v9453_v18  ;;  %v18176_v35 = vld [vmem:[#allocation26_spill] sm:$0xff] }
 0x666   :  { %v12906_v48 = vpop.f32.mrb[236].mxu1  ;;  %v17080_v47 = vadd.f32 %v16985_v13, %v9456_v26 }
 0x667   :  { %v12907_v44 = vpop.f32.mrb[237].mxu1 }
 0x668   :  { %v12908_v0 = vadd.f32 %v12907_v44, %v12906_v48  ;;  %v12909_v12 = vpop.f32.mrb[238].mxu1 }
 0x669   :  { %v12910_v33 = vpop.f32.mrb[239].mxu1 }
 0x66a   :  { %v9461_v34 = vadd.f32 %v12908_v0, %v16870_v23  ;;  %v12911_v49 = vadd.f32 %v12910_v33, %v12909_v12 }
 0x66c   :  { %v9464_v61 = vadd.f32 %v12911_v49, %v16873_v17  ;;  %v17085_v29 = vadd.f32 %v16997_v30, %v9461_v34 }
 0x66e   :  { %v12912_v10 = vpop.f32.mrb[240].mxu1  ;;  %v17088_v58 = vadd.f32 %v17000_v38, %v9464_v61 }
 0x66f   :  { %v12913_v3 = vpop.f32.mrb[241].mxu1 }
 0x670   :  { %v12914_v20 = vadd.f32 %v12913_v3, %v12912_v10  ;;  %v12915_v13 = vpop.f32.mrb[242].mxu1 }
 0x671   :  { %v12916_v16 = vpop.f32.mrb[243].mxu1 }
 0x672   :  { %v9469_v22 = vadd.f32 %v12914_v20, %v16886_v52  ;;  %v12917_v2 = vadd.f32 %v12916_v16, %v12915_v13 }
 0x674   :  { %v9472_v14 = vadd.f32 %v12917_v2, %v16889_v21  ;;  %v17093_v23 = vadd.f32 %v17009_v27, %v9469_v22 }
 0x676   :  { %v12918_v17 = vpop.f32.mrb[244].mxu1  ;;  %v17096_v30 = vadd.f32 %v17012_v62, %v9472_v14 }
 0x677   :  { %v12919_v50 = vpop.f32.mrb[245].mxu1 }
 0x678   :  { %v12920_v11 = vadd.f32 %v12919_v50, %v12918_v17  ;;  %v12921_v38 = vpop.f32.mrb[246].mxu1 }
 0x679   :  { %v12922_v19 = vpop.f32.mrb[247].mxu1 }
 0x67a   :  { %v9477_v32 = vadd.f32 %v12920_v11, %v16902_v36  ;;  %v12923_v18 = vadd.f32 %v12922_v19, %v12921_v38 }
 0x67c   :  { %v9480_v26 = vadd.f32 %v12923_v18, %v18176_v35  ;;  %v17101_v52 = vadd.f32 %v17021_v60, %v9477_v32 }
 0x67e   :  { %v12924_v21 = vpop.f32.mrb[248].mxu1  ;;  %v17104_v27 = vadd.f32 %v17024_v41, %v9480_v26 }
 0x67f   :  { %v12925_v48 = vpop.f32.mrb[249].mxu1 }
 0x680   :  { %v12926_v44 = vadd.f32 %v12925_v48, %v12924_v21  ;;  %v12927_v62 = vpop.f32.mrb[250].mxu1 }
 0x681   :  { %v12928_v0 = vpop.f32.mrb[251].mxu1 }
 0x682   :  { %v9485_v12 = vadd.f32 %v12926_v44, %v16918_v43  ;;  %v12929_v33 = vadd.f32 %v12928_v0, %v12927_v62  ;;  %v18177_v44 = vld [vmem:[#allocation43_spill] sm:$0xff] }
 0x683   :  { %v18178_v0 = vld [vmem:[#allocation71_spill] sm:$0xff] }
 0x684   :  { %v9488_v34 = vadd.f32 %v12929_v33, %v16921_v39  ;;  %v17109_v36 = vadd.f32 %v17033_v7, %v9485_v12 }
 0x686   :  { %v12930_v49 = vpop.f32.mrb[252].mxu1  ;;  %v17112_v60 = vadd.f32 %v17036_v6, %v9488_v34 }
 0x687   :  { %v12931_v61 = vpop.f32.mrb[253].mxu1 }
 0x688   :  { %v12932_v10 = vadd.f32 %v12931_v61, %v12930_v49  ;;  %v12933_v41 = vpop.f32.mrb[254].mxu1 }
 0x689   :  { %v12934_v3 = vpop.f32.mrb[255].mxu1 }
 0x68a   :  { %v9493_v20 = vadd.f32 %v12932_v10, %v16934_v37  ;;  %v12935_v13 = vadd.f32 %v12934_v3, %v12933_v41 }
 0x68c   :  { %v9496_v16 = vadd.f32 %v12935_v13, %v16937_v57  ;;  %v17117_v43 = vadd.f32 %v17046_v4, %v9493_v20 }
 0x68e   :  { %v13016_v39 = vpop.f32.mrb[0].mxu1  ;;  %v17120_v7 = vadd.f32 %v17049_v15, %v9496_v16 }
 0x68f   :  { %v13017_v22 = vpop.f32.mrb[1].mxu1 }
 0x690   :  { %v13018_v2 = vadd.f32 %v13017_v22, %v13016_v39  ;;  %v13019_v6 = vpop.f32.mrb[2].mxu1 }
 0x691   :  { %v13020_v14 = vpop.f32.mrb[3].mxu1 }
 0x692   :  { %v9631_v17 = vadd.f32 %v13018_v2, %v17061_v54  ;;  %v13021_v50 = vadd.f32 %v13020_v14, %v13019_v6 }
 0x694   :  { %v9693_v11 = vadd.f32 %v9631_v17, %v16959_v51  ;;  %v9634_v37 = vadd.f32 %v13021_v50, %v17064_v53 }
 0x696   :  { %v9725_v38 = vmin.f32 %v9693_v11, 0.0  ;;  %v9694_v57 = vadd.f32 %v9634_v37, %v16964_v45  ;;  %v13022_v4 = vpop.f32.mrb[4].mxu1  ;;  %vm9709_vm0 = vcmp.gt.f32.partialorder %v9693_v11, 0.0 }
 0x697   :  { %v13023_v19 = vpop.f32.mrb[5].mxu1 }
 0x698   :  { %v9741_v32 = vmul.f32 1.442695, %v9725_v38  ;;  %v9726_v18 = vmin.f32 %v9694_v57, 0.0  ;;  %v13024_v15 = vadd.f32 %v13023_v19, %v13022_v4  ;;  %v13025_v35 = vpop.f32.mrb[6].mxu1  ;;  %vm9710_vm1 = vcmp.gt.f32.partialorder %v9694_v57, 0.0 }
 0x699   :  { %v13026_v26 = vpop.f32.mrb[7].mxu1 }
 0x69a   :  { %13768 = vpow2.f32 %v9741_v32  ;;  %v9743_v21 = vmul.f32 1.442695, %v9726_v18  ;;  %v9639_v48 = vadd.f32 %v13024_v15, %v17069_v31  ;;  %v13027_v54 = vadd.f32 %v13026_v26, %v13025_v35 }
 0x69c   :  { %13770 = vpow2.f32 %v9743_v21  ;;  %v9695_v51 = vadd.f32 %v9639_v48, %v18177_v44  ;;  %v9642_v53 = vadd.f32 %v13027_v54, %v17072_v46 }
 0x69e   :  { %v9727_v62 = vmin.f32 %v9695_v51, 0.0  ;;  %v17130_v45 = vadd.f32 %v9642_v53, %v18178_v0  ;;  %v13028_v12 = vpop.f32.mrb[8].mxu1  ;;  %vm9711_vm2 = vcmp.gt.f32.partialorder %v9695_v51, 0.0 }
 0x69f   :  { %v13029_v33 = vpop.f32.mrb[9].mxu1 }
 0x6a0   :  { %v9745_v34 = vmul.f32 1.442695, %v9727_v62  ;;  %v9728_v49 = vmin.f32 %v17130_v45, 0.0  ;;  %v13030_v61 = vadd.f32 %v13029_v33, %v13028_v12  ;;  %v13031_v10 = vpop.f32.mrb[10].mxu1  ;;  %vm9712_vm3 = vcmp.gt.f32.partialorder %v17130_v45, 0.0 }
 0x6a1   :  { %v13032_v41 = vpop.f32.mrb[11].mxu1 }
 0x6a2   :  { %13772 = vpow2.f32 %v9745_v34  ;;  %v9747_v31 = vmul.f32 1.442695, %v9728_v49  ;;  %v9647_v3 = vadd.f32 %v13030_v61, %v17077_v9  ;;  %v13033_v20 = vadd.f32 %v13032_v41, %v13031_v10 }
 0x6a4   :  { %v13769_v13 = vpop.eup %13768  ;;  %13774 = vpow2.f32 %v9747_v31  ;;  %v17135_v46 = vadd.f32 %v9647_v3, %v16991_v63  ;;  %v9650_v16 = vadd.f32 %v13033_v20, %v17080_v47  ;;  %v13835_v31 = vld [vmem:[#allocation11] ss:$8 sps:$4 sm:$0xff]  }
 0x6a5   :  { %v10968_v39 = vadd.f32 -1.0, %v13769_v13  ;;  %v17153_v20 = vld [vmem:[#allocation2] sm:$0xff] }
 0x6a6   :  { %v13771_v22 = vpop.eup %13770  ;;  %v9729_v2 = vmin.f32 %v17135_v46, 0.0  ;;  %v17140_v6 = vadd.f32 %v9650_v16, %v16995_v25  ;;  %v13034_v14 = vpop.f32.mrb[12].mxu1  ;;  %v13837_v16 = vld [vmem:[#allocation11 + $0x14] ss:$8 sps:$4 sm:$0xff]   ;;  %vm9713_vm4 = vcmp.gt.f32.partialorder %v17135_v46, 0.0 }
 0x6a7   :  { %v9789_v17 = vmul.f32 1.6732632, %v10968_v39  ;;  %v10969_v50 = vadd.f32 -1.0, %v13771_v22  ;;  %v13035_v37 = vpop.f32.mrb[13].mxu1 }
 0x6a8   :  { %v9749_v9 = vmul.f32 1.442695, %v9729_v2  ;;  %v9730_v38 = vmin.f32 %v17140_v6, 0.0  ;;  %v13036_v4 = vadd.f32 %v13035_v37, %v13034_v14  ;;  %v13037_v63 = vpop.f32.mrb[14].mxu1  ;;  %vm9714_vm5 = vcmp.gt.f32.partialorder %v17140_v6, 0.0 }
 0x6a9   :  { %v9805_v19 = vsel %vm9709_vm0, %v9693_v11, %v9789_v17  ;;  %v9790_v32 = vmul.f32 1.6732632, %v10969_v50  ;;  %v13038_v47 = vpop.f32.mrb[15].mxu1 }
 0x6aa   :  { %13776 = vpow2.f32 %v9749_v9  ;;  %v9751_v18 = vmul.f32 1.442695, %v9730_v38  ;;  %v9655_v15 = vadd.f32 %v13036_v4, %v17085_v29  ;;  %v13039_v35 = vadd.f32 %v13038_v47, %v13037_v63  ;;  %v13838_v9 = vld [vmem:[#allocation11 + $0x10] ss:$8 sps:$4 sm:$0xff]  }
 0x6ab   :  { %v9806_v25 = vsel %vm9710_vm1, %v9694_v57, %v9790_v32  ;;  %v9821_v21 = vmul.f32 1.050701, %v9805_v19  ;;  %v13839_v19 = vld [vmem:[#allocation11 + $0x24] ss:$8 sps:$4 sm:$0xff]  }
 0x6ac   :  { %v13773_v26 = vpop.eup %13772  ;;  %v9822_v48 = vmul.f32 1.050701, %v9806_v25  ;;  %13778 = vpow2.f32 %v9751_v18  ;;  %v17145_v54 = vadd.f32 %v9655_v15, %v17003_v55  ;;  %v9658_v53 = vadd.f32 %v13039_v35, %v17088_v58 }
 0x6ad   :  { %v10970_v44 = vadd.f32 -1.0, %v13773_v26 }
 0x6ae   :  { %v13775_v11 = vpop.eup %13774  ;;  %v9837_v62 = vpack.c.bf16 %v9822_v48, %v9821_v21  ;;  %v9731_v0 = vmin.f32 %v17145_v54, 0.0  ;;  %v13040_v12 = vpop.f32.mrb[16].mxu1  ;;  %v17150_v29 = vadd.f32 %v9658_v53, %v17007_v28  ;;  %v13841_v53 = vld [vmem:[#allocation11 + $0x34] ss:$8 sps:$4 sm:$0xff]   ;;  %vm9715_vm6 = vcmp.gt.f32.partialorder %v17145_v54, 0.0 }
 0x6af   :  { %v9791_v33 = vmul.f32 1.6732632, %v10970_v44  ;;  %v10971_v34 = vadd.f32 -1.0, %v13775_v11  ;;  %v13041_v57 = vpop.f32.mrb[17].mxu1 }
 0x6b0   :  { %v9753_v49 = vmul.f32 1.442695, %v9731_v0  ;;  %v13042_v61 = vadd.f32 %v13041_v57, %v13040_v12  ;;  %v13043_v10 = vpop.f32.mrb[18].mxu1  ;;  %9974 = vmatmul.mubr.bf16.vlgmr.msra.gmra.mrb[0].mxu0 %v9837_v62  ;;  %v9732_v58 = vmin.f32 %v17150_v29, 0.0  ;;  %vm9716_vm14 = vcmp.gt.f32.partialorder %v17150_v29, 0.0 }
 0x6b1   :  { %v9807_v55 = vsel %vm9711_vm2, %v9695_v51, %v9791_v33  ;;  %v9792_v41 = vmul.f32 1.6732632, %v10971_v34  ;;  %10135 = vmatpush1.bf16.msra.mxu0 %v13835_v31  ;;  %v13044_v3 = vpop.f32.mrb[19].mxu1  ;;  %9983 = vmatprep.mubr.bf16.mxu0 %v17153_v20 }
 0x6b2   :  { %13780 = vpow2.f32 %v9753_v49  ;;  %v9663_v28 = vadd.f32 %v13042_v61, %v17093_v23  ;;  %v13045_v13 = vadd.f32 %v13044_v3, %v13043_v10  ;;  %10136 = vmatprep.subr.bf16.mxu0 %v13837_v16  ;;  %v9755_v39 = vmul.f32 1.442695, %v9732_v58  ;;  %v13842_v49 = vld [vmem:[#allocation11 + $0x30] ss:$8 sps:$4 sm:$0xff]  }
 0x6b3   :  { %v9808_v51 = vsel %vm9712_vm3, %v17130_v45, %v9792_v41  ;;  %v9823_v2 = vmul.f32 1.050701, %v9807_v55  ;;  %v13843_v55 = vld [vmem:[#allocation11 + $0x44] ss:$8 sps:$4 sm:$0xff]  }
 0x6b4   :  { %v13777_v22 = vpop.eup %13776  ;;  %v9824_v14 = vmul.f32 1.050701, %v9808_v51  ;;  %v17160_v17 = vadd.f32 %v9663_v28, %v17015_v42  ;;  %v9666_v50 = vadd.f32 %v13045_v13, %v17096_v30  ;;  %13782 = vpow2.f32 %v9755_v39  ;;  %v13844_v39 = vld [vmem:[#allocation11 + $0x40] ss:$8 sps:$4 sm:$0xff]  }
 0x6b5   :  { %v10972_v37 = vadd.f32 -1.0, %v13777_v22  ;;  %10137 = vmatpush1.bf16.msra.mxu0 %v13838_v9 }
 0x6b6   :  { %v13779_v38 = vpop.eup %13778  ;;  %v9838_v23 = vpack.c.bf16 %v9824_v14, %v9823_v2  ;;  %v9733_v4 = vmin.f32 %v17160_v17, 0.0  ;;  %v17165_v63 = vadd.f32 %v9666_v50, %v17019_v40  ;;  %v13046_v45 = vpop.f32.mrb[20].mxu1  ;;  %10138 = vmatprep.subr.bf16.mxu0 %v13839_v19  ;;  %v13840_v40 = vld [vmem:[#allocation11 + $0x20] ss:$8 sps:$4 sm:$0xff]   ;;  %v13845_v2 = vld [vmem:[#allocation11 + $0x54] ss:$8 sps:$4 sm:$0xff]  }
 0x6b7   :  { %v9793_v32 = vmul.f32 1.6732632, %v10972_v37  ;;  %v10973_v47 = vadd.f32 -1.0, %v13779_v38  ;;  %v13047_v42 = vpop.f32.mrb[21].mxu1  ;;  %v13846_v19 = vld [vmem:[#allocation11 + $0x50] ss:$8 sps:$4 sm:$0xff]  }
 0x6b8   :  { %v9757_v30 = vmul.f32 1.442695, %v9733_v4  ;;  %v9734_v18 = vmin.f32 %v17165_v63, 0.0  ;;  %v13048_v15 = vadd.f32 %v13047_v42, %v13046_v45  ;;  %v13049_v25 = vpop.f32.mrb[22].mxu1  ;;  %9984 = vmatmul.mubr.bf16.gmra.mrb[4].mxu0 %v9838_v23  ;;  %v13847_v42 = vld [vmem:[#allocation11 + $0x64] ss:$8 sps:$4 sm:$0xff]  }
 0x6b9   :  { %v9809_v35 = vsel %vm9713_vm4, %v17135_v46, %v9793_v32  ;;  %v9794_v26 = vmul.f32 1.6732632, %v10973_v47  ;;  %v13050_v21 = vpop.f32.mrb[23].mxu1  ;;  %9993 = vmatprep.mubr.bf16.mxu0 %v17153_v20  ;;  %10139 = vmatpush1.bf16.msra.mxu0 %v13840_v40  ;;  %vm9717_vm15 = vcmp.gt.f32.partialorder %v17160_v17, 0.0  ;;  %vm9718_vm7 = vcmp.gt.f32.partialorder %v17165_v63, 0.0 }
 0x6ba   :  { %13784 = vpow2.f32 %v9757_v30  ;;  %v9759_v48 = vmul.f32 1.442695, %v9734_v18  ;;  %v9671_v44 = vadd.f32 %v13048_v15, %v17101_v52  ;;  %10140 = vmatprep.subr.bf16.mxu0 %v13841_v53  ;;  %v13051_v62 = vadd.f32 %v13050_v21, %v13049_v25  ;;  %v13848_v53 = vld [vmem:[#allocation11 + $0x60] ss:$8 sps:$4 sm:$0xff]  }
 0x6bb   :  { %v9810_v11 = vsel %vm9714_vm5, %v17140_v6, %v9794_v26  ;;  %v9825_v12 = vmul.f32 1.050701, %v9809_v35 }
 0x6bc   :  { %v13781_v0 = vpop.eup %13780  ;;  %v9826_v46 = vmul.f32 1.050701, %v9810_v11  ;;  %13786 = vpow2.f32 %v9759_v48  ;;  %v17175_v33 = vadd.f32 %v9671_v44, %v17027_v1  ;;  %v9674_v57 = vadd.f32 %v13051_v62, %v17104_v27 }
 0x6bd   :  { %v10974_v34 = vadd.f32 -1.0, %v13781_v0  ;;  %10141 = vmatpush1.bf16.msra.mxu0 %v13842_v49  ;;  %v13849_v0 = vld [vmem:[#allocation11 + $0x74] ss:$8 sps:$4 sm:$0xff]  }
 0x6be   :  { %v9839_v61 = vpack.c.bf16 %v9826_v46, %v9825_v12  ;;  %v9735_v52 = vmin.f32 %v17175_v33, 0.0  ;;  %v13052_v10 = vpop.f32.mrb[24].mxu1  ;;  %10142 = vmatprep.subr.bf16.mxu0 %v13843_v55  ;;  %v13783_v6 = vpop.eup %13782  ;;  %v17180_v58 = vadd.f32 %v9674_v57, %v17031_v59  ;;  %v13850_v55 = vld [vmem:[#allocation11 + $0x70] ss:$8 sps:$4 sm:$0xff]   ;;  %vm9719_vm8 = vcmp.gt.f32.partialorder %v17175_v33, 0.0 }
 0x6bf   :  { %v9795_v41 = vmul.f32 1.6732632, %v10974_v34  ;;  %v13053_v31 = vpop.f32.mrb[25].mxu1  ;;  %v10975_v1 = vadd.f32 -1.0, %v13783_v6 }
 0x6c0   :  { %v9761_v3 = vmul.f32 1.442695, %v9735_v52  ;;  %v13054_v28 = vadd.f32 %v13053_v31, %v13052_v10  ;;  %v13055_v27 = vpop.f32.mrb[26].mxu1  ;;  %9994 = vmatmul.mubr.bf16.gmra.mrb[8].mxu0 %v9839_v61  ;;  %v9736_v16 = vmin.f32 %v17180_v58, 0.0  ;;  %vm9720_vm9 = vcmp.gt.f32.partialorder %v17180_v58, 0.0 }
 0x6c1   :  { %v9811_v13 = vsel %vm9715_vm6, %v17145_v54, %v9795_v41  ;;  %v13056_v51 = vpop.f32.mrb[27].mxu1  ;;  %10003 = vmatprep.mubr.bf16.mxu0 %v17153_v20  ;;  %10143 = vmatpush1.bf16.msra.mxu0 %v13844_v39  ;;  %v9796_v22 = vmul.f32 1.6732632, %v10975_v1 }
 0x6c2   :  { %13788 = vpow2.f32 %v9761_v3  ;;  %v9679_v59 = vadd.f32 %v13054_v28, %v17109_v36  ;;  %10144 = vmatprep.subr.bf16.mxu0 %v13845_v2  ;;  %v9763_v14 = vmul.f32 1.442695, %v9736_v16  ;;  %v13057_v50 = vadd.f32 %v13056_v51, %v13055_v27 }
 0x6c3   :  { %v9827_v9 = vmul.f32 1.050701, %v9811_v13  ;;  %v9812_v54 = vsel %vm9716_vm14, %v17150_v29, %v9796_v22 }
 0x6c4   :  { %v13785_v37 = vpop.eup %13784  ;;  %v17190_v38 = vadd.f32 %v9679_v59, %v17039_v8  ;;  %v9828_v23 = vmul.f32 1.050701, %v9812_v54  ;;  %13790 = vpow2.f32 %v9763_v14  ;;  %v9682_v45 = vadd.f32 %v13057_v50, %v17112_v60 }
 0x6c5   :  { %v10976_v4 = vadd.f32 -1.0, %v13785_v37  ;;  %10145 = vmatpush1.bf16.msra.mxu0 %v13846_v19 }
 0x6c6   :  { %v13787_v36 = vpop.eup %13786  ;;  %v9737_v32 = vmin.f32 %v17190_v38, 0.0  ;;  %v13058_v47 = vpop.f32.mrb[28].mxu1  ;;  %10146 = vmatprep.subr.bf16.mxu0 %v13847_v42  ;;  %v9840_v30 = vpack.c.bf16 %v9828_v23, %v9827_v9  ;;  %v17195_v29 = vadd.f32 %v9682_v45, %v17043_v56  ;;  %vm9721_vm10 = vcmp.gt.f32.partialorder %v17190_v38, 0.0 }
 0x6c7   :  { %v9797_v18 = vmul.f32 1.6732632, %v10976_v4  ;;  %v10977_v15 = vadd.f32 -1.0, %v13787_v36  ;;  %v13059_v8 = vpop.f32.mrb[29].mxu1 }
 0x6c8   :  { %v9765_v25 = vmul.f32 1.442695, %v9737_v32  ;;  %v13060_v35 = vadd.f32 %v13059_v8, %v13058_v47  ;;  %v13061_v60 = vpop.f32.mrb[30].mxu1  ;;  %v9738_v40 = vmin.f32 %v17195_v29, 0.0  ;;  %10004 = vmatmul.mubr.bf16.gmra.mrb[12].mxu0 %v9840_v30  ;;  %vm9722_vm11 = vcmp.gt.f32.partialorder %v17195_v29, 0.0 }
 0x6c9   :  { %v9813_v26 = vsel %vm9717_vm15, %v17160_v17, %v9797_v18  ;;  %v9798_v21 = vmul.f32 1.6732632, %v10977_v15  ;;  %v13062_v48 = vpop.f32.mrb[31].mxu1  ;;  %10013 = vmatprep.mubr.bf16.mxu0 %v17153_v20  ;;  %10147 = vmatpush1.bf16.msra.mxu0 %v13848_v53 }
 0x6ca   :  { %13792 = vpow2.f32 %v9765_v25  ;;  %v9687_v44 = vadd.f32 %v13060_v35, %v17117_v43  ;;  %v13063_v56 = vadd.f32 %v13062_v48, %v13061_v60  ;;  %v9767_v62 = vmul.f32 1.442695, %v9738_v40  ;;  %10148 = vmatprep.subr.bf16.mxu0 %v13849_v0 }
 0x6cb   :  { %v9814_v11 = vsel %vm9718_vm7, %v17165_v63, %v9798_v21  ;;  %v9829_v12 = vmul.f32 1.050701, %v9813_v26 }
 0x6cc   :  { %v13789_v17 = vpop.eup %13788  ;;  %v9830_v46 = vmul.f32 1.050701, %v9814_v11  ;;  %v9707_v34 = vadd.f32 %v9687_v44, %v17052_v24  ;;  %v9690_v57 = vadd.f32 %v13063_v56, %v17120_v7  ;;  %13794 = vpow2.f32 %v9767_v62 }
 0x6cd   :  { %v10978_v49 = vadd.f32 -1.0, %v13789_v17  ;;  %10149 = vmatpush1.bf16.msra.mxu0 %v13850_v55  ;;  %v18179_v17 = vld [vmem:[#allocation82_spill] sm:$0xff] }
 0x6ce   :  { %v9841_v43 = vpack.c.bf16 %v9830_v46, %v9829_v12  ;;  %v9739_v61 = vmin.f32 %v9707_v34, 0.0  ;;  %v9708_v52 = vadd.f32 %v9690_v57, %v17056_v5  ;;  %v17207_v10 = vpop.f32.mrb[32].mxu1  ;;  %v13791_v63 = vpop.eup %13790  ;;  %vm9723_vm12 = vcmp.gt.f32.partialorder %v9707_v34, 0.0  ;;  %v18180_v12 = vld [vmem:[#allocation81_spill] sm:$0xff] }
 0x6cf   :  { %v9799_v6 = vmul.f32 1.6732632, %v10978_v49  ;;  %v17209_v41 = vpop.f32.mrb[33].mxu1  ;;  %v10979_v31 = vadd.f32 -1.0, %v13791_v63  ;;  %v18181_v46 = vpack.c.bf16 %v18179_v17, %v18180_v12 }
 0x6d0   :  { %v9769_v1 = vmul.f32 1.442695, %v9739_v61  ;;  %v9740_v3 = vmin.f32 %v9708_v52, 0.0  ;;  %v17211_v24 = vpop.f32.mrb[34].mxu1  ;;  %10014 = vmatmul.mubr.bf16.gmra.mrb[16].mxu0 %v9841_v43  ;;  %vm9724_vm13 = vcmp.gt.f32.partialorder %v9708_v52, 0.0  ;;  %v18182_v61 = vld [vmem:[#allocation50_spill] sm:$0xff] }
 0x6d1   :  { %v17214_v7 = vpop.f32.mrb[35].mxu1  ;;  %v9815_v5 = vsel %vm9719_vm8, %v17175_v33, %v9799_v6  ;;  %v9800_v28 = vmul.f32 1.6732632, %v10979_v31  ;;  %10023 = vmatprep.mubr.bf16.mxu0 %v17153_v20  ;;  %v18185_v6 = vlaneseq }
 0x6d2   :  { %13796 = vpow2.f32 %v9769_v1  ;;  %v9771_v27 = vmul.f32 1.442695, %v9740_v3  ;;  %v9831_v51 = vmul.f32 1.050701, %v9815_v5  ;;  %v10247_v3 = vld [vmem:[#allocation13] sm:$0x3] }
 0x6d3   :  { %v9816_v16 = vsel %vm9720_vm9, %v17180_v58, %v9800_v28  ;;  %v10250_v31 = vshrl.u32 %v18185_v6, 7 }
 0x6d4   :  { %v13793_v13 = vpop.eup %13792  ;;  %13798 = vpow2.f32 %v9771_v27  ;;  %v9832_v39 = vmul.f32 1.050701, %v9816_v16 }
 0x6d5   :  { %v10980_v22 = vadd.f32 -1.0, %v13793_v13  ;;  %v10251_v1 = vsub.s32 0, %v10250_v31  ;;  %v10255_v5 = vsub.s32 1, %v10250_v31 }
 0x6d6   :  { %v17220_v59 = vpop.f32.mrb[36].mxu1  ;;  %v13795_v2 = vpop.eup %13794  ;;  %v9842_v14 = vpack.c.bf16 %v9832_v39, %v9831_v51 }
 0x6d7   :  { %v9801_v50 = vmul.f32 1.6732632, %v10980_v22  ;;  %v17222_v33 = vpop.f32.mrb[37].mxu1  ;;  %v10981_v37 = vadd.f32 -1.0, %v13795_v2  ;;  %v17275_v28 = vrot.slane %v10247_v3, %v10251_v1  ;;  %v17277_v27 = vrot.slane %v10247_v3, %v10255_v5 }
 0x6d8   :  { %v17224_v9 = vpop.f32.mrb[38].mxu1  ;;  %10024 = vmatmul.mubr.bf16.gmra.mrb[20].mxu0 %v9842_v14 }
 0x6d9   :  { %v17227_v54 = vpop.f32.mrb[39].mxu1  ;;  %v9817_v58 = vsel %vm9721_vm10, %v17190_v38, %v9801_v50  ;;  %v9802_v23 = vmul.f32 1.6732632, %v10981_v37  ;;  %10033 = vmatprep.mubr.bf16.mxu0 %v17153_v20 }
 0x6da   :  { %v9833_v19 = vmul.f32 1.050701, %v9817_v58 }
 0x6db   :  { %v9818_v45 = vsel %vm9722_vm11, %v17195_v29, %v9802_v23 }
 0x6dc   :  { %v13797_v4 = vpop.eup %13796  ;;  %v9834_v36 = vmul.f32 1.050701, %v9818_v45 }
 0x6dd   :  { %v10982_v32 = vadd.f32 -1.0, %v13797_v4 }
 0x6de   :  { %v13799_v47 = vpop.eup %13798  ;;  %v17233_v42 = vpop.f32.mrb[40].mxu1  ;;  %v9843_v30 = vpack.c.bf16 %v9834_v36, %v9833_v19 }
 0x6df   :  { %v9803_v18 = vmul.f32 1.6732632, %v10982_v32  ;;  %v10983_v15 = vadd.f32 -1.0, %v13799_v47  ;;  %v17235_v8 = vpop.f32.mrb[41].mxu1 }
 0x6e0   :  { %v17237_v38 = vpop.f32.mrb[42].mxu1  ;;  %10034 = vmatmul.mubr.bf16.gmra.mrb[24].mxu0 %v9843_v30 }
 0x6e1   :  { %v9819_v25 = vsel %vm9723_vm12, %v9707_v34, %v9803_v18  ;;  %v9804_v35 = vmul.f32 1.6732632, %v10983_v15  ;;  %v17239_v60 = vpop.f32.mrb[43].mxu1  ;;  %10043 = vmatprep.mubr.bf16.mxu0 %v17153_v20 }
 0x6e2   :  { %v9835_v26 = vmul.f32 1.050701, %v9819_v25 }
 0x6e3   :  { %v9820_v29 = vsel %vm9724_vm13, %v9708_v52, %v9804_v35  ;;  %v18183_v52 = vld [vmem:[#allocation53_spill] sm:$0xff] }
 0x6e4   :  { %v9836_v21 = vmul.f32 1.050701, %v9820_v29  ;;  %v18184_v55 = vpack.c.bf16 %v18182_v61, %v18183_v52 }
 0x6e6   :  { %v9844_v40 = vpack.c.bf16 %v9836_v21, %v9835_v26  ;;  %v17242_v48 = vpop.f32.mrb[44].mxu1 }
 0x6e7   :  { %v17244_v44 = vpop.f32.mrb[45].mxu1 }
 0x6e8   :  { %v17246_v56 = vpop.f32.mrb[46].mxu1  ;;  %10044 = vmatmul.mubr.bf16.gmra.mrb[28].mxu0 %v9844_v40 }
 0x6e9   :  { %v17248_v53 = vpop.f32.mrb[47].mxu1  ;;  %10166 = vmatprep.mubr.bf16.mxu0 %v17153_v20 }
 0x6ee   :  { %v17251_v11 = vpop.f32.mrb[48].mxu1 }
 0x6ef   :  { %v17253_v62 = vpop.f32.mrb[49].mxu1 }
 0x6f0   :  { %v17255_v0 = vpop.f32.mrb[50].mxu1  ;;  %10167 = vmatmul.mubr.bf16.vlgmr.msra.gmra.mrb[0].mxu0 %v18181_v46 }
 0x6f1   :  { %v17260_v34 = vpop.f32.mrb[51].mxu1  ;;  %10176 = vmatprep.mubr.bf16.mxu0 %v17153_v20 }
 0x6f6   :  { %v17263_v57 = vpop.f32.mrb[52].mxu1 }
 0x6f7   :  { %v17265_v49 = vpop.f32.mrb[53].mxu1 }
 0x6f8   :  { %v17267_v43 = vpop.f32.mrb[54].mxu1  ;;  %10177 = vmatmul.mubr.bf16.gmra.mrb[4].mxu0 %v18184_v55 }
 0x6f9   :  { %v17272_v63 = vpop.f32.mrb[55].mxu1 }
 0x793   :  { %v9995_v20 = vpop.f32.mrb[8].mxu0 }
 0x794   :  { %v10189_v13 = vadd.f32 %v17207_v10, %v9995_v20  ;;  %v9997_v16 = vpop.f32.mrb[9].mxu0 }
 0x795   :  { %v10191_v51 = vadd.f32 %v17209_v41, %v9997_v16  ;;  %v9999_v39 = vpop.f32.mrb[10].mxu0 }
 0x796   :  { %v10267_v22 = vadd.f32 %v17275_v28, %v10189_v13  ;;  %v10193_v2 = vadd.f32 %v17211_v24, %v9999_v39  ;;  %v10001_v14 = vpop.f32.mrb[11].mxu0 }
 0x797   :  { %v10268_v50 = vadd.f32 %v17277_v27, %v10191_v51  ;;  %v10195_v37 = vadd.f32 %v17214_v7, %v10001_v14 }
 0x798   :  { %10299 = vst [vmem:[#allocation14 + $0x40] sm:$0xff] %v10267_v22  ;;  %v10269_v58 = vadd.f32 %v17275_v28, %v10193_v2 }
 0x799   :  { %10300 = vst [vmem:[#allocation14 + $0x48] sm:$0xff] %v10268_v50  ;;  %v10270_v23 = vadd.f32 %v17277_v27, %v10195_v37 }
 0x79a   :  { %10301 = vst [vmem:[#allocation14 + $0x50] sm:$0xff] %v10269_v58 }
 0x79b   :  { %10302 = vst [vmem:[#allocation14 + $0x58] sm:$0xff] %v10270_v23  ;;  %v10005_v10 = vpop.f32.mrb[12].mxu0 }
 0x79c   :  { %v10199_v41 = vadd.f32 %v17220_v59, %v10005_v10  ;;  %v10007_v4 = vpop.f32.mrb[13].mxu0 }
 0x79d   :  { %v10201_v45 = vadd.f32 %v17222_v33, %v10007_v4  ;;  %v10009_v24 = vpop.f32.mrb[14].mxu0 }
 0x79e   :  { %v10271_v19 = vadd.f32 %v17275_v28, %v10199_v41  ;;  %v10203_v36 = vadd.f32 %v17224_v9, %v10009_v24  ;;  %v10011_v7 = vpop.f32.mrb[15].mxu0 }
 0x79f   :  { %v10272_v32 = vadd.f32 %v17277_v27, %v10201_v45  ;;  %v10205_v47 = vadd.f32 %v17227_v54, %v10011_v7 }
 0x7a0   :  { %10303 = vst [vmem:[#allocation14 + $0x60] sm:$0xff] %v10271_v19  ;;  %v10273_v30 = vadd.f32 %v17275_v28, %v10203_v36 }
 0x7a1   :  { %10304 = vst [vmem:[#allocation14 + $0x68] sm:$0xff] %v10272_v32  ;;  %v10274_v18 = vadd.f32 %v17277_v27, %v10205_v47 }
 0x7a2   :  { %10305 = vst [vmem:[#allocation14 + $0x70] sm:$0xff] %v10273_v30 }
 0x7a3   :  { %10306 = vst [vmem:[#allocation14 + $0x78] sm:$0xff] %v10274_v18  ;;  %v10015_v59 = vpop.f32.mrb[16].mxu0 }
 0x7a4   :  { %v10209_v33 = vadd.f32 %v17233_v42, %v10015_v59  ;;  %v10017_v15 = vpop.f32.mrb[17].mxu0 }
 0x7a5   :  { %v10211_v25 = vadd.f32 %v17235_v8, %v10017_v15  ;;  %v10019_v9 = vpop.f32.mrb[18].mxu0 }
 0x7a6   :  { %v10275_v35 = vadd.f32 %v17275_v28, %v10209_v33  ;;  %v10213_v29 = vadd.f32 %v17237_v38, %v10019_v9  ;;  %v10021_v54 = vpop.f32.mrb[19].mxu0 }
 0x7a7   :  { %v10276_v26 = vadd.f32 %v17277_v27, %v10211_v25  ;;  %v10215_v21 = vadd.f32 %v17239_v60, %v10021_v54 }
 0x7a8   :  { %10307 = vst [vmem:[#allocation14 + $0x80] sm:$0xff] %v10275_v35  ;;  %v10277_v40 = vadd.f32 %v17275_v28, %v10213_v29 }
 0x7a9   :  { %10308 = vst [vmem:[#allocation14 + $0x88] sm:$0xff] %v10276_v26  ;;  %v10278_v17 = vadd.f32 %v17277_v27, %v10215_v21 }
 0x7aa   :  { %10309 = vst [vmem:[#allocation14 + $0x90] sm:$0xff] %v10277_v40 }
 0x7ab   :  { %10310 = vst [vmem:[#allocation14 + $0x98] sm:$0xff] %v10278_v17  ;;  %v10025_v42 = vpop.f32.mrb[20].mxu0 }
 0x7ac   :  { %v10219_v8 = vadd.f32 %v17242_v48, %v10025_v42  ;;  %v10027_v12 = vpop.f32.mrb[21].mxu0 }
 0x7ad   :  { %v10221_v46 = vadd.f32 %v17244_v44, %v10027_v12  ;;  %v10029_v38 = vpop.f32.mrb[22].mxu0 }
 0x7ae   :  { %v10279_v61 = vadd.f32 %v17275_v28, %v10219_v8  ;;  %v10223_v52 = vadd.f32 %v17246_v56, %v10029_v38  ;;  %v10031_v60 = vpop.f32.mrb[23].mxu0 }
 0x7af   :  { %v10280_v55 = vadd.f32 %v17277_v27, %v10221_v46  ;;  %v10225_v6 = vadd.f32 %v17248_v53, %v10031_v60 }
 0x7b0   :  { %10311 = vst [vmem:[#allocation14 + $0xa0] sm:$0xff] %v10279_v61  ;;  %v10281_v31 = vadd.f32 %v17275_v28, %v10223_v52 }
 0x7b1   :  { %10312 = vst [vmem:[#allocation14 + $0xa8] sm:$0xff] %v10280_v55  ;;  %v10282_v1 = vadd.f32 %v17277_v27, %v10225_v6 }
 0x7b2   :  { %10313 = vst [vmem:[#allocation14 + $0xb0] sm:$0xff] %v10281_v31 }
 0x7b3   :  { %10314 = vst [vmem:[#allocation14 + $0xb8] sm:$0xff] %v10282_v1  ;;  %v10035_v48 = vpop.f32.mrb[24].mxu0 }
 0x7b4   :  { %v10229_v44 = vadd.f32 %v17251_v11, %v10035_v48  ;;  %v10037_v3 = vpop.f32.mrb[25].mxu0 }
 0x7b5   :  { %v10231_v5 = vadd.f32 %v17253_v62, %v10037_v3  ;;  %v10039_v56 = vpop.f32.mrb[26].mxu0 }
 0x7b6   :  { %v10283_v20 = vadd.f32 %v17275_v28, %v10229_v44  ;;  %v10233_v13 = vadd.f32 %v17255_v0, %v10039_v56  ;;  %v10041_v53 = vpop.f32.mrb[27].mxu0 }
 0x7b7   :  { %v10284_v16 = vadd.f32 %v17277_v27, %v10231_v5  ;;  %v10235_v51 = vadd.f32 %v17260_v34, %v10041_v53 }
 0x7b8   :  { %10315 = vst [vmem:[#allocation14 + $0xc0] sm:$0xff] %v10283_v20  ;;  %v10285_v39 = vadd.f32 %v17275_v28, %v10233_v13 }
 0x7b9   :  { %10316 = vst [vmem:[#allocation14 + $0xc8] sm:$0xff] %v10284_v16  ;;  %v10286_v22 = vadd.f32 %v17277_v27, %v10235_v51 }
 0x7ba   :  { %10317 = vst [vmem:[#allocation14 + $0xd0] sm:$0xff] %v10285_v39 }
 0x7bb   :  { %10318 = vst [vmem:[#allocation14 + $0xd8] sm:$0xff] %v10286_v22  ;;  %v10045_v11 = vpop.f32.mrb[28].mxu0 }
 0x7bc   :  { %v10239_v62 = vadd.f32 %v17263_v57, %v10045_v11  ;;  %v10047_v2 = vpop.f32.mrb[29].mxu0 }
 0x7bd   :  { %v10241_v14 = vadd.f32 %v17265_v49, %v10047_v2  ;;  %v10049_v0 = vpop.f32.mrb[30].mxu0 }
 0x7be   :  { %v10287_v50 = vadd.f32 %v17275_v28, %v10239_v62  ;;  %v10243_v37 = vadd.f32 %v17267_v43, %v10049_v0  ;;  %v10051_v34 = vpop.f32.mrb[31].mxu0 }
 0x7bf   :  { %v10288_v58 = vadd.f32 %v17277_v27, %v10241_v14  ;;  %v10245_v23 = vadd.f32 %v17272_v63, %v10051_v34 }
 0x7c0   :  { %10319 = vst [vmem:[#allocation14 + $0xe0] sm:$0xff] %v10287_v50  ;;  %v10289_v10 = vadd.f32 %v17275_v28, %v10243_v37 }
 0x7c1   :  { %10320 = vst [vmem:[#allocation14 + $0xe8] sm:$0xff] %v10288_v58  ;;  %v10290_v41 = vadd.f32 %v17277_v27, %v10245_v23 }
 0x7c2   :  { %10321 = vst [vmem:[#allocation14 + $0xf0] sm:$0xff] %v10289_v10 }
 0x7c3   :  { %10322 = vst [vmem:[#allocation14 + $0xf8] sm:$0xff] %v10290_v41  ;;  %v10168_v57 = vpop.f32.mrb[0].mxu0 }
 0x7c4   :  { %v10259_v49 = vadd.f32 %v17275_v28, %v10168_v57  ;;  %v10170_v4 = vpop.f32.mrb[1].mxu0 }
 0x7c5   :  { %v10260_v45 = vadd.f32 %v17277_v27, %v10170_v4  ;;  %v10172_v43 = vpop.f32.mrb[2].mxu0 }
 0x7c6   :  { %10291 = vst [vmem:[#allocation14] sm:$0xff] %v10259_v49  ;;  %v10261_v24 = vadd.f32 %v17275_v28, %v10172_v43  ;;  %v10174_v19 = vpop.f32.mrb[3].mxu0 }
 0x7c7   :  { %10292 = vst [vmem:[#allocation14 + $0x8] sm:$0xff] %v10260_v45  ;;  %v10262_v63 = vadd.f32 %v17277_v27, %v10174_v19 }
 0x7c8   :  { %10293 = vst [vmem:[#allocation14 + $0x10] sm:$0xff] %v10261_v24 }
 0x7c9   :  { %10294 = vst [vmem:[#allocation14 + $0x18] sm:$0xff] %v10262_v63 }
 0x7cb   :  { %v10178_v36 = vpop.f32.mrb[4].mxu0 }
 0x7cc   :  { %v10263_v7 = vadd.f32 %v17275_v28, %v10178_v36  ;;  %v10180_v32 = vpop.f32.mrb[5].mxu0 }
 0x7cd   :  { %v10264_v47 = vadd.f32 %v17277_v27, %v10180_v32  ;;  %v10182_v30 = vpop.f32.mrb[6].mxu0 }
 0x7ce   :  { %10295 = vst [vmem:[#allocation14 + $0x20] sm:$0xff] %v10263_v7  ;;  %v10265_v18 = vadd.f32 %v17275_v28, %v10182_v30  ;;  %v10184_v59 = vpop.f32.mrb[7].mxu0 }
 0x7cf   :  { %10296 = vst [vmem:[#allocation14 + $0x28] sm:$0xff] %v10264_v47  ;;  %v10266_v33 = vadd.f32 %v17277_v27, %v10184_v59 }
 0x7d0   :  { %10297 = vst [vmem:[#allocation14 + $0x30] sm:$0xff] %v10265_v18 }
 0x7d1   :  { %10298 = vst [vmem:[#allocation14 + $0x38] sm:$0xff] %v10266_v33 }
 0x7d2   :  { %13972 = shalt.err (!%p13969_p2)
}
 0x7d3   :  { %s13973_s13 = scalar_lea.hbm %s17353_s6, 4096 }
 0x7d4   :  { %p13974_p3 = scmp.ne.s32.totalorder %s17353_s6, %s13973_s13  ;;  %p13977_p4 = scmp.lt.u32.totalorder %s13973_s13, %s17353_s6 }
 0x7d6   :  { %p13979_p5 = pnand %p13977_p4, %p13974_p3 }
 0x7d8   :  { %13982 = shalt.err (!%p13979_p5)
}
 0x7d9   :  { %s14003_s19 = smov 256   ;;  %s14004_s20 = smov 16  }
 0x7da   :  { %10334 = dma.vmem_to_hbm [thread:$0]  %s10329_s10, 4096, %s17353_s6, [#allocation7], %s14003_s19, %s14003_s19, %s14004_s20  }
 0x7db   :  { %13989 = dma.done.wait [#allocation7], 4096  }
 0x7dc   :  { %13990 = vsyncadd [#allocation7], 4294963200 }
 0x7dd   :  { %10338 = vsyncpa [#allocation6], 1 }
 0x7de   :  { %10339 = vsyncpa [#allocation9], 1 }
 0x7df   :  { %10340 = vsyncpa [#allocation12], 1 }
 0x7e0   :  { %10341 = vsyncpa [#allocation7], 1 }

</bundles_post_ra>
